<compile_context>
chip_gen: v6e
topology: v6e:2x2x1
jax: 0.10.0
libtpu: 0.0.40
codegen_flags: <defaults>
</compile_context>

<pallas_src>
import functools

import jax
import jax.numpy as jnp
from jax.experimental import pallas as pl
from jax.experimental.pallas import tpu as pltpu

_LANE = 128                               # vreg lane width
_TARGET_BLOCK_BYTES = 2 * 1024 * 1024     # ~2 MiB per block-buffer
_SUBLANE_PACK = 32                        # row granularity: safe for f32/bf16/int8/fp8 packing


def _lambda_kernel(fn, x_ref, o_ref):
    # Element-wise application of the wrapped fn on the current VMEM tile.
    o_ref[...] = fn(x_ref[...]).astype(o_ref.dtype)


def _choose_layout(n):
    """Pick a lane-dense 2D layout (cols, pad) for a flat length-n array."""
    for cols in (4096, 2048, 1024, 512, 256, 128):
        if n % cols == 0:
            return cols, 0
    # Ragged size: fall back to 128 lanes with a small tail pad.
    return _LANE, (-n) % _LANE


def pallas_lambda(fn):
    """JAX equivalent of PyTorch `Lambda(fn)` for element-wise, shape-preserving fn."""

    def apply(x):
        orig_shape = x.shape
        n = x.size

        # Output dtype follows fn (it may legitimately change dtype).
        out_dtype = jax.eval_shape(
            fn, jax.ShapeDtypeStruct(x.shape, x.dtype)
        ).dtype

        in_bytes = jnp.dtype(x.dtype).itemsize
        out_bytes = jnp.dtype(out_dtype).itemsize
        buf_bytes = max(in_bytes, out_bytes)

        # Tiny / single-block inputs: kernel dispatch + DMA setup dominates.
        elems_per_block = _TARGET_BLOCK_BYTES // buf_bytes
        if n <= elems_per_block:
            return fn(x)

        cols, n_pad = _choose_layout(n)
        flat = jnp.reshape(x, (n,))
        if n_pad:
            # TODO(synk): the zero padding (and Pallas' ragged-block padding)
            # is fed through fn; results are discarded, but fns undefined at 0
            # (log, 1/x) will produce NaN/inf only in the discarded tail.
            flat = jnp.concatenate([flat, jnp.zeros((n_pad,), dtype=x.dtype)])
        rows = flat.size // cols
        x2d = jnp.reshape(flat, (rows, cols))

        # Block rows: largest multiple of 32 that keeps one block <= ~2 MiB.
        rows_budget = max(
            _SUBLANE_PACK,
            (_TARGET_BLOCK_BYTES // (cols * buf_bytes)) // _SUBLANE_PACK * _SUBLANE_PACK,
        )
        rows_per_block = min(rows, rows_budget)

        grid = (pl.cdiv(rows, rows_per_block),)  # ragged last block masked by Pallas
        kernel = functools.partial(_lambda_kernel, fn)

        cost = pl.CostEstimate(
            flops=n,
            transcendentals=n,  # conservative upper bound for gelu/exp-like lambdas
            bytes_accessed=n * (in_bytes + out_bytes),
        )

        out2d = pl.pallas_call(
            kernel,
            out_shape=jax.ShapeDtypeStruct((rows, cols), out_dtype),
            grid_spec=pltpu.PrefetchScalarGridSpec(
                num_scalar_prefetch=0,
                grid=grid,
                in_specs=[pl.BlockSpec((rows_per_block, cols), lambda i: (i, 0))],
                out_specs=pl.BlockSpec((rows_per_block, cols), lambda i: (i, 0)),
            ),
            compiler_params=pltpu.CompilerParams(
                dimension_semantics=("parallel",),
            ),
            cost_estimate=cost,
        )(x2d)

        out_flat = jnp.reshape(out2d, (rows * cols,))
        if n_pad:
            out_flat = out_flat[:n]
        return jnp.reshape(out_flat, orig_shape)

    return apply


# TODO(synk): Lambda can also wrap non-elementwise fns (e.g. rearranges); those
# are handled in plain JAX glue by the caller, not inside this kernel.


if __name__ == "__main__":
    # Representative instantiation used in ptavit3d-style code:
    #   Lambda(lambda x: F.gelu(x))
    fn = jax.nn.gelu
    lam = pallas_lambda(fn)

    key = jax.random.PRNGKey(0)
    k1, k2, k3 = jax.random.split(key, 3)

    # Small NCHW input (matches the module-level demo shape).  Takes the
    # plain-JAX fast path by design (size << one block).
    x_small = jax.random.normal(k1, (2, 4, 16, 16), dtype=jnp.float32)
    y_small = lam(x_small)
    jax.block_until_ready(y_small)
    assert y_small.shape == x_small.shape and y_small.dtype == x_small.dtype
    assert jnp.allclose(y_small, fn(x_small), atol=1e-5, rtol=1e-5)

    # Larger NCDHW input (ptavit3d-style 3D tensor) — exercises the Pallas
    # kernel path: 1,048,576 elems -> (256, 4096) layout -> 2 grid steps of
    # 2 MiB lane-dense blocks.
    x_big = jax.random.normal(k2, (2, 16, 8, 64, 64), dtype=jnp.float32)
    y_big = lam(x_big)
    jax.block_until_ready(y_big)
    assert y_big.shape == x_big.shape and y_big.dtype == x_big.dtype
    assert jnp.allclose(y_big, fn(x_big), atol=1e-5, rtol=1e-5)

    # Ragged size (not a multiple of 128) — exercises the pad + tail-slice path.
    x_ragged = jax.random.normal(k3, (5, 11, 97, 101), dtype=jnp.float32)
    y_ragged = lam(x_ragged)
    jax.block_until_ready(y_ragged)
    assert y_ragged.shape == x_ragged.shape and y_ragged.dtype == x_ragged.dtype
    assert jnp.allclose(y_ragged, fn(x_ragged), atol=1e-5, rtol=1e-5)

    print("KERNEL_OK")
</pallas_src>

<mosaic_0001>
module attributes {stable_mosaic.version = 11 : i64} {
  func.func @_lambda_kernel(%arg0: i32, %arg1: memref<128x4096xf32, #tpu.memory_space<vmem>>, %arg2: memref<128x4096xf32, #tpu.memory_space<vmem>>) attributes {dimension_semantics = [#tpu.dimension_semantics<parallel>], iteration_bounds = array<i64: 2>, scalar_prefetch = 0 : i64, scratch_operands = 0 : i64, tpu.core_type = #tpu.core_type<tc>, window_params = [{transform_indices = @transform_0, window_bounds = array<i64: 128, 4096>}, {transform_indices = @transform_1, window_bounds = array<i64: 128, 4096>}]} {
    %c0 = arith.constant 0 : index
    %c0_0 = arith.constant 0 : index
    %0 = vector.load %arg1[%c0, %c0_0] : memref<128x4096xf32, #tpu.memory_space<vmem>>, vector<128x4096xf32>
    %1 = arith.mulf %0, %0 : vector<128x4096xf32>
    %2 = arith.mulf %0, %1 : vector<128x4096xf32>
    %cst = arith.constant 4.471500e-02 : f32
    %3 = vector.broadcast %cst : f32 to vector<128x4096xf32>
    %4 = arith.mulf %3, %2 : vector<128x4096xf32>
    %5 = arith.addf %0, %4 : vector<128x4096xf32>
    %cst_1 = arith.constant 0.797884583 : f32
    %6 = vector.broadcast %cst_1 : f32 to vector<128x4096xf32>
    %7 = arith.mulf %6, %5 : vector<128x4096xf32>
    %8 = math.tanh %7 : vector<128x4096xf32>
    %cst_2 = arith.constant 1.000000e+00 : f32
    %9 = vector.broadcast %cst_2 : f32 to vector<128x4096xf32>
    %10 = arith.addf %9, %8 : vector<128x4096xf32>
    %cst_3 = arith.constant 5.000000e-01 : f32
    %11 = vector.broadcast %cst_3 : f32 to vector<128x4096xf32>
    %12 = arith.mulf %11, %10 : vector<128x4096xf32>
    %13 = arith.mulf %0, %12 : vector<128x4096xf32>
    %c0_4 = arith.constant 0 : index
    %c0_5 = arith.constant 0 : index
    %14 = vector.load %arg2[%c0_4, %c0_5] : memref<128x4096xf32, #tpu.memory_space<vmem>>, vector<128x4096xf32>
    tpu.vector_store %arg2[%c0_4, %c0_5], %13 {strides = array<i32>} : memref<128x4096xf32, #tpu.memory_space<vmem>>, vector<128x4096xf32>,
    return
  }
  func.func @transform_0(%arg0: i32) -> (i32, i32) {
    %c0_i32 = arith.constant 0 : i32
    %c0_i32_0 = arith.constant 0 : i32
    return %arg0, %c0_i32 : i32, i32
  }
  func.func @transform_1(%arg0: i32) -> (i32, i32) {
    %c0_i32 = arith.constant 0 : i32
    %c0_i32_0 = arith.constant 0 : i32
    return %arg0, %c0_i32 : i32, i32
  }
}

</mosaic_0001>

<bundles_post_ra>
// kernel: tpu_custom_call.1
= control target key start
LH: loop header
LB: loop body
LE: loop exit
PB: predicated region body
PF: predicated region fallthrough
CT: control target
= control target key end

     0   :  { %6 = vsyncpa [#allocation3], 0  ;;  %s11833_s0 = inlined_call_operand.hbm [shape: f32[256,4096], index: 0, kind: input, shape index: {}]   ;;  %s11834_s1 = inlined_call_operand.hbm [shape: f32[256,4096], index: 1, kind: output, shape index: {}]  }
   0x1   :  { %8 = vsyncpa [#allocation3 + $0x1], 0 }
   0x2   :  { %9 = vsyncpa [#allocation4], 0 }
   0x3   :  { %11 = vsyncpa [#allocation4 + $0x1], 0  ;;  %s7062_s6 = smov 0   ;;  %s7064_s7 = smov 0  }
   0x4   :  { %s7066_s8 = smov 0   ;;  %s7068_s9 = smov 0  }
   0x5 LB: > { %s7083_s10 = sadd.s32 4294967295, %s7044_s9   ;;  %s5858_s11 = sadd.s32 4294967294, %s7044_s9   ;;  %s7044_s9 = sphi %s7068_s9, %s11849_s9   ;;  %s7040_s8 = sphi %s7066_s8, %s11848_s8   ;;  %s7036_s7 = sphi %s7064_s7, %s11847_s7   ;;  %s7032_s6 = sphi %s7062_s6, %s11846_s6  }
   0x6   : > { %s7087_s12 = sadd.s32 1, %s7044_s9   ;;  %s24_s13 = sadd.s32 1, %s7040_s8 }
   0x7   : > { %s21_s14 = ssub.s32 %s7044_s9, %s7087_s12  ;;  %p31_p0 = scmp.ne.s32.totalorder %s7040_s8, %s7036_s7 }
   0x8   : > { %p22_p1 = scmp.eq.s32.totalorder %s21_s14, 0  ;;  %p32_p2 = scmp.eq.s32.totalorder %s7044_s9, 0 }
   0x9   : > { %p37_p3 = scmp.ne.s32.totalorder %s7036_s7, %s7032_s6  ;;  %p38_p4 = scmp.eq.s32.totalorder %s7083_s10, 0 }
   0xa   : > { %s7099_s15 = scalar_select %p22_p1, %s7040_s8, %s24_s13  }
   0xb   : > { %p7101_p5 = por %p32_p2, %p31_p0  ;;  %p7105_p6 = por %p38_p4, %p37_p3 }
   0xc   : > { %p61_p7 = scmp.eq.s32.totalorder %s7083_s10, 1  ;;  %p67_p8 = scmp.eq.s32.totalorder %s5858_s11, 1 }
   0xd   : > { %s11838_s17 = scalar_select %p7105_p6, 1, 0 }
   0xe   : > { %p5890_p10 = scmp.lt.s32.totalorder %s7044_s9, 2  ;;  %p7112_p11 = por %p61_p7, %p31_p0 }
   0xf   : > { %p7116_p12 = por %p67_p8, %p37_p3  ;;  %s87_s20 = sand.u32 1, %s7040_s8  }
  0x10   : > { %s11839_s18 = scalar_select %p7112_p11, 1, 0 }
  0x11   : > { %s11840_s19 = scalar_select %p7116_p12, 1, 0 }
  0x12   : > { %s5875_s21 = sshll.u32 %s7044_s9, 16  ;;  %s5861_s22 = sshll.u32 %s87_s20, 12 }
  0x13   : > { %s7125_s25 = scalar_lea.hbm %s11833_s0, %s5875_s21  ;;  %s91_s26 = scalar_lea.vmem [#allocation2], %s5861_s22 }
  0x14   : > { %s99_s27 = sshll.u32 %s91_s26, 4  ;;  %p7129_p13 = pnand %p5890_p10, %p7101_p5  ;;  %s7133_s27 = int_to_ptr.vmem [resolvable:$true] %s99_s27 }
  0x15   : > { %s7135_s29 = scalar_lea.sflag [#allocation3], %s87_s20  ;;  %s6952_s30 = scalar_lea.hbm %s7125_s25, 65536 }
  0x16   : > { %p6953_p0 = scmp.ne.s32.totalorder %s7125_s25, %s6952_s30  ;;  %p6954_p1 = pneg %p7129_p13 }
  0x17   : > { %s6957_s4 = scalar_lea.hbm %s11833_s0, 131072  ;;  %p6958_p4 = scmp.lt.s32.totalorder %s7125_s25, %s11833_s0 }
  0x18   : > { %p6955_p2 = pnand %p6954_p1, %p6953_p0  ;;  %p6959_p5 = scmp.lt.s32.totalorder %s6957_s4, %s6952_s30 }
  0x1a   : > { %p6956_p3 = pneg %p6955_p2  ;;  %p6960_p7 = por %p6959_p5, %p6958_p4 }
  0x1c   : > { %p6961_p8 = pnand %p6960_p7, %p6956_p3 }
  0x1e   : > { %6964 = shalt.err (!%p6961_p8)
}
  0x1f   : > { %s6965_s13 = scalar_lea.vmem %s7133_s27, 65536  ;;  %s7046_s14 = smov [#allocation2]  }
  0x20   : > { %p6966_p10 = scmp.ne.s32.totalorder %s7133_s27, %s6965_s13  ;;  %s6970_s16 = sshll.u32 %s7046_s14, 4  ;;  %s6971_s16 = int_to_ptr.vmem [resolvable:$false] %s6970_s16 }
  0x21   : > { %s6972_s20 = scalar_lea.vmem %s6971_s16, 131072  ;;  %p6973_p2 = scmp.lt.s32.totalorder %s7133_s27, %s6971_s16 }
  0x22   : > { %p6968_p9 = pnand %p6966_p10, %p6954_p1  ;;  %p6974_p12 = scmp.lt.s32.totalorder %s6972_s20, %s6965_s13 }
  0x24   : > { %p6969_p0 = pneg %p6968_p9  ;;  %p6975_p11 = por %p6974_p12, %p6973_p2 }
  0x26   : > { %p6976_p6 = pnand %p6975_p11, %p6969_p0 }
  0x28   : > { %6979 = shalt.err (!%p6976_p6)
}
  0x29   : > { %s7047_s21 = smov 4096   ;;  %s7048_s22 = smov 256  }
  0x2a   : > { %5885 = dma.hbm_to_vmem [thread:$0]  (!%p7129_p13), %s7125_s25, 65536, %s7133_s27, %s7135_s29, %s7047_s21, %s7047_s21, %s7048_s22  }
  0x2b   : > { %p5865_p9 = scmp.ge.s32.totalorder %s7044_s9, 1  ;;  %p107_p1 = scmp.lt.s32.totalorder %s7044_s9, 3 }
  0x2d   : > { %p108_p3 = pnand %p5865_p9, %p107_p1 }
  0x2e   : > { %s7159_s23 = sand.u32 (!%p108_p3), 1, %s7036_s7   ;;  %p11842_p6 = scmp.ne.s32.totalorder (!%p108_p3), %s11838_s17, 0 }
  0x2f   : > { %111 = sbr.rel (%p108_p3) target bundleno = 1237 (0x4d5), region = 24  ;;  %s5866_s24 = sshll.u32 (!%p108_p3), %s7159_s23, 12 }
  0x30   : > { %s114_s26 = scalar_lea.sflag (!%p108_p3), [#allocation3], %s7159_s23  ;;  %s7165_s30 = scalar_lea.vmem (!%p108_p3), [#allocation2], %s5866_s24 }
  0x34   : > { %7023 = dma.done.wait (%p11842_p6), %s114_s26, 65536  }
  0x35   : > { %7025 = vsyncadd (%p11842_p6), %s114_s26, 4294901760  ;;  %v7172_v0 = vld [vmem:[%s7165_s30] sm:$0xff]  ;;  %v7175_v1 = vld [vmem:[%s7165_s30 + $0x8] sm:$0xff]  ;;  %s7311_s17 = scalar_lea.vmem [#allocation5], %s5866_s24  ;;  %s5877_s25 = sshll.u32 %s7083_s10, 16 }
  0x36   : > { %v7178_v2 = vld [vmem:[%s7165_s30 + $0x10] sm:$0xff]  ;;  %v650_v3 = vmul.f32 %v7172_v0, %v7172_v0  ;;  %v651_v4 = vmul.f32 %v7175_v1, %v7175_v1  ;;  %v7187_v6 = vld [vmem:[%s7165_s30 + $0x18] sm:$0xff]  ;;  %v7190_v7 = vld [vmem:[%s7165_s30 + $0x20] sm:$0xff]  ;;  %s5785_s27 = sshll.u32 %s7311_s17, 4  ;;  %s11784_s2 = scalar_lea.hbm %s11834_s1, %s5877_s25  ;;  %s11786_s27 = int_to_ptr.vmem [resolvable:$true] %s5785_s27 }
  0x37   : > { %v652_v5 = vmul.f32 %v7178_v2, %v7178_v2  ;;  %v7193_v8 = vld [vmem:[%s7165_s30 + $0x28] sm:$0xff]  ;;  %v653_v9 = vmul.f32 %v7187_v6, %v7187_v6  ;;  %v654_v10 = vmul.f32 %v7190_v7, %v7190_v7  ;;  %v7202_v12 = vld [vmem:[%s7165_s30 + $0x30] sm:$0xff]  ;;  %v7205_v13 = vld [vmem:[%s7165_s30 + $0x38] sm:$0xff]  ;;  %s5771_s10 = scalar_lea.sflag [#allocation4], %s7159_s23  ;;  %s6980_s3 = scalar_lea.vmem %s11786_s27, 65536 }
  0x38   : > { %v655_v11 = vmul.f32 %v7193_v8, %v7193_v8  ;;  %v1162_v14 = vmul.f32 %v650_v3, %v7172_v0  ;;  %v1163_v15 = vmul.f32 %v651_v4, %v7175_v1  ;;  %v656_v17 = vmul.f32 %v7202_v12, %v7202_v12  ;;  %v7223_v34 = vld [vmem:[%s7165_s30 + $0x40] sm:$0xff]  ;;  %v7226_v35 = vld [vmem:[%s7165_s30 + $0x48] sm:$0xff]  ;;  %v7232_v40 = vld [vmem:[%s7165_s30 + $0x50] sm:$0xff]  ;;  %p6981_p11 = scmp.ne.s32.totalorder %s11786_s27, %s6980_s3  ;;  %p11843_p12 = scmp.ne.s32.totalorder %s11839_s18, 0 }
  0x39   : > { %v1164_v16 = vmul.f32 %v652_v5, %v7178_v2  ;;  %v1165_v18 = vmul.f32 %v653_v9, %v7187_v6  ;;  %v1166_v19 = vmul.f32 %v654_v10, %v7190_v7  ;;  %v657_v21 = vmul.f32 %v7205_v13, %v7205_v13  ;;  %v7235_v41 = vld [vmem:[%s7165_s30 + $0x58] sm:$0xff]  ;;  %v7238_v42 = vld [vmem:[%s7165_s30 + $0x60] sm:$0xff]  ;;  %v7247_v54 = vld [vmem:[%s7165_s30 + $0x68] sm:$0xff]  ;;  %s7049_s4 = smov [#allocation5]  }
  0x3a   : > { %v1167_v20 = vmul.f32 %v655_v11, %v7193_v8  ;;  %v1674_v22 = vmul.f32 0.044715, %v1162_v14  ;;  %v1675_v23 = vmul.f32 0.044715, %v1163_v15  ;;  %v1168_v25 = vmul.f32 %v656_v17, %v7202_v12  ;;  %v7264_v14 = vld [vmem:[%s7165_s30 + $0x70] sm:$0xff]  ;;  %p6982_p13 = pnand %p6981_p11, %p11843_p12  ;;  %s6984_s5 = sshll.u32 %s7049_s4, 4  ;;  %s6985_s5 = int_to_ptr.vmem [resolvable:$false] %s6984_s5 }
  0x3b   : > { %v1676_v24 = vmul.f32 0.044715, %v1164_v16  ;;  %v1677_v26 = vmul.f32 0.044715, %v1165_v18  ;;  %v1678_v27 = vmul.f32 0.044715, %v1166_v19  ;;  %v1169_v29 = vmul.f32 %v657_v21, %v7205_v13  ;;  %p6987_p5 = scmp.lt.s32.totalorder %s11786_s27, %s6985_s5 }
  0x3c   : > { %v1679_v28 = vmul.f32 0.044715, %v1167_v20  ;;  %v2186_v30 = vadd.f32 %v1674_v22, %v7172_v0  ;;  %v2187_v31 = vadd.f32 %v1675_v23, %v7175_v1  ;;  %v1680_v33 = vmul.f32 0.044715, %v1168_v25  ;;  %v7269_v18 = vld [vmem:[%s7165_s30 + $0x78] sm:$0xff]  ;;  %v7274_v22 = vld [vmem:[%s7165_s30 + $0x80] sm:$0xff]  ;;  %p6983_p4 = pneg %p6982_p13 }
  0x3d   : > { %v2188_v32 = vadd.f32 %v1676_v24, %v7178_v2  ;;  %v2189_v36 = vadd.f32 %v1677_v26, %v7187_v6  ;;  %v2190_v37 = vadd.f32 %v1678_v27, %v7190_v7  ;;  %v1681_v39 = vmul.f32 0.044715, %v1169_v29  ;;  %v7280_v27 = vld [vmem:[%s7165_s30 + $0x88] sm:$0xff]  ;;  %s6986_s11 = scalar_lea.vmem %s6985_s5, 131072 }
  0x3e   : > { %v2191_v38 = vadd.f32 %v1679_v28, %v7193_v8  ;;  %v2698_v43 = vmul.f32 0.7978846, %v2186_v30  ;;  %v2699_v44 = vmul.f32 0.7978846, %v2187_v31  ;;  %v2192_v46 = vadd.f32 %v1680_v33, %v7202_v12  ;;  %p6988_p7 = scmp.lt.s32.totalorder %s6986_s11, %s6980_s3 }
  0x3f   : > { %v2700_v45 = vmul.f32 0.7978846, %v2188_v32  ;;  %v2701_v47 = vmul.f32 0.7978846, %v2189_v36  ;;  %v2702_v48 = vmul.f32 0.7978846, %v2190_v37  ;;  %v2193_v50 = vadd.f32 %v1681_v39, %v7205_v13 }
  0x40   : > { %v2703_v49 = vmul.f32 0.7978846, %v2191_v38  ;;  %5928 = vtanh.f32 %v2698_v43  ;;  %v2704_v51 = vmul.f32 0.7978846, %v2192_v46  ;;  %v658_v52 = vmul.f32 %v7223_v34, %v7223_v34  ;;  %v7286_v32 = vld [vmem:[%s7165_s30 + $0x90] sm:$0xff]  ;;  %v7292_v38 = vld [vmem:[%s7165_s30 + $0x98] sm:$0xff]  ;;  %p6989_p8 = por %p6988_p7, %p6987_p5 }
  0x41   : > { %v659_v53 = vmul.f32 %v7226_v35, %v7226_v35  ;;  %5930 = vtanh.f32 %v2699_v44  ;;  %v2705_v55 = vmul.f32 0.7978846, %v2193_v50  ;;  %v660_v56 = vmul.f32 %v7232_v40, %v7232_v40 }
  0x42   : > { %v661_v57 = vmul.f32 %v7235_v41, %v7235_v41  ;;  %5932 = vtanh.f32 %v2700_v45  ;;  %v1170_v58 = vmul.f32 %v658_v52, %v7223_v34  ;;  %v662_v60 = vmul.f32 %v7238_v42, %v7238_v42  ;;  %p6990_p10 = pnand %p6989_p8, %p6983_p4 }
  0x43   : > { %v1171_v59 = vmul.f32 %v659_v53, %v7226_v35  ;;  %5934 = vtanh.f32 %v2701_v47  ;;  %v1172_v61 = vmul.f32 %v660_v56, %v7232_v40  ;;  %v663_v63 = vmul.f32 %v7247_v54, %v7247_v54 }
  0x44   : > { %v1173_v62 = vmul.f32 %v661_v57, %v7235_v41  ;;  %5936 = vtanh.f32 %v2702_v48  ;;  %v1682_v3 = vmul.f32 0.044715, %v1170_v58  ;;  %v1174_v5 = vmul.f32 %v662_v60, %v7238_v42 }
  0x45   : > { %v1683_v4 = vmul.f32 0.044715, %v1171_v59  ;;  %5938 = vtanh.f32 %v2703_v49  ;;  %v1684_v9 = vmul.f32 0.044715, %v1172_v61  ;;  %v1175_v11 = vmul.f32 %v663_v63, %v7247_v54 }
  0x46   : > { %v1685_v10 = vmul.f32 0.044715, %v1173_v62  ;;  %5940 = vtanh.f32 %v2704_v51  ;;  %v2194_v15 = vadd.f32 %v1682_v3, %v7223_v34  ;;  %v1686_v17 = vmul.f32 0.044715, %v1174_v5 }
  0x47   : > { %v2195_v16 = vadd.f32 %v1683_v4, %v7226_v35  ;;  %5942 = vtanh.f32 %v2705_v55  ;;  %v2196_v19 = vadd.f32 %v1684_v9, %v7232_v40  ;;  %v1687_v21 = vmul.f32 0.044715, %v1175_v11 }
  0x48   : > { %v2197_v20 = vadd.f32 %v1685_v10, %v7235_v41  ;;  %v2706_v23 = vmul.f32 0.7978846, %v2194_v15  ;;  %v2198_v25 = vadd.f32 %v1686_v17, %v7238_v42  ;;  %v664_v26 = vmul.f32 %v7264_v14, %v7264_v14 }
  0x49   : > { %v2707_v24 = vmul.f32 0.7978846, %v2195_v16  ;;  %v2708_v28 = vmul.f32 0.7978846, %v2196_v19  ;;  %v2199_v30 = vadd.f32 %v1687_v21, %v7247_v54  ;;  %v665_v31 = vmul.f32 %v7269_v18, %v7269_v18 }
  0x4a   : > { %v2709_v29 = vmul.f32 0.7978846, %v2197_v20  ;;  %5944 = vtanh.f32 %v2706_v23  ;;  %v2710_v33 = vmul.f32 0.7978846, %v2198_v25  ;;  %v1176_v36 = vmul.f32 %v664_v26, %v7264_v14 }
  0x4b   : > { %v666_v37 = vmul.f32 %v7274_v22, %v7274_v22  ;;  %5946 = vtanh.f32 %v2707_v24  ;;  %v2711_v39 = vmul.f32 0.7978846, %v2199_v30  ;;  %v1177_v43 = vmul.f32 %v665_v31, %v7269_v18 }
  0x4c   : > { %v667_v44 = vmul.f32 %v7280_v27, %v7280_v27  ;;  %5948 = vtanh.f32 %v2708_v28  ;;  %v1688_v45 = vmul.f32 0.044715, %v1176_v36  ;;  %v668_v47 = vmul.f32 %v7286_v32, %v7286_v32 }
  0x4d   : > { %v1178_v46 = vmul.f32 %v666_v37, %v7274_v22  ;;  %v5929_v48 = vpop.eup %5928  ;;  %5950 = vtanh.f32 %v2709_v29  ;;  %v1689_v49 = vmul.f32 0.044715, %v1177_v43  ;;  %v669_v51 = vmul.f32 %v7292_v38, %v7292_v38  ;;  %v7318_v37 = vld [vmem:[%s7165_s30 + $0xa0] sm:$0xff] }
  0x4e   : > { %v1179_v50 = vmul.f32 %v667_v44, %v7280_v27  ;;  %v5931_v52 = vpop.eup %5930  ;;  %v3722_v53 = vadd.f32 1.0, %v5929_v48  ;;  %5952 = vtanh.f32 %v2710_v33  ;;  %v2200_v55 = vadd.f32 %v1688_v45, %v7264_v14  ;;  %v7324_v44 = vld [vmem:[%s7165_s30 + $0xa8] sm:$0xff] }
  0x4f   : > { %v1690_v56 = vmul.f32 0.044715, %v1178_v46  ;;  %v5933_v57 = vpop.eup %5932  ;;  %v3723_v58 = vadd.f32 1.0, %v5931_v52  ;;  %5954 = vtanh.f32 %v2711_v39  ;;  %v2201_v59 = vadd.f32 %v1689_v49, %v7269_v18 }
  0x50   : > { %v1691_v60 = vmul.f32 0.044715, %v1179_v50  ;;  %v5935_v61 = vpop.eup %5934  ;;  %v4234_v62 = vmul.f32 0.5, %v3722_v53  ;;  %v3724_v63 = vadd.f32 1.0, %v5933_v57  ;;  %v2712_v3 = vmul.f32 0.7978846, %v2200_v55 }
  0x51   : > { %v2202_v4 = vadd.f32 %v1690_v56, %v7274_v22  ;;  %v5937_v5 = vpop.eup %5936  ;;  %v4235_v9 = vmul.f32 0.5, %v3723_v58  ;;  %v3725_v10 = vadd.f32 1.0, %v5935_v61  ;;  %v2713_v11 = vmul.f32 0.7978846, %v2201_v59 }
  0x52   : > { %v2203_v15 = vadd.f32 %v1691_v60, %v7280_v27  ;;  %v5939_v16 = vpop.eup %5938  ;;  %v4746_v17 = vmul.f32 %v4234_v62, %v7172_v0  ;;  %v4236_v19 = vmul.f32 0.5, %v3724_v63  ;;  %v3726_v20 = vadd.f32 1.0, %v5937_v5 }
  0x53   : > { %5956 = vtanh.f32 %v2712_v3  ;;  %v5941_v21 = vpop.eup %5940  ;;  %v4747_v23 = vmul.f32 %v4235_v9, %v7175_v1  ;;  %v4237_v24 = vmul.f32 0.5, %v3725_v10  ;;  %v3727_v25 = vadd.f32 1.0, %v5939_v16 }
  0x54   : > { %5958 = vtanh.f32 %v2713_v11  ;;  %v5943_v26 = vpop.eup %5942  ;;  %5258 = vst [vmem:[%s7311_s17] sm:$0xff] %v4746_v17  ;;  %v4748_v0 = vmul.f32 %v4236_v19, %v7178_v2  ;;  %v4238_v28 = vmul.f32 0.5, %v3726_v20  ;;  %v3728_v29 = vadd.f32 1.0, %v5941_v21  ;;  %v7346_v20 = vld [vmem:[%s7165_s30 + $0xb0] sm:$0xff] }
  0x55   : > { %v2714_v30 = vmul.f32 0.7978846, %v2202_v4  ;;  %5259 = vst [vmem:[%s7311_s17 + $0x8] sm:$0xff] %v4747_v23  ;;  %v4749_v1 = vmul.f32 %v4237_v24, %v7187_v6  ;;  %v4239_v31 = vmul.f32 0.5, %v3727_v25  ;;  %v3729_v33 = vadd.f32 1.0, %v5943_v26  ;;  %v7351_v24 = vld [vmem:[%s7165_s30 + $0xb8] sm:$0xff] }
  0x56   : > { %v2715_v36 = vmul.f32 0.7978846, %v2203_v15  ;;  %5260 = vst [vmem:[%s7311_s17 + $0x10] sm:$0xff] %v4748_v0  ;;  %v4750_v39 = vmul.f32 %v4238_v28, %v7190_v7  ;;  %v4240_v43 = vmul.f32 0.5, %v3728_v29  ;;  %v1180_v2 = vmul.f32 %v668_v47, %v7286_v32  ;;  %v7356_v28 = vld [vmem:[%s7165_s30 + $0xc0] sm:$0xff] }
  0x57   : > { %5960 = vtanh.f32 %v2714_v30  ;;  %v5945_v45 = vpop.eup %5944  ;;  %5261 = vst [vmem:[%s7311_s17 + $0x18] sm:$0xff] %v4749_v1  ;;  %v4751_v6 = vmul.f32 %v4239_v31, %v7193_v8  ;;  %v4241_v46 = vmul.f32 0.5, %v3729_v33  ;;  %v1181_v48 = vmul.f32 %v669_v51, %v7292_v38  ;;  %v7364_v33 = vld [vmem:[%s7165_s30 + $0xc8] sm:$0xff] }
  0x58   : > { %5962 = vtanh.f32 %v2715_v36  ;;  %v5947_v49 = vpop.eup %5946  ;;  %5262 = vst [vmem:[%s7311_s17 + $0x20] sm:$0xff] %v4750_v39  ;;  %v4752_v7 = vmul.f32 %v4240_v43, %v7202_v12  ;;  %v3730_v50 = vadd.f32 1.0, %v5945_v45  ;;  %v1692_v52 = vmul.f32 0.044715, %v1180_v2 }
  0x59   : > { %v670_v47 = vmul.f32 %v7318_v37, %v7318_v37  ;;  %v5949_v53 = vpop.eup %5948  ;;  %5263 = vst [vmem:[%s7311_s17 + $0x28] sm:$0xff] %v4751_v6  ;;  %v4753_v55 = vmul.f32 %v4241_v46, %v7205_v13  ;;  %v3731_v8 = vadd.f32 1.0, %v5947_v49  ;;  %v1693_v56 = vmul.f32 0.044715, %v1181_v48 }
  0x5a   : > { %v671_v57 = vmul.f32 %v7324_v44, %v7324_v44  ;;  %v5951_v51 = vpop.eup %5950  ;;  %5264 = vst [vmem:[%s7311_s17 + $0x30] sm:$0xff] %v4752_v7  ;;  %v4242_v58 = vmul.f32 0.5, %v3730_v50  ;;  %v3732_v59 = vadd.f32 1.0, %v5949_v53  ;;  %v2204_v12 = vadd.f32 %v1692_v52, %v7286_v32 }
  0x5b   : > { %v1182_v60 = vmul.f32 %v670_v47, %v7318_v37  ;;  %v5953_v61 = vpop.eup %5952  ;;  %5265 = vst [vmem:[%s7311_s17 + $0x38] sm:$0xff] %v4753_v55  ;;  %v4243_v62 = vmul.f32 0.5, %v3731_v8  ;;  %v3733_v63 = vadd.f32 1.0, %v5951_v51  ;;  %v2205_v13 = vadd.f32 %v1693_v56, %v7292_v38  ;;  %v7381_v55 = vld [vmem:[%s7165_s30 + $0xd0] sm:$0xff]  ;;  %v7384_v8 = vld [vmem:[%s7165_s30 + $0xd8] sm:$0xff] }
  0x5c   : > { %v1183_v3 = vmul.f32 %v671_v57, %v7324_v44  ;;  %v5955_v4 = vpop.eup %5954  ;;  %v4754_v5 = vmul.f32 %v4242_v58, %v7223_v34  ;;  %v4244_v9 = vmul.f32 0.5, %v3732_v59  ;;  %v3734_v10 = vadd.f32 1.0, %v5953_v61 }
  0x5d   : > { %v2716_v11 = vmul.f32 0.7978846, %v2204_v12  ;;  %v4755_v15 = vmul.f32 %v4243_v62, %v7226_v35  ;;  %v4245_v16 = vmul.f32 0.5, %v3733_v63  ;;  %v3735_v17 = vadd.f32 1.0, %v5955_v4  ;;  %v7398_v63 = vld [vmem:[%s7165_s30 + $0xe0] sm:$0xff] }
  0x5e   : > { %v2717_v19 = vmul.f32 0.7978846, %v2205_v13  ;;  %5266 = vst [vmem:[%s7311_s17 + $0x40] sm:$0xff] %v4754_v5  ;;  %v4756_v21 = vmul.f32 %v4244_v9, %v7232_v40  ;;  %v4246_v23 = vmul.f32 0.5, %v3734_v10  ;;  %v1694_v34 = vmul.f32 0.044715, %v1182_v60 }
  0x5f   : > { %5964 = vtanh.f32 %v2716_v11  ;;  %5267 = vst [vmem:[%s7311_s17 + $0x48] sm:$0xff] %v4755_v15  ;;  %v4757_v35 = vmul.f32 %v4245_v16, %v7235_v41  ;;  %v4247_v26 = vmul.f32 0.5, %v3735_v17  ;;  %v1695_v0 = vmul.f32 0.044715, %v1183_v3  ;;  %v7401_v13 = vld [vmem:[%s7165_s30 + $0xe8] sm:$0xff] }
  0x60   : > { %v5957_v25 = vpop.eup %5956  ;;  %5966 = vtanh.f32 %v2717_v19  ;;  %5268 = vst [vmem:[%s7311_s17 + $0x50] sm:$0xff] %v4756_v21  ;;  %v4758_v40 = vmul.f32 %v4246_v23, %v7238_v42  ;;  %v2206_v1 = vadd.f32 %v1694_v34, %v7318_v37  ;;  %v672_v31 = vmul.f32 %v7346_v20, %v7346_v20 }
  0x61   : > { %v5959_v29 = vpop.eup %5958  ;;  %v3736_v30 = vadd.f32 1.0, %v5957_v25  ;;  %5269 = vst [vmem:[%s7311_s17 + $0x58] sm:$0xff] %v4757_v35  ;;  %v4759_v41 = vmul.f32 %v4247_v26, %v7247_v54  ;;  %v2207_v39 = vadd.f32 %v1695_v0, %v7324_v44  ;;  %v673_v43 = vmul.f32 %v7351_v24, %v7351_v24  ;;  %v7416_v25 = vld [vmem:[%s7165_s30 + $0xf0] sm:$0xff] }
  0x62   : > { %v3737_v36 = vadd.f32 1.0, %v5959_v29  ;;  %5270 = vst [vmem:[%s7311_s17 + $0x60] sm:$0xff] %v4758_v40  ;;  %v2718_v2 = vmul.f32 0.7978846, %v2206_v1  ;;  %v1184_v45 = vmul.f32 %v672_v31, %v7346_v20  ;;  %v674_v6 = vmul.f32 %v7356_v28, %v7356_v28 }
  0x63   : > { %v4248_v42 = vmul.f32 0.5, %v3736_v30  ;;  %5271 = vst [vmem:[%s7311_s17 + $0x68] sm:$0xff] %v4759_v41  ;;  %v2719_v48 = vmul.f32 0.7978846, %v2207_v39  ;;  %v1185_v49 = vmul.f32 %v673_v43, %v7351_v24  ;;  %v675_v7 = vmul.f32 %v7364_v33, %v7364_v33 }
  0x64   : > { %v5961_v46 = vpop.eup %5960  ;;  %v4249_v54 = vmul.f32 0.5, %v3737_v36  ;;  %5968 = vtanh.f32 %v2718_v2  ;;  %v1696_v53 = vmul.f32 0.044715, %v1184_v45  ;;  %v676_v62 = vmul.f32 %v7381_v55, %v7381_v55  ;;  %v7428_v2 = vld [vmem:[%s7165_s30 + $0x100] sm:$0xff] }
  0x65   : > { %v5963_v50 = vpop.eup %5962  ;;  %v4760_v52 = vmul.f32 %v4248_v42, %v7264_v14  ;;  %v3738_v47 = vadd.f32 1.0, %v5961_v46  ;;  %5970 = vtanh.f32 %v2719_v48  ;;  %v1697_v51 = vmul.f32 0.044715, %v1185_v49  ;;  %v7425_v42 = vld [vmem:[%s7165_s30 + $0xf8] sm:$0xff] }
  0x66   : > { %v4761_v56 = vmul.f32 %v4249_v54, %v7269_v18  ;;  %v3739_v57 = vadd.f32 1.0, %v5963_v50  ;;  %v2208_v59 = vadd.f32 %v1696_v53, %v7346_v20  ;;  %v1186_v14 = vmul.f32 %v674_v6, %v7356_v28 }
  0x67   : > { %5272 = vst [vmem:[%s7311_s17 + $0x70] sm:$0xff] %v4760_v52  ;;  %v4250_v58 = vmul.f32 0.5, %v3738_v47  ;;  %v1187_v12 = vmul.f32 %v675_v7, %v7364_v33  ;;  %v2209_v61 = vadd.f32 %v1697_v51, %v7351_v24  ;;  %v677_v18 = vmul.f32 %v7384_v8, %v7384_v8 }
  0x68   : > { %5273 = vst [vmem:[%s7311_s17 + $0x78] sm:$0xff] %v4761_v56  ;;  %v4251_v60 = vmul.f32 0.5, %v3739_v57  ;;  %v2720_v4 = vmul.f32 0.7978846, %v2208_v59  ;;  %v1698_v5 = vmul.f32 0.044715, %v1186_v14  ;;  %v1188_v15 = vmul.f32 %v676_v62, %v7381_v55 }
  0x69   : > { %v4762_v3 = vmul.f32 %v4250_v58, %v7274_v22  ;;  %v1699_v9 = vmul.f32 0.044715, %v1187_v12  ;;  %v2721_v11 = vmul.f32 0.7978846, %v2209_v61  ;;  %v1189_v16 = vmul.f32 %v677_v18, %v7384_v8  ;;  %v7439_v56 = vld [vmem:[%s7165_s30 + $0x108] sm:$0xff] }
  0x6a   : > { %v4763_v10 = vmul.f32 %v4251_v60, %v7280_v27  ;;  %5972 = vtanh.f32 %v2720_v4  ;;  %v2210_v17 = vadd.f32 %v1698_v5, %v7356_v28  ;;  %v678_v22 = vmul.f32 %v7398_v63, %v7398_v63  ;;  %v7447_v60 = vld [vmem:[%s7165_s30 + $0x110] sm:$0xff] }
  0x6b   : > { %5274 = vst [vmem:[%s7311_s17 + $0x80] sm:$0xff] %v4762_v3  ;;  %v2211_v19 = vadd.f32 %v1699_v9, %v7364_v33  ;;  %5974 = vtanh.f32 %v2721_v11  ;;  %v1700_v23 = vmul.f32 0.044715, %v1188_v15  ;;  %v1701_v34 = vmul.f32 0.044715, %v1189_v16 }
  0x6c   : > { %v5965_v21 = vpop.eup %5964  ;;  %5275 = vst [vmem:[%s7311_s17 + $0x88] sm:$0xff] %v4763_v10  ;;  %v679_v27 = vmul.f32 %v7401_v13, %v7401_v13  ;;  %v2722_v0 = vmul.f32 0.7978846, %v2210_v17  ;;  %v1190_v40 = vmul.f32 %v678_v22, %v7398_v63  ;;  %v680_v43 = vmul.f32 %v7416_v25, %v7416_v25  ;;  %v7453_v10 = vld [vmem:[%s7165_s30 + $0x118] sm:$0xff] }
  0x6d   : > { %v5967_v35 = vpop.eup %5966  ;;  %v3740_v26 = vadd.f32 1.0, %v5965_v21  ;;  %v2723_v29 = vmul.f32 0.7978846, %v2211_v19  ;;  %v2212_v1 = vadd.f32 %v1700_v23, %v7381_v55  ;;  %v2213_v31 = vadd.f32 %v1701_v34, %v7384_v8 }
  0x6e   : > { %v3741_v30 = vadd.f32 1.0, %v5967_v35  ;;  %v1191_v41 = vmul.f32 %v679_v27, %v7401_v13  ;;  %5976 = vtanh.f32 %v2722_v0  ;;  %v1702_v39 = vmul.f32 0.044715, %v1190_v40  ;;  %v7467_v0 = vld [vmem:[%s7165_s30 + $0x120] sm:$0xff] }
  0x6f   : > { %v4252_v36 = vmul.f32 0.5, %v3740_v26  ;;  %5978 = vtanh.f32 %v2723_v29  ;;  %v2724_v6 = vmul.f32 0.7978846, %v2212_v1  ;;  %v2725_v46 = vmul.f32 0.7978846, %v2213_v31  ;;  %v7470_v29 = vld [vmem:[%s7165_s30 + $0x128] sm:$0xff] }
  0x70   : > { %v4253_v45 = vmul.f32 0.5, %v3741_v30  ;;  %v2214_v48 = vadd.f32 %v1702_v39, %v7398_v63  ;;  %v1703_v49 = vmul.f32 0.044715, %v1191_v41  ;;  %v1192_v7 = vmul.f32 %v680_v43, %v7416_v25 }
  0x71   : > { %v4764_v54 = vmul.f32 %v4252_v36, %v7286_v32  ;;  %v5969_v50 = vpop.eup %5968  ;;  %5980 = vtanh.f32 %v2724_v6  ;;  %v681_v47 = vmul.f32 %v7425_v42, %v7425_v42  ;;  %v682_v53 = vmul.f32 %v7428_v2, %v7428_v2 }
  0x72   : > { %v4765_v52 = vmul.f32 %v4253_v45, %v7292_v38  ;;  %v5971_v32 = vpop.eup %5970  ;;  %v3742_v57 = vadd.f32 1.0, %v5969_v50  ;;  %5982 = vtanh.f32 %v2725_v46  ;;  %v2726_v51 = vmul.f32 0.7978846, %v2214_v48 }
  0x73   : > { %5276 = vst [vmem:[%s7311_s17 + $0x90] sm:$0xff] %v4764_v54  ;;  %v2215_v58 = vadd.f32 %v1703_v49, %v7401_v13  ;;  %v3743_v38 = vadd.f32 1.0, %v5971_v32  ;;  %v1704_v59 = vmul.f32 0.044715, %v1192_v7  ;;  %v1193_v14 = vmul.f32 %v681_v47, %v7425_v42 }
  0x74   : > { %5277 = vst [vmem:[%s7311_s17 + $0x98] sm:$0xff] %v4765_v52  ;;  %v1194_v12 = vmul.f32 %v682_v53, %v7428_v2  ;;  %v4254_v61 = vmul.f32 0.5, %v3742_v57  ;;  %5984 = vtanh.f32 %v2726_v51  ;;  %v683_v18 = vmul.f32 %v7439_v56, %v7439_v56 }
  0x75   : > { %v2727_v62 = vmul.f32 0.7978846, %v2215_v58  ;;  %v4255_v3 = vmul.f32 0.5, %v3743_v38  ;;  %v2216_v4 = vadd.f32 %v1704_v59, %v7416_v25  ;;  %v1705_v5 = vmul.f32 0.044715, %v1193_v14  ;;  %v7488_v14 = vld [vmem:[%s7165_s30 + $0x130] sm:$0xff] }
  0x76   : > { %v1706_v9 = vmul.f32 0.044715, %v1194_v12  ;;  %v4766_v11 = vmul.f32 %v4254_v61, %v7318_v37  ;;  %v1195_v15 = vmul.f32 %v683_v18, %v7439_v56  ;;  %v684_v16 = vmul.f32 %v7447_v60, %v7447_v60 }
  0x77   : > { %5986 = vtanh.f32 %v2727_v62  ;;  %v5973_v17 = vpop.eup %5972  ;;  %v4767_v19 = vmul.f32 %v4255_v3, %v7324_v44  ;;  %v2728_v22 = vmul.f32 0.7978846, %v2216_v4  ;;  %v2217_v21 = vadd.f32 %v1705_v5, %v7425_v42  ;;  %v7492_v3 = vld [vmem:[%s7165_s30 + $0x138] sm:$0xff] }
  0x78   : > { %v2218_v23 = vadd.f32 %v1706_v9, %v7428_v2  ;;  %v5975_v34 = vpop.eup %5974  ;;  %5278 = vst [vmem:[%s7311_s17 + $0xa0] sm:$0xff] %v4766_v11  ;;  %v3744_v27 = vadd.f32 1.0, %v5973_v17  ;;  %v1707_v37 = vmul.f32 0.044715, %v1195_v15  ;;  %v1196_v35 = vmul.f32 %v684_v16, %v7447_v60 }
  0x79   : > { %v685_v26 = vmul.f32 %v7453_v10, %v7453_v10  ;;  %5279 = vst [vmem:[%s7311_s17 + $0xa8] sm:$0xff] %v4767_v19  ;;  %v3745_v44 = vadd.f32 1.0, %v5975_v34  ;;  %5988 = vtanh.f32 %v2728_v22  ;;  %v2729_v40 = vmul.f32 0.7978846, %v2217_v21  ;;  %v7499_v19 = vld [vmem:[%s7165_s30 + $0x140] sm:$0xff]  ;;  %v7508_v34 = vld [vmem:[%s7165_s30 + $0x148] sm:$0xff] }
  0x7a   : > { %v2730_v30 = vmul.f32 0.7978846, %v2218_v23  ;;  %v4256_v1 = vmul.f32 0.5, %v3744_v27  ;;  %v2219_v31 = vadd.f32 %v1707_v37, %v7439_v56  ;;  %v1708_v41 = vmul.f32 0.044715, %v1196_v35 }
  0x7b   : > { %v1197_v36 = vmul.f32 %v685_v26, %v7453_v10  ;;  %v5977_v39 = vpop.eup %5976  ;;  %v4257_v43 = vmul.f32 0.5, %v3745_v44  ;;  %5990 = vtanh.f32 %v2729_v40  ;;  %v686_v45 = vmul.f32 %v7467_v0, %v7467_v0 }
  0x7c   : > { %v687_v6 = vmul.f32 %v7470_v29, %v7470_v29  ;;  %v5979_v46 = vpop.eup %5978  ;;  %v4768_v54 = vmul.f32 %v4256_v1, %v7346_v20  ;;  %v3746_v48 = vadd.f32 1.0, %v5977_v39  ;;  %5992 = vtanh.f32 %v2730_v30  ;;  %v7517_v1 = vld [vmem:[%s7165_s30 + $0x150] sm:$0xff] }
  0x7d   : > { %v2731_v49 = vmul.f32 0.7978846, %v2219_v31  ;;  %v4769_v7 = vmul.f32 %v4257_v43, %v7351_v24  ;;  %v3747_v50 = vadd.f32 1.0, %v5979_v46  ;;  %v2220_v52 = vadd.f32 %v1708_v41, %v7447_v60 }
  0x7e   : > { %v1709_v47 = vmul.f32 0.044715, %v1197_v36  ;;  %v5981_v53 = vpop.eup %5980  ;;  %5280 = vst [vmem:[%s7311_s17 + $0xb0] sm:$0xff] %v4768_v54  ;;  %v4258_v32 = vmul.f32 0.5, %v3746_v48  ;;  %v1198_v57 = vmul.f32 %v686_v45, %v7467_v0  ;;  %v1199_v51 = vmul.f32 %v687_v6, %v7470_v29 }
  0x7f   : > { %5994 = vtanh.f32 %v2731_v49  ;;  %v5983_v20 = vpop.eup %5982  ;;  %5281 = vst [vmem:[%s7311_s17 + $0xb8] sm:$0xff] %v4769_v7  ;;  %v4259_v58 = vmul.f32 0.5, %v3747_v50  ;;  %v3748_v38 = vadd.f32 1.0, %v5981_v53  ;;  %v2732_v24 = vmul.f32 0.7978846, %v2220_v52 }
  0x80   : > { %v2221_v59 = vadd.f32 %v1709_v47, %v7453_v10  ;;  %v4770_v12 = vmul.f32 %v4258_v32, %v7356_v28  ;;  %v3749_v61 = vadd.f32 1.0, %v5983_v20  ;;  %v1710_v62 = vmul.f32 0.044715, %v1198_v57 }
  0x81   : > { %v1711_v18 = vmul.f32 0.044715, %v1199_v51  ;;  %v5985_v4 = vpop.eup %5984  ;;  %v4771_v5 = vmul.f32 %v4259_v58, %v7364_v33  ;;  %v4260_v9 = vmul.f32 0.5, %v3748_v38  ;;  %5996 = vtanh.f32 %v2732_v24  ;;  %v7534_v51 = vld [vmem:[%s7165_s30 + $0x158] sm:$0xff] }
  0x82   : > { %v2733_v11 = vmul.f32 0.7978846, %v2221_v59  ;;  %5282 = vst [vmem:[%s7311_s17 + $0xc0] sm:$0xff] %v4770_v12  ;;  %v4261_v15 = vmul.f32 0.5, %v3749_v61  ;;  %v3750_v16 = vadd.f32 1.0, %v5985_v4  ;;  %v2222_v17 = vadd.f32 %v1710_v62, %v7467_v0 }
  0x83   : > { %v2223_v28 = vadd.f32 %v1711_v18, %v7470_v29  ;;  %5283 = vst [vmem:[%s7311_s17 + $0xc8] sm:$0xff] %v4771_v5  ;;  %v4772_v21 = vmul.f32 %v4260_v9, %v7381_v55  ;;  %v688_v33 = vmul.f32 %v7488_v14, %v7488_v14  ;;  %v689_v23 = vmul.f32 %v7492_v3, %v7492_v3  ;;  %v7544_v9 = vld [vmem:[%s7165_s30 + $0x160] sm:$0xff] }
  0x84   : > { %v5987_v22 = vpop.eup %5986  ;;  %5998 = vtanh.f32 %v2733_v11  ;;  %v4773_v27 = vmul.f32 %v4261_v15, %v7384_v8  ;;  %v4262_v37 = vmul.f32 0.5, %v3750_v16  ;;  %v2734_v26 = vmul.f32 0.7978846, %v2222_v17  ;;  %v7547_v11 = vld [vmem:[%s7165_s30 + $0x168] sm:$0xff] }
  0x85   : > { %v3751_v35 = vadd.f32 1.0, %v5987_v22  ;;  %5284 = vst [vmem:[%s7311_s17 + $0xd0] sm:$0xff] %v4772_v21  ;;  %v2735_v44 = vmul.f32 0.7978846, %v2223_v28  ;;  %v1200_v55 = vmul.f32 %v688_v33, %v7488_v14  ;;  %v1201_v40 = vmul.f32 %v689_v23, %v7492_v3  ;;  %v7554_v23 = vld [vmem:[%s7165_s30 + $0x170] sm:$0xff] }
  0x86   : > { %v690_v30 = vmul.f32 %v7499_v19, %v7499_v19  ;;  %v5989_v31 = vpop.eup %5988  ;;  %5285 = vst [vmem:[%s7311_s17 + $0xd8] sm:$0xff] %v4773_v27  ;;  %v4774_v41 = vmul.f32 %v4262_v37, %v7398_v63  ;;  %6000 = vtanh.f32 %v2734_v26  ;;  %v691_v36 = vmul.f32 %v7508_v34, %v7508_v34  ;;  %v7563_v26 = vld [vmem:[%s7165_s30 + $0x178] sm:$0xff] }
  0x87   : > { %v4263_v8 = vmul.f32 0.5, %v3751_v35  ;;  %v3752_v39 = vadd.f32 1.0, %v5989_v31  ;;  %6002 = vtanh.f32 %v2735_v44  ;;  %v1712_v43 = vmul.f32 0.044715, %v1200_v55 }
  0x88   : > { %v1713_v45 = vmul.f32 0.044715, %v1201_v40  ;;  %v5991_v6 = vpop.eup %5990  ;;  %5286 = vst [vmem:[%s7311_s17 + $0xe0] sm:$0xff] %v4774_v41  ;;  %v1202_v54 = vmul.f32 %v690_v30, %v7499_v19  ;;  %v1203_v48 = vmul.f32 %v691_v36, %v7508_v34  ;;  %v692_v63 = vmul.f32 %v7517_v1, %v7517_v1 }
  0x89   : > { %v4775_v46 = vmul.f32 %v4263_v8, %v7401_v13  ;;  %v5993_v49 = vpop.eup %5992  ;;  %v4264_v7 = vmul.f32 0.5, %v3752_v39  ;;  %v3753_v50 = vadd.f32 1.0, %v5991_v6  ;;  %v2224_v52 = vadd.f32 %v1712_v43, %v7488_v14 }
  0x8a   : > { %v2225_v47 = vadd.f32 %v1713_v45, %v7492_v3  ;;  %v3754_v53 = vadd.f32 1.0, %v5993_v49  ;;  %v1714_v32 = vmul.f32 0.044715, %v1202_v54  ;;  %v1715_v57 = vmul.f32 0.044715, %v1203_v48 }
  0x8b   : > { %5287 = vst [vmem:[%s7311_s17 + $0xe8] sm:$0xff] %v4775_v46  ;;  %v1204_v13 = vmul.f32 %v692_v63, %v7517_v1  ;;  %v4776_v58 = vmul.f32 %v4264_v7, %v7416_v25  ;;  %v4265_v38 = vmul.f32 0.5, %v3753_v50  ;;  %v2736_v24 = vmul.f32 0.7978846, %v2224_v52  ;;  %v7575_v63 = vld [vmem:[%s7165_s30 + $0x180] sm:$0xff] }
  0x8c   : > { %v5995_v20 = vpop.eup %5994  ;;  %v2737_v59 = vmul.f32 0.7978846, %v2225_v47  ;;  %v4266_v12 = vmul.f32 0.5, %v3754_v53  ;;  %v2226_v62 = vadd.f32 %v1714_v32, %v7499_v19  ;;  %v2227_v18 = vadd.f32 %v1715_v57, %v7508_v34  ;;  %v7584_v57 = vld [vmem:[%s7165_s30 + $0x188] sm:$0xff] }
  0x8d   : > { %v3755_v61 = vadd.f32 1.0, %v5995_v20  ;;  %5288 = vst [vmem:[%s7311_s17 + $0xf0] sm:$0xff] %v4776_v58  ;;  %v4777_v4 = vmul.f32 %v4265_v38, %v7425_v42  ;;  %6004 = vtanh.f32 %v2736_v24  ;;  %v1716_v5 = vmul.f32 0.044715, %v1204_v13  ;;  %v7587_v13 = vld [vmem:[%s7165_s30 + $0x190] sm:$0xff]  ;;  %v7593_v24 = vld [vmem:[%s7165_s30 + $0x198] sm:$0xff] }
  0x8e   : > { %v693_v25 = vmul.f32 %v7534_v51, %v7534_v51  ;;  %v5997_v15 = vpop.eup %5996  ;;  %v4778_v16 = vmul.f32 %v4266_v12, %v7428_v2  ;;  %6006 = vtanh.f32 %v2737_v59  ;;  %v2738_v28 = vmul.f32 0.7978846, %v2226_v62 }
  0x8f   : > { %v4267_v17 = vmul.f32 0.5, %v3755_v61  ;;  %5289 = vst [vmem:[%s7311_s17 + $0xf8] sm:$0xff] %v4777_v4  ;;  %v3756_v42 = vadd.f32 1.0, %v5997_v15  ;;  %v2739_v22 = vmul.f32 0.7978846, %v2227_v18  ;;  %v2228_v21 = vadd.f32 %v1716_v5, %v7517_v1 }
  0x90   : > { %v1205_v33 = vmul.f32 %v693_v25, %v7534_v51  ;;  %5290 = vst [vmem:[%s7311_s17 + $0x100] sm:$0xff] %v4778_v16  ;;  %6008 = vtanh.f32 %v2738_v28  ;;  %v694_v2 = vmul.f32 %v7544_v9, %v7544_v9  ;;  %v695_v35 = vmul.f32 %v7547_v11, %v7547_v11 }
  0x91   : > { %v5999_v27 = vpop.eup %5998  ;;  %v4779_v37 = vmul.f32 %v4267_v17, %v7439_v56  ;;  %v4268_v44 = vmul.f32 0.5, %v3756_v42  ;;  %6010 = vtanh.f32 %v2739_v22  ;;  %v2740_v40 = vmul.f32 0.7978846, %v2228_v21  ;;  %v7608_v17 = vld [vmem:[%s7165_s30 + $0x1a0] sm:$0xff] }
  0x92   : > { %v3757_v55 = vadd.f32 1.0, %v5999_v27  ;;  %v1717_v30 = vmul.f32 0.044715, %v1205_v33  ;;  %v1206_v31 = vmul.f32 %v694_v2, %v7544_v9  ;;  %v1207_v56 = vmul.f32 %v695_v35, %v7547_v11 }
  0x93   : > { %5291 = vst [vmem:[%s7311_s17 + $0x108] sm:$0xff] %v4779_v37  ;;  %v696_v41 = vmul.f32 %v7554_v23, %v7554_v23  ;;  %v6001_v8 = vpop.eup %6000  ;;  %v4780_v36 = vmul.f32 %v4268_v44, %v7447_v60  ;;  %6012 = vtanh.f32 %v2740_v40  ;;  %v697_v43 = vmul.f32 %v7563_v26, %v7563_v26 }
  0x94   : > { %v4269_v39 = vmul.f32 0.5, %v3757_v55  ;;  %v6003_v45 = vpop.eup %6002  ;;  %v3758_v6 = vadd.f32 1.0, %v6001_v8  ;;  %v2229_v46 = vadd.f32 %v1717_v30, %v7534_v51  ;;  %v1718_v54 = vmul.f32 0.044715, %v1206_v31 }
  0x95   : > { %v1719_v48 = vmul.f32 0.044715, %v1207_v56  ;;  %5292 = vst [vmem:[%s7311_s17 + $0x110] sm:$0xff] %v4780_v36  ;;  %v3759_v49 = vadd.f32 1.0, %v6003_v45  ;;  %v1208_v7 = vmul.f32 %v696_v41, %v7554_v23  ;;  %v1209_v50 = vmul.f32 %v697_v43, %v7563_v26 }
  0x96   : > { %v4781_v60 = vmul.f32 %v4269_v39, %v7453_v10  ;;  %v4270_v52 = vmul.f32 0.5, %v3758_v6  ;;  %v2741_v47 = vmul.f32 0.7978846, %v2229_v46  ;;  %v2230_v53 = vadd.f32 %v1718_v54, %v7544_v9 }
  0x97   : > { %v2231_v32 = vadd.f32 %v1719_v48, %v7547_v11  ;;  %v4271_v20 = vmul.f32 0.5, %v3759_v49  ;;  %v1720_v58 = vmul.f32 0.044715, %v1208_v7  ;;  %v1721_v10 = vmul.f32 0.044715, %v1209_v50  ;;  %v7623_v7 = vld [vmem:[%s7165_s30 + $0x1a8] sm:$0xff] }
  0x98   : > { %5293 = vst [vmem:[%s7311_s17 + $0x118] sm:$0xff] %v4781_v60  ;;  %v698_v38 = vmul.f32 %v7575_v63, %v7575_v63  ;;  %v4782_v59 = vmul.f32 %v4270_v52, %v7467_v0  ;;  %6014 = vtanh.f32 %v2741_v47  ;;  %v2742_v12 = vmul.f32 0.7978846, %v2230_v53  ;;  %v7626_v50 = vld [vmem:[%s7165_s30 + $0x1b0] sm:$0xff]  ;;  %v7633_v53 = vld [vmem:[%s7165_s30 + $0x1b8] sm:$0xff] }
  0x99   : > { %v2743_v61 = vmul.f32 0.7978846, %v2231_v32  ;;  %v4783_v62 = vmul.f32 %v4271_v20, %v7470_v29  ;;  %v2232_v18 = vadd.f32 %v1720_v58, %v7554_v23  ;;  %v2233_v4 = vadd.f32 %v1721_v10, %v7563_v26  ;;  %v7636_v32 = vld [vmem:[%s7165_s30 + $0x1c0] sm:$0xff] }
  0x9a   : > { %v1210_v5 = vmul.f32 %v698_v38, %v7575_v63  ;;  %v6005_v25 = vpop.eup %6004  ;;  %5294 = vst [vmem:[%s7311_s17 + $0x120] sm:$0xff] %v4782_v59  ;;  %6016 = vtanh.f32 %v2742_v12  ;;  %v699_v15 = vmul.f32 %v7584_v57, %v7584_v57  ;;  %v700_v0 = vmul.f32 %v7587_v13, %v7587_v13 }
  0x9b   : > { %v701_v16 = vmul.f32 %v7593_v24, %v7593_v24  ;;  %v6007_v29 = vpop.eup %6006  ;;  %5295 = vst [vmem:[%s7311_s17 + $0x128] sm:$0xff] %v4783_v62  ;;  %v3760_v28 = vadd.f32 1.0, %v6005_v25  ;;  %6018 = vtanh.f32 %v2743_v61  ;;  %v2744_v42 = vmul.f32 0.7978846, %v2232_v18 }
  0x9c   : > { %v2745_v22 = vmul.f32 0.7978846, %v2233_v4  ;;  %v3761_v21 = vadd.f32 1.0, %v6007_v29  ;;  %v1722_v33 = vmul.f32 0.044715, %v1210_v5  ;;  %v1211_v27 = vmul.f32 %v699_v15, %v7584_v57 }
  0x9d   : > { %v1212_v37 = vmul.f32 %v700_v0, %v7587_v13  ;;  %v6009_v2 = vpop.eup %6008  ;;  %v4272_v35 = vmul.f32 0.5, %v3760_v28  ;;  %6020 = vtanh.f32 %v2744_v42  ;;  %v1213_v44 = vmul.f32 %v701_v16, %v7593_v24  ;;  %v7653_v0 = vld [vmem:[%s7165_s30 + $0x1c8] sm:$0xff] }
  0x9e   : > { %v702_v55 = vmul.f32 %v7608_v17, %v7608_v17  ;;  %v6011_v40 = vpop.eup %6010  ;;  %v4273_v30 = vmul.f32 0.5, %v3761_v21  ;;  %v3762_v31 = vadd.f32 1.0, %v6009_v2  ;;  %6022 = vtanh.f32 %v2745_v22 }
  0x9f   : > { %v2234_v56 = vadd.f32 %v1722_v33, %v7575_v63  ;;  %v4784_v41 = vmul.f32 %v4272_v35, %v7488_v14  ;;  %v3763_v8 = vadd.f32 1.0, %v6011_v40  ;;  %v1723_v36 = vmul.f32 0.044715, %v1211_v27 }
  0xa0   : > { %v1724_v39 = vmul.f32 0.044715, %v1212_v37  ;;  %v6013_v43 = vpop.eup %6012  ;;  %v4785_v45 = vmul.f32 %v4273_v30, %v7492_v3  ;;  %v4274_v6 = vmul.f32 0.5, %v3762_v31  ;;  %v1725_v54 = vmul.f32 0.044715, %v1213_v44 }
  0xa1   : > { %v2746_v46 = vmul.f32 0.7978846, %v2234_v56  ;;  %5296 = vst [vmem:[%s7311_s17 + $0x130] sm:$0xff] %v4784_v41  ;;  %v4275_v48 = vmul.f32 0.5, %v3763_v8  ;;  %v3764_v60 = vadd.f32 1.0, %v6013_v43  ;;  %v2235_v49 = vadd.f32 %v1723_v36, %v7584_v57  ;;  %v7666_v43 = vld [vmem:[%s7165_s30 + $0x1d0] sm:$0xff] }
  0xa2   : > { %v2236_v14 = vadd.f32 %v1724_v39, %v7587_v13  ;;  %5297 = vst [vmem:[%s7311_s17 + $0x138] sm:$0xff] %v4785_v45  ;;  %v4786_v3 = vmul.f32 %v4274_v6, %v7499_v19  ;;  %v2237_v52 = vadd.f32 %v1725_v54, %v7593_v24  ;;  %v1214_v47 = vmul.f32 %v702_v55, %v7608_v17  ;;  %v7671_v54 = vld [vmem:[%s7165_s30 + $0x1d8] sm:$0xff] }
  0xa3   : > { %6024 = vtanh.f32 %v2746_v46  ;;  %v4787_v20 = vmul.f32 %v4275_v48, %v7508_v34  ;;  %v4276_v58 = vmul.f32 0.5, %v3764_v60  ;;  %v2747_v10 = vmul.f32 0.7978846, %v2235_v49 }
  0xa4   : > { %v2748_v38 = vmul.f32 0.7978846, %v2236_v14  ;;  %5298 = vst [vmem:[%s7311_s17 + $0x140] sm:$0xff] %v4786_v3  ;;  %v2749_v59 = vmul.f32 0.7978846, %v2237_v52  ;;  %v703_v12 = vmul.f32 %v7623_v7, %v7623_v7  ;;  %v704_v61 = vmul.f32 %v7626_v50, %v7626_v50 }
  0xa5   : > { %v1726_v19 = vmul.f32 0.044715, %v1214_v47  ;;  %v6015_v62 = vpop.eup %6014  ;;  %5299 = vst [vmem:[%s7311_s17 + $0x148] sm:$0xff] %v4787_v20  ;;  %v4788_v18 = vmul.f32 %v4276_v58, %v7517_v1  ;;  %6026 = vtanh.f32 %v2747_v10  ;;  %v705_v34 = vmul.f32 %v7633_v53, %v7633_v53  ;;  %v7678_v47 = vld [vmem:[%s7165_s30 + $0x1e0] sm:$0xff] }
  0xa6   : > { %v706_v4 = vmul.f32 %v7636_v32, %v7636_v32  ;;  %v3765_v5 = vadd.f32 1.0, %v6015_v62  ;;  %6028 = vtanh.f32 %v2748_v38  ;;  %v1215_v15 = vmul.f32 %v703_v12, %v7623_v7  ;;  %v7687_v38 = vld [vmem:[%s7165_s30 + $0x1e8] sm:$0xff] }
  0xa7   : > { %v2238_v25 = vadd.f32 %v1726_v19, %v7608_v17  ;;  %v6017_v16 = vpop.eup %6016  ;;  %5300 = vst [vmem:[%s7311_s17 + $0x150] sm:$0xff] %v4788_v18  ;;  %6030 = vtanh.f32 %v2749_v59  ;;  %v1216_v1 = vmul.f32 %v704_v61, %v7626_v50  ;;  %v1217_v29 = vmul.f32 %v705_v34, %v7633_v53  ;;  %v7690_v59 = vld [vmem:[%s7165_s30 + $0x1f0] sm:$0xff] }
  0xa8   : > { %v1218_v28 = vmul.f32 %v706_v4, %v7636_v32  ;;  %v6019_v42 = vpop.eup %6018  ;;  %v4277_v22 = vmul.f32 0.5, %v3765_v5  ;;  %v3766_v21 = vadd.f32 1.0, %v6017_v16  ;;  %v1727_v27 = vmul.f32 0.044715, %v1215_v15 }
  0xa9   : > { %v2750_v33 = vmul.f32 0.7978846, %v2238_v25  ;;  %v3767_v37 = vadd.f32 1.0, %v6019_v42  ;;  %v1728_v2 = vmul.f32 0.044715, %v1216_v1  ;;  %v707_v44 = vmul.f32 %v7653_v0, %v7653_v0 }
  0xaa   : > { %v1729_v35 = vmul.f32 0.044715, %v1217_v29  ;;  %v6021_v55 = vpop.eup %6020  ;;  %v4789_v40 = vmul.f32 %v4277_v22, %v7534_v51  ;;  %v4278_v30 = vmul.f32 0.5, %v3766_v21  ;;  %v2239_v31 = vadd.f32 %v1727_v27, %v7623_v7 }
  0xab   : > { %6032 = vtanh.f32 %v2750_v33  ;;  %v6023_v56 = vpop.eup %6022  ;;  %v4279_v41 = vmul.f32 0.5, %v3767_v37  ;;  %v3768_v8 = vadd.f32 1.0, %v6021_v55  ;;  %v2240_v36 = vadd.f32 %v1728_v2, %v7626_v50 }
  0xac   : > { %v2241_v39 = vadd.f32 %v1729_v35, %v7633_v53  ;;  %5301 = vst [vmem:[%s7311_s17 + $0x158] sm:$0xff] %v4789_v40  ;;  %v4790_v45 = vmul.f32 %v4278_v30, %v7544_v9  ;;  %v3769_v51 = vadd.f32 1.0, %v6023_v56  ;;  %v2751_v6 = vmul.f32 0.7978846, %v2239_v31 }
  0xad   : > { %v1730_v46 = vmul.f32 0.044715, %v1218_v28  ;;  %v4791_v48 = vmul.f32 %v4279_v41, %v7547_v11  ;;  %v4280_v60 = vmul.f32 0.5, %v3768_v8  ;;  %v2752_v49 = vmul.f32 0.7978846, %v2240_v36  ;;  %v7712_v36 = vld [vmem:[%s7165_s30 + $0x1f8] sm:$0xff] }
  0xae   : > { %v2753_v14 = vmul.f32 0.7978846, %v2241_v39  ;;  %5302 = vst [vmem:[%s7311_s17 + $0x160] sm:$0xff] %v4790_v45  ;;  %v4281_v3 = vmul.f32 0.5, %v3769_v51  ;;  %6034 = vtanh.f32 %v2751_v6  ;;  %v1219_v9 = vmul.f32 %v707_v44, %v7653_v0 }
  0xaf   : > { %v2242_v52 = vadd.f32 %v1730_v46, %v7636_v32  ;;  %5303 = vst [vmem:[%s7311_s17 + $0x168] sm:$0xff] %v4791_v48  ;;  %v4792_v58 = vmul.f32 %v4280_v60, %v7554_v23  ;;  %6036 = vtanh.f32 %v2752_v49  ;;  %v708_v11 = vmul.f32 %v7666_v43, %v7666_v43  ;;  %v7717_v46 = vld [vmem:[%s7165_s30 + $0x200] sm:$0xff]  ;;  %v7720_v48 = vld [vmem:[%s7165_s30 + $0x208] sm:$0xff] }
  0xb0   : > { %v6025_v20 = vpop.eup %6024  ;;  %v709_v10 = vmul.f32 %v7671_v54, %v7671_v54  ;;  %v4793_v19 = vmul.f32 %v4281_v3, %v7563_v26  ;;  %6038 = vtanh.f32 %v2753_v14  ;;  %v1731_v62 = vmul.f32 0.044715, %v1219_v9 }
  0xb1   : > { %v3770_v12 = vadd.f32 1.0, %v6025_v20  ;;  %v2754_v61 = vmul.f32 0.7978846, %v2242_v52  ;;  %5304 = vst [vmem:[%s7311_s17 + $0x170] sm:$0xff] %v4792_v58  ;;  %v1220_v23 = vmul.f32 %v708_v11, %v7666_v43  ;;  %v710_v34 = vmul.f32 %v7678_v47, %v7678_v47 }
  0xb2   : > { %v1221_v18 = vmul.f32 %v709_v10, %v7671_v54  ;;  %v6027_v4 = vpop.eup %6026  ;;  %5305 = vst [vmem:[%s7311_s17 + $0x178] sm:$0xff] %v4793_v19  ;;  %v711_v25 = vmul.f32 %v7687_v38, %v7687_v38  ;;  %v712_v26 = vmul.f32 %v7690_v59, %v7690_v59  ;;  %v2243_v1 = vadd.f32 %v1731_v62, %v7653_v0 }
  0xb3   : > { %v4282_v5 = vmul.f32 0.5, %v3770_v12  ;;  %6040 = vtanh.f32 %v2754_v61  ;;  %v6029_v15 = vpop.eup %6028  ;;  %v3771_v16 = vadd.f32 1.0, %v6027_v4  ;;  %v1732_v29 = vmul.f32 0.044715, %v1220_v23  ;;  %v7737_v61 = vld [vmem:[%s7165_s30 + $0x210] sm:$0xff] }
  0xb4   : > { %v1733_v28 = vmul.f32 0.044715, %v1221_v18  ;;  %v6031_v42 = vpop.eup %6030  ;;  %v3772_v21 = vadd.f32 1.0, %v6029_v15  ;;  %v1222_v33 = vmul.f32 %v710_v34, %v7678_v47  ;;  %v1223_v27 = vmul.f32 %v711_v25, %v7687_v38 }
  0xb5   : > { %v4794_v22 = vmul.f32 %v4282_v5, %v7575_v63  ;;  %v4283_v37 = vmul.f32 0.5, %v3771_v16  ;;  %v3773_v2 = vadd.f32 1.0, %v6031_v42  ;;  %v2755_v35 = vmul.f32 0.7978846, %v2243_v1 }
  0xb6   : > { %v2244_v44 = vadd.f32 %v1732_v29, %v7666_v43  ;;  %v4284_v55 = vmul.f32 0.5, %v3772_v21  ;;  %v2245_v40 = vadd.f32 %v1733_v28, %v7671_v54  ;;  %v1734_v30 = vmul.f32 0.044715, %v1222_v33  ;;  %v7748_v33 = vld [vmem:[%s7165_s30 + $0x218] sm:$0xff] }
  0xb7   : > { %5306 = vst [vmem:[%s7311_s17 + $0x180] sm:$0xff] %v4794_v22  ;;  %v1735_v63 = vmul.f32 0.044715, %v1223_v27  ;;  %v4795_v56 = vmul.f32 %v4283_v37, %v7584_v57  ;;  %v4285_v41 = vmul.f32 0.5, %v3773_v2  ;;  %6042 = vtanh.f32 %v2755_v35  ;;  %v7751_v27 = vld [vmem:[%s7165_s30 + $0x220] sm:$0xff] }
  0xb8   : > { %v6033_v31 = vpop.eup %6032  ;;  %v2756_v8 = vmul.f32 0.7978846, %v2244_v44  ;;  %v4796_v39 = vmul.f32 %v4284_v55, %v7587_v13  ;;  %v2757_v51 = vmul.f32 0.7978846, %v2245_v40  ;;  %v2246_v6 = vadd.f32 %v1734_v30, %v7678_v47  ;;  %v7756_v44 = vld [vmem:[%s7165_s30 + $0x228] sm:$0xff] }
  0xb9   : > { %v3774_v45 = vadd.f32 1.0, %v6033_v31  ;;  %5307 = vst [vmem:[%s7311_s17 + $0x188] sm:$0xff] %v4795_v56  ;;  %v4797_v57 = vmul.f32 %v4285_v41, %v7593_v24  ;;  %v2247_v60 = vadd.f32 %v1735_v63, %v7687_v38  ;;  %v1224_v49 = vmul.f32 %v712_v26, %v7690_v59  ;;  %v7768_v41 = vld [vmem:[%s7165_s30 + $0x230] sm:$0xff] }
  0xba   : > { %6044 = vtanh.f32 %v2756_v8  ;;  %5308 = vst [vmem:[%s7311_s17 + $0x190] sm:$0xff] %v4796_v39  ;;  %v2758_v14 = vmul.f32 0.7978846, %v2246_v6  ;;  %v713_v3 = vmul.f32 %v7712_v36, %v7712_v36  ;;  %v714_v24 = vmul.f32 %v7717_v46, %v7717_v46 }
  0xbb   : > { %v4286_v13 = vmul.f32 0.5, %v3774_v45  ;;  %6046 = vtanh.f32 %v2757_v51  ;;  %v6035_v52 = vpop.eup %6034  ;;  %5309 = vst [vmem:[%s7311_s17 + $0x198] sm:$0xff] %v4797_v57  ;;  %v2759_v9 = vmul.f32 0.7978846, %v2247_v60  ;;  %v1736_v20 = vmul.f32 0.044715, %v1224_v49 }
  0xbc   : > { %v715_v58 = vmul.f32 %v7720_v48, %v7720_v48  ;;  %v6037_v11 = vpop.eup %6036  ;;  %v3775_v19 = vadd.f32 1.0, %v6035_v52  ;;  %6048 = vtanh.f32 %v2758_v14  ;;  %v1225_v12 = vmul.f32 %v713_v3, %v7712_v36 }
  0xbd   : > { %v4798_v10 = vmul.f32 %v4286_v13, %v7608_v17  ;;  %v6039_v62 = vpop.eup %6038  ;;  %v3776_v23 = vadd.f32 1.0, %v6037_v11  ;;  %6050 = vtanh.f32 %v2759_v9  ;;  %v2248_v18 = vadd.f32 %v1736_v20, %v7690_v59 }
  0xbe   : > { %v1226_v34 = vmul.f32 %v714_v24, %v7717_v46  ;;  %v4287_v4 = vmul.f32 0.5, %v3775_v19  ;;  %v3777_v5 = vadd.f32 1.0, %v6039_v62  ;;  %v1737_v25 = vmul.f32 0.044715, %v1225_v12 }
  0xbf   : > { %5310 = vst [vmem:[%s7311_s17 + $0x1a0] sm:$0xff] %v4798_v10  ;;  %v1227_v17 = vmul.f32 %v715_v58, %v7720_v48  ;;  %v4288_v15 = vmul.f32 0.5, %v3776_v23  ;;  %v2760_v16 = vmul.f32 0.7978846, %v2248_v18  ;;  %v716_v29 = vmul.f32 %v7737_v61, %v7737_v61 }
  0xc0   : > { %v6041_v26 = vpop.eup %6040  ;;  %v1738_v1 = vmul.f32 0.044715, %v1226_v34  ;;  %v4799_v28 = vmul.f32 %v4287_v4, %v7623_v7  ;;  %v4289_v42 = vmul.f32 0.5, %v3777_v5  ;;  %v2249_v21 = vadd.f32 %v1737_v25, %v7712_v36 }
  0xc1   : > { %v3778_v22 = vadd.f32 1.0, %v6041_v26  ;;  %v4800_v37 = vmul.f32 %v4288_v15, %v7626_v50  ;;  %6052 = vtanh.f32 %v2760_v16  ;;  %v1739_v35 = vmul.f32 0.044715, %v1227_v17  ;;  %v7786_v17 = vld [vmem:[%s7165_s30 + $0x238] sm:$0xff] }
  0xc2   : > { %v2250_v2 = vadd.f32 %v1738_v1, %v7717_v46  ;;  %5311 = vst [vmem:[%s7311_s17 + $0x1a8] sm:$0xff] %v4799_v28  ;;  %v4801_v7 = vmul.f32 %v4289_v42, %v7633_v53  ;;  %v2761_v40 = vmul.f32 0.7978846, %v2249_v21  ;;  %v1228_v30 = vmul.f32 %v716_v29, %v7737_v61  ;;  %v7792_v1 = vld [vmem:[%s7165_s30 + $0x240] sm:$0xff] }
  0xc3   : > { %v4290_v55 = vmul.f32 0.5, %v3778_v22  ;;  %5312 = vst [vmem:[%s7311_s17 + $0x1b0] sm:$0xff] %v4800_v37  ;;  %v2251_v31 = vadd.f32 %v1739_v35, %v7720_v48  ;;  %v717_v50 = vmul.f32 %v7748_v33, %v7748_v33  ;;  %v718_v56 = vmul.f32 %v7751_v27, %v7751_v27  ;;  %v7802_v35 = vld [vmem:[%s7165_s30 + $0x250] sm:$0xff] }
  0xc4   : > { %v2762_v63 = vmul.f32 0.7978846, %v2250_v2  ;;  %v6043_v8 = vpop.eup %6042  ;;  %5313 = vst [vmem:[%s7311_s17 + $0x1b8] sm:$0xff] %v4801_v7  ;;  %6054 = vtanh.f32 %v2761_v40  ;;  %v1740_v39 = vmul.f32 0.044715, %v1228_v30  ;;  %v719_v45 = vmul.f32 %v7756_v44, %v7756_v44  ;;  %v7799_v2 = vld [vmem:[%s7165_s30 + $0x248] sm:$0xff] }
  0xc5   : > { %v4802_v53 = vmul.f32 %v4290_v55, %v7636_v32  ;;  %v3779_v51 = vadd.f32 1.0, %v6043_v8  ;;  %v2763_v6 = vmul.f32 0.7978846, %v2251_v31  ;;  %v1229_v57 = vmul.f32 %v717_v50, %v7748_v33  ;;  %v7810_v30 = vld [vmem:[%s7165_s30 + $0x258] sm:$0xff] }
  0xc6   : > { %6056 = vtanh.f32 %v2762_v63  ;;  %v2252_v49 = vadd.f32 %v1740_v39, %v7737_v61  ;;  %v1230_v13 = vmul.f32 %v718_v56, %v7751_v27  ;;  %v1231_v14 = vmul.f32 %v719_v45, %v7756_v44  ;;  %v7813_v63 = vld [vmem:[%s7165_s30 + $0x260] sm:$0xff] }
  0xc7   : > { %v6045_v60 = vpop.eup %6044  ;;  %5314 = vst [vmem:[%s7311_s17 + $0x1c0] sm:$0xff] %v4802_v53  ;;  %v720_v32 = vmul.f32 %v7768_v41, %v7768_v41  ;;  %v4291_v52 = vmul.f32 0.5, %v3779_v51  ;;  %6058 = vtanh.f32 %v2763_v6  ;;  %v1741_v20 = vmul.f32 0.044715, %v1229_v57 }
  0xc8   : > { %v6047_v3 = vpop.eup %6046  ;;  %v3780_v9 = vadd.f32 1.0, %v6045_v60  ;;  %v2764_v58 = vmul.f32 0.7978846, %v2252_v49  ;;  %v1742_v11 = vmul.f32 0.044715, %v1230_v13  ;;  %v722_v40 = vmul.f32 %v7792_v1, %v7792_v1 }
  0xc9   : > { %v3781_v24 = vadd.f32 1.0, %v6047_v3  ;;  %v1232_v10 = vmul.f32 %v720_v32, %v7768_v41  ;;  %v6049_v19 = vpop.eup %6048  ;;  %v4803_v12 = vmul.f32 %v4291_v52, %v7653_v0  ;;  %v2253_v23 = vadd.f32 %v1741_v20, %v7748_v33 }
  0xca   : > { %v4292_v62 = vmul.f32 0.5, %v3780_v9  ;;  %v1743_v18 = vmul.f32 0.044715, %v1231_v14  ;;  %v6051_v34 = vpop.eup %6050  ;;  %v3782_v5 = vadd.f32 1.0, %v6049_v19  ;;  %6060 = vtanh.f32 %v2764_v58 }
  0xcb   : > { %v4293_v4 = vmul.f32 0.5, %v3781_v24  ;;  %v2254_v25 = vadd.f32 %v1742_v11, %v7751_v27  ;;  %5315 = vst [vmem:[%s7311_s17 + $0x1c8] sm:$0xff] %v4803_v12  ;;  %v3783_v15 = vadd.f32 1.0, %v6051_v34  ;;  %v2765_v0 = vmul.f32 0.7978846, %v2253_v23 }
  0xcc   : > { %v4804_v26 = vmul.f32 %v4292_v62, %v7666_v43  ;;  %v2255_v16 = vadd.f32 %v1743_v18, %v7756_v44  ;;  %v4294_v28 = vmul.f32 0.5, %v3782_v5  ;;  %v1744_v22 = vmul.f32 0.044715, %v1232_v10  ;;  %v7838_v5 = vld [vmem:[%s7165_s30 + $0x268] sm:$0xff] }
  0xcd   : > { %v4805_v29 = vmul.f32 %v4293_v4, %v7671_v54  ;;  %v2766_v42 = vmul.f32 0.7978846, %v2254_v25  ;;  %v4295_v21 = vmul.f32 0.5, %v3783_v15  ;;  %6062 = vtanh.f32 %v2765_v0 }
  0xce   : > { %5316 = vst [vmem:[%s7311_s17 + $0x1d0] sm:$0xff] %v4804_v26  ;;  %v2767_v37 = vmul.f32 0.7978846, %v2255_v16  ;;  %v721_v43 = vmul.f32 %v7786_v17, %v7786_v17  ;;  %v6053_v7 = vpop.eup %6052  ;;  %v4806_v54 = vmul.f32 %v4294_v28, %v7678_v47  ;;  %v2256_v55 = vadd.f32 %v1744_v22, %v7768_v41  ;;  %v7843_v16 = vld [vmem:[%s7165_s30 + $0x270] sm:$0xff] }
  0xcf   : > { %5317 = vst [vmem:[%s7311_s17 + $0x1d8] sm:$0xff] %v4805_v29  ;;  %6064 = vtanh.f32 %v2766_v42  ;;  %v4807_v31 = vmul.f32 %v4295_v21, %v7687_v38  ;;  %v3784_v50 = vadd.f32 1.0, %v6053_v7  ;;  %v1234_v47 = vmul.f32 %v722_v40, %v7792_v1 }
  0xd0   : > { %6066 = vtanh.f32 %v2767_v37  ;;  %v1233_v56 = vmul.f32 %v721_v43, %v7786_v17  ;;  %5318 = vst [vmem:[%s7311_s17 + $0x1e0] sm:$0xff] %v4806_v54  ;;  %v2768_v8 = vmul.f32 0.7978846, %v2256_v55  ;;  %v723_v53 = vmul.f32 %v7799_v2, %v7799_v2 }
  0xd1   : > { %v724_v39 = vmul.f32 %v7802_v35, %v7802_v35  ;;  %v6055_v45 = vpop.eup %6054  ;;  %5319 = vst [vmem:[%s7311_s17 + $0x1e8] sm:$0xff] %v4807_v31  ;;  %v4296_v51 = vmul.f32 0.5, %v3784_v50  ;;  %v725_v38 = vmul.f32 %v7810_v30, %v7810_v30  ;;  %v726_v57 = vmul.f32 %v7813_v63, %v7813_v63  ;;  %v7857_v50 = vld [vmem:[%s7165_s30 + $0x278] sm:$0xff] }
  0xd2   : > { %v1745_v6 = vmul.f32 0.044715, %v1233_v56  ;;  %v3785_v49 = vadd.f32 1.0, %v6055_v45  ;;  %6068 = vtanh.f32 %v2768_v8  ;;  %v1746_v13 = vmul.f32 0.044715, %v1234_v47  ;;  %v7860_v56 = vld [vmem:[%s7165_s30 + $0x280] sm:$0xff] }
  0xd3   : > { %v6057_v60 = vpop.eup %6056  ;;  %v1235_v14 = vmul.f32 %v723_v53, %v7799_v2  ;;  %v4808_v32 = vmul.f32 %v4296_v51, %v7690_v59  ;;  %v1236_v9 = vmul.f32 %v724_v39, %v7802_v35  ;;  %v1237_v10 = vmul.f32 %v725_v38, %v7810_v30 }
  0xd4   : > { %v3786_v3 = vadd.f32 1.0, %v6057_v60  ;;  %v2257_v52 = vadd.f32 %v1745_v6, %v7786_v17  ;;  %v6059_v20 = vpop.eup %6058  ;;  %v4297_v24 = vmul.f32 0.5, %v3785_v49  ;;  %v2258_v58 = vadd.f32 %v1746_v13, %v7792_v1 }
  0xd5   : > { %v1747_v11 = vmul.f32 0.044715, %v1235_v14  ;;  %5320 = vst [vmem:[%s7311_s17 + $0x1f0] sm:$0xff] %v4808_v32  ;;  %v3787_v12 = vadd.f32 1.0, %v6059_v20  ;;  %v1748_v59 = vmul.f32 0.044715, %v1236_v9  ;;  %v727_v21 = vmul.f32 %v7838_v5, %v7838_v5 }
  0xd6   : > { %v4298_v19 = vmul.f32 0.5, %v3786_v3  ;;  %v2769_v62 = vmul.f32 0.7978846, %v2257_v52  ;;  %v4809_v23 = vmul.f32 %v4297_v24, %v7712_v36  ;;  %v2770_v18 = vmul.f32 0.7978846, %v2258_v58  ;;  %v7873_v9 = vld [vmem:[%s7165_s30 + $0x288] sm:$0xff] }
  0xd7   : > { %v2259_v34 = vadd.f32 %v1747_v11, %v7799_v2  ;;  %v1749_v4 = vmul.f32 0.044715, %v1237_v10  ;;  %v6061_v25 = vpop.eup %6060  ;;  %v4299_v15 = vmul.f32 0.5, %v3787_v12  ;;  %v2260_v0 = vadd.f32 %v1748_v59, %v7802_v35  ;;  %v7879_v10 = vld [vmem:[%s7165_s30 + $0x290] sm:$0xff] }
  0xd8   : > { %v4810_v26 = vmul.f32 %v4298_v19, %v7717_v46  ;;  %6070 = vtanh.f32 %v2769_v62  ;;  %5321 = vst [vmem:[%s7311_s17 + $0x1f8] sm:$0xff] %v4809_v23  ;;  %v3788_v29 = vadd.f32 1.0, %v6061_v25  ;;  %v1238_v46 = vmul.f32 %v726_v57, %v7813_v63  ;;  %v7882_v19 = vld [vmem:[%s7165_s30 + $0x298] sm:$0xff]  ;;  %v7896_v25 = vld [vmem:[%s7165_s30 + $0x2a0] sm:$0xff] }
  0xd9   : > { %6072 = vtanh.f32 %v2770_v18  ;;  %v2771_v36 = vmul.f32 0.7978846, %v2259_v34  ;;  %v2261_v28 = vadd.f32 %v1749_v4, %v7810_v30  ;;  %v4811_v42 = vmul.f32 %v4299_v15, %v7720_v48 }
  0xda   : > { %5322 = vst [vmem:[%s7311_s17 + $0x200] sm:$0xff] %v4810_v26  ;;  %v2772_v22 = vmul.f32 0.7978846, %v2260_v0  ;;  %v6063_v37 = vpop.eup %6062  ;;  %v4300_v43 = vmul.f32 0.5, %v3788_v29  ;;  %v728_v54 = vmul.f32 %v7843_v16, %v7843_v16  ;;  %v1750_v48 = vmul.f32 0.044715, %v1238_v46 }
  0xdb   : > { %6074 = vtanh.f32 %v2771_v36  ;;  %v2773_v7 = vmul.f32 0.7978846, %v2261_v28  ;;  %5323 = vst [vmem:[%s7311_s17 + $0x208] sm:$0xff] %v4811_v42  ;;  %v3789_v40 = vadd.f32 1.0, %v6063_v37  ;;  %v1239_v31 = vmul.f32 %v727_v21, %v7838_v5  ;;  %v7902_v36 = vld [vmem:[%s7165_s30 + $0x2a8] sm:$0xff] }
  0xdc   : > { %v6065_v55 = vpop.eup %6064  ;;  %6076 = vtanh.f32 %v2772_v22  ;;  %v4812_v47 = vmul.f32 %v4300_v43, %v7737_v61  ;;  %v1240_v39 = vmul.f32 %v728_v54, %v7843_v16  ;;  %v2262_v6 = vadd.f32 %v1750_v48, %v7813_v63 }
  0xdd   : > { %v6067_v8 = vpop.eup %6066  ;;  %v3790_v53 = vadd.f32 1.0, %v6065_v55  ;;  %6078 = vtanh.f32 %v2773_v7  ;;  %v4301_v45 = vmul.f32 0.5, %v3789_v40  ;;  %v1751_v38 = vmul.f32 0.044715, %v1239_v31 }
  0xde   : > { %v3791_v51 = vadd.f32 1.0, %v6067_v8  ;;  %5324 = vst [vmem:[%s7311_s17 + $0x210] sm:$0xff] %v4812_v47  ;;  %v1752_v60 = vmul.f32 0.044715, %v1240_v39  ;;  %v729_v49 = vmul.f32 %v7857_v50, %v7857_v50  ;;  %v730_v61 = vmul.f32 %v7860_v56, %v7860_v56 }
  0xdf   : > { %v4302_v57 = vmul.f32 0.5, %v3790_v53  ;;  %v6069_v13 = vpop.eup %6068  ;;  %v4813_v14 = vmul.f32 %v4301_v45, %v7748_v33  ;;  %v2774_v3 = vmul.f32 0.7978846, %v2262_v6  ;;  %v2263_v52 = vadd.f32 %v1751_v38, %v7838_v5 }
  0xe0   : > { %v4303_v32 = vmul.f32 0.5, %v3791_v51  ;;  %v3792_v24 = vadd.f32 1.0, %v6069_v13  ;;  %v2264_v58 = vadd.f32 %v1752_v60, %v7843_v16  ;;  %v1241_v11 = vmul.f32 %v729_v49, %v7857_v50  ;;  %v7917_v13 = vld [vmem:[%s7165_s30 + $0x2b0] sm:$0xff] }
  0xe1   : > { %v4814_v20 = vmul.f32 %v4302_v57, %v7751_v27  ;;  %5325 = vst [vmem:[%s7311_s17 + $0x218] sm:$0xff] %v4813_v14  ;;  %6080 = vtanh.f32 %v2774_v3  ;;  %v2775_v12 = vmul.f32 0.7978846, %v2263_v52  ;;  %v1242_v62 = vmul.f32 %v730_v61, %v7860_v56  ;;  %v7922_v52 = vld [vmem:[%s7165_s30 + $0x2b8] sm:$0xff] }
  0xe2   : > { %v4815_v33 = vmul.f32 %v4303_v32, %v7756_v44  ;;  %v4304_v27 = vmul.f32 0.5, %v3792_v24  ;;  %v2776_v59 = vmul.f32 0.7978846, %v2264_v58  ;;  %v1753_v23 = vmul.f32 0.044715, %v1241_v11  ;;  %v7928_v58 = vld [vmem:[%s7165_s30 + $0x2c0] sm:$0xff] }
  0xe3   : > { %5326 = vst [vmem:[%s7311_s17 + $0x220] sm:$0xff] %v4814_v20  ;;  %v731_v18 = vmul.f32 %v7873_v9, %v7873_v9  ;;  %6082 = vtanh.f32 %v2775_v12  ;;  %v1754_v34 = vmul.f32 0.044715, %v1242_v62  ;;  %v732_v4 = vmul.f32 %v7879_v10, %v7879_v10  ;;  %v7933_v62 = vld [vmem:[%s7165_s30 + $0x2c8] sm:$0xff] }
  0xe4   : > { %5327 = vst [vmem:[%s7311_s17 + $0x228] sm:$0xff] %v4815_v33  ;;  %v733_v44 = vmul.f32 %v7882_v19, %v7882_v19  ;;  %v4816_v15 = vmul.f32 %v4304_v27, %v7768_v41  ;;  %6084 = vtanh.f32 %v2776_v59  ;;  %v2265_v0 = vadd.f32 %v1753_v23, %v7857_v50 }
  0xe5   : > { %v6071_v26 = vpop.eup %6070  ;;  %v1243_v29 = vmul.f32 %v731_v18, %v7873_v9  ;;  %v2266_v22 = vadd.f32 %v1754_v34, %v7860_v56  ;;  %v1244_v46 = vmul.f32 %v732_v4, %v7879_v10  ;;  %v734_v41 = vmul.f32 %v7896_v25, %v7896_v25 }
  0xe6   : > { %v6073_v28 = vpop.eup %6072  ;;  %v3793_v42 = vadd.f32 1.0, %v6071_v26  ;;  %v1245_v21 = vmul.f32 %v733_v44, %v7882_v19  ;;  %5328 = vst [vmem:[%s7311_s17 + $0x230] sm:$0xff] %v4816_v15  ;;  %v2777_v43 = vmul.f32 0.7978846, %v2265_v0  ;;  %v735_v31 = vmul.f32 %v7902_v36, %v7902_v36 }
  0xe7   : > { %v3794_v37 = vadd.f32 1.0, %v6073_v28  ;;  %v1755_v7 = vmul.f32 0.044715, %v1243_v29  ;;  %v2778_v40 = vmul.f32 0.7978846, %v2266_v22  ;;  %v736_v23 = vmul.f32 %v7917_v13, %v7917_v13 }
  0xe8   : > { %v6075_v54 = vpop.eup %6074  ;;  %v4305_v55 = vmul.f32 0.5, %v3793_v42  ;;  %v1756_v48 = vmul.f32 0.044715, %v1244_v46  ;;  %6086 = vtanh.f32 %v2777_v43  ;;  %v1757_v3 = vmul.f32 0.044715, %v1245_v21 }
  0xe9   : > { %v6077_v8 = vpop.eup %6076  ;;  %v4306_v47 = vmul.f32 0.5, %v3794_v37  ;;  %v3795_v53 = vadd.f32 1.0, %v6075_v54  ;;  %v2267_v39 = vadd.f32 %v1755_v7, %v7873_v9  ;;  %6088 = vtanh.f32 %v2778_v40 }
  0xea   : > { %v6079_v45 = vpop.eup %6078  ;;  %v4817_v51 = vmul.f32 %v4305_v55, %v7786_v17  ;;  %v3796_v6 = vadd.f32 1.0, %v6077_v8  ;;  %v2268_v38 = vadd.f32 %v1756_v48, %v7879_v10  ;;  %v1246_v17 = vmul.f32 %v734_v41, %v7896_v25  ;;  %v7953_v41 = vld [vmem:[%s7165_s30 + $0x2d0] sm:$0xff] }
  0xeb   : > { %v4818_v57 = vmul.f32 %v4306_v47, %v7792_v1  ;;  %v4307_v60 = vmul.f32 0.5, %v3795_v53  ;;  %v3797_v49 = vadd.f32 1.0, %v6079_v45  ;;  %v2779_v61 = vmul.f32 0.7978846, %v2267_v39 }
  0xec   : > { %5329 = vst [vmem:[%s7311_s17 + $0x238] sm:$0xff] %v4817_v51  ;;  %v4308_v14 = vmul.f32 0.5, %v3796_v6  ;;  %v2780_v32 = vmul.f32 0.7978846, %v2268_v38  ;;  %v1247_v24 = vmul.f32 %v735_v31, %v7902_v36  ;;  %v2269_v33 = vadd.f32 %v1757_v3, %v7882_v19  ;;  %v7964_v51 = vld [vmem:[%s7165_s30 + $0x2d8] sm:$0xff] }
  0xed   : > { %5330 = vst [vmem:[%s7311_s17 + $0x240] sm:$0xff] %v4818_v57  ;;  %v4819_v20 = vmul.f32 %v4307_v60, %v7799_v2  ;;  %v4309_v1 = vmul.f32 0.5, %v3797_v49  ;;  %6090 = vtanh.f32 %v2779_v61  ;;  %v1758_v12 = vmul.f32 0.044715, %v1246_v17 }
  0xee   : > { %v4820_v11 = vmul.f32 %v4308_v14, %v7802_v35  ;;  %6092 = vtanh.f32 %v2780_v32  ;;  %v6081_v27 = vpop.eup %6080  ;;  %v1759_v59 = vmul.f32 0.044715, %v1247_v24  ;;  %v737_v18 = vmul.f32 %v7922_v52, %v7922_v52 }
  0xef   : > { %5331 = vst [vmem:[%s7311_s17 + $0x248] sm:$0xff] %v4819_v20  ;;  %v4821_v2 = vmul.f32 %v4309_v1, %v7810_v30  ;;  %v3798_v35 = vadd.f32 1.0, %v6081_v27  ;;  %v2781_v34 = vmul.f32 0.7978846, %v2269_v33  ;;  %v2270_v4 = vadd.f32 %v1758_v12, %v7896_v25  ;;  %v7975_v33 = vld [vmem:[%s7165_s30 + $0x2e0] sm:$0xff]  ;;  %v7978_v12 = vld [vmem:[%s7165_s30 + $0x2e8] sm:$0xff] }
  0xf0   : > { %5332 = vst [vmem:[%s7311_s17 + $0x250] sm:$0xff] %v4820_v11  ;;  %v738_v44 = vmul.f32 %v7928_v58, %v7928_v58  ;;  %v6083_v26 = vpop.eup %6082  ;;  %v2271_v30 = vadd.f32 %v1759_v59, %v7902_v36  ;;  %v1248_v15 = vmul.f32 %v736_v23, %v7917_v13  ;;  %v1249_v0 = vmul.f32 %v737_v18, %v7922_v52  ;;  %v7983_v18 = vld [vmem:[%s7165_s30 + $0x2f0] sm:$0xff] }
  0xf1   : > { %5333 = vst [vmem:[%s7311_s17 + $0x258] sm:$0xff] %v4821_v2  ;;  %v739_v29 = vmul.f32 %v7933_v62, %v7933_v62  ;;  %v6085_v28 = vpop.eup %6084  ;;  %v4310_v42 = vmul.f32 0.5, %v3798_v35  ;;  %v3799_v22 = vadd.f32 1.0, %v6083_v26  ;;  %6094 = vtanh.f32 %v2781_v34 }
  0xf2   : > { %v2782_v46 = vmul.f32 0.7978846, %v2270_v4  ;;  %v3800_v21 = vadd.f32 1.0, %v6085_v28  ;;  %v2783_v37 = vmul.f32 0.7978846, %v2271_v30  ;;  %v1250_v7 = vmul.f32 %v738_v44, %v7928_v58  ;;  %v7996_v28 = vld [vmem:[%s7165_s30 + $0x2f8] sm:$0xff] }
  0xf3   : > { %v1760_v43 = vmul.f32 0.044715, %v1248_v15  ;;  %v4822_v54 = vmul.f32 %v4310_v42, %v7813_v63  ;;  %v4311_v55 = vmul.f32 0.5, %v3799_v22  ;;  %v1761_v40 = vmul.f32 0.044715, %v1249_v0 }
  0xf4   : > { %6096 = vtanh.f32 %v2782_v46  ;;  %v4312_v48 = vmul.f32 0.5, %v3800_v21  ;;  %v1762_v8 = vmul.f32 0.044715, %v1250_v7  ;;  %v1251_v45 = vmul.f32 %v739_v29, %v7933_v62 }
  0xf5   : > { %6098 = vtanh.f32 %v2783_v37  ;;  %v2272_v31 = vadd.f32 %v1760_v43, %v7917_v13  ;;  %v6087_v47 = vpop.eup %6086  ;;  %5334 = vst [vmem:[%s7311_s17 + $0x260] sm:$0xff] %v4822_v54  ;;  %v4823_v53 = vmul.f32 %v4311_v55, %v7838_v5  ;;  %v2273_v39 = vadd.f32 %v1761_v40, %v7922_v52  ;;  %v8003_v43 = vld [vmem:[%s7165_s30 + $0x300] sm:$0xff] }
  0xf6   : > { %v740_v63 = vmul.f32 %v7953_v41, %v7953_v41  ;;  %v6089_v6 = vpop.eup %6088  ;;  %v4824_v38 = vmul.f32 %v4312_v48, %v7843_v16  ;;  %v3801_v57 = vadd.f32 1.0, %v6087_v47  ;;  %v2274_v49 = vadd.f32 %v1762_v8, %v7928_v58 }
  0xf7   : > { %v2784_v60 = vmul.f32 0.7978846, %v2272_v31  ;;  %5335 = vst [vmem:[%s7311_s17 + $0x268] sm:$0xff] %v4823_v53  ;;  %v3802_v5 = vadd.f32 1.0, %v6089_v6  ;;  %v2785_v61 = vmul.f32 0.7978846, %v2273_v39  ;;  %v741_v16 = vmul.f32 %v7964_v51, %v7964_v51 }
  0xf8   : > { %v1763_v14 = vmul.f32 0.044715, %v1251_v45  ;;  %v1252_v32 = vmul.f32 %v740_v63, %v7953_v41  ;;  %5336 = vst [vmem:[%s7311_s17 + $0x270] sm:$0xff] %v4824_v38  ;;  %v4313_v3 = vmul.f32 0.5, %v3801_v57  ;;  %v2786_v17 = vmul.f32 0.7978846, %v2274_v49 }
  0xf9   : > { %6100 = vtanh.f32 %v2784_v60  ;;  %v4314_v1 = vmul.f32 0.5, %v3802_v5  ;;  %v1253_v23 = vmul.f32 %v741_v16, %v7964_v51  ;;  %v743_v15 = vmul.f32 %v7978_v12, %v7978_v12  ;;  %v8016_v57 = vld [vmem:[%s7165_s30 + $0x308] sm:$0xff] }
  0xfa   : > { %v6091_v20 = vpop.eup %6090  ;;  %6102 = vtanh.f32 %v2785_v61  ;;  %v2275_v24 = vadd.f32 %v1763_v14, %v7933_v62  ;;  %v1764_v11 = vmul.f32 0.044715, %v1252_v32  ;;  %v4825_v2 = vmul.f32 %v4313_v3, %v7857_v50 }
  0xfb   : > { %v6093_v27 = vpop.eup %6092  ;;  %v3803_v59 = vadd.f32 1.0, %v6091_v20  ;;  %6104 = vtanh.f32 %v2786_v17  ;;  %v4826_v35 = vmul.f32 %v4314_v1, %v7860_v56  ;;  %v1765_v30 = vmul.f32 0.044715, %v1253_v23  ;;  %v8028_v23 = vld [vmem:[%s7165_s30 + $0x310] sm:$0xff] }
  0xfc   : > { %v3804_v34 = vadd.f32 1.0, %v6093_v27  ;;  %v2787_v4 = vmul.f32 0.7978846, %v2275_v24  ;;  %v2276_v44 = vadd.f32 %v1764_v11, %v7953_v41  ;;  %5337 = vst [vmem:[%s7311_s17 + $0x278] sm:$0xff] %v4825_v2  ;;  %v742_v50 = vmul.f32 %v7975_v33, %v7975_v33 }
  0xfd   : > { %v4315_v26 = vmul.f32 0.5, %v3803_v59  ;;  %5338 = vst [vmem:[%s7311_s17 + $0x280] sm:$0xff] %v4826_v35  ;;  %v744_v56 = vmul.f32 %v7983_v18, %v7983_v18  ;;  %v2277_v46 = vadd.f32 %v1765_v30, %v7964_v51  ;;  %v1255_v37 = vmul.f32 %v743_v15, %v7978_v12 }
  0xfe   : > { %v4316_v0 = vmul.f32 0.5, %v3804_v34  ;;  %6106 = vtanh.f32 %v2787_v4  ;;  %v2788_v29 = vmul.f32 0.7978846, %v2276_v44  ;;  %v6095_v42 = vpop.eup %6094  ;;  %v1254_v21 = vmul.f32 %v742_v50, %v7975_v33  ;;  %v8034_v44 = vld [vmem:[%s7165_s30 + $0x318] sm:$0xff] }
  0xff   : > { %v4827_v22 = vmul.f32 %v4315_v26, %v7873_v9  ;;  %v3805_v54 = vadd.f32 1.0, %v6095_v42  ;;  %v1256_v55 = vmul.f32 %v744_v56, %v7983_v18  ;;  %v2789_v48 = vmul.f32 0.7978846, %v2277_v46 }
 0x100   : > { %v4828_v7 = vmul.f32 %v4316_v0, %v7879_v10  ;;  %6108 = vtanh.f32 %v2788_v29  ;;  %v1766_v9 = vmul.f32 0.044715, %v1254_v21  ;;  %v1767_v31 = vmul.f32 0.044715, %v1255_v37  ;;  %v8044_v37 = vld [vmem:[%s7165_s30 + $0x320] sm:$0xff] }
 0x101   : > { %v6097_v40 = vpop.eup %6096  ;;  %5339 = vst [vmem:[%s7311_s17 + $0x288] sm:$0xff] %v4827_v22  ;;  %v745_v8 = vmul.f32 %v7996_v28, %v7996_v28  ;;  %v4317_v53 = vmul.f32 0.5, %v3805_v54  ;;  %v1768_v45 = vmul.f32 0.044715, %v1256_v55  ;;  %v746_v10 = vmul.f32 %v8003_v43, %v8003_v43 }
 0x102   : > { %v6099_v47 = vpop.eup %6098  ;;  %5340 = vst [vmem:[%s7311_s17 + $0x290] sm:$0xff] %v4828_v7  ;;  %v3806_v39 = vadd.f32 1.0, %v6097_v40  ;;  %6110 = vtanh.f32 %v2789_v48  ;;  %v2278_v6 = vadd.f32 %v1766_v9, %v7975_v33  ;;  %v2279_v38 = vadd.f32 %v1767_v31, %v7978_v12  ;;  %v8049_v40 = vld [vmem:[%s7165_s30 + $0x328] sm:$0xff]  ;;  %v8052_v48 = vld [vmem:[%s7165_s30 + $0x330] sm:$0xff] }
 0x103   : > { %v3807_v63 = vadd.f32 1.0, %v6099_v47  ;;  %v4829_v60 = vmul.f32 %v4317_v53, %v7882_v19  ;;  %v2280_v5 = vadd.f32 %v1768_v45, %v7983_v18  ;;  %v1257_v61 = vmul.f32 %v745_v8, %v7996_v28 }
 0x104   : > { %v4318_v49 = vmul.f32 0.5, %v3806_v39  ;;  %v2790_v32 = vmul.f32 0.7978846, %v2278_v6  ;;  %v2791_v3 = vmul.f32 0.7978846, %v2279_v38  ;;  %v1258_v17 = vmul.f32 %v746_v10, %v8003_v43  ;;  %v8067_v6 = vld [vmem:[%s7165_s30 + $0x338] sm:$0xff] }
 0x105   : > { %v4319_v14 = vmul.f32 0.5, %v3807_v63  ;;  %5341 = vst [vmem:[%s7311_s17 + $0x298] sm:$0xff] %v4829_v60  ;;  %v2792_v1 = vmul.f32 0.7978846, %v2280_v5  ;;  %v1769_v19 = vmul.f32 0.044715, %v1257_v61  ;;  %v747_v24 = vmul.f32 %v8016_v57, %v8016_v57 }
 0x106   : > { %v6101_v16 = vpop.eup %6100  ;;  %v4830_v20 = vmul.f32 %v4318_v49, %v7896_v25  ;;  %6112 = vtanh.f32 %v2790_v32  ;;  %v1770_v59 = vmul.f32 0.044715, %v1258_v17  ;;  %v748_v29 = vmul.f32 %v8028_v23, %v8028_v23  ;;  %v8072_v61 = vld [vmem:[%s7165_s30 + $0x340] sm:$0xff] }
 0x107   : > { %v6103_v11 = vpop.eup %6102  ;;  %v4831_v27 = vmul.f32 %v4319_v14, %v7902_v36  ;;  %v3808_v2 = vadd.f32 1.0, %v6101_v16  ;;  %6114 = vtanh.f32 %v2791_v3  ;;  %v2281_v25 = vadd.f32 %v1769_v19, %v7996_v28 }
 0x108   : > { %v6105_v35 = vpop.eup %6104  ;;  %5342 = vst [vmem:[%s7311_s17 + $0x2a0] sm:$0xff] %v4830_v20  ;;  %v3809_v34 = vadd.f32 1.0, %v6103_v11  ;;  %v1259_v4 = vmul.f32 %v747_v24, %v8016_v57  ;;  %6116 = vtanh.f32 %v2792_v1  ;;  %v2282_v36 = vadd.f32 %v1770_v59, %v8003_v43 }
 0x109   : > { %5343 = vst [vmem:[%s7311_s17 + $0x2a8] sm:$0xff] %v4831_v27  ;;  %v4320_v26 = vmul.f32 0.5, %v3808_v2  ;;  %v3810_v30 = vadd.f32 1.0, %v6105_v35  ;;  %v2793_v15 = vmul.f32 0.7978846, %v2281_v25  ;;  %v749_v21 = vmul.f32 %v8034_v44, %v8034_v44 }
 0x10a   : > { %v4321_v50 = vmul.f32 0.5, %v3809_v34  ;;  %v1771_v0 = vmul.f32 0.044715, %v1259_v4  ;;  %v2794_v46 = vmul.f32 0.7978846, %v2282_v36  ;;  %v1260_v31 = vmul.f32 %v748_v29, %v8028_v23 }
 0x10b   : > { %v6107_v56 = vpop.eup %6106  ;;  %v4832_v42 = vmul.f32 %v4320_v26, %v7917_v13  ;;  %v4322_v22 = vmul.f32 0.5, %v3810_v30  ;;  %6118 = vtanh.f32 %v2793_v15  ;;  %v1261_v8 = vmul.f32 %v749_v21, %v8034_v44 }
 0x10c   : > { %v4833_v7 = vmul.f32 %v4321_v50, %v7922_v52  ;;  %v3811_v54 = vadd.f32 1.0, %v6107_v56  ;;  %v2283_v55 = vadd.f32 %v1771_v0, %v8016_v57  ;;  %6120 = vtanh.f32 %v2794_v46 }
 0x10d   : > { %v6109_v13 = vpop.eup %6108  ;;  %5344 = vst [vmem:[%s7311_s17 + $0x2b0] sm:$0xff] %v4832_v42  ;;  %v4834_v9 = vmul.f32 %v4322_v22, %v7928_v58  ;;  %v750_v39 = vmul.f32 %v8044_v37, %v8044_v37  ;;  %v1772_v45 = vmul.f32 0.044715, %v1260_v31  ;;  %v1773_v10 = vmul.f32 0.044715, %v1261_v8  ;;  %v8095_v31 = vld [vmem:[%s7165_s30 + $0x348] sm:$0xff] }
 0x10e   : > { %5345 = vst [vmem:[%s7311_s17 + $0x2b8] sm:$0xff] %v4833_v7  ;;  %v4323_v52 = vmul.f32 0.5, %v3811_v54  ;;  %v3812_v47 = vadd.f32 1.0, %v6109_v13  ;;  %v2795_v53 = vmul.f32 0.7978846, %v2283_v55  ;;  %v751_v58 = vmul.f32 %v8049_v40, %v8049_v40  ;;  %v8098_v8 = vld [vmem:[%s7165_s30 + $0x350] sm:$0xff] }
 0x10f   : > { %5346 = vst [vmem:[%s7311_s17 + $0x2c0] sm:$0xff] %v4834_v9  ;;  %v752_v63 = vmul.f32 %v8052_v48, %v8052_v48  ;;  %v6111_v38 = vpop.eup %6110  ;;  %v1262_v5 = vmul.f32 %v750_v39, %v8044_v37  ;;  %v2284_v32 = vadd.f32 %v1772_v45, %v8028_v23  ;;  %v2285_v3 = vadd.f32 %v1773_v10, %v8034_v44  ;;  %v8103_v45 = vld [vmem:[%s7165_s30 + $0x358] sm:$0xff] }
 0x110   : > { %v4835_v60 = vmul.f32 %v4323_v52, %v7933_v62  ;;  %v4324_v49 = vmul.f32 0.5, %v3812_v47  ;;  %6122 = vtanh.f32 %v2795_v53  ;;  %v3813_v14 = vadd.f32 1.0, %v6111_v38 }
 0x111   : > { %v1263_v17 = vmul.f32 %v751_v58, %v8049_v40  ;;  %v1774_v20 = vmul.f32 0.044715, %v1262_v5  ;;  %v1264_v62 = vmul.f32 %v752_v63, %v8052_v48  ;;  %v753_v1 = vmul.f32 %v8067_v6, %v8067_v6 }
 0x112   : > { %5347 = vst [vmem:[%s7311_s17 + $0x2c8] sm:$0xff] %v4835_v60  ;;  %v4836_v16 = vmul.f32 %v4324_v49, %v7953_v41  ;;  %v4325_v19 = vmul.f32 0.5, %v3813_v14  ;;  %v2796_v24 = vmul.f32 0.7978846, %v2284_v32  ;;  %v2797_v11 = vmul.f32 0.7978846, %v2285_v3 }
 0x113   : > { %v754_v27 = vmul.f32 %v8072_v61, %v8072_v61  ;;  %v6113_v2 = vpop.eup %6112  ;;  %v2286_v59 = vadd.f32 %v1774_v20, %v8044_v37  ;;  %v1775_v35 = vmul.f32 0.044715, %v1263_v17  ;;  %v1776_v34 = vmul.f32 0.044715, %v1264_v62  ;;  %v8121_v3 = vld [vmem:[%s7165_s30 + $0x368] sm:$0xff]  ;;  %v8124_v17 = vld [vmem:[%s7165_s30 + $0x370] sm:$0xff] }
 0x114   : > { %5348 = vst [vmem:[%s7311_s17 + $0x2d0] sm:$0xff] %v4836_v16  ;;  %v1265_v41 = vmul.f32 %v753_v1, %v8067_v6  ;;  %v6115_v25 = vpop.eup %6114  ;;  %v4837_v4 = vmul.f32 %v4325_v19, %v7964_v51  ;;  %v3814_v26 = vadd.f32 1.0, %v6113_v2  ;;  %6124 = vtanh.f32 %v2796_v24  ;;  %v8129_v1 = vld [vmem:[%s7165_s30 + $0x378] sm:$0xff] }
 0x115   : > { %v1266_v30 = vmul.f32 %v754_v27, %v8072_v61  ;;  %v6117_v36 = vpop.eup %6116  ;;  %v3815_v50 = vadd.f32 1.0, %v6115_v25  ;;  %6126 = vtanh.f32 %v2797_v11  ;;  %v2798_v15 = vmul.f32 0.7978846, %v2286_v59 }
 0x116   : > { %v2287_v0 = vadd.f32 %v1775_v35, %v8049_v40  ;;  %5349 = vst [vmem:[%s7311_s17 + $0x2d8] sm:$0xff] %v4837_v4  ;;  %v4326_v29 = vmul.f32 0.5, %v3814_v26  ;;  %v3816_v56 = vadd.f32 1.0, %v6117_v36  ;;  %v2288_v42 = vadd.f32 %v1776_v34, %v8052_v48 }
 0x117   : > { %v1777_v22 = vmul.f32 0.044715, %v1265_v41  ;;  %v4327_v46 = vmul.f32 0.5, %v3815_v50  ;;  %6128 = vtanh.f32 %v2798_v15  ;;  %v1778_v21 = vmul.f32 0.044715, %v1266_v30  ;;  %v8148_v15 = vld [vmem:[%s7165_s30 + $0x380] sm:$0xff] }
 0x118   : > { %v2799_v51 = vmul.f32 0.7978846, %v2287_v0  ;;  %v6119_v7 = vpop.eup %6118  ;;  %v4838_v54 = vmul.f32 %v4326_v29, %v7975_v33  ;;  %v4328_v55 = vmul.f32 0.5, %v3816_v56  ;;  %v2800_v13 = vmul.f32 0.7978846, %v2288_v42  ;;  %v8106_v33 = vld [vmem:[%s7165_s30 + $0x360] sm:$0xff] }
 0x119   : > { %v2289_v9 = vadd.f32 %v1777_v22, %v8067_v6  ;;  %v6121_v52 = vpop.eup %6120  ;;  %v4839_v47 = vmul.f32 %v4327_v46, %v7978_v12  ;;  %v3817_v53 = vadd.f32 1.0, %v6119_v7  ;;  %v2290_v39 = vadd.f32 %v1778_v21, %v8072_v61 }
 0x11a   : > { %6130 = vtanh.f32 %v2799_v51  ;;  %5350 = vst [vmem:[%s7311_s17 + $0x2e0] sm:$0xff] %v4838_v54  ;;  %v4840_v10 = vmul.f32 %v4328_v55, %v7983_v18  ;;  %v3818_v58 = vadd.f32 1.0, %v6121_v52  ;;  %v755_v60 = vmul.f32 %v8095_v31, %v8095_v31 }
 0x11b   : > { %6132 = vtanh.f32 %v2800_v13  ;;  %v2801_v63 = vmul.f32 0.7978846, %v2289_v9  ;;  %5351 = vst [vmem:[%s7311_s17 + $0x2e8] sm:$0xff] %v4839_v47  ;;  %v4329_v38 = vmul.f32 0.5, %v3817_v53  ;;  %v2802_v12 = vmul.f32 0.7978846, %v2290_v39 }
 0x11c   : > { %v756_v49 = vmul.f32 %v8098_v8, %v8098_v8  ;;  %5352 = vst [vmem:[%s7311_s17 + $0x2f0] sm:$0xff] %v4840_v10  ;;  %v4330_v14 = vmul.f32 0.5, %v3818_v58  ;;  %v757_v18 = vmul.f32 %v8103_v45, %v8103_v45  ;;  %v758_v32 = vmul.f32 %v8106_v33, %v8106_v33 }
 0x11d   : > { %v6123_v5 = vpop.eup %6122  ;;  %6134 = vtanh.f32 %v2801_v63  ;;  %v4841_v16 = vmul.f32 %v4329_v38, %v7996_v28  ;;  %v1267_v62 = vmul.f32 %v755_v60, %v8095_v31  ;;  %v759_v28 = vmul.f32 %v8121_v3, %v8121_v3 }
 0x11e   : > { %v3819_v20 = vadd.f32 1.0, %v6123_v5  ;;  %6136 = vtanh.f32 %v2802_v12  ;;  %v4842_v19 = vmul.f32 %v4330_v14, %v8003_v43  ;;  %v1268_v24 = vmul.f32 %v756_v49, %v8098_v8 }
 0x11f   : > { %v1269_v11 = vmul.f32 %v757_v18, %v8103_v45  ;;  %v1270_v27 = vmul.f32 %v758_v32, %v8106_v33  ;;  %5353 = vst [vmem:[%s7311_s17 + $0x2f8] sm:$0xff] %v4841_v16  ;;  %v1779_v59 = vmul.f32 0.044715, %v1267_v62  ;;  %v760_v35 = vmul.f32 %v8124_v17, %v8124_v17  ;;  %v8166_v62 = vld [vmem:[%s7165_s30 + $0x388] sm:$0xff] }
 0x120   : > { %v4331_v2 = vmul.f32 0.5, %v3819_v20  ;;  %5354 = vst [vmem:[%s7311_s17 + $0x300] sm:$0xff] %v4842_v19  ;;  %v1780_v34 = vmul.f32 0.044715, %v1268_v24  ;;  %v761_v25 = vmul.f32 %v8129_v1, %v8129_v1  ;;  %v1271_v36 = vmul.f32 %v759_v28, %v8121_v3 }
 0x121   : > { %v1781_v43 = vmul.f32 0.044715, %v1269_v11  ;;  %v1782_v41 = vmul.f32 0.044715, %v1270_v27  ;;  %v6125_v4 = vpop.eup %6124  ;;  %v2291_v30 = vadd.f32 %v1779_v59, %v8095_v31  ;;  %v1272_v50 = vmul.f32 %v760_v35, %v8124_v17 }
 0x122   : > { %v4843_v26 = vmul.f32 %v4331_v2, %v8016_v57  ;;  %v6127_v0 = vpop.eup %6126  ;;  %v3820_v29 = vadd.f32 1.0, %v6125_v4  ;;  %v2292_v56 = vadd.f32 %v1780_v34, %v8098_v8  ;;  %v1783_v57 = vmul.f32 0.044715, %v1271_v36  ;;  %v8169_v2 = vld [vmem:[%s7165_s30 + $0x390] sm:$0xff]  ;;  %v8175_v34 = vld [vmem:[%s7165_s30 + $0x398] sm:$0xff] }
 0x123   : > { %v2293_v42 = vadd.f32 %v1781_v43, %v8103_v45  ;;  %v2294_v22 = vadd.f32 %v1782_v41, %v8106_v33  ;;  %v3821_v46 = vadd.f32 1.0, %v6127_v0  ;;  %v2803_v51 = vmul.f32 0.7978846, %v2291_v30  ;;  %v8178_v43 = vld [vmem:[%s7165_s30 + $0x3a0] sm:$0xff] }
 0x124   : > { %5355 = vst [vmem:[%s7311_s17 + $0x308] sm:$0xff] %v4843_v26  ;;  %v1273_v21 = vmul.f32 %v761_v25, %v8129_v1  ;;  %v6129_v7 = vpop.eup %6128  ;;  %v4332_v54 = vmul.f32 0.5, %v3820_v29  ;;  %v2804_v55 = vmul.f32 0.7978846, %v2292_v56  ;;  %v762_v9 = vmul.f32 %v8148_v15, %v8148_v15 }
 0x125   : > { %v2805_v13 = vmul.f32 0.7978846, %v2293_v42  ;;  %v4333_v52 = vmul.f32 0.5, %v3821_v46  ;;  %v3822_v47 = vadd.f32 1.0, %v6129_v7  ;;  %6138 = vtanh.f32 %v2803_v51  ;;  %v8198_v42 = vld [vmem:[%s7165_s30 + $0x3b0] sm:$0xff] }
 0x126   : > { %v2806_v53 = vmul.f32 0.7978846, %v2294_v22  ;;  %v4844_v10 = vmul.f32 %v4332_v54, %v8028_v23  ;;  %6140 = vtanh.f32 %v2804_v55  ;;  %v2295_v58 = vadd.f32 %v1783_v57, %v8121_v3  ;;  %v8201_v22 = vld [vmem:[%s7165_s30 + $0x3b8] sm:$0xff] }
 0x127   : > { %v6131_v39 = vpop.eup %6130  ;;  %v1784_v63 = vmul.f32 0.044715, %v1272_v50  ;;  %v4845_v12 = vmul.f32 %v4333_v52, %v8034_v44  ;;  %v4334_v60 = vmul.f32 0.5, %v3822_v47  ;;  %6142 = vtanh.f32 %v2805_v13  ;;  %v8188_v50 = vld [vmem:[%s7165_s30 + $0x3a8] sm:$0xff] }
 0x128   : > { %v6133_v38 = vpop.eup %6132  ;;  %v3823_v49 = vadd.f32 1.0, %v6131_v39  ;;  %5356 = vst [vmem:[%s7311_s17 + $0x310] sm:$0xff] %v4844_v10  ;;  %6144 = vtanh.f32 %v2806_v53  ;;  %v2807_v14 = vmul.f32 0.7978846, %v2295_v58  ;;  %v1785_v20 = vmul.f32 0.044715, %v1273_v21 }
 0x129   : > { %v3824_v5 = vadd.f32 1.0, %v6133_v38  ;;  %v2296_v18 = vadd.f32 %v1784_v63, %v8124_v17  ;;  %5357 = vst [vmem:[%s7311_s17 + $0x318] sm:$0xff] %v4845_v12  ;;  %v4846_v32 = vmul.f32 %v4334_v60, %v8044_v37  ;;  %v1274_v44 = vmul.f32 %v762_v9, %v8148_v15 }
 0x12a   : > { %v6135_v23 = vpop.eup %6134  ;;  %v4335_v16 = vmul.f32 0.5, %v3823_v49  ;;  %6146 = vtanh.f32 %v2807_v14  ;;  %v2297_v28 = vadd.f32 %v1785_v20, %v8129_v1  ;;  %v763_v4 = vmul.f32 %v8166_v62, %v8166_v62 }
 0x12b   : > { %v6137_v19 = vpop.eup %6136  ;;  %v4336_v24 = vmul.f32 0.5, %v3824_v5  ;;  %v3825_v11 = vadd.f32 1.0, %v6135_v23  ;;  %v2808_v27 = vmul.f32 0.7978846, %v2296_v18  ;;  %5358 = vst [vmem:[%s7311_s17 + $0x320] sm:$0xff] %v4846_v32  ;;  %v764_v36 = vmul.f32 %v8169_v2, %v8169_v2 }
 0x12c   : > { %v4847_v37 = vmul.f32 %v4335_v16, %v8049_v40  ;;  %v3826_v59 = vadd.f32 1.0, %v6137_v19  ;;  %v1786_v35 = vmul.f32 0.044715, %v1274_v44  ;;  %v2809_v26 = vmul.f32 0.7978846, %v2297_v28 }
 0x12d   : > { %v4848_v41 = vmul.f32 %v4336_v24, %v8052_v48  ;;  %v4337_v25 = vmul.f32 0.5, %v3825_v11  ;;  %6148 = vtanh.f32 %v2808_v27  ;;  %v1275_v0 = vmul.f32 %v763_v4, %v8166_v62  ;;  %v8225_v4 = vld [vmem:[%s7165_s30 + $0x3c0] sm:$0xff] }
 0x12e   : > { %5359 = vst [vmem:[%s7311_s17 + $0x328] sm:$0xff] %v4847_v37  ;;  %v4338_v40 = vmul.f32 0.5, %v3826_v59  ;;  %v2298_v30 = vadd.f32 %v1786_v35, %v8148_v15  ;;  %v765_v29 = vmul.f32 %v8175_v34, %v8175_v34  ;;  %v766_v56 = vmul.f32 %v8178_v43, %v8178_v43 }
 0x12f   : > { %5360 = vst [vmem:[%s7311_s17 + $0x330] sm:$0xff] %v4848_v41  ;;  %v4849_v48 = vmul.f32 %v4337_v25, %v8067_v6  ;;  %6150 = vtanh.f32 %v2809_v26  ;;  %v1276_v57 = vmul.f32 %v764_v36, %v8169_v2  ;;  %v1787_v6 = vmul.f32 0.044715, %v1275_v0 }
 0x130   : > { %v4850_v46 = vmul.f32 %v4338_v40, %v8072_v61  ;;  %v2810_v51 = vmul.f32 0.7978846, %v2298_v30  ;;  %v1277_v21 = vmul.f32 %v765_v29, %v8175_v34  ;;  %v1278_v7 = vmul.f32 %v766_v56, %v8178_v43  ;;  %v8228_v40 = vld [vmem:[%s7165_s30 + $0x3c8] sm:$0xff] }
 0x131   : > { %5361 = vst [vmem:[%s7311_s17 + $0x338] sm:$0xff] %v4849_v48  ;;  %v767_v54 = vmul.f32 %v8188_v50, %v8188_v50  ;;  %v1788_v55 = vmul.f32 0.044715, %v1276_v57  ;;  %v768_v13 = vmul.f32 %v8198_v42, %v8198_v42  ;;  %v769_v61 = vmul.f32 %v8201_v22, %v8201_v22  ;;  %v8234_v48 = vld [vmem:[%s7165_s30 + $0x3d0] sm:$0xff] }
 0x132   : > { %5362 = vst [vmem:[%s7311_s17 + $0x340] sm:$0xff] %v4850_v46  ;;  %6152 = vtanh.f32 %v2810_v51  ;;  %v6139_v9 = vpop.eup %6138  ;;  %v2299_v52 = vadd.f32 %v1787_v6, %v8166_v62  ;;  %v1789_v47 = vmul.f32 0.044715, %v1277_v21  ;;  %v1790_v53 = vmul.f32 0.044715, %v1278_v7 }
 0x133   : > { %v1279_v39 = vmul.f32 %v767_v54, %v8188_v50  ;;  %v6141_v10 = vpop.eup %6140  ;;  %v3827_v58 = vadd.f32 1.0, %v6139_v9  ;;  %v2300_v63 = vadd.f32 %v1788_v55, %v8169_v2  ;;  %v1280_v38 = vmul.f32 %v768_v13, %v8198_v42  ;;  %v8251_v9 = vld [vmem:[%s7165_s30 + $0x3d8] sm:$0xff] }
 0x134   : > { %v1281_v12 = vmul.f32 %v769_v61, %v8201_v22  ;;  %v6143_v60 = vpop.eup %6142  ;;  %v3828_v49 = vadd.f32 1.0, %v6141_v10  ;;  %v2811_v5 = vmul.f32 0.7978846, %v2299_v52  ;;  %v2301_v14 = vadd.f32 %v1789_v47, %v8175_v34  ;;  %v8258_v10 = vld [vmem:[%s7165_s30 + $0x3e0] sm:$0xff] }
 0x135   : > { %v2302_v18 = vadd.f32 %v1790_v53, %v8178_v43  ;;  %v6145_v23 = vpop.eup %6144  ;;  %v4339_v32 = vmul.f32 0.5, %v3827_v58  ;;  %v3829_v16 = vadd.f32 1.0, %v6143_v60  ;;  %v2812_v20 = vmul.f32 0.7978846, %v2300_v63 }
 0x136   : > { %v1791_v44 = vmul.f32 0.044715, %v1279_v39  ;;  %v4340_v19 = vmul.f32 0.5, %v3828_v49  ;;  %v3830_v24 = vadd.f32 1.0, %v6145_v23  ;;  %6154 = vtanh.f32 %v2811_v5  ;;  %v8267_v5 = vld [vmem:[%s7165_s30 + $0x3f0] sm:$0xff] }
 0x137   : > { %v2813_v11 = vmul.f32 0.7978846, %v2301_v14  ;;  %v6147_v27 = vpop.eup %6146  ;;  %v4851_v37 = vmul.f32 %v4339_v32, %v8095_v31  ;;  %v4341_v59 = vmul.f32 0.5, %v3829_v16  ;;  %6156 = vtanh.f32 %v2812_v20 }
 0x138   : > { %v2814_v28 = vmul.f32 0.7978846, %v2302_v18  ;;  %v4852_v35 = vmul.f32 %v4340_v19, %v8098_v8  ;;  %v4342_v41 = vmul.f32 0.5, %v3830_v24  ;;  %v3831_v25 = vadd.f32 1.0, %v6147_v27 }
 0x139   : > { %6158 = vtanh.f32 %v2813_v11  ;;  %5363 = vst [vmem:[%s7311_s17 + $0x348] sm:$0xff] %v4851_v37  ;;  %v4853_v30 = vmul.f32 %v4341_v59, %v8103_v45  ;;  %v2303_v31 = vadd.f32 %v1791_v44, %v8188_v50  ;;  %v1792_v36 = vmul.f32 0.044715, %v1280_v38 }
 0x13a   : > { %v6149_v26 = vpop.eup %6148  ;;  %6160 = vtanh.f32 %v2814_v28  ;;  %5364 = vst [vmem:[%s7311_s17 + $0x350] sm:$0xff] %v4852_v35  ;;  %v4854_v8 = vmul.f32 %v4342_v41, %v8106_v33  ;;  %v4343_v0 = vmul.f32 0.5, %v3831_v25  ;;  %v1793_v56 = vmul.f32 0.044715, %v1281_v12  ;;  %v8261_v12 = vld [vmem:[%s7165_s30 + $0x3e8] sm:$0xff] }
 0x13b   : > { %v3832_v29 = vadd.f32 1.0, %v6149_v26  ;;  %5365 = vst [vmem:[%s7311_s17 + $0x358] sm:$0xff] %v4853_v30  ;;  %v2815_v46 = vmul.f32 0.7978846, %v2303_v31  ;;  %v2304_v51 = vadd.f32 %v1792_v36, %v8198_v42  ;;  %v770_v45 = vmul.f32 %v8225_v4, %v8225_v4 }
 0x13c   : > { %v771_v57 = vmul.f32 %v8228_v40, %v8228_v40  ;;  %v6151_v6 = vpop.eup %6150  ;;  %5366 = vst [vmem:[%s7311_s17 + $0x360] sm:$0xff] %v4854_v8  ;;  %v4855_v33 = vmul.f32 %v4343_v0, %v8121_v3  ;;  %v2305_v7 = vadd.f32 %v1793_v56, %v8201_v22  ;;  %v772_v54 = vmul.f32 %v8234_v48, %v8234_v48 }
 0x13d   : > { %v4344_v21 = vmul.f32 0.5, %v3832_v29  ;;  %v3833_v55 = vadd.f32 1.0, %v6151_v6  ;;  %6162 = vtanh.f32 %v2815_v46  ;;  %v2816_v13 = vmul.f32 0.7978846, %v2304_v51 }
 0x13e   : > { %v1282_v61 = vmul.f32 %v770_v45, %v8225_v4  ;;  %5367 = vst [vmem:[%s7311_s17 + $0x368] sm:$0xff] %v4855_v33  ;;  %v2817_v47 = vmul.f32 0.7978846, %v2305_v7  ;;  %v1283_v53 = vmul.f32 %v771_v57, %v8228_v40  ;;  %v1284_v39 = vmul.f32 %v772_v54, %v8234_v48  ;;  %v8287_v45 = vld [vmem:[%s7165_s30 + $0x3f8] sm:$0xff] }
 0x13f   : > { %v6153_v52 = vpop.eup %6152  ;;  %v4856_v3 = vmul.f32 %v4344_v21, %v8124_v17  ;;  %v4345_v58 = vmul.f32 0.5, %v3833_v55  ;;  %6164 = vtanh.f32 %v2816_v13  ;;  %v773_v17 = vmul.f32 %v8251_v9, %v8251_v9 }
 0x140   : > { %v3834_v63 = vadd.f32 1.0, %v6153_v52  ;;  %v1794_v38 = vmul.f32 0.044715, %v1282_v61  ;;  %6166 = vtanh.f32 %v2817_v47  ;;  %v1795_v60 = vmul.f32 0.044715, %v1283_v53  ;;  %v8295_v61 = vld [vmem:[%s7165_s30 + $0x400] sm:$0xff] }
 0x141   : > { %5368 = vst [vmem:[%s7311_s17 + $0x370] sm:$0xff] %v4856_v3  ;;  %v1796_v49 = vmul.f32 0.044715, %v1284_v39  ;;  %v4857_v14 = vmul.f32 %v4345_v58, %v8129_v1  ;;  %v774_v32 = vmul.f32 %v8258_v10, %v8258_v10  ;;  %v1285_v44 = vmul.f32 %v773_v17, %v8251_v9  ;;  %v8298_v52 = vld [vmem:[%s7165_s30 + $0x408] sm:$0xff]  ;;  %v8313_v17 = vld [vmem:[%s7165_s30 + $0x410] sm:$0xff] }
 0x142   : > { %v4346_v18 = vmul.f32 0.5, %v3834_v63  ;;  %v2306_v23 = vadd.f32 %v1794_v38, %v8225_v4  ;;  %v2307_v16 = vadd.f32 %v1795_v60, %v8228_v40  ;;  %v775_v19 = vmul.f32 %v8261_v12, %v8261_v12 }
 0x143   : > { %v2308_v20 = vadd.f32 %v1796_v49, %v8234_v48  ;;  %v6155_v24 = vpop.eup %6154  ;;  %5369 = vst [vmem:[%s7311_s17 + $0x378] sm:$0xff] %v4857_v14  ;;  %v1286_v27 = vmul.f32 %v774_v32, %v8258_v10  ;;  %v776_v37 = vmul.f32 %v8267_v5, %v8267_v5  ;;  %v1797_v31 = vmul.f32 0.044715, %v1285_v44 }
 0x144   : > { %v4858_v1 = vmul.f32 %v4346_v18, %v8148_v15  ;;  %v2818_v11 = vmul.f32 0.7978846, %v2306_v23  ;;  %v6157_v59 = vpop.eup %6156  ;;  %v3835_v28 = vadd.f32 1.0, %v6155_v24  ;;  %v2819_v35 = vmul.f32 0.7978846, %v2307_v16 }
 0x145   : > { %v2820_v41 = vmul.f32 0.7978846, %v2308_v20  ;;  %v1287_v25 = vmul.f32 %v775_v19, %v8261_v12  ;;  %v3836_v30 = vadd.f32 1.0, %v6157_v59  ;;  %v1798_v36 = vmul.f32 0.044715, %v1286_v27  ;;  %v8320_v19 = vld [vmem:[%s7165_s30 + $0x418] sm:$0xff] }
 0x146   : > { %v6159_v26 = vpop.eup %6158  ;;  %5370 = vst [vmem:[%s7311_s17 + $0x380] sm:$0xff] %v4858_v1  ;;  %6168 = vtanh.f32 %v2818_v11  ;;  %v4347_v8 = vmul.f32 0.5, %v3835_v28  ;;  %v2309_v51 = vadd.f32 %v1797_v31, %v8251_v9  ;;  %v1288_v13 = vmul.f32 %v776_v37, %v8267_v5 }
 0x147   : > { %v6161_v15 = vpop.eup %6160  ;;  %v3837_v0 = vadd.f32 1.0, %v6159_v26  ;;  %6170 = vtanh.f32 %v2819_v35  ;;  %v1799_v29 = vmul.f32 0.044715, %v1287_v25  ;;  %v4348_v56 = vmul.f32 0.5, %v3836_v30 }
 0x148   : > { %v3838_v46 = vadd.f32 1.0, %v6161_v15  ;;  %6172 = vtanh.f32 %v2820_v41  ;;  %v4859_v57 = vmul.f32 %v4347_v8, %v8166_v62  ;;  %v2310_v33 = vadd.f32 %v1798_v36, %v8258_v10  ;;  %v8327_v41 = vld [vmem:[%s7165_s30 + $0x420] sm:$0xff] }
 0x149   : > { %v4349_v6 = vmul.f32 0.5, %v3837_v0  ;;  %v2311_v21 = vadd.f32 %v1799_v29, %v8261_v12  ;;  %v4860_v7 = vmul.f32 %v4348_v56, %v8169_v2  ;;  %v2821_v55 = vmul.f32 0.7978846, %v2309_v51  ;;  %v8342_v51 = vld [vmem:[%s7165_s30 + $0x428] sm:$0xff] }
 0x14a   : > { %v4350_v54 = vmul.f32 0.5, %v3838_v46  ;;  %v6163_v3 = vpop.eup %6162  ;;  %5371 = vst [vmem:[%s7311_s17 + $0x388] sm:$0xff] %v4859_v57  ;;  %v2822_v47 = vmul.f32 0.7978846, %v2310_v33  ;;  %v777_v2 = vmul.f32 %v8287_v45, %v8287_v45  ;;  %v1800_v63 = vmul.f32 0.044715, %v1288_v13 }
 0x14b   : > { %v4861_v62 = vmul.f32 %v4349_v6, %v8175_v34  ;;  %v2823_v53 = vmul.f32 0.7978846, %v2311_v21  ;;  %5372 = vst [vmem:[%s7311_s17 + $0x390] sm:$0xff] %v4860_v7  ;;  %v3839_v58 = vadd.f32 1.0, %v6163_v3  ;;  %6174 = vtanh.f32 %v2821_v55 }
 0x14c   : > { %v4862_v39 = vmul.f32 %v4350_v54, %v8178_v43  ;;  %v6165_v38 = vpop.eup %6164  ;;  %6176 = vtanh.f32 %v2822_v47  ;;  %v1289_v60 = vmul.f32 %v777_v2, %v8287_v45  ;;  %v778_v34 = vmul.f32 %v8295_v61, %v8295_v61  ;;  %v8350_v47 = vld [vmem:[%s7165_s30 + $0x430] sm:$0xff] }
 0x14d   : > { %5373 = vst [vmem:[%s7311_s17 + $0x398] sm:$0xff] %v4861_v62  ;;  %v779_v49 = vmul.f32 %v8298_v52, %v8298_v52  ;;  %v6167_v14 = vpop.eup %6166  ;;  %v4351_v43 = vmul.f32 0.5, %v3839_v58  ;;  %v3840_v18 = vadd.f32 1.0, %v6165_v38  ;;  %6178 = vtanh.f32 %v2823_v53 }
 0x14e   : > { %5374 = vst [vmem:[%s7311_s17 + $0x3a0] sm:$0xff] %v4862_v39  ;;  %v2312_v23 = vadd.f32 %v1800_v63, %v8267_v5  ;;  %v3841_v32 = vadd.f32 1.0, %v6167_v14  ;;  %v1801_v16 = vmul.f32 0.044715, %v1289_v60  ;;  %v1290_v20 = vmul.f32 %v778_v34, %v8295_v61 }
 0x14f   : > { %v1291_v44 = vmul.f32 %v779_v49, %v8298_v52  ;;  %v4863_v24 = vmul.f32 %v4351_v43, %v8188_v50  ;;  %v4352_v1 = vmul.f32 0.5, %v3840_v18  ;;  %v780_v27 = vmul.f32 %v8313_v17, %v8313_v17  ;;  %v8357_v49 = vld [vmem:[%s7165_s30 + $0x438] sm:$0xff] }
 0x150   : > { %v2824_v11 = vmul.f32 0.7978846, %v2312_v23  ;;  %v4353_v37 = vmul.f32 0.5, %v3841_v32  ;;  %v2313_v59 = vadd.f32 %v1801_v16, %v8287_v45  ;;  %v1802_v28 = vmul.f32 0.044715, %v1290_v20 }
 0x151   : > { %v1803_v35 = vmul.f32 0.044715, %v1291_v44  ;;  %5375 = vst [vmem:[%s7311_s17 + $0x3a8] sm:$0xff] %v4863_v24  ;;  %v4864_v25 = vmul.f32 %v4352_v1, %v8198_v42  ;;  %v1292_v50 = vmul.f32 %v780_v27, %v8313_v17  ;;  %v781_v26 = vmul.f32 %v8320_v19, %v8320_v19 }
 0x152   : > { %6180 = vtanh.f32 %v2824_v11  ;;  %v4865_v31 = vmul.f32 %v4353_v37, %v8201_v22  ;;  %v2825_v36 = vmul.f32 0.7978846, %v2313_v59  ;;  %v2314_v15 = vadd.f32 %v1802_v28, %v8295_v61  ;;  %v8370_v11 = vld [vmem:[%s7165_s30 + $0x440] sm:$0xff] }
 0x153   : > { %v6169_v30 = vpop.eup %6168  ;;  %v2315_v8 = vadd.f32 %v1803_v35, %v8298_v52  ;;  %5376 = vst [vmem:[%s7311_s17 + $0x3b0] sm:$0xff] %v4864_v25  ;;  %v1804_v56 = vmul.f32 0.044715, %v1292_v50  ;;  %v1293_v42 = vmul.f32 %v781_v26, %v8320_v19  ;;  %v782_v46 = vmul.f32 %v8327_v41, %v8327_v41  ;;  %v8376_v26 = vld [vmem:[%s7165_s30 + $0x448] sm:$0xff] }
 0x154   : > { %v6171_v0 = vpop.eup %6170  ;;  %v3842_v29 = vadd.f32 1.0, %v6169_v30  ;;  %5377 = vst [vmem:[%s7311_s17 + $0x3b8] sm:$0xff] %v4865_v31  ;;  %6182 = vtanh.f32 %v2825_v36  ;;  %v2826_v6 = vmul.f32 0.7978846, %v2314_v15  ;;  %v783_v62 = vmul.f32 %v8342_v51, %v8342_v51  ;;  %v8379_v30 = vld [vmem:[%s7165_s30 + $0x450] sm:$0xff] }
 0x155   : > { %v6173_v57 = vpop.eup %6172  ;;  %v3843_v22 = vadd.f32 1.0, %v6171_v0  ;;  %v2827_v33 = vmul.f32 0.7978846, %v2315_v8  ;;  %v2316_v54 = vadd.f32 %v1804_v56, %v8313_v17  ;;  %v1805_v55 = vmul.f32 0.044715, %v1293_v42  ;;  %v8385_v0 = vld [vmem:[%s7165_s30 + $0x458] sm:$0xff] }
 0x156   : > { %v4354_v21 = vmul.f32 0.5, %v3842_v29  ;;  %v3844_v7 = vadd.f32 1.0, %v6173_v57  ;;  %6184 = vtanh.f32 %v2826_v6  ;;  %v1294_v3 = vmul.f32 %v782_v46, %v8327_v41 }
 0x157   : > { %v4355_v13 = vmul.f32 0.5, %v3843_v22  ;;  %6186 = vtanh.f32 %v2827_v33  ;;  %v2828_v39 = vmul.f32 0.7978846, %v2316_v54  ;;  %v2317_v38 = vadd.f32 %v1805_v55, %v8320_v19 }
 0x158   : > { %v4866_v53 = vmul.f32 %v4354_v21, %v8225_v4  ;;  %v4356_v2 = vmul.f32 0.5, %v3844_v7  ;;  %v6175_v58 = vpop.eup %6174  ;;  %v1806_v60 = vmul.f32 0.044715, %v1294_v3  ;;  %v1295_v34 = vmul.f32 %v783_v62, %v8342_v51 }
 0x159   : > { %v4867_v63 = vmul.f32 %v4355_v13, %v8228_v40  ;;  %v6177_v14 = vpop.eup %6176  ;;  %v3845_v43 = vadd.f32 1.0, %v6175_v58  ;;  %6188 = vtanh.f32 %v2828_v39  ;;  %v784_v18 = vmul.f32 %v8350_v47, %v8350_v47 }
 0x15a   : > { %5378 = vst [vmem:[%s7311_s17 + $0x3c0] sm:$0xff] %v4866_v53  ;;  %v4868_v4 = vmul.f32 %v4356_v2, %v8234_v48  ;;  %v6179_v23 = vpop.eup %6178  ;;  %v3846_v40 = vadd.f32 1.0, %v6177_v14  ;;  %v2829_v32 = vmul.f32 0.7978846, %v2317_v38  ;;  %v2318_v16 = vadd.f32 %v1806_v60, %v8327_v41 }
 0x15b   : > { %5379 = vst [vmem:[%s7311_s17 + $0x3c8] sm:$0xff] %v4867_v63  ;;  %v1807_v20 = vmul.f32 0.044715, %v1295_v34  ;;  %v4357_v44 = vmul.f32 0.5, %v3845_v43  ;;  %v3847_v24 = vadd.f32 1.0, %v6179_v23  ;;  %v1296_v1 = vmul.f32 %v784_v18, %v8350_v47  ;;  %v8407_v43 = vld [vmem:[%s7165_s30 + $0x460] sm:$0xff] }
 0x15c   : > { %5380 = vst [vmem:[%s7311_s17 + $0x3d0] sm:$0xff] %v4868_v4  ;;  %v785_v48 = vmul.f32 %v8357_v49, %v8357_v49  ;;  %v4358_v27 = vmul.f32 0.5, %v3846_v40  ;;  %6190 = vtanh.f32 %v2829_v32  ;;  %v2830_v37 = vmul.f32 0.7978846, %v2318_v16 }
 0x15d   : > { %v2319_v59 = vadd.f32 %v1807_v20, %v8342_v51  ;;  %v4869_v28 = vmul.f32 %v4357_v44, %v8251_v9  ;;  %v4359_v35 = vmul.f32 0.5, %v3847_v24  ;;  %v1808_v25 = vmul.f32 0.044715, %v1296_v1  ;;  %v8414_v1 = vld [vmem:[%s7165_s30 + $0x468] sm:$0xff] }
 0x15e   : > { %v1297_v50 = vmul.f32 %v785_v48, %v8357_v49  ;;  %v4870_v36 = vmul.f32 %v4358_v27, %v8258_v10  ;;  %6192 = vtanh.f32 %v2830_v37  ;;  %v786_v8 = vmul.f32 %v8370_v11, %v8370_v11  ;;  %v8421_v37 = vld [vmem:[%s7165_s30 + $0x470] sm:$0xff] }
 0x15f   : > { %v6181_v31 = vpop.eup %6180  ;;  %v2831_v15 = vmul.f32 0.7978846, %v2319_v59  ;;  %5381 = vst [vmem:[%s7311_s17 + $0x3d8] sm:$0xff] %v4869_v28  ;;  %v4871_v9 = vmul.f32 %v4359_v35, %v8261_v12  ;;  %v2320_v56 = vadd.f32 %v1808_v25, %v8350_v47  ;;  %v787_v10 = vmul.f32 %v8376_v26, %v8376_v26  ;;  %v8424_v59 = vld [vmem:[%s7165_s30 + $0x478] sm:$0xff] }
 0x160   : > { %v3848_v29 = vadd.f32 1.0, %v6181_v31  ;;  %v1809_v42 = vmul.f32 0.044715, %v1297_v50  ;;  %5382 = vst [vmem:[%s7311_s17 + $0x3e0] sm:$0xff] %v4870_v36  ;;  %v1298_v46 = vmul.f32 %v786_v8, %v8370_v11  ;;  %v788_v57 = vmul.f32 %v8379_v30, %v8379_v30  ;;  %v8432_v8 = vld [vmem:[%s7165_s30 + $0x480] sm:$0xff] }
 0x161   : > { %6194 = vtanh.f32 %v2831_v15  ;;  %v6183_v22 = vpop.eup %6182  ;;  %5383 = vst [vmem:[%s7311_s17 + $0x3e8] sm:$0xff] %v4871_v9  ;;  %v2832_v33 = vmul.f32 0.7978846, %v2320_v56  ;;  %v789_v21 = vmul.f32 %v8385_v0, %v8385_v0  ;;  %v1299_v55 = vmul.f32 %v787_v10, %v8376_v26 }
 0x162   : > { %v4360_v6 = vmul.f32 0.5, %v3848_v29  ;;  %v2321_v12 = vadd.f32 %v1809_v42, %v8357_v49  ;;  %v3849_v7 = vadd.f32 1.0, %v6183_v22  ;;  %v1810_v54 = vmul.f32 0.044715, %v1298_v46 }
 0x163   : > { %v1300_v13 = vmul.f32 %v788_v57, %v8379_v30  ;;  %v6185_v3 = vpop.eup %6184  ;;  %6196 = vtanh.f32 %v2832_v33  ;;  %v1301_v2 = vmul.f32 %v789_v21, %v8385_v0  ;;  %v1811_v60 = vmul.f32 0.044715, %v1299_v55 }
 0x164   : > { %v4872_v62 = vmul.f32 %v4360_v6, %v8267_v5  ;;  %v2833_v53 = vmul.f32 0.7978846, %v2321_v12  ;;  %v6187_v39 = vpop.eup %6186  ;;  %v4361_v58 = vmul.f32 0.5, %v3849_v7  ;;  %v3850_v63 = vadd.f32 1.0, %v6185_v3  ;;  %v8447_v12 = vld [vmem:[%s7165_s30 + $0x488] sm:$0xff] }
 0x165   : > { %v2322_v38 = vadd.f32 %v1810_v54, %v8370_v11  ;;  %v3851_v34 = vadd.f32 1.0, %v6187_v39  ;;  %v1812_v14 = vmul.f32 0.044715, %v1300_v13  ;;  %v1813_v4 = vmul.f32 0.044715, %v1301_v2 }
 0x166   : > { %5384 = vst [vmem:[%s7311_s17 + $0x3f0] sm:$0xff] %v4872_v62  ;;  %6198 = vtanh.f32 %v2833_v53  ;;  %v6189_v5 = vpop.eup %6188  ;;  %v4873_v18 = vmul.f32 %v4361_v58, %v8287_v45  ;;  %v4362_v23 = vmul.f32 0.5, %v3850_v63  ;;  %v2323_v32 = vadd.f32 %v1811_v60, %v8376_v26 }
 0x167   : > { %v2834_v40 = vmul.f32 0.7978846, %v2322_v38  ;;  %v4363_v16 = vmul.f32 0.5, %v3851_v34  ;;  %v3852_v20 = vadd.f32 1.0, %v6189_v5  ;;  %v2324_v44 = vadd.f32 %v1812_v14, %v8379_v30 }
 0x168   : > { %v2325_v24 = vadd.f32 %v1813_v4, %v8385_v0  ;;  %5385 = vst [vmem:[%s7311_s17 + $0x3f8] sm:$0xff] %v4873_v18  ;;  %v4874_v48 = vmul.f32 %v4362_v23, %v8295_v61  ;;  %v2835_v27 = vmul.f32 0.7978846, %v2323_v32  ;;  %v790_v45 = vmul.f32 %v8407_v43, %v8407_v43  ;;  %v8460_v4 = vld [vmem:[%s7165_s30 + $0x490] sm:$0xff] }
 0x169   : > { %6200 = vtanh.f32 %v2834_v40  ;;  %v6191_v28 = vpop.eup %6190  ;;  %v4875_v35 = vmul.f32 %v4363_v16, %v8298_v52  ;;  %v4364_v25 = vmul.f32 0.5, %v3852_v20  ;;  %v2836_v50 = vmul.f32 0.7978846, %v2324_v44  ;;  %v8466_v40 = vld [vmem:[%s7165_s30 + $0x498] sm:$0xff] }
 0x16a   : > { %v2837_v31 = vmul.f32 0.7978846, %v2325_v24  ;;  %5386 = vst [vmem:[%s7311_s17 + $0x400] sm:$0xff] %v4874_v48  ;;  %v3853_v36 = vadd.f32 1.0, %v6191_v28  ;;  %6202 = vtanh.f32 %v2835_v27  ;;  %v1302_v61 = vmul.f32 %v790_v45, %v8407_v43 }
 0x16b   : > { %v791_v15 = vmul.f32 %v8414_v1, %v8414_v1  ;;  %v6193_v9 = vpop.eup %6192  ;;  %5387 = vst [vmem:[%s7311_s17 + $0x408] sm:$0xff] %v4875_v35  ;;  %v4876_v29 = vmul.f32 %v4364_v25, %v8313_v17  ;;  %6204 = vtanh.f32 %v2836_v50  ;;  %v792_v52 = vmul.f32 %v8421_v37, %v8421_v37 }
 0x16c   : > { %v793_v56 = vmul.f32 %v8424_v59, %v8424_v59  ;;  %v4365_v42 = vmul.f32 0.5, %v3853_v36  ;;  %v3854_v46 = vadd.f32 1.0, %v6193_v9  ;;  %6206 = vtanh.f32 %v2837_v31 }
 0x16d   : > { %v1814_v10 = vmul.f32 0.044715, %v1302_v61  ;;  %5388 = vst [vmem:[%s7311_s17 + $0x410] sm:$0xff] %v4876_v29  ;;  %v1303_v22 = vmul.f32 %v791_v15, %v8414_v1  ;;  %v1304_v6 = vmul.f32 %v792_v52, %v8421_v37  ;;  %v794_v33 = vmul.f32 %v8432_v8, %v8432_v8  ;;  %v8477_v61 = vld [vmem:[%s7165_s30 + $0x4a0] sm:$0xff] }
 0x16e   : > { %v6195_v57 = vpop.eup %6194  ;;  %v1305_v17 = vmul.f32 %v793_v56, %v8424_v59  ;;  %v4877_v21 = vmul.f32 %v4365_v42, %v8320_v19  ;;  %v4366_v7 = vmul.f32 0.5, %v3854_v46  ;;  %v795_v19 = vmul.f32 %v8447_v12, %v8447_v12 }
 0x16f   : > { %v3855_v54 = vadd.f32 1.0, %v6195_v57  ;;  %v2326_v55 = vadd.f32 %v1814_v10, %v8407_v43  ;;  %v1815_v13 = vmul.f32 0.044715, %v1303_v22  ;;  %v1816_v3 = vmul.f32 0.044715, %v1304_v6  ;;  %v8484_v10 = vld [vmem:[%s7165_s30 + $0x4a8] sm:$0xff] }
 0x170   : > { %v1817_v62 = vmul.f32 0.044715, %v1305_v17  ;;  %v1306_v53 = vmul.f32 %v794_v33, %v8432_v8  ;;  %v6197_v2 = vpop.eup %6196  ;;  %5389 = vst [vmem:[%s7311_s17 + $0x418] sm:$0xff] %v4877_v21  ;;  %v4878_v39 = vmul.f32 %v4366_v7, %v8327_v41  ;;  %v1307_v23 = vmul.f32 %v795_v19, %v8447_v12  ;;  %v8490_v33 = vld [vmem:[%s7165_s30 + $0x4b0] sm:$0xff]  ;;  %v8509_v19 = vld [vmem:[%s7165_s30 + $0x4c8] sm:$0xff] }
 0x171   : > { %v4367_v58 = vmul.f32 0.5, %v3855_v54  ;;  %v2838_v63 = vmul.f32 0.7978846, %v2326_v55  ;;  %v3856_v38 = vadd.f32 1.0, %v6197_v2  ;;  %v2327_v60 = vadd.f32 %v1815_v13, %v8414_v1 }
 0x172   : > { %v2328_v34 = vadd.f32 %v1816_v3, %v8421_v37  ;;  %v2329_v14 = vadd.f32 %v1817_v62, %v8424_v59  ;;  %5390 = vst [vmem:[%s7311_s17 + $0x420] sm:$0xff] %v4878_v39  ;;  %v1818_v41 = vmul.f32 0.044715, %v1306_v53  ;;  %v1819_v27 = vmul.f32 0.044715, %v1307_v23  ;;  %v8497_v53 = vld [vmem:[%s7165_s30 + $0x4b8] sm:$0xff] }
 0x173   : > { %v6199_v5 = vpop.eup %6198  ;;  %v4879_v18 = vmul.f32 %v4367_v58, %v8342_v51  ;;  %6208 = vtanh.f32 %v2838_v63  ;;  %v4368_v32 = vmul.f32 0.5, %v3856_v38  ;;  %v2839_v20 = vmul.f32 0.7978846, %v2327_v60  ;;  %v8506_v63 = vld [vmem:[%s7165_s30 + $0x4c0] sm:$0xff] }
 0x174   : > { %v3857_v16 = vadd.f32 1.0, %v6199_v5  ;;  %v2840_v44 = vmul.f32 0.7978846, %v2328_v34  ;;  %v2841_v24 = vmul.f32 0.7978846, %v2329_v14  ;;  %v2330_v48 = vadd.f32 %v1818_v41, %v8432_v8 }
 0x175   : > { %5391 = vst [vmem:[%s7311_s17 + $0x428] sm:$0xff] %v4879_v18  ;;  %v796_v51 = vmul.f32 %v8460_v4, %v8460_v4  ;;  %v4880_v28 = vmul.f32 %v4368_v32, %v8350_v47  ;;  %6210 = vtanh.f32 %v2839_v20  ;;  %v797_v25 = vmul.f32 %v8466_v40, %v8466_v40  ;;  %v8525_v20 = vld [vmem:[%s7165_s30 + $0x4d0] sm:$0xff] }
 0x176   : > { %v6201_v45 = vpop.eup %6200  ;;  %v4369_v35 = vmul.f32 0.5, %v3857_v16  ;;  %6212 = vtanh.f32 %v2840_v44  ;;  %v2842_v31 = vmul.f32 0.7978846, %v2330_v48  ;;  %v2331_v36 = vadd.f32 %v1819_v27, %v8447_v12 }
 0x177   : > { %v3858_v50 = vadd.f32 1.0, %v6201_v45  ;;  %v6203_v15 = vpop.eup %6202  ;;  %5392 = vst [vmem:[%s7311_s17 + $0x430] sm:$0xff] %v4880_v28  ;;  %6214 = vtanh.f32 %v2841_v24  ;;  %v1308_v47 = vmul.f32 %v796_v51, %v8460_v4  ;;  %v1309_v29 = vmul.f32 %v797_v25, %v8466_v40 }
 0x178   : > { %v4881_v9 = vmul.f32 %v4369_v35, %v8357_v49  ;;  %v6205_v52 = vpop.eup %6204  ;;  %v3859_v42 = vadd.f32 1.0, %v6203_v15  ;;  %6216 = vtanh.f32 %v2842_v31  ;;  %v2843_v46 = vmul.f32 0.7978846, %v2331_v36 }
 0x179   : > { %v4370_v56 = vmul.f32 0.5, %v3858_v50  ;;  %v6207_v57 = vpop.eup %6206  ;;  %v3860_v22 = vadd.f32 1.0, %v6205_v52  ;;  %v1820_v6 = vmul.f32 0.044715, %v1308_v47  ;;  %v1821_v49 = vmul.f32 0.044715, %v1309_v29 }
 0x17a   : > { %5393 = vst [vmem:[%s7311_s17 + $0x438] sm:$0xff] %v4881_v9  ;;  %v798_v17 = vmul.f32 %v8477_v61, %v8477_v61  ;;  %v4371_v7 = vmul.f32 0.5, %v3859_v42  ;;  %v3861_v54 = vadd.f32 1.0, %v6207_v57  ;;  %6218 = vtanh.f32 %v2843_v46 }
 0x17b   : > { %v4882_v21 = vmul.f32 %v4370_v56, %v8370_v11  ;;  %v4372_v55 = vmul.f32 0.5, %v3860_v22  ;;  %v2332_v13 = vadd.f32 %v1820_v6, %v8460_v4  ;;  %v2333_v3 = vadd.f32 %v1821_v49, %v8466_v40 }
 0x17c   : > { %v1310_v62 = vmul.f32 %v798_v17, %v8477_v61  ;;  %v4883_v2 = vmul.f32 %v4371_v7, %v8376_v26  ;;  %v4373_v39 = vmul.f32 0.5, %v3861_v54  ;;  %v799_v11 = vmul.f32 %v8484_v10, %v8484_v10 }
 0x17d   : > { %5394 = vst [vmem:[%s7311_s17 + $0x440] sm:$0xff] %v4882_v21  ;;  %v800_v58 = vmul.f32 %v8490_v33, %v8490_v33  ;;  %v4884_v38 = vmul.f32 %v4372_v55, %v8379_v30  ;;  %v2844_v60 = vmul.f32 0.7978846, %v2332_v13  ;;  %v2845_v34 = vmul.f32 0.7978846, %v2333_v3 }
 0x17e   : > { %v1822_v14 = vmul.f32 0.044715, %v1310_v62  ;;  %5395 = vst [vmem:[%s7311_s17 + $0x448] sm:$0xff] %v4883_v2  ;;  %v4885_v26 = vmul.f32 %v4373_v39, %v8385_v0  ;;  %v1311_v5 = vmul.f32 %v799_v11, %v8484_v10  ;;  %v801_v41 = vmul.f32 %v8497_v53, %v8497_v53  ;;  %v8541_v62 = vld [vmem:[%s7165_s30 + $0x4d8] sm:$0xff] }
 0x17f   : > { %v1312_v18 = vmul.f32 %v800_v58, %v8490_v33  ;;  %5396 = vst [vmem:[%s7311_s17 + $0x450] sm:$0xff] %v4884_v38  ;;  %6220 = vtanh.f32 %v2844_v60  ;;  %v802_v30 = vmul.f32 %v8506_v63, %v8506_v63  ;;  %v803_v16 = vmul.f32 %v8509_v19, %v8509_v19  ;;  %v8545_v38 = vld [vmem:[%s7165_s30 + $0x4e0] sm:$0xff]  ;;  %v8548_v60 = vld [vmem:[%s7165_s30 + $0x4e8] sm:$0xff] }
 0x180   : > { %v6209_v23 = vpop.eup %6208  ;;  %v2334_v32 = vadd.f32 %v1822_v14, %v8477_v61  ;;  %5397 = vst [vmem:[%s7311_s17 + $0x458] sm:$0xff] %v4885_v26  ;;  %6222 = vtanh.f32 %v2845_v34  ;;  %v1823_v44 = vmul.f32 0.044715, %v1311_v5  ;;  %v1313_v27 = vmul.f32 %v801_v41, %v8497_v53  ;;  %v8555_v26 = vld [vmem:[%s7165_s30 + $0x4f0] sm:$0xff] }
 0x181   : > { %v3862_v0 = vadd.f32 1.0, %v6209_v23  ;;  %v1824_v24 = vmul.f32 0.044715, %v1312_v18  ;;  %v1314_v51 = vmul.f32 %v802_v30, %v8506_v63  ;;  %v1315_v45 = vmul.f32 %v803_v16, %v8509_v19 }
 0x182   : > { %v2846_v48 = vmul.f32 0.7978846, %v2334_v32  ;;  %v6211_v28 = vpop.eup %6210  ;;  %v2335_v25 = vadd.f32 %v1823_v44, %v8484_v10  ;;  %v804_v31 = vmul.f32 %v8525_v20, %v8525_v20  ;;  %v1825_v9 = vmul.f32 0.044715, %v1313_v27 }
 0x183   : > { %v4374_v35 = vmul.f32 0.5, %v3862_v0  ;;  %v2336_v50 = vadd.f32 %v1824_v24, %v8490_v33  ;;  %v6213_v36 = vpop.eup %6212  ;;  %v3863_v15 = vadd.f32 1.0, %v6211_v28  ;;  %v1826_v47 = vmul.f32 0.044715, %v1314_v51 }
 0x184   : > { %6224 = vtanh.f32 %v2846_v48  ;;  %v6215_v29 = vpop.eup %6214  ;;  %v3864_v56 = vadd.f32 1.0, %v6213_v36  ;;  %v2847_v42 = vmul.f32 0.7978846, %v2335_v25  ;;  %v2337_v49 = vadd.f32 %v1825_v9, %v8497_v53 }
 0x185   : > { %v4886_v52 = vmul.f32 %v4374_v35, %v8407_v43  ;;  %v2848_v46 = vmul.f32 0.7978846, %v2336_v50  ;;  %v6217_v57 = vpop.eup %6216  ;;  %v4375_v22 = vmul.f32 0.5, %v3863_v15  ;;  %v3865_v6 = vadd.f32 1.0, %v6215_v29 }
 0x186   : > { %v2338_v17 = vadd.f32 %v1826_v47, %v8506_v63  ;;  %v4376_v21 = vmul.f32 0.5, %v3864_v56  ;;  %v3866_v7 = vadd.f32 1.0, %v6217_v57  ;;  %6226 = vtanh.f32 %v2847_v42  ;;  %v8584_v42 = vld [vmem:[%s7165_s30 + $0x500] sm:$0xff] }
 0x187   : > { %5398 = vst [vmem:[%s7311_s17 + $0x460] sm:$0xff] %v4886_v52  ;;  %v1827_v54 = vmul.f32 0.044715, %v1315_v45  ;;  %v6219_v43 = vpop.eup %6218  ;;  %v4887_v55 = vmul.f32 %v4375_v22, %v8414_v1  ;;  %v4377_v13 = vmul.f32 0.5, %v3865_v6  ;;  %6228 = vtanh.f32 %v2848_v46 }
 0x188   : > { %v2849_v3 = vmul.f32 0.7978846, %v2337_v49  ;;  %v4888_v2 = vmul.f32 %v4376_v21, %v8421_v37  ;;  %v4378_v39 = vmul.f32 0.5, %v3866_v7  ;;  %v3867_v11 = vadd.f32 1.0, %v6219_v43  ;;  %v8558_v37 = vld [vmem:[%s7165_s30 + $0x4f8] sm:$0xff] }
 0x189   : > { %v2850_v58 = vmul.f32 0.7978846, %v2338_v17  ;;  %5399 = vst [vmem:[%s7311_s17 + $0x468] sm:$0xff] %v4887_v55  ;;  %v4889_v1 = vmul.f32 %v4377_v13, %v8424_v59  ;;  %v2339_v34 = vadd.f32 %v1827_v54, %v8509_v19  ;;  %v1316_v14 = vmul.f32 %v804_v31, %v8525_v20  ;;  %v8595_v13 = vld [vmem:[%s7165_s30 + $0x508] sm:$0xff] }
 0x18a   : > { %6230 = vtanh.f32 %v2849_v3  ;;  %5400 = vst [vmem:[%s7311_s17 + $0x470] sm:$0xff] %v4888_v2  ;;  %v4890_v5 = vmul.f32 %v4378_v39, %v8432_v8  ;;  %v4379_v18 = vmul.f32 0.5, %v3867_v11  ;;  %v805_v41 = vmul.f32 %v8541_v62, %v8541_v62 }
 0x18b   : > { %6232 = vtanh.f32 %v2850_v58  ;;  %5401 = vst [vmem:[%s7311_s17 + $0x478] sm:$0xff] %v4889_v1  ;;  %v2851_v59 = vmul.f32 0.7978846, %v2339_v34  ;;  %v1828_v23 = vmul.f32 0.044715, %v1316_v14  ;;  %v806_v32 = vmul.f32 %v8545_v38, %v8545_v38 }
 0x18c   : > { %v807_v30 = vmul.f32 %v8548_v60, %v8548_v60  ;;  %v6221_v16 = vpop.eup %6220  ;;  %5402 = vst [vmem:[%s7311_s17 + $0x480] sm:$0xff] %v4890_v5  ;;  %v4891_v0 = vmul.f32 %v4379_v18, %v8447_v12  ;;  %v1317_v8 = vmul.f32 %v805_v41, %v8541_v62  ;;  %v808_v44 = vmul.f32 %v8555_v26, %v8555_v26  ;;  %v8604_v41 = vld [vmem:[%s7165_s30 + $0x510] sm:$0xff] }
 0x18d   : > { %v809_v24 = vmul.f32 %v8558_v37, %v8558_v37  ;;  %v6223_v48 = vpop.eup %6222  ;;  %v3868_v27 = vadd.f32 1.0, %v6221_v16  ;;  %6234 = vtanh.f32 %v2851_v59  ;;  %v2340_v51 = vadd.f32 %v1828_v23, %v8525_v20 }
 0x18e   : > { %v1318_v45 = vmul.f32 %v806_v32, %v8545_v38  ;;  %5403 = vst [vmem:[%s7311_s17 + $0x488] sm:$0xff] %v4891_v0  ;;  %v3869_v28 = vadd.f32 1.0, %v6223_v48  ;;  %v1829_v35 = vmul.f32 0.044715, %v1317_v8  ;;  %v1319_v12 = vmul.f32 %v807_v30, %v8548_v60  ;;  %v8608_v30 = vld [vmem:[%s7165_s30 + $0x518] sm:$0xff] }
 0x18f   : > { %v1320_v25 = vmul.f32 %v808_v44, %v8555_v26  ;;  %v4380_v50 = vmul.f32 0.5, %v3868_v27  ;;  %v2852_v31 = vmul.f32 0.7978846, %v2340_v51  ;;  %v1321_v15 = vmul.f32 %v809_v24, %v8558_v37  ;;  %v8613_v24 = vld [vmem:[%s7165_s30 + $0x520] sm:$0xff] }
 0x190   : > { %v1830_v36 = vmul.f32 0.044715, %v1318_v45  ;;  %v4381_v47 = vmul.f32 0.5, %v3869_v28  ;;  %v2341_v29 = vadd.f32 %v1829_v35, %v8541_v62  ;;  %v1831_v52 = vmul.f32 0.044715, %v1319_v12 }
 0x191   : > { %v6225_v9 = vpop.eup %6224  ;;  %v1832_v56 = vmul.f32 0.044715, %v1320_v25  ;;  %v4892_v46 = vmul.f32 %v4380_v50, %v8460_v4  ;;  %6236 = vtanh.f32 %v2852_v31  ;;  %v1833_v55 = vmul.f32 0.044715, %v1321_v15  ;;  %v8623_v25 = vld [vmem:[%s7165_s30 + $0x528] sm:$0xff]  ;;  %v8631_v15 = vld [vmem:[%s7165_s30 + $0x530] sm:$0xff] }
 0x192   : > { %v3870_v57 = vadd.f32 1.0, %v6225_v9  ;;  %v2342_v22 = vadd.f32 %v1830_v36, %v8545_v38  ;;  %v4893_v6 = vmul.f32 %v4381_v47, %v8466_v40  ;;  %v2853_v49 = vmul.f32 0.7978846, %v2341_v29 }
 0x193   : > { %v2343_v17 = vadd.f32 %v1831_v52, %v8548_v60  ;;  %v2344_v21 = vadd.f32 %v1832_v56, %v8555_v26  ;;  %v6227_v7 = vpop.eup %6226  ;;  %5404 = vst [vmem:[%s7311_s17 + $0x490] sm:$0xff] %v4892_v46  ;;  %v810_v4 = vmul.f32 %v8584_v42, %v8584_v42  ;;  %v2345_v1 = vadd.f32 %v1833_v55, %v8558_v37  ;;  %v8649_v55 = vld [vmem:[%s7165_s30 + $0x540] sm:$0xff] }
 0x194   : > { %v4382_v54 = vmul.f32 0.5, %v3870_v57  ;;  %v2854_v43 = vmul.f32 0.7978846, %v2342_v22  ;;  %v6229_v3 = vpop.eup %6228  ;;  %5405 = vst [vmem:[%s7311_s17 + $0x498] sm:$0xff] %v4893_v6  ;;  %v3871_v40 = vadd.f32 1.0, %v6227_v7  ;;  %6238 = vtanh.f32 %v2853_v49 }
 0x195   : > { %v2855_v2 = vmul.f32 0.7978846, %v2343_v17  ;;  %v2856_v39 = vmul.f32 0.7978846, %v2344_v21  ;;  %v3872_v58 = vadd.f32 1.0, %v6229_v3  ;;  %v1322_v5 = vmul.f32 %v810_v4, %v8584_v42  ;;  %v8644_v17 = vld [vmem:[%s7165_s30 + $0x538] sm:$0xff] }
 0x196   : > { %v4894_v11 = vmul.f32 %v4382_v54, %v8477_v61  ;;  %6240 = vtanh.f32 %v2854_v43  ;;  %v4383_v14 = vmul.f32 0.5, %v3871_v40  ;;  %v811_v18 = vmul.f32 %v8595_v13, %v8595_v13 }
 0x197   : > { %v6231_v34 = vpop.eup %6230  ;;  %6242 = vtanh.f32 %v2855_v2  ;;  %v4384_v61 = vmul.f32 0.5, %v3872_v58  ;;  %v2857_v32 = vmul.f32 0.7978846, %v2345_v1  ;;  %v1834_v8 = vmul.f32 0.044715, %v1322_v5 }
 0x198   : > { %v6233_v59 = vpop.eup %6232  ;;  %5406 = vst [vmem:[%s7311_s17 + $0x4a0] sm:$0xff] %v4894_v11  ;;  %v3873_v23 = vadd.f32 1.0, %v6231_v34  ;;  %6244 = vtanh.f32 %v2856_v39  ;;  %v4895_v16 = vmul.f32 %v4383_v14, %v8484_v10  ;;  %v1323_v44 = vmul.f32 %v811_v18, %v8595_v13 }
 0x199   : > { %v3874_v0 = vadd.f32 1.0, %v6233_v59  ;;  %v4896_v48 = vmul.f32 %v4384_v61, %v8490_v33  ;;  %6246 = vtanh.f32 %v2857_v32  ;;  %v812_v51 = vmul.f32 %v8604_v41, %v8604_v41 }
 0x19a   : > { %v4385_v27 = vmul.f32 0.5, %v3873_v23  ;;  %v6235_v45 = vpop.eup %6234  ;;  %5407 = vst [vmem:[%s7311_s17 + $0x4a8] sm:$0xff] %v4895_v16  ;;  %v2346_v10 = vadd.f32 %v1834_v8, %v8584_v42  ;;  %v1835_v35 = vmul.f32 0.044715, %v1323_v44  ;;  %v813_v12 = vmul.f32 %v8608_v30, %v8608_v30 }
 0x19b   : > { %v4386_v28 = vmul.f32 0.5, %v3874_v0  ;;  %5408 = vst [vmem:[%s7311_s17 + $0x4b0] sm:$0xff] %v4896_v48  ;;  %v3875_v50 = vadd.f32 1.0, %v6235_v45  ;;  %v1324_v31 = vmul.f32 %v812_v51, %v8604_v41  ;;  %v814_v36 = vmul.f32 %v8613_v24, %v8613_v24 }
 0x19c   : > { %v4897_v33 = vmul.f32 %v4385_v27, %v8497_v53  ;;  %v2858_v47 = vmul.f32 0.7978846, %v2346_v10  ;;  %v2347_v29 = vadd.f32 %v1835_v35, %v8595_v13  ;;  %v1325_v52 = vmul.f32 %v813_v12, %v8608_v30  ;;  %v8666_v12 = vld [vmem:[%s7165_s30 + $0x548] sm:$0xff] }
 0x19d   : > { %v4898_v9 = vmul.f32 %v4386_v28, %v8506_v63  ;;  %v4387_v56 = vmul.f32 0.5, %v3875_v50  ;;  %v1836_v53 = vmul.f32 0.044715, %v1324_v31  ;;  %v1326_v46 = vmul.f32 %v814_v36, %v8613_v24 }
 0x19e   : > { %5409 = vst [vmem:[%s7311_s17 + $0x4b8] sm:$0xff] %v4897_v33  ;;  %v815_v57 = vmul.f32 %v8623_v25, %v8623_v25  ;;  %v6237_v22 = vpop.eup %6236  ;;  %6248 = vtanh.f32 %v2858_v47  ;;  %v2859_v6 = vmul.f32 0.7978846, %v2347_v29  ;;  %v1837_v63 = vmul.f32 0.044715, %v1325_v52  ;;  %v8674_v47 = vld [vmem:[%s7165_s30 + $0x558] sm:$0xff] }
 0x19f   : > { %5410 = vst [vmem:[%s7311_s17 + $0x4c0] sm:$0xff] %v4898_v9  ;;  %v816_v49 = vmul.f32 %v8631_v15, %v8631_v15  ;;  %v4899_v21 = vmul.f32 %v4387_v56, %v8509_v19  ;;  %v3876_v7 = vadd.f32 1.0, %v6237_v22  ;;  %v2348_v54 = vadd.f32 %v1836_v53, %v8604_v41  ;;  %v8671_v9 = vld [vmem:[%s7165_s30 + $0x550] sm:$0xff]  ;;  %v8680_v56 = vld [vmem:[%s7165_s30 + $0x560] sm:$0xff] }
 0x1a0   : > { %v1838_v43 = vmul.f32 0.044715, %v1326_v46  ;;  %6250 = vtanh.f32 %v2859_v6  ;;  %v2349_v4 = vadd.f32 %v1837_v63, %v8608_v30  ;;  %v1327_v3 = vmul.f32 %v815_v57, %v8623_v25 }
 0x1a1   : > { %v1328_v40 = vmul.f32 %v816_v49, %v8631_v15  ;;  %v6239_v2 = vpop.eup %6238  ;;  %5411 = vst [vmem:[%s7311_s17 + $0x4c8] sm:$0xff] %v4899_v21  ;;  %v4388_v39 = vmul.f32 0.5, %v3876_v7  ;;  %v2860_v11 = vmul.f32 0.7978846, %v2348_v54  ;;  %v817_v19 = vmul.f32 %v8644_v17, %v8644_v17  ;;  %v8693_v49 = vld [vmem:[%s7165_s30 + $0x568] sm:$0xff] }
 0x1a2   : > { %v2350_v58 = vadd.f32 %v1838_v43, %v8613_v24  ;;  %v3877_v34 = vadd.f32 1.0, %v6239_v2  ;;  %v2861_v14 = vmul.f32 0.7978846, %v2349_v4  ;;  %v1839_v5 = vmul.f32 0.044715, %v1327_v3 }
 0x1a3   : > { %v6241_v1 = vpop.eup %6240  ;;  %v818_v18 = vmul.f32 %v8649_v55, %v8649_v55  ;;  %v4900_v61 = vmul.f32 %v4388_v39, %v8525_v20  ;;  %6252 = vtanh.f32 %v2860_v11  ;;  %v1840_v51 = vmul.f32 0.044715, %v1328_v40 }
 0x1a4   : > { %v6243_v59 = vpop.eup %6242  ;;  %v3878_v23 = vadd.f32 1.0, %v6241_v1  ;;  %v2862_v32 = vmul.f32 0.7978846, %v2350_v58  ;;  %v4389_v0 = vmul.f32 0.5, %v3877_v34  ;;  %6254 = vtanh.f32 %v2861_v14 }
 0x1a5   : > { %v6245_v16 = vpop.eup %6244  ;;  %v3879_v8 = vadd.f32 1.0, %v6243_v59  ;;  %v2351_v44 = vadd.f32 %v1839_v5, %v8623_v25  ;;  %5412 = vst [vmem:[%s7311_s17 + $0x4d0] sm:$0xff] %v4900_v61  ;;  %v1329_v35 = vmul.f32 %v817_v19, %v8644_v17  ;;  %v2352_v36 = vadd.f32 %v1840_v51, %v8631_v15 }
 0x1a6   : > { %v4390_v48 = vmul.f32 0.5, %v3878_v23  ;;  %v3880_v27 = vadd.f32 1.0, %v6245_v16  ;;  %6256 = vtanh.f32 %v2862_v32  ;;  %v6247_v45 = vpop.eup %6246  ;;  %v4901_v20 = vmul.f32 %v4389_v0, %v8541_v62 }
 0x1a7   : > { %v4391_v28 = vmul.f32 0.5, %v3879_v8  ;;  %v2863_v10 = vmul.f32 0.7978846, %v2351_v44  ;;  %v3881_v31 = vadd.f32 1.0, %v6247_v45  ;;  %v1841_v29 = vmul.f32 0.044715, %v1329_v35 }
 0x1a8   : > { %v4902_v33 = vmul.f32 %v4390_v48, %v8545_v38  ;;  %v4392_v50 = vmul.f32 0.5, %v3880_v27  ;;  %5413 = vst [vmem:[%s7311_s17 + $0x4d8] sm:$0xff] %v4901_v20  ;;  %v1330_v52 = vmul.f32 %v818_v18, %v8649_v55  ;;  %v2864_v46 = vmul.f32 0.7978846, %v2352_v36 }
 0x1a9   : > { %v4903_v62 = vmul.f32 %v4391_v28, %v8548_v60  ;;  %6258 = vtanh.f32 %v2863_v10  ;;  %v4393_v53 = vmul.f32 0.5, %v3881_v31  ;;  %v819_v57 = vmul.f32 %v8666_v12, %v8666_v12  ;;  %v8716_v10 = vld [vmem:[%s7165_s30 + $0x570] sm:$0xff] }
 0x1aa   : > { %5414 = vst [vmem:[%s7311_s17 + $0x4e0] sm:$0xff] %v4902_v33  ;;  %v4904_v38 = vmul.f32 %v4392_v50, %v8555_v26  ;;  %v2353_v22 = vadd.f32 %v1841_v29, %v8644_v17  ;;  %v1842_v60 = vmul.f32 0.044715, %v1330_v52  ;;  %v820_v6 = vmul.f32 %v8671_v9, %v8671_v9  ;;  %v8721_v29 = vld [vmem:[%s7165_s30 + $0x578] sm:$0xff] }
 0x1ab   : > { %5415 = vst [vmem:[%s7311_s17 + $0x4e8] sm:$0xff] %v4903_v62  ;;  %v821_v63 = vmul.f32 %v8674_v47, %v8674_v47  ;;  %v6249_v21 = vpop.eup %6248  ;;  %v4905_v26 = vmul.f32 %v4393_v53, %v8558_v37  ;;  %6260 = vtanh.f32 %v2864_v46  ;;  %v1331_v7 = vmul.f32 %v819_v57, %v8666_v12  ;;  %v8727_v57 = vld [vmem:[%s7165_s30 + $0x580] sm:$0xff] }
 0x1ac   : > { %5416 = vst [vmem:[%s7311_s17 + $0x4f0] sm:$0xff] %v4904_v38  ;;  %v822_v54 = vmul.f32 %v8680_v56, %v8680_v56  ;;  %v3882_v43 = vadd.f32 1.0, %v6249_v21  ;;  %v2865_v4 = vmul.f32 0.7978846, %v2353_v22  ;;  %v2354_v3 = vadd.f32 %v1842_v60, %v8649_v55  ;;  %v8730_v22 = vld [vmem:[%s7165_s30 + $0x588] sm:$0xff]  ;;  %v8734_v21 = vld [vmem:[%s7165_s30 + $0x590] sm:$0xff] }
 0x1ad   : > { %v1332_v40 = vmul.f32 %v820_v6, %v8671_v9  ;;  %v6251_v2 = vpop.eup %6250  ;;  %5417 = vst [vmem:[%s7311_s17 + $0x4f8] sm:$0xff] %v4905_v26  ;;  %v1843_v39 = vmul.f32 0.044715, %v1331_v7  ;;  %v1333_v11 = vmul.f32 %v821_v63, %v8674_v47  ;;  %v823_v37 = vmul.f32 %v8693_v49, %v8693_v49 }
 0x1ae   : > { %v1334_v58 = vmul.f32 %v822_v54, %v8680_v56  ;;  %v4394_v19 = vmul.f32 0.5, %v3882_v43  ;;  %v3883_v1 = vadd.f32 1.0, %v6251_v2  ;;  %6262 = vtanh.f32 %v2865_v4  ;;  %v8742_v54 = vld [vmem:[%s7165_s30 + $0x598] sm:$0xff] }
 0x1af   : > { %v2866_v34 = vmul.f32 0.7978846, %v2354_v3  ;;  %v2355_v14 = vadd.f32 %v1843_v39, %v8666_v12  ;;  %v1844_v5 = vmul.f32 0.044715, %v1332_v40  ;;  %v1845_v18 = vmul.f32 0.044715, %v1333_v11 }
 0x1b0   : > { %v1846_v59 = vmul.f32 0.044715, %v1334_v58  ;;  %v6253_v61 = vpop.eup %6252  ;;  %v4906_v23 = vmul.f32 %v4394_v19, %v8584_v42  ;;  %v4395_v32 = vmul.f32 0.5, %v3883_v1  ;;  %v1335_v16 = vmul.f32 %v823_v37, %v8693_v49 }
 0x1b1   : > { %6264 = vtanh.f32 %v2866_v34  ;;  %v6255_v0 = vpop.eup %6254  ;;  %v3884_v8 = vadd.f32 1.0, %v6253_v61  ;;  %v2867_v44 = vmul.f32 0.7978846, %v2355_v14  ;;  %v2356_v48 = vadd.f32 %v1844_v5, %v8671_v9 }
 0x1b2   : > { %v2357_v27 = vadd.f32 %v1845_v18, %v8674_v47  ;;  %5418 = vst [vmem:[%s7311_s17 + $0x500] sm:$0xff] %v4906_v23  ;;  %v4907_v45 = vmul.f32 %v4395_v32, %v8595_v13  ;;  %v3885_v20 = vadd.f32 1.0, %v6255_v0  ;;  %v2358_v42 = vadd.f32 %v1846_v59, %v8680_v56 }
 0x1b3   : > { %v6257_v51 = vpop.eup %6256  ;;  %v1847_v28 = vmul.f32 0.044715, %v1335_v16  ;;  %v4396_v35 = vmul.f32 0.5, %v3884_v8  ;;  %6266 = vtanh.f32 %v2867_v44  ;;  %v2868_v50 = vmul.f32 0.7978846, %v2356_v48 }
 0x1b4   : > { %v3886_v33 = vadd.f32 1.0, %v6257_v51  ;;  %5419 = vst [vmem:[%s7311_s17 + $0x508] sm:$0xff] %v4907_v45  ;;  %v4397_v31 = vmul.f32 0.5, %v3885_v20  ;;  %v2869_v36 = vmul.f32 0.7978846, %v2357_v27  ;;  %v824_v46 = vmul.f32 %v8716_v10, %v8716_v10 }
 0x1b5   : > { %v2870_v62 = vmul.f32 0.7978846, %v2358_v42  ;;  %v2359_v13 = vadd.f32 %v1847_v28, %v8693_v49  ;;  %v4908_v38 = vmul.f32 %v4396_v35, %v8604_v41  ;;  %6268 = vtanh.f32 %v2868_v50  ;;  %v8769_v35 = vld [vmem:[%s7165_s30 + $0x5a0] sm:$0xff] }
 0x1b6   : > { %v6259_v52 = vpop.eup %6258  ;;  %v4398_v53 = vmul.f32 0.5, %v3886_v33  ;;  %v4909_v60 = vmul.f32 %v4397_v31, %v8608_v30  ;;  %6270 = vtanh.f32 %v2869_v36  ;;  %v1336_v26 = vmul.f32 %v824_v46, %v8716_v10 }
 0x1b7   : > { %v3887_v6 = vadd.f32 1.0, %v6259_v52  ;;  %v2871_v63 = vmul.f32 0.7978846, %v2359_v13  ;;  %5420 = vst [vmem:[%s7311_s17 + $0x510] sm:$0xff] %v4908_v38  ;;  %6272 = vtanh.f32 %v2870_v62  ;;  %v825_v7 = vmul.f32 %v8721_v29, %v8721_v29 }
 0x1b8   : > { %v4910_v41 = vmul.f32 %v4398_v53, %v8613_v24  ;;  %v6261_v43 = vpop.eup %6260  ;;  %5421 = vst [vmem:[%s7311_s17 + $0x518] sm:$0xff] %v4909_v60  ;;  %v826_v4 = vmul.f32 %v8727_v57, %v8727_v57  ;;  %v827_v3 = vmul.f32 %v8730_v22, %v8730_v22  ;;  %v1848_v40 = vmul.f32 0.044715, %v1336_v26 }
 0x1b9   : > { %v4399_v30 = vmul.f32 0.5, %v3887_v6  ;;  %6274 = vtanh.f32 %v2871_v63  ;;  %v3888_v24 = vadd.f32 1.0, %v6261_v43  ;;  %v1337_v2 = vmul.f32 %v825_v7, %v8721_v29 }
 0x1ba   : > { %5422 = vst [vmem:[%s7311_s17 + $0x520] sm:$0xff] %v4910_v41  ;;  %v828_v39 = vmul.f32 %v8734_v21, %v8734_v21  ;;  %v1338_v58 = vmul.f32 %v826_v4, %v8727_v57  ;;  %v1339_v37 = vmul.f32 %v827_v3, %v8730_v22  ;;  %v829_v19 = vmul.f32 %v8742_v54, %v8742_v54  ;;  %v8786_v4 = vld [vmem:[%s7165_s30 + $0x5b0] sm:$0xff]  ;;  %v8789_v3 = vld [vmem:[%s7165_s30 + $0x5b8] sm:$0xff] }
 0x1bb   : > { %v4911_v11 = vmul.f32 %v4399_v30, %v8623_v25  ;;  %v6263_v1 = vpop.eup %6262  ;;  %v4400_v34 = vmul.f32 0.5, %v3888_v24  ;;  %v2360_v14 = vadd.f32 %v1848_v40, %v8716_v10  ;;  %v1849_v5 = vmul.f32 0.044715, %v1337_v2 }
 0x1bc   : > { %v1340_v18 = vmul.f32 %v828_v39, %v8734_v21  ;;  %v3889_v59 = vadd.f32 1.0, %v6263_v1  ;;  %v1850_v61 = vmul.f32 0.044715, %v1338_v58  ;;  %v1851_v23 = vmul.f32 0.044715, %v1339_v37 }
 0x1bd   : > { %5423 = vst [vmem:[%s7311_s17 + $0x528] sm:$0xff] %v4911_v11  ;;  %v1341_v25 = vmul.f32 %v829_v19, %v8742_v54  ;;  %v4912_v16 = vmul.f32 %v4400_v34, %v8631_v15  ;;  %v2872_v0 = vmul.f32 0.7978846, %v2360_v14  ;;  %v2361_v8 = vadd.f32 %v1849_v5, %v8721_v29  ;;  %v8772_v15 = vld [vmem:[%s7165_s30 + $0x5a8] sm:$0xff]  ;;  %v8793_v11 = vld [vmem:[%s7165_s30 + $0x5c0] sm:$0xff] }
 0x1be   : > { %v6265_v32 = vpop.eup %6264  ;;  %v1852_v44 = vmul.f32 0.044715, %v1340_v18  ;;  %v4401_v48 = vmul.f32 0.5, %v3889_v59  ;;  %v2362_v51 = vadd.f32 %v1850_v61, %v8727_v57  ;;  %v2363_v45 = vadd.f32 %v1851_v23, %v8730_v22  ;;  %v8802_v18 = vld [vmem:[%s7165_s30 + $0x5c8] sm:$0xff] }
 0x1bf   : > { %v3890_v27 = vadd.f32 1.0, %v6265_v32  ;;  %5424 = vst [vmem:[%s7311_s17 + $0x530] sm:$0xff] %v4912_v16  ;;  %6276 = vtanh.f32 %v2872_v0  ;;  %v2873_v20 = vmul.f32 0.7978846, %v2361_v8  ;;  %v1853_v28 = vmul.f32 0.044715, %v1341_v25 }
 0x1c0   : > { %v2364_v42 = vadd.f32 %v1852_v44, %v8734_v21  ;;  %v6267_v33 = vpop.eup %6266  ;;  %v4913_v50 = vmul.f32 %v4401_v48, %v8644_v17  ;;  %v2874_v36 = vmul.f32 0.7978846, %v2362_v51  ;;  %v2875_v62 = vmul.f32 0.7978846, %v2363_v45  ;;  %v8820_v44 = vld [vmem:[%s7165_s30 + $0x5e0] sm:$0xff] }
 0x1c1   : > { %v4402_v31 = vmul.f32 0.5, %v3890_v27  ;;  %v3891_v13 = vadd.f32 1.0, %v6267_v33  ;;  %6278 = vtanh.f32 %v2873_v20  ;;  %v2365_v38 = vadd.f32 %v1853_v28, %v8742_v54 }
 0x1c2   : > { %v2876_v52 = vmul.f32 0.7978846, %v2364_v42  ;;  %v6269_v53 = vpop.eup %6268  ;;  %5425 = vst [vmem:[%s7311_s17 + $0x538] sm:$0xff] %v4913_v50  ;;  %6280 = vtanh.f32 %v2874_v36  ;;  %v830_v60 = vmul.f32 %v8769_v35, %v8769_v35  ;;  %v831_v17 = vmul.f32 %v8772_v15, %v8772_v15 }
 0x1c3   : > { %v4914_v46 = vmul.f32 %v4402_v31, %v8649_v55  ;;  %v6271_v6 = vpop.eup %6270  ;;  %v4403_v63 = vmul.f32 0.5, %v3891_v13  ;;  %v3892_v41 = vadd.f32 1.0, %v6269_v53  ;;  %6282 = vtanh.f32 %v2875_v62 }
 0x1c4   : > { %v2877_v26 = vmul.f32 0.7978846, %v2365_v38  ;;  %v6273_v7 = vpop.eup %6272  ;;  %v3893_v43 = vadd.f32 1.0, %v6271_v6  ;;  %6284 = vtanh.f32 %v2876_v52  ;;  %v1342_v55 = vmul.f32 %v830_v60, %v8769_v35 }
 0x1c5   : > { %5426 = vst [vmem:[%s7311_s17 + $0x540] sm:$0xff] %v4914_v46  ;;  %v1343_v30 = vmul.f32 %v831_v17, %v8772_v15  ;;  %v4915_v40 = vmul.f32 %v4403_v63, %v8666_v12  ;;  %v4404_v2 = vmul.f32 0.5, %v3892_v41  ;;  %v3894_v39 = vadd.f32 1.0, %v6273_v7 }
 0x1c6   : > { %v6275_v24 = vpop.eup %6274  ;;  %6286 = vtanh.f32 %v2877_v26  ;;  %v4405_v58 = vmul.f32 0.5, %v3893_v43  ;;  %v1854_v19 = vmul.f32 0.044715, %v1342_v55  ;;  %v832_v12 = vmul.f32 %v8786_v4, %v8786_v4 }
 0x1c7   : > { %v3895_v37 = vadd.f32 1.0, %v6275_v24  ;;  %v1855_v1 = vmul.f32 0.044715, %v1343_v30  ;;  %5427 = vst [vmem:[%s7311_s17 + $0x548] sm:$0xff] %v4915_v40  ;;  %v4916_v34 = vmul.f32 %v4404_v2, %v8671_v9  ;;  %v4406_v14 = vmul.f32 0.5, %v3894_v39  ;;  %v8808_v9 = vld [vmem:[%s7165_s30 + $0x5d0] sm:$0xff] }
 0x1c8   : > { %v833_v5 = vmul.f32 %v8789_v3, %v8789_v3  ;;  %v4917_v59 = vmul.f32 %v4405_v58, %v8674_v47  ;;  %v2366_v23 = vadd.f32 %v1854_v19, %v8769_v35  ;;  %v1344_v16 = vmul.f32 %v832_v12, %v8786_v4  ;;  %v8817_v47 = vld [vmem:[%s7165_s30 + $0x5d8] sm:$0xff] }
 0x1c9   : > { %v4407_v61 = vmul.f32 0.5, %v3895_v37  ;;  %v2367_v25 = vadd.f32 %v1855_v1, %v8772_v15  ;;  %5428 = vst [vmem:[%s7311_s17 + $0x550] sm:$0xff] %v4916_v34  ;;  %v4918_v32 = vmul.f32 %v4406_v14, %v8680_v56  ;;  %v834_v8 = vmul.f32 %v8793_v11, %v8793_v11 }
 0x1ca   : > { %v1345_v0 = vmul.f32 %v833_v5, %v8789_v3  ;;  %5429 = vst [vmem:[%s7311_s17 + $0x558] sm:$0xff] %v4917_v59  ;;  %v2878_v27 = vmul.f32 0.7978846, %v2366_v23  ;;  %v835_v56 = vmul.f32 %v8802_v18, %v8802_v18  ;;  %v1856_v45 = vmul.f32 0.044715, %v1344_v16  ;;  %v8854_v16 = vld [vmem:[%s7165_s30 + $0x5f8] sm:$0xff] }
 0x1cb   : > { %v4919_v48 = vmul.f32 %v4407_v61, %v8693_v49  ;;  %v2879_v51 = vmul.f32 0.7978846, %v2367_v25  ;;  %5430 = vst [vmem:[%s7311_s17 + $0x560] sm:$0xff] %v4918_v32  ;;  %v1346_v42 = vmul.f32 %v834_v8, %v8793_v11  ;;  %v836_v28 = vmul.f32 %v8808_v9, %v8808_v9  ;;  %v8851_v32 = vld [vmem:[%s7165_s30 + $0x5f0] sm:$0xff] }
 0x1cc   : > { %v1857_v20 = vmul.f32 0.044715, %v1345_v0  ;;  %v6277_v33 = vpop.eup %6276  ;;  %6288 = vtanh.f32 %v2878_v27  ;;  %v1347_v50 = vmul.f32 %v835_v56, %v8802_v18  ;;  %v837_v49 = vmul.f32 %v8817_v47, %v8817_v47 }
 0x1cd   : > { %5431 = vst [vmem:[%s7311_s17 + $0x568] sm:$0xff] %v4919_v48  ;;  %v838_v31 = vmul.f32 %v8820_v44, %v8820_v44  ;;  %v3896_v36 = vadd.f32 1.0, %v6277_v33  ;;  %6290 = vtanh.f32 %v2879_v51  ;;  %v2368_v62 = vadd.f32 %v1856_v45, %v8786_v4  ;;  %v8859_v48 = vld [vmem:[%s7165_s30 + $0x600] sm:$0xff]  ;;  %v8867_v45 = vld [vmem:[%s7165_s30 + $0x608] sm:$0xff] }
 0x1ce   : > { %v2369_v13 = vadd.f32 %v1857_v20, %v8789_v3  ;;  %v6279_v52 = vpop.eup %6278  ;;  %v1858_v38 = vmul.f32 0.044715, %v1346_v42  ;;  %v1859_v53 = vmul.f32 0.044715, %v1347_v50  ;;  %v1348_v46 = vmul.f32 %v836_v28, %v8808_v9 }
 0x1cf   : > { %v1349_v60 = vmul.f32 %v837_v49, %v8817_v47  ;;  %v6281_v17 = vpop.eup %6280  ;;  %v4408_v6 = vmul.f32 0.5, %v3896_v36  ;;  %v3897_v63 = vadd.f32 1.0, %v6279_v52  ;;  %v2880_v41 = vmul.f32 0.7978846, %v2368_v62 }
 0x1d0   : > { %v2881_v26 = vmul.f32 0.7978846, %v2369_v13  ;;  %v6283_v7 = vpop.eup %6282  ;;  %v3898_v43 = vadd.f32 1.0, %v6281_v17  ;;  %v2370_v55 = vadd.f32 %v1858_v38, %v8793_v11  ;;  %v2371_v30 = vadd.f32 %v1859_v53, %v8802_v18 }
 0x1d1   : > { %v1860_v24 = vmul.f32 0.044715, %v1348_v46  ;;  %v6285_v40 = vpop.eup %6284  ;;  %v4920_v2 = vmul.f32 %v4408_v6, %v8716_v10  ;;  %v4409_v39 = vmul.f32 0.5, %v3897_v63  ;;  %v3899_v58 = vadd.f32 1.0, %v6283_v7  ;;  %v8846_v10 = vld [vmem:[%s7165_s30 + $0x5e8] sm:$0xff] }
 0x1d2   : > { %6292 = vtanh.f32 %v2880_v41  ;;  %v4410_v19 = vmul.f32 0.5, %v3898_v43  ;;  %v3900_v1 = vadd.f32 1.0, %v6285_v40  ;;  %v2882_v34 = vmul.f32 0.7978846, %v2370_v55 }
 0x1d3   : > { %v6287_v37 = vpop.eup %6286  ;;  %6294 = vtanh.f32 %v2881_v26  ;;  %5432 = vst [vmem:[%s7311_s17 + $0x570] sm:$0xff] %v4920_v2  ;;  %v4921_v14 = vmul.f32 %v4409_v39, %v8721_v29  ;;  %v4411_v12 = vmul.f32 0.5, %v3899_v58  ;;  %v2883_v59 = vmul.f32 0.7978846, %v2371_v30 }
 0x1d4   : > { %v3901_v5 = vadd.f32 1.0, %v6287_v37  ;;  %v4922_v61 = vmul.f32 %v4410_v19, %v8727_v57  ;;  %v4412_v23 = vmul.f32 0.5, %v3900_v1  ;;  %6296 = vtanh.f32 %v2882_v34  ;;  %v8894_v37 = vld [vmem:[%s7165_s30 + $0x610] sm:$0xff]  ;;  %v8897_v19 = vld [vmem:[%s7165_s30 + $0x618] sm:$0xff] }
 0x1d5   : > { %v2372_v25 = vadd.f32 %v1860_v24, %v8808_v9  ;;  %5433 = vst [vmem:[%s7311_s17 + $0x578] sm:$0xff] %v4921_v14  ;;  %v4923_v29 = vmul.f32 %v4411_v12, %v8730_v22  ;;  %6298 = vtanh.f32 %v2883_v59  ;;  %v1861_v8 = vmul.f32 0.044715, %v1349_v60 }
 0x1d6   : > { %v4413_v0 = vmul.f32 0.5, %v3901_v5  ;;  %5434 = vst [vmem:[%s7311_s17 + $0x580] sm:$0xff] %v4922_v61  ;;  %v4924_v57 = vmul.f32 %v4412_v23, %v8734_v21  ;;  %v1350_v51 = vmul.f32 %v838_v31, %v8820_v44  ;;  %v839_v56 = vmul.f32 %v8846_v10, %v8846_v10 }
 0x1d7   : > { %v2884_v27 = vmul.f32 0.7978846, %v2372_v25  ;;  %5435 = vst [vmem:[%s7311_s17 + $0x588] sm:$0xff] %v4923_v29  ;;  %v2373_v20 = vadd.f32 %v1861_v8, %v8817_v47  ;;  %v840_v42 = vmul.f32 %v8851_v32, %v8851_v32  ;;  %v841_v21 = vmul.f32 %v8854_v16, %v8854_v16 }
 0x1d8   : > { %v4925_v22 = vmul.f32 %v4413_v0, %v8742_v54  ;;  %5436 = vst [vmem:[%s7311_s17 + $0x590] sm:$0xff] %v4924_v57  ;;  %v1862_v28 = vmul.f32 0.044715, %v1350_v51  ;;  %v1351_v33 = vmul.f32 %v839_v56, %v8846_v10  ;;  %v842_v50 = vmul.f32 %v8859_v48, %v8859_v48  ;;  %v8908_v51 = vld [vmem:[%s7165_s30 + $0x620] sm:$0xff]  ;;  %v8911_v56 = vld [vmem:[%s7165_s30 + $0x628] sm:$0xff] }
 0x1d9   : > { %6300 = vtanh.f32 %v2884_v27  ;;  %v6289_v49 = vpop.eup %6288  ;;  %v2885_v31 = vmul.f32 0.7978846, %v2373_v20  ;;  %v1352_v54 = vmul.f32 %v840_v42, %v8851_v32  ;;  %v1353_v36 = vmul.f32 %v841_v21, %v8854_v16 }
 0x1da   : > { %5437 = vst [vmem:[%s7311_s17 + $0x598] sm:$0xff] %v4925_v22  ;;  %v843_v62 = vmul.f32 %v8867_v45, %v8867_v45  ;;  %v6291_v13 = vpop.eup %6290  ;;  %v3902_v52 = vadd.f32 1.0, %v6289_v49  ;;  %v2374_v38 = vadd.f32 %v1862_v28, %v8820_v44  ;;  %v1863_v53 = vmul.f32 0.044715, %v1351_v33 }
 0x1db   : > { %v1354_v46 = vmul.f32 %v842_v50, %v8859_v48  ;;  %v3903_v60 = vadd.f32 1.0, %v6291_v13  ;;  %6302 = vtanh.f32 %v2885_v31  ;;  %v1864_v17 = vmul.f32 0.044715, %v1352_v54  ;;  %v8926_v13 = vld [vmem:[%s7165_s30 + $0x638] sm:$0xff] }
 0x1dc   : > { %v1865_v6 = vmul.f32 0.044715, %v1353_v36  ;;  %v4414_v63 = vmul.f32 0.5, %v3902_v52  ;;  %v2886_v41 = vmul.f32 0.7978846, %v2374_v38  ;;  %v2375_v26 = vadd.f32 %v1863_v53, %v8846_v10  ;;  %v8931_v53 = vld [vmem:[%s7165_s30 + $0x640] sm:$0xff] }
 0x1dd   : > { %v1866_v7 = vmul.f32 0.044715, %v1354_v46  ;;  %v4415_v43 = vmul.f32 0.5, %v3903_v60  ;;  %v2376_v55 = vadd.f32 %v1864_v17, %v8851_v32  ;;  %v1355_v24 = vmul.f32 %v843_v62, %v8867_v45  ;;  %v8923_v62 = vld [vmem:[%s7165_s30 + $0x630] sm:$0xff] }
 0x1de   : > { %v2377_v30 = vadd.f32 %v1865_v6, %v8854_v16  ;;  %v4926_v2 = vmul.f32 %v4414_v63, %v8769_v35  ;;  %6304 = vtanh.f32 %v2886_v41  ;;  %v2887_v39 = vmul.f32 0.7978846, %v2375_v26 }
 0x1df   : > { %v6293_v40 = vpop.eup %6292  ;;  %v2378_v58 = vadd.f32 %v1866_v7, %v8859_v48  ;;  %v4927_v34 = vmul.f32 %v4415_v43, %v8772_v15  ;;  %v2888_v12 = vmul.f32 0.7978846, %v2376_v55  ;;  %v1867_v61 = vmul.f32 0.044715, %v1355_v24 }
 0x1e0   : > { %v6295_v1 = vpop.eup %6294  ;;  %v3904_v14 = vadd.f32 1.0, %v6293_v40  ;;  %v2889_v5 = vmul.f32 0.7978846, %v2377_v30  ;;  %5438 = vst [vmem:[%s7311_s17 + $0x5a0] sm:$0xff] %v4926_v2  ;;  %6306 = vtanh.f32 %v2887_v39  ;;  %v844_v29 = vmul.f32 %v8894_v37, %v8894_v37 }
 0x1e1   : > { %v3905_v59 = vadd.f32 1.0, %v6295_v1  ;;  %v2890_v35 = vmul.f32 0.7978846, %v2378_v58  ;;  %v6297_v23 = vpop.eup %6296  ;;  %5439 = vst [vmem:[%s7311_s17 + $0x5a8] sm:$0xff] %v4927_v34  ;;  %6308 = vtanh.f32 %v2888_v12  ;;  %v845_v15 = vmul.f32 %v8897_v19, %v8897_v19 }
 0x1e2   : > { %v4416_v25 = vmul.f32 0.5, %v3904_v14  ;;  %v6299_v0 = vpop.eup %6298  ;;  %v3906_v57 = vadd.f32 1.0, %v6297_v23  ;;  %6310 = vtanh.f32 %v2889_v5  ;;  %v2379_v27 = vadd.f32 %v1867_v61, %v8867_v45 }
 0x1e3   : > { %v4417_v8 = vmul.f32 0.5, %v3905_v59  ;;  %v3907_v20 = vadd.f32 1.0, %v6299_v0  ;;  %6312 = vtanh.f32 %v2890_v35  ;;  %v1356_v42 = vmul.f32 %v844_v29, %v8894_v37 }
 0x1e4   : > { %v4928_v22 = vmul.f32 %v4416_v25, %v8786_v4  ;;  %v4418_v28 = vmul.f32 0.5, %v3906_v57  ;;  %v2891_v33 = vmul.f32 0.7978846, %v2379_v27  ;;  %v1357_v50 = vmul.f32 %v845_v15, %v8897_v19 }
 0x1e5   : > { %v4929_v21 = vmul.f32 %v4417_v8, %v8789_v3  ;;  %v4419_v31 = vmul.f32 0.5, %v3907_v20  ;;  %v1868_v54 = vmul.f32 0.044715, %v1356_v42  ;;  %v846_v4 = vmul.f32 %v8908_v51, %v8908_v51 }
 0x1e6   : > { %v6301_v49 = vpop.eup %6300  ;;  %5440 = vst [vmem:[%s7311_s17 + $0x5b0] sm:$0xff] %v4928_v22  ;;  %v847_v36 = vmul.f32 %v8911_v56, %v8911_v56  ;;  %v4930_v3 = vmul.f32 %v4418_v28, %v8793_v11  ;;  %6314 = vtanh.f32 %v2891_v33  ;;  %v1869_v38 = vmul.f32 0.044715, %v1357_v50 }
 0x1e7   : > { %5441 = vst [vmem:[%s7311_s17 + $0x5b8] sm:$0xff] %v4929_v21  ;;  %v3908_v52 = vadd.f32 1.0, %v6301_v49  ;;  %v4931_v46 = vmul.f32 %v4419_v31, %v8802_v18  ;;  %v2380_v60 = vadd.f32 %v1868_v54, %v8894_v37  ;;  %v1358_v17 = vmul.f32 %v846_v4, %v8908_v51  ;;  %v8962_v49 = vld [vmem:[%s7165_s30 + $0x650] sm:$0xff] }
 0x1e8   : > { %v1359_v6 = vmul.f32 %v847_v36, %v8911_v56  ;;  %v6303_v63 = vpop.eup %6302  ;;  %5442 = vst [vmem:[%s7311_s17 + $0x5c0] sm:$0xff] %v4930_v3  ;;  %v2381_v26 = vadd.f32 %v1869_v38, %v8897_v19  ;;  %v848_v11 = vmul.f32 %v8923_v62, %v8923_v62  ;;  %v849_v7 = vmul.f32 %v8926_v13, %v8926_v13 }
 0x1e9   : > { %v4420_v41 = vmul.f32 0.5, %v3908_v52  ;;  %5443 = vst [vmem:[%s7311_s17 + $0x5c8] sm:$0xff] %v4931_v46  ;;  %v3909_v18 = vadd.f32 1.0, %v6303_v63  ;;  %v2892_v43 = vmul.f32 0.7978846, %v2380_v60  ;;  %v850_v30 = vmul.f32 %v8931_v53, %v8931_v53  ;;  %v8970_v46 = vld [vmem:[%s7165_s30 + $0x658] sm:$0xff] }
 0x1ea   : > { %v1870_v55 = vmul.f32 0.044715, %v1358_v17  ;;  %v2893_v40 = vmul.f32 0.7978846, %v2381_v26  ;;  %v1871_v2 = vmul.f32 0.044715, %v1359_v6  ;;  %v1360_v39 = vmul.f32 %v848_v11, %v8923_v62 }
 0x1eb   : > { %v4932_v24 = vmul.f32 %v4420_v41, %v8808_v9  ;;  %v6305_v58 = vpop.eup %6304  ;;  %v4421_v1 = vmul.f32 0.5, %v3909_v18  ;;  %6316 = vtanh.f32 %v2892_v43  ;;  %v1361_v14 = vmul.f32 %v849_v7, %v8926_v13  ;;  %v8976_v63 = vld [vmem:[%s7165_s30 + $0x660] sm:$0xff]  ;;  %v8979_v41 = vld [vmem:[%s7165_s30 + $0x668] sm:$0xff]  ;;  %v8984_v18 = vld [vmem:[%s7165_s30 + $0x670] sm:$0xff] }
 0x1ec   : > { %v2382_v34 = vadd.f32 %v1870_v55, %v8908_v51  ;;  %v3910_v12 = vadd.f32 1.0, %v6305_v58  ;;  %6318 = vtanh.f32 %v2893_v40  ;;  %v2383_v5 = vadd.f32 %v1871_v2, %v8911_v56 }
 0x1ed   : > { %5444 = vst [vmem:[%s7311_s17 + $0x5d0] sm:$0xff] %v4932_v24  ;;  %v1872_v59 = vmul.f32 0.044715, %v1360_v39  ;;  %v6307_v35 = vpop.eup %6306  ;;  %v4933_v9 = vmul.f32 %v4421_v1, %v8817_v47  ;;  %v1873_v23 = vmul.f32 0.044715, %v1361_v14  ;;  %v1362_v25 = vmul.f32 %v850_v30, %v8931_v53  ;;  %v8958_v47 = vld [vmem:[%s7165_s30 + $0x648] sm:$0xff] }
 0x1ee   : > { %v2894_v61 = vmul.f32 0.7978846, %v2382_v34  ;;  %v6309_v29 = vpop.eup %6308  ;;  %v4422_v15 = vmul.f32 0.5, %v3910_v12  ;;  %v3911_v0 = vadd.f32 1.0, %v6307_v35  ;;  %v2895_v8 = vmul.f32 0.7978846, %v2383_v5 }
 0x1ef   : > { %v2384_v57 = vadd.f32 %v1872_v59, %v8923_v62  ;;  %v6311_v27 = vpop.eup %6310  ;;  %5445 = vst [vmem:[%s7311_s17 + $0x5d8] sm:$0xff] %v4933_v9  ;;  %v3912_v22 = vadd.f32 1.0, %v6309_v29  ;;  %v2385_v20 = vadd.f32 %v1873_v23, %v8926_v13  ;;  %v1874_v42 = vmul.f32 0.044715, %v1362_v25  ;;  %v8993_v24 = vld [vmem:[%s7165_s30 + $0x678] sm:$0xff] }
 0x1f0   : > { %6320 = vtanh.f32 %v2894_v61  ;;  %v6313_v21 = vpop.eup %6312  ;;  %v4934_v28 = vmul.f32 %v4422_v15, %v8820_v44  ;;  %v4423_v33 = vmul.f32 0.5, %v3911_v0  ;;  %v3913_v50 = vadd.f32 1.0, %v6311_v27 }
 0x1f1   : > { %6322 = vtanh.f32 %v2895_v8  ;;  %v4424_v31 = vmul.f32 0.5, %v3912_v22  ;;  %v3914_v54 = vadd.f32 1.0, %v6313_v21  ;;  %v2896_v4 = vmul.f32 0.7978846, %v2384_v57 }
 0x1f2   : > { %v2897_v36 = vmul.f32 0.7978846, %v2385_v20  ;;  %5446 = vst [vmem:[%s7311_s17 + $0x5e0] sm:$0xff] %v4934_v28  ;;  %v4935_v3 = vmul.f32 %v4423_v33, %v8846_v10  ;;  %v4425_v52 = vmul.f32 0.5, %v3913_v50  ;;  %v2386_v38 = vadd.f32 %v1874_v42, %v8931_v53 }
 0x1f3   : > { %v851_v44 = vmul.f32 %v8958_v47, %v8958_v47  ;;  %v6315_v60 = vpop.eup %6314  ;;  %v4936_v17 = vmul.f32 %v4424_v31, %v8851_v32  ;;  %v4426_v6 = vmul.f32 0.5, %v3914_v54  ;;  %6324 = vtanh.f32 %v2896_v4 }
 0x1f4   : > { %v852_v10 = vmul.f32 %v8962_v49, %v8962_v49  ;;  %5447 = vst [vmem:[%s7311_s17 + $0x5e8] sm:$0xff] %v4935_v3  ;;  %v4937_v26 = vmul.f32 %v4425_v52, %v8854_v16  ;;  %v3915_v11 = vadd.f32 1.0, %v6315_v60  ;;  %6326 = vtanh.f32 %v2897_v36  ;;  %v9018_v36 = vld [vmem:[%s7165_s30 + $0x680] sm:$0xff] }
 0x1f5   : > { %v2898_v7 = vmul.f32 0.7978846, %v2386_v38  ;;  %5448 = vst [vmem:[%s7311_s17 + $0x5f0] sm:$0xff] %v4936_v17  ;;  %v4938_v32 = vmul.f32 %v4426_v6, %v8859_v48  ;;  %v1363_v43 = vmul.f32 %v851_v44, %v8958_v47  ;;  %v853_v30 = vmul.f32 %v8970_v46, %v8970_v46 }
 0x1f6   : > { %v1364_v55 = vmul.f32 %v852_v10, %v8962_v49  ;;  %5449 = vst [vmem:[%s7311_s17 + $0x5f8] sm:$0xff] %v4937_v26  ;;  %v4427_v16 = vmul.f32 0.5, %v3915_v11  ;;  %v854_v40 = vmul.f32 %v8976_v63, %v8976_v63  ;;  %v855_v2 = vmul.f32 %v8979_v41, %v8979_v41  ;;  %v9028_v26 = vld [vmem:[%s7165_s30 + $0x688] sm:$0xff]  ;;  %v9031_v11 = vld [vmem:[%s7165_s30 + $0x690] sm:$0xff] }
 0x1f7   : > { %6328 = vtanh.f32 %v2898_v7  ;;  %5450 = vst [vmem:[%s7311_s17 + $0x600] sm:$0xff] %v4938_v32  ;;  %v1875_v48 = vmul.f32 0.044715, %v1363_v43  ;;  %v1365_v58 = vmul.f32 %v853_v30, %v8970_v46  ;;  %v856_v1 = vmul.f32 %v8984_v18, %v8984_v18 }
 0x1f8   : > { %v1876_v39 = vmul.f32 0.044715, %v1364_v55  ;;  %v6317_v34 = vpop.eup %6316  ;;  %v4939_v14 = vmul.f32 %v4427_v16, %v8867_v45  ;;  %v1366_v12 = vmul.f32 %v854_v40, %v8976_v63  ;;  %v1367_v5 = vmul.f32 %v855_v2, %v8979_v41 }
 0x1f9   : > { %v857_v59 = vmul.f32 %v8993_v24, %v8993_v24  ;;  %v6319_v35 = vpop.eup %6318  ;;  %v3916_v9 = vadd.f32 1.0, %v6317_v34  ;;  %v2387_v61 = vadd.f32 %v1875_v48, %v8958_v47  ;;  %v1877_v25 = vmul.f32 0.044715, %v1365_v58  ;;  %v9037_v48 = vld [vmem:[%s7165_s30 + $0x698] sm:$0xff] }
 0x1fa   : > { %v2388_v23 = vadd.f32 %v1876_v39, %v8962_v49  ;;  %5451 = vst [vmem:[%s7311_s17 + $0x608] sm:$0xff] %v4939_v14  ;;  %v3917_v29 = vadd.f32 1.0, %v6319_v35  ;;  %v1878_v15 = vmul.f32 0.044715, %v1366_v12  ;;  %v1879_v0 = vmul.f32 0.044715, %v1367_v5 }
 0x1fb   : > { %v1368_v45 = vmul.f32 %v856_v1, %v8984_v18  ;;  %v4428_v8 = vmul.f32 0.5, %v3916_v9  ;;  %v2899_v57 = vmul.f32 0.7978846, %v2387_v61  ;;  %v2389_v22 = vadd.f32 %v1877_v25, %v8970_v46  ;;  %v9047_v5 = vld [vmem:[%s7165_s30 + $0x6a0] sm:$0xff] }
 0x1fc   : > { %v2900_v27 = vmul.f32 0.7978846, %v2388_v23  ;;  %v4429_v42 = vmul.f32 0.5, %v3917_v29  ;;  %v2390_v21 = vadd.f32 %v1878_v15, %v8976_v63  ;;  %v2391_v28 = vadd.f32 %v1879_v0, %v8979_v41  ;;  %v9055_v23 = vld [vmem:[%s7165_s30 + $0x6a8] sm:$0xff] }
 0x1fd   : > { %v6321_v20 = vpop.eup %6320  ;;  %v1880_v33 = vmul.f32 0.044715, %v1368_v45  ;;  %v4940_v31 = vmul.f32 %v4428_v8, %v8894_v37  ;;  %6330 = vtanh.f32 %v2899_v57  ;;  %v2901_v4 = vmul.f32 0.7978846, %v2389_v22  ;;  %v9067_v22 = vld [vmem:[%s7165_s30 + $0x6b8] sm:$0xff] }
 0x1fe   : > { %v6323_v50 = vpop.eup %6322  ;;  %v3918_v54 = vadd.f32 1.0, %v6321_v20  ;;  %v4941_v3 = vmul.f32 %v4429_v42, %v8897_v19  ;;  %6332 = vtanh.f32 %v2900_v27  ;;  %v2902_v38 = vmul.f32 0.7978846, %v2390_v21  ;;  %v9064_v27 = vld [vmem:[%s7165_s30 + $0x6b0] sm:$0xff] }
 0x1ff   : > { %v3919_v52 = vadd.f32 1.0, %v6323_v50  ;;  %5452 = vst [vmem:[%s7311_s17 + $0x610] sm:$0xff] %v4940_v31  ;;  %6334 = vtanh.f32 %v2901_v4  ;;  %v2903_v60 = vmul.f32 0.7978846, %v2391_v28  ;;  %v2392_v17 = vadd.f32 %v1880_v33, %v8984_v18 }
 0x200   : > { %v4430_v44 = vmul.f32 0.5, %v3918_v54  ;;  %v6325_v6 = vpop.eup %6324  ;;  %5453 = vst [vmem:[%s7311_s17 + $0x618] sm:$0xff] %v4941_v3  ;;  %6336 = vtanh.f32 %v2902_v38  ;;  %v1369_v10 = vmul.f32 %v857_v59, %v8993_v24  ;;  %v858_v19 = vmul.f32 %v9018_v36, %v9018_v36 }
 0x201   : > { %v4431_v37 = vmul.f32 0.5, %v3919_v52  ;;  %v6327_v7 = vpop.eup %6326  ;;  %v3920_v43 = vadd.f32 1.0, %v6325_v6  ;;  %6338 = vtanh.f32 %v2903_v60  ;;  %v2904_v55 = vmul.f32 0.7978846, %v2392_v17 }
 0x202   : > { %v4942_v32 = vmul.f32 %v4430_v44, %v8908_v51  ;;  %v3921_v16 = vadd.f32 1.0, %v6327_v7  ;;  %v1881_v40 = vmul.f32 0.044715, %v1369_v10  ;;  %v1370_v2 = vmul.f32 %v858_v19, %v9018_v36 }
 0x203   : > { %v4943_v30 = vmul.f32 %v4431_v37, %v8911_v56  ;;  %v4432_v58 = vmul.f32 0.5, %v3920_v43  ;;  %6340 = vtanh.f32 %v2904_v55  ;;  %v859_v51 = vmul.f32 %v9028_v26, %v9028_v26 }
 0x204   : > { %v6329_v39 = vpop.eup %6328  ;;  %5454 = vst [vmem:[%s7311_s17 + $0x620] sm:$0xff] %v4942_v32  ;;  %v860_v1 = vmul.f32 %v9031_v11, %v9031_v11  ;;  %v4433_v56 = vmul.f32 0.5, %v3921_v16  ;;  %v2393_v14 = vadd.f32 %v1881_v40, %v8993_v24  ;;  %v1882_v12 = vmul.f32 0.044715, %v1370_v2 }
 0x205   : > { %5455 = vst [vmem:[%s7311_s17 + $0x628] sm:$0xff] %v4943_v30  ;;  %v3922_v34 = vadd.f32 1.0, %v6329_v39  ;;  %v4944_v59 = vmul.f32 %v4432_v58, %v8923_v62  ;;  %v1371_v35 = vmul.f32 %v859_v51, %v9028_v26  ;;  %v861_v61 = vmul.f32 %v9037_v48, %v9037_v48 }
 0x206   : > { %v1372_v9 = vmul.f32 %v860_v1, %v9031_v11  ;;  %v4945_v25 = vmul.f32 %v4433_v56, %v8926_v13  ;;  %v2905_v15 = vmul.f32 0.7978846, %v2393_v14  ;;  %v2394_v0 = vadd.f32 %v1882_v12, %v9018_v36 }
 0x207   : > { %v4434_v29 = vmul.f32 0.5, %v3922_v34  ;;  %5456 = vst [vmem:[%s7311_s17 + $0x630] sm:$0xff] %v4944_v59  ;;  %v1883_v45 = vmul.f32 0.044715, %v1371_v35  ;;  %v1373_v8 = vmul.f32 %v861_v61, %v9037_v48  ;;  %v862_v57 = vmul.f32 %v9047_v5, %v9047_v5  ;;  %v9089_v59 = vld [vmem:[%s7165_s30 + $0x6c0] sm:$0xff] }
 0x208   : > { %v1884_v62 = vmul.f32 0.044715, %v1372_v9  ;;  %5457 = vst [vmem:[%s7311_s17 + $0x638] sm:$0xff] %v4945_v25  ;;  %6342 = vtanh.f32 %v2905_v15  ;;  %v2906_v20 = vmul.f32 0.7978846, %v2394_v0  ;;  %v863_v42 = vmul.f32 %v9055_v23, %v9055_v23  ;;  %v9094_v25 = vld [vmem:[%s7165_s30 + $0x6c8] sm:$0xff] }
 0x209   : > { %v4946_v13 = vmul.f32 %v4434_v29, %v8931_v53  ;;  %v2395_v21 = vadd.f32 %v1883_v45, %v9028_v26  ;;  %v1885_v33 = vmul.f32 0.044715, %v1373_v8  ;;  %v1374_v50 = vmul.f32 %v862_v57, %v9047_v5  ;;  %v9097_v29 = vld [vmem:[%s7165_s30 + $0x6d0] sm:$0xff]  ;;  %v9103_v45 = vld [vmem:[%s7165_s30 + $0x6d8] sm:$0xff] }
 0x20a   : > { %v2396_v28 = vadd.f32 %v1884_v62, %v9031_v11  ;;  %v6331_v31 = vpop.eup %6330  ;;  %6344 = vtanh.f32 %v2906_v20  ;;  %v1375_v54 = vmul.f32 %v863_v42, %v9055_v23  ;;  %v864_v53 = vmul.f32 %v9064_v27, %v9064_v27  ;;  %v9116_v42 = vld [vmem:[%s7165_s30 + $0x6e0] sm:$0xff] }
 0x20b   : > { %5458 = vst [vmem:[%s7311_s17 + $0x640] sm:$0xff] %v4946_v13  ;;  %v865_v4 = vmul.f32 %v9067_v22, %v9067_v22  ;;  %v6333_v3 = vpop.eup %6332  ;;  %v3923_v52 = vadd.f32 1.0, %v6331_v31  ;;  %v2907_v38 = vmul.f32 0.7978846, %v2395_v21  ;;  %v2397_v60 = vadd.f32 %v1885_v33, %v9037_v48 }
 0x20c   : > { %v2908_v44 = vmul.f32 0.7978846, %v2396_v28  ;;  %v6335_v17 = vpop.eup %6334  ;;  %v3924_v6 = vadd.f32 1.0, %v6333_v3  ;;  %v1886_v37 = vmul.f32 0.044715, %v1374_v50  ;;  %v1376_v19 = vmul.f32 %v864_v53, %v9064_v27 }
 0x20d   : > { %v1887_v10 = vmul.f32 0.044715, %v1375_v54  ;;  %v6337_v7 = vpop.eup %6336  ;;  %v4435_v32 = vmul.f32 0.5, %v3923_v52  ;;  %v3925_v43 = vadd.f32 1.0, %v6335_v17  ;;  %6346 = vtanh.f32 %v2907_v38 }
 0x20e   : > { %v2909_v55 = vmul.f32 0.7978846, %v2397_v60  ;;  %v6339_v30 = vpop.eup %6338  ;;  %v4436_v16 = vmul.f32 0.5, %v3924_v6  ;;  %v3926_v40 = vadd.f32 1.0, %v6337_v7  ;;  %6348 = vtanh.f32 %v2908_v44 }
 0x20f   : > { %v2398_v2 = vadd.f32 %v1886_v37, %v9047_v5  ;;  %v4947_v39 = vmul.f32 %v4435_v32, %v8958_v47  ;;  %v4437_v58 = vmul.f32 0.5, %v3925_v43  ;;  %v3927_v51 = vadd.f32 1.0, %v6339_v30 }
 0x210   : > { %6350 = vtanh.f32 %v2909_v55  ;;  %v6341_v1 = vpop.eup %6340  ;;  %v4948_v56 = vmul.f32 %v4436_v16, %v8962_v49  ;;  %v4438_v34 = vmul.f32 0.5, %v3926_v40  ;;  %v2399_v12 = vadd.f32 %v1887_v10, %v9055_v23 }
 0x211   : > { %v2910_v14 = vmul.f32 0.7978846, %v2398_v2  ;;  %5459 = vst [vmem:[%s7311_s17 + $0x648] sm:$0xff] %v4947_v39  ;;  %v4949_v35 = vmul.f32 %v4437_v58, %v8970_v46  ;;  %v4439_v47 = vmul.f32 0.5, %v3927_v51  ;;  %v3928_v9 = vadd.f32 1.0, %v6341_v1 }
 0x212   : > { %v1888_v61 = vmul.f32 0.044715, %v1376_v19  ;;  %5460 = vst [vmem:[%s7311_s17 + $0x650] sm:$0xff] %v4948_v56  ;;  %v4950_v49 = vmul.f32 %v4438_v34, %v8976_v63  ;;  %v2911_v15 = vmul.f32 0.7978846, %v2399_v12  ;;  %v1377_v0 = vmul.f32 %v865_v4, %v9067_v22 }
 0x213   : > { %6352 = vtanh.f32 %v2910_v14  ;;  %5461 = vst [vmem:[%s7311_s17 + $0x658] sm:$0xff] %v4949_v35  ;;  %v4951_v46 = vmul.f32 %v4439_v47, %v8979_v41  ;;  %v4440_v62 = vmul.f32 0.5, %v3928_v9  ;;  %v866_v57 = vmul.f32 %v9089_v59, %v9089_v59  ;;  %v9139_v14 = vld [vmem:[%s7165_s30 + $0x6e8] sm:$0xff] }
 0x214   : > { %v2400_v8 = vadd.f32 %v1888_v61, %v9064_v27  ;;  %5462 = vst [vmem:[%s7311_s17 + $0x660] sm:$0xff] %v4950_v49  ;;  %6354 = vtanh.f32 %v2911_v15  ;;  %v1889_v63 = vmul.f32 0.044715, %v1377_v0  ;;  %v867_v13 = vmul.f32 %v9094_v25, %v9094_v25  ;;  %v9144_v15 = vld [vmem:[%s7165_s30 + $0x6f0] sm:$0xff] }
 0x215   : > { %v868_v20 = vmul.f32 %v9097_v29, %v9097_v29  ;;  %v6343_v21 = vpop.eup %6342  ;;  %5463 = vst [vmem:[%s7311_s17 + $0x668] sm:$0xff] %v4951_v46  ;;  %v4952_v41 = vmul.f32 %v4440_v62, %v8984_v18  ;;  %v1378_v33 = vmul.f32 %v866_v57, %v9089_v59  ;;  %v869_v50 = vmul.f32 %v9103_v45, %v9103_v45  ;;  %v9153_v57 = vld [vmem:[%s7165_s30 + $0x700] sm:$0xff] }
 0x216   : > { %v2912_v28 = vmul.f32 0.7978846, %v2400_v8  ;;  %v3929_v31 = vadd.f32 1.0, %v6343_v21  ;;  %v2401_v54 = vadd.f32 %v1889_v63, %v9067_v22  ;;  %v1379_v53 = vmul.f32 %v867_v13, %v9094_v25  ;;  %v9157_v21 = vld [vmem:[%s7165_s30 + $0x708] sm:$0xff] }
 0x217   : > { %v1380_v4 = vmul.f32 %v868_v20, %v9097_v29  ;;  %v6345_v3 = vpop.eup %6344  ;;  %5464 = vst [vmem:[%s7311_s17 + $0x670] sm:$0xff] %v4952_v41  ;;  %v1890_v52 = vmul.f32 0.044715, %v1378_v33  ;;  %v1381_v38 = vmul.f32 %v869_v50, %v9103_v45  ;;  %v870_v18 = vmul.f32 %v9116_v42, %v9116_v42 }
 0x218   : > { %6356 = vtanh.f32 %v2912_v28  ;;  %v4441_v44 = vmul.f32 0.5, %v3929_v31  ;;  %v3930_v60 = vadd.f32 1.0, %v6345_v3  ;;  %v2913_v17 = vmul.f32 0.7978846, %v2401_v54  ;;  %v9167_v31 = vld [vmem:[%s7165_s30 + $0x710] sm:$0xff] }
 0x219   : > { %v1891_v6 = vmul.f32 0.044715, %v1379_v53  ;;  %v2402_v37 = vadd.f32 %v1890_v52, %v9089_v59  ;;  %v1892_v10 = vmul.f32 0.044715, %v1380_v4  ;;  %v1893_v19 = vmul.f32 0.044715, %v1381_v38 }
 0x21a   : > { %v1382_v7 = vmul.f32 %v870_v18, %v9116_v42  ;;  %v6347_v32 = vpop.eup %6346  ;;  %v4953_v43 = vmul.f32 %v4441_v44, %v8993_v24  ;;  %v4442_v55 = vmul.f32 0.5, %v3930_v60  ;;  %6358 = vtanh.f32 %v2913_v17 }
 0x21b   : > { %v2403_v30 = vadd.f32 %v1891_v6, %v9094_v25  ;;  %v6349_v16 = vpop.eup %6348  ;;  %v3931_v40 = vadd.f32 1.0, %v6347_v32  ;;  %v2914_v2 = vmul.f32 0.7978846, %v2402_v37  ;;  %v2404_v39 = vadd.f32 %v1892_v10, %v9097_v29 }
 0x21c   : > { %v2405_v58 = vadd.f32 %v1893_v19, %v9103_v45  ;;  %5465 = vst [vmem:[%s7311_s17 + $0x678] sm:$0xff] %v4953_v43  ;;  %v4954_v1 = vmul.f32 %v4442_v55, %v9018_v36  ;;  %v3932_v56 = vadd.f32 1.0, %v6349_v16  ;;  %v1894_v34 = vmul.f32 0.044715, %v1382_v7  ;;  %v9147_v36 = vld [vmem:[%s7165_s30 + $0x6f8] sm:$0xff] }
 0x21d   : > { %v6351_v51 = vpop.eup %6350  ;;  %v2915_v24 = vmul.f32 0.7978846, %v2403_v30  ;;  %v4443_v12 = vmul.f32 0.5, %v3931_v40  ;;  %6360 = vtanh.f32 %v2914_v2  ;;  %v2916_v47 = vmul.f32 0.7978846, %v2404_v39  ;;  %v9189_v39 = vld [vmem:[%s7165_s30 + $0x718] sm:$0xff] }
 0x21e   : > { %v3933_v35 = vadd.f32 1.0, %v6351_v51  ;;  %5466 = vst [vmem:[%s7311_s17 + $0x680] sm:$0xff] %v4954_v1  ;;  %v4444_v9 = vmul.f32 0.5, %v3932_v56  ;;  %v2917_v61 = vmul.f32 0.7978846, %v2405_v58  ;;  %v2406_v49 = vadd.f32 %v1894_v34, %v9116_v42  ;;  %v9194_v56 = vld [vmem:[%s7165_s30 + $0x720] sm:$0xff] }
 0x21f   : > { %6362 = vtanh.f32 %v2915_v24  ;;  %v4955_v46 = vmul.f32 %v4443_v12, %v9028_v26  ;;  %v871_v8 = vmul.f32 %v9139_v14, %v9139_v14  ;;  %v872_v33 = vmul.f32 %v9144_v15, %v9144_v15 }
 0x220   : > { %v6353_v0 = vpop.eup %6352  ;;  %v4445_v62 = vmul.f32 0.5, %v3933_v35  ;;  %6364 = vtanh.f32 %v2916_v47  ;;  %v4956_v63 = vmul.f32 %v4444_v9, %v9031_v11  ;;  %v2918_v20 = vmul.f32 0.7978846, %v2406_v49 }
 0x221   : > { %v3934_v13 = vadd.f32 1.0, %v6353_v0  ;;  %6366 = vtanh.f32 %v2917_v61  ;;  %v6355_v41 = vpop.eup %6354  ;;  %5467 = vst [vmem:[%s7311_s17 + $0x688] sm:$0xff] %v4955_v46  ;;  %v1383_v28 = vmul.f32 %v871_v8, %v9139_v14  ;;  %v873_v50 = vmul.f32 %v9147_v36, %v9147_v36 }
 0x222   : > { %v4957_v26 = vmul.f32 %v4445_v62, %v9037_v48  ;;  %5468 = vst [vmem:[%s7311_s17 + $0x690] sm:$0xff] %v4956_v63  ;;  %v3935_v54 = vadd.f32 1.0, %v6355_v41  ;;  %6368 = vtanh.f32 %v2918_v20  ;;  %v874_v53 = vmul.f32 %v9153_v57, %v9153_v57 }
 0x223   : > { %v4446_v11 = vmul.f32 0.5, %v3934_v13  ;;  %v1895_v48 = vmul.f32 0.044715, %v1383_v28  ;;  %v1384_v4 = vmul.f32 %v872_v33, %v9144_v15  ;;  %v1385_v3 = vmul.f32 %v873_v50, %v9147_v36 }
 0x224   : > { %5469 = vst [vmem:[%s7311_s17 + $0x698] sm:$0xff] %v4957_v26  ;;  %v875_v52 = vmul.f32 %v9157_v21, %v9157_v21  ;;  %v4447_v44 = vmul.f32 0.5, %v3935_v54  ;;  %v1386_v60 = vmul.f32 %v874_v53, %v9153_v57  ;;  %v876_v17 = vmul.f32 %v9167_v31, %v9167_v31  ;;  %v9208_v53 = vld [vmem:[%s7165_s30 + $0x728] sm:$0xff] }
 0x225   : > { %v6357_v38 = vpop.eup %6356  ;;  %v4958_v18 = vmul.f32 %v4446_v11, %v9047_v5  ;;  %v2407_v37 = vadd.f32 %v1895_v48, %v9139_v14  ;;  %v1896_v10 = vmul.f32 0.044715, %v1384_v4  ;;  %v1897_v19 = vmul.f32 0.044715, %v1385_v3 }
 0x226   : > { %v3936_v6 = vadd.f32 1.0, %v6357_v38  ;;  %v4959_v7 = vmul.f32 %v4447_v44, %v9055_v23  ;;  %v1898_v32 = vmul.f32 0.044715, %v1386_v60  ;;  %v1387_v5 = vmul.f32 %v875_v52, %v9157_v21  ;;  %v9216_v38 = vld [vmem:[%s7165_s30 + $0x738] sm:$0xff] }
 0x227   : > { %5470 = vst [vmem:[%s7311_s17 + $0x6a0] sm:$0xff] %v4958_v18  ;;  %v1388_v43 = vmul.f32 %v876_v17, %v9167_v31  ;;  %v6359_v55 = vpop.eup %6358  ;;  %v2919_v16 = vmul.f32 0.7978846, %v2407_v37  ;;  %v2408_v40 = vadd.f32 %v1896_v10, %v9144_v15  ;;  %v2409_v2 = vadd.f32 %v1897_v19, %v9147_v36 }
 0x228   : > { %v4448_v30 = vmul.f32 0.5, %v3936_v6  ;;  %5471 = vst [vmem:[%s7311_s17 + $0x6a8] sm:$0xff] %v4959_v7  ;;  %v3937_v58 = vadd.f32 1.0, %v6359_v55  ;;  %v2410_v51 = vadd.f32 %v1898_v32, %v9153_v57  ;;  %v1899_v23 = vmul.f32 0.044715, %v1387_v5  ;;  %v9220_v6 = vld [vmem:[%s7165_s30 + $0x740] sm:$0xff] }
 0x229   : > { %v1900_v1 = vmul.f32 0.044715, %v1388_v43  ;;  %6370 = vtanh.f32 %v2919_v16  ;;  %v2920_v34 = vmul.f32 0.7978846, %v2408_v40  ;;  %v2921_v12 = vmul.f32 0.7978846, %v2409_v2 }
 0x22a   : > { %v4960_v24 = vmul.f32 %v4448_v30, %v9064_v27  ;;  %v6361_v35 = vpop.eup %6360  ;;  %v4449_v47 = vmul.f32 0.5, %v3937_v58  ;;  %v2922_v9 = vmul.f32 0.7978846, %v2410_v51  ;;  %v2411_v61 = vadd.f32 %v1899_v23, %v9157_v21  ;;  %v9229_v7 = vld [vmem:[%s7165_s30 + $0x748] sm:$0xff]  ;;  %v9243_v40 = vld [vmem:[%s7165_s30 + $0x750] sm:$0xff] }
 0x22b   : > { %v2412_v49 = vadd.f32 %v1900_v1, %v9167_v31  ;;  %v3938_v46 = vadd.f32 1.0, %v6361_v35  ;;  %6372 = vtanh.f32 %v2920_v34  ;;  %v877_v62 = vmul.f32 %v9189_v39, %v9189_v39 }
 0x22c   : > { %v6363_v0 = vpop.eup %6362  ;;  %5472 = vst [vmem:[%s7311_s17 + $0x6b0] sm:$0xff] %v4960_v24  ;;  %v878_v27 = vmul.f32 %v9194_v56, %v9194_v56  ;;  %v4961_v63 = vmul.f32 %v4449_v47, %v9067_v22  ;;  %6374 = vtanh.f32 %v2921_v12  ;;  %v2923_v20 = vmul.f32 0.7978846, %v2411_v61  ;;  %v9211_v22 = vld [vmem:[%s7165_s30 + $0x730] sm:$0xff] }
 0x22d   : > { %v6365_v8 = vpop.eup %6364  ;;  %v3939_v13 = vadd.f32 1.0, %v6363_v0  ;;  %v4450_v26 = vmul.f32 0.5, %v3938_v46  ;;  %6376 = vtanh.f32 %v2922_v9  ;;  %v2924_v33 = vmul.f32 0.7978846, %v2412_v49 }
 0x22e   : > { %v6367_v41 = vpop.eup %6366  ;;  %v3940_v28 = vadd.f32 1.0, %v6365_v8  ;;  %5473 = vst [vmem:[%s7311_s17 + $0x6b8] sm:$0xff] %v4961_v63  ;;  %6378 = vtanh.f32 %v2923_v20  ;;  %v1389_v54 = vmul.f32 %v877_v62, %v9189_v39  ;;  %v1390_v52 = vmul.f32 %v878_v27, %v9194_v56 }
 0x22f   : > { %v4451_v50 = vmul.f32 0.5, %v3939_v13  ;;  %v3941_v11 = vadd.f32 1.0, %v6367_v41  ;;  %v6369_v48 = vpop.eup %6368  ;;  %v4962_v4 = vmul.f32 %v4450_v26, %v9089_v59  ;;  %6380 = vtanh.f32 %v2924_v33 }
 0x230   : > { %v4452_v3 = vmul.f32 0.5, %v3940_v28  ;;  %v3942_v60 = vadd.f32 1.0, %v6369_v48  ;;  %v1901_v17 = vmul.f32 0.044715, %v1389_v54  ;;  %v1902_v59 = vmul.f32 0.044715, %v1390_v52 }
 0x231   : > { %v4963_v18 = vmul.f32 %v4451_v50, %v9094_v25  ;;  %v4453_v44 = vmul.f32 0.5, %v3941_v11  ;;  %5474 = vst [vmem:[%s7311_s17 + $0x6c0] sm:$0xff] %v4962_v4  ;;  %v879_v10 = vmul.f32 %v9208_v53, %v9208_v53  ;;  %v880_v19 = vmul.f32 %v9211_v22, %v9211_v22 }
 0x232   : > { %v4964_v37 = vmul.f32 %v4452_v3, %v9097_v29  ;;  %v4454_v32 = vmul.f32 0.5, %v3942_v60  ;;  %v2413_v5 = vadd.f32 %v1901_v17, %v9189_v39  ;;  %v881_v43 = vmul.f32 %v9216_v38, %v9216_v38 }
 0x233   : > { %5475 = vst [vmem:[%s7311_s17 + $0x6c8] sm:$0xff] %v4963_v18  ;;  %v4965_v25 = vmul.f32 %v4453_v44, %v9103_v45  ;;  %v2414_v29 = vadd.f32 %v1902_v59, %v9194_v56  ;;  %v1391_v55 = vmul.f32 %v879_v10, %v9208_v53  ;;  %v1392_v30 = vmul.f32 %v880_v19, %v9211_v22  ;;  %v9268_v19 = vld [vmem:[%s7165_s30 + $0x760] sm:$0xff] }
 0x234   : > { %5476 = vst [vmem:[%s7311_s17 + $0x6d0] sm:$0xff] %v4964_v37  ;;  %v882_v16 = vmul.f32 %v9220_v6, %v9220_v6  ;;  %v4966_v45 = vmul.f32 %v4454_v32, %v9116_v42  ;;  %v2925_v2 = vmul.f32 0.7978846, %v2413_v5  ;;  %v1393_v58 = vmul.f32 %v881_v43, %v9216_v38  ;;  %v9263_v37 = vld [vmem:[%s7165_s30 + $0x758] sm:$0xff] }
 0x235   : > { %5477 = vst [vmem:[%s7311_s17 + $0x6d8] sm:$0xff] %v4965_v25  ;;  %v883_v51 = vmul.f32 %v9229_v7, %v9229_v7  ;;  %v2926_v23 = vmul.f32 0.7978846, %v2414_v29  ;;  %v1903_v1 = vmul.f32 0.044715, %v1391_v55  ;;  %v884_v42 = vmul.f32 %v9243_v40, %v9243_v40  ;;  %v9271_v25 = vld [vmem:[%s7165_s30 + $0x768] sm:$0xff] }
 0x236   : > { %v1904_v24 = vmul.f32 0.044715, %v1392_v30  ;;  %v1394_v34 = vmul.f32 %v882_v16, %v9220_v6  ;;  %v6371_v12 = vpop.eup %6370  ;;  %5478 = vst [vmem:[%s7311_s17 + $0x6e0] sm:$0xff] %v4966_v45  ;;  %6382 = vtanh.f32 %v2925_v2  ;;  %v1905_v35 = vmul.f32 0.044715, %v1393_v58  ;;  %v9275_v29 = vld [vmem:[%s7165_s30 + $0x770] sm:$0xff] }
 0x237   : > { %v1395_v47 = vmul.f32 %v883_v51, %v9229_v7  ;;  %v3943_v9 = vadd.f32 1.0, %v6371_v12  ;;  %6384 = vtanh.f32 %v2926_v23  ;;  %v2415_v61 = vadd.f32 %v1903_v1, %v9208_v53  ;;  %v9282_v45 = vld [vmem:[%s7165_s30 + $0x778] sm:$0xff]  ;;  %v9285_v2 = vld [vmem:[%s7165_s30 + $0x780] sm:$0xff]  ;;  %v9294_v51 = vld [vmem:[%s7165_s30 + $0x788] sm:$0xff] }
 0x238   : > { %v2416_v49 = vadd.f32 %v1904_v24, %v9211_v22  ;;  %v6373_v0 = vpop.eup %6372  ;;  %v2417_v46 = vadd.f32 %v1905_v35, %v9216_v38  ;;  %v1906_v62 = vmul.f32 0.044715, %v1394_v34  ;;  %v1396_v8 = vmul.f32 %v884_v42, %v9243_v40 }
 0x239   : > { %v1907_v27 = vmul.f32 0.044715, %v1395_v47  ;;  %v6375_v63 = vpop.eup %6374  ;;  %v4455_v13 = vmul.f32 0.5, %v3943_v9  ;;  %v3944_v20 = vadd.f32 1.0, %v6373_v0  ;;  %v2927_v41 = vmul.f32 0.7978846, %v2415_v61 }
 0x23a   : > { %v2928_v26 = vmul.f32 0.7978846, %v2416_v49  ;;  %v6377_v28 = vpop.eup %6376  ;;  %v3945_v33 = vadd.f32 1.0, %v6375_v63  ;;  %v2929_v50 = vmul.f32 0.7978846, %v2417_v46  ;;  %v2418_v11 = vadd.f32 %v1906_v62, %v9220_v6 }
 0x23b   : > { %v2419_v54 = vadd.f32 %v1907_v27, %v9229_v7  ;;  %v6379_v48 = vpop.eup %6378  ;;  %v4967_v4 = vmul.f32 %v4455_v13, %v9139_v14  ;;  %v4456_v3 = vmul.f32 0.5, %v3944_v20  ;;  %v3946_v52 = vadd.f32 1.0, %v6377_v28 }
 0x23c   : > { %6386 = vtanh.f32 %v2927_v41  ;;  %v6381_v18 = vpop.eup %6380  ;;  %v4457_v44 = vmul.f32 0.5, %v3945_v33  ;;  %v3947_v60 = vadd.f32 1.0, %v6379_v48  ;;  %v2930_v17 = vmul.f32 0.7978846, %v2418_v11 }
 0x23d   : > { %6388 = vtanh.f32 %v2928_v26  ;;  %5479 = vst [vmem:[%s7311_s17 + $0x6e8] sm:$0xff] %v4967_v4  ;;  %v4968_v59 = vmul.f32 %v4456_v3, %v9144_v15  ;;  %v4458_v10 = vmul.f32 0.5, %v3946_v52  ;;  %v3948_v14 = vadd.f32 1.0, %v6381_v18 }
 0x23e   : > { %6390 = vtanh.f32 %v2929_v50  ;;  %v4969_v32 = vmul.f32 %v4457_v44, %v9147_v36  ;;  %v4459_v5 = vmul.f32 0.5, %v3947_v60  ;;  %v2931_v43 = vmul.f32 0.7978846, %v2419_v54 }
 0x23f   : > { %6392 = vtanh.f32 %v2930_v17  ;;  %5480 = vst [vmem:[%s7311_s17 + $0x6f0] sm:$0xff] %v4968_v59  ;;  %v4970_v15 = vmul.f32 %v4458_v10, %v9153_v57  ;;  %v4460_v55 = vmul.f32 0.5, %v3948_v14  ;;  %v1908_v30 = vmul.f32 0.044715, %v1396_v8 }
 0x240   : > { %v885_v16 = vmul.f32 %v9263_v37, %v9263_v37  ;;  %5481 = vst [vmem:[%s7311_s17 + $0x6f8] sm:$0xff] %v4969_v32  ;;  %v4971_v36 = vmul.f32 %v4459_v5, %v9157_v21  ;;  %6394 = vtanh.f32 %v2931_v43  ;;  %v886_v58 = vmul.f32 %v9268_v19, %v9268_v19 }
 0x241   : > { %v887_v57 = vmul.f32 %v9271_v25, %v9271_v25  ;;  %5482 = vst [vmem:[%s7311_s17 + $0x700] sm:$0xff] %v4970_v15  ;;  %v4972_v23 = vmul.f32 %v4460_v55, %v9167_v31  ;;  %v2420_v1 = vadd.f32 %v1908_v30, %v9243_v40  ;;  %v888_v21 = vmul.f32 %v9275_v29, %v9275_v29 }
 0x242   : > { %v1397_v24 = vmul.f32 %v885_v16, %v9263_v37  ;;  %5483 = vst [vmem:[%s7311_s17 + $0x708] sm:$0xff] %v4971_v36  ;;  %v1398_v34 = vmul.f32 %v886_v58, %v9268_v19  ;;  %v889_v35 = vmul.f32 %v9282_v45, %v9282_v45  ;;  %v890_v47 = vmul.f32 %v9285_v2, %v9285_v2  ;;  %v9327_v58 = vld [vmem:[%s7165_s30 + $0x790] sm:$0xff] }
 0x243   : > { %v1399_v12 = vmul.f32 %v887_v57, %v9271_v25  ;;  %v6383_v42 = vpop.eup %6382  ;;  %5484 = vst [vmem:[%s7311_s17 + $0x710] sm:$0xff] %v4972_v23  ;;  %v2932_v31 = vmul.f32 0.7978846, %v2420_v1  ;;  %v1400_v61 = vmul.f32 %v888_v21, %v9275_v29  ;;  %v891_v49 = vmul.f32 %v9294_v51, %v9294_v51  ;;  %v9330_v57 = vld [vmem:[%s7165_s30 + $0x798] sm:$0xff] }
 0x244   : > { %v1909_v9 = vmul.f32 0.044715, %v1397_v24  ;;  %v6385_v0 = vpop.eup %6384  ;;  %v3949_v46 = vadd.f32 1.0, %v6383_v42  ;;  %v1910_v62 = vmul.f32 0.044715, %v1398_v34  ;;  %v1401_v8 = vmul.f32 %v889_v35, %v9282_v45  ;;  %v9334_v34 = vld [vmem:[%s7165_s30 + $0x7a0] sm:$0xff] }
 0x245   : > { %v1911_v27 = vmul.f32 0.044715, %v1399_v12  ;;  %v3950_v63 = vadd.f32 1.0, %v6385_v0  ;;  %6396 = vtanh.f32 %v2932_v31  ;;  %v1912_v20 = vmul.f32 0.044715, %v1400_v61  ;;  %v9338_v31 = vld [vmem:[%s7165_s30 + $0x7a8] sm:$0xff] }
 0x246   : > { %v2421_v13 = vadd.f32 %v1909_v9, %v9263_v37  ;;  %v4461_v41 = vmul.f32 0.5, %v3949_v46  ;;  %v2422_v26 = vadd.f32 %v1910_v62, %v9268_v19  ;;  %v1913_v33 = vmul.f32 0.044715, %v1401_v8  ;;  %v9348_v0 = vld [vmem:[%s7165_s30 + $0x7b0] sm:$0xff] }
 0x247   : > { %v2423_v28 = vadd.f32 %v1911_v27, %v9271_v25  ;;  %v4462_v50 = vmul.f32 0.5, %v3950_v63  ;;  %v2424_v54 = vadd.f32 %v1912_v20, %v9275_v29  ;;  %v1402_v48 = vmul.f32 %v890_v47, %v9285_v2 }
 0x248   : > { %v2933_v11 = vmul.f32 0.7978846, %v2421_v13  ;;  %v4973_v3 = vmul.f32 %v4461_v41, %v9189_v39  ;;  %v2934_v52 = vmul.f32 0.7978846, %v2422_v26  ;;  %v2425_v44 = vadd.f32 %v1913_v33, %v9282_v45  ;;  %v9370_v33 = vld [vmem:[%s7165_s30 + $0x7c0] sm:$0xff] }
 0x249   : > { %v6387_v4 = vpop.eup %6386  ;;  %v2935_v18 = vmul.f32 0.7978846, %v2423_v28  ;;  %v4974_v17 = vmul.f32 %v4462_v50, %v9194_v56  ;;  %v2936_v10 = vmul.f32 0.7978846, %v2424_v54  ;;  %v1914_v43 = vmul.f32 0.044715, %v1402_v48 }
 0x24a   : > { %v6389_v60 = vpop.eup %6388  ;;  %v3951_v59 = vadd.f32 1.0, %v6387_v4  ;;  %6398 = vtanh.f32 %v2933_v11  ;;  %5485 = vst [vmem:[%s7311_s17 + $0x718] sm:$0xff] %v4973_v3  ;;  %v2937_v5 = vmul.f32 0.7978846, %v2425_v44  ;;  %v1403_v30 = vmul.f32 %v891_v49, %v9294_v51 }
 0x24b   : > { %v6391_v14 = vpop.eup %6390  ;;  %v3952_v32 = vadd.f32 1.0, %v6389_v60  ;;  %6400 = vtanh.f32 %v2934_v52  ;;  %5486 = vst [vmem:[%s7311_s17 + $0x720] sm:$0xff] %v4974_v17  ;;  %v2426_v36 = vadd.f32 %v1914_v43, %v9285_v2  ;;  %v892_v61 = vmul.f32 %v9327_v58, %v9327_v58 }
 0x24c   : > { %v6393_v39 = vpop.eup %6392  ;;  %v4463_v15 = vmul.f32 0.5, %v3951_v59  ;;  %v3953_v55 = vadd.f32 1.0, %v6391_v14  ;;  %6402 = vtanh.f32 %v2935_v18  ;;  %v1915_v21 = vmul.f32 0.044715, %v1403_v30 }
 0x24d   : > { %v4464_v56 = vmul.f32 0.5, %v3952_v32  ;;  %v3954_v16 = vadd.f32 1.0, %v6393_v39  ;;  %6404 = vtanh.f32 %v2936_v10  ;;  %v6395_v23 = vpop.eup %6394  ;;  %v2938_v42 = vmul.f32 0.7978846, %v2426_v36 }
 0x24e   : > { %v4975_v1 = vmul.f32 %v4463_v15, %v9208_v53  ;;  %v4465_v24 = vmul.f32 0.5, %v3953_v55  ;;  %6406 = vtanh.f32 %v2937_v5  ;;  %v3955_v47 = vadd.f32 1.0, %v6395_v23 }
 0x24f   : > { %v4976_v12 = vmul.f32 %v4464_v56, %v9211_v22  ;;  %v4466_v35 = vmul.f32 0.5, %v3954_v16  ;;  %v2427_v53 = vadd.f32 %v1915_v21, %v9294_v51  ;;  %v893_v49 = vmul.f32 %v9330_v57, %v9330_v57  ;;  %v9351_v22 = vld [vmem:[%s7165_s30 + $0x7b8] sm:$0xff] }
 0x250   : > { %5487 = vst [vmem:[%s7311_s17 + $0x728] sm:$0xff] %v4975_v1  ;;  %v4977_v9 = vmul.f32 %v4465_v24, %v9216_v38  ;;  %v4467_v62 = vmul.f32 0.5, %v3955_v47  ;;  %6408 = vtanh.f32 %v2938_v42  ;;  %v894_v38 = vmul.f32 %v9334_v34, %v9334_v34 }
 0x251   : > { %5488 = vst [vmem:[%s7311_s17 + $0x730] sm:$0xff] %v4976_v12  ;;  %v4978_v46 = vmul.f32 %v4466_v35, %v9220_v6  ;;  %v2939_v27 = vmul.f32 0.7978846, %v2427_v53  ;;  %v1404_v8 = vmul.f32 %v892_v61, %v9327_v58  ;;  %v1405_v63 = vmul.f32 %v893_v49, %v9330_v57  ;;  %v9388_v49 = vld [vmem:[%s7165_s30 + $0x7c8] sm:$0xff] }
 0x252   : > { %5489 = vst [vmem:[%s7311_s17 + $0x738] sm:$0xff] %v4977_v9  ;;  %v895_v13 = vmul.f32 %v9338_v31, %v9338_v31  ;;  %v6397_v20 = vpop.eup %6396  ;;  %v4979_v41 = vmul.f32 %v4467_v62, %v9229_v7  ;;  %v1406_v6 = vmul.f32 %v894_v38, %v9334_v34  ;;  %v896_v26 = vmul.f32 %v9348_v0, %v9348_v0 }
 0x253   : > { %5490 = vst [vmem:[%s7311_s17 + $0x740] sm:$0xff] %v4978_v46  ;;  %v897_v28 = vmul.f32 %v9351_v22, %v9351_v22  ;;  %v3956_v50 = vadd.f32 1.0, %v6397_v20  ;;  %6410 = vtanh.f32 %v2939_v27  ;;  %v1916_v11 = vmul.f32 0.044715, %v1404_v8  ;;  %v9392_v27 = vld [vmem:[%s7165_s30 + $0x7d0] sm:$0xff] }
 0x254   : > { %v1917_v54 = vmul.f32 0.044715, %v1405_v63  ;;  %5491 = vst [vmem:[%s7311_s17 + $0x748] sm:$0xff] %v4979_v41  ;;  %v1918_v48 = vmul.f32 0.044715, %v1406_v6  ;;  %v1407_v4 = vmul.f32 %v895_v13, %v9338_v31  ;;  %v1408_v7 = vmul.f32 %v896_v26, %v9348_v0  ;;  %v9398_v41 = vld [vmem:[%s7165_s30 + $0x7d8] sm:$0xff] }
 0x255   : > { %v1409_v3 = vmul.f32 %v897_v28, %v9351_v22  ;;  %v4468_v52 = vmul.f32 0.5, %v3956_v50  ;;  %v2428_v18 = vadd.f32 %v1916_v11, %v9327_v58  ;;  %v898_v60 = vmul.f32 %v9370_v33, %v9370_v33  ;;  %v9401_v6 = vld [vmem:[%s7165_s30 + $0x7e0] sm:$0xff]  ;;  %v9408_v50 = vld [vmem:[%s7165_s30 + $0x7e8] sm:$0xff] }
 0x256   : > { %v2429_v44 = vadd.f32 %v1917_v54, %v9330_v57  ;;  %v2430_v59 = vadd.f32 %v1918_v48, %v9334_v34  ;;  %v1919_v10 = vmul.f32 0.044715, %v1407_v4  ;;  %v1920_v14 = vmul.f32 0.044715, %v1408_v7 }
 0x257   : > { %v6399_v17 = vpop.eup %6398  ;;  %v1921_v32 = vmul.f32 0.044715, %v1409_v3  ;;  %v4980_v43 = vmul.f32 %v4468_v52, %v9243_v40  ;;  %v2940_v15 = vmul.f32 0.7978846, %v2428_v18  ;;  %v1410_v20 = vmul.f32 %v898_v60, %v9370_v33  ;;  %v9426_v60 = vld [vmem:[%s7165_s30 + $0x7f0] sm:$0xff] }
 0x258   : > { %v6401_v5 = vpop.eup %6400  ;;  %v3957_v39 = vadd.f32 1.0, %v6399_v17  ;;  %v2941_v55 = vmul.f32 0.7978846, %v2429_v44  ;;  %v2942_v16 = vmul.f32 0.7978846, %v2430_v59  ;;  %v2431_v36 = vadd.f32 %v1919_v10, %v9338_v31 }
 0x259   : > { %v6403_v30 = vpop.eup %6402  ;;  %v3958_v56 = vadd.f32 1.0, %v6401_v5  ;;  %v2432_v23 = vadd.f32 %v1920_v14, %v9348_v0  ;;  %5492 = vst [vmem:[%s7311_s17 + $0x750] sm:$0xff] %v4980_v43  ;;  %6412 = vtanh.f32 %v2940_v15  ;;  %v2433_v12 = vadd.f32 %v1921_v32, %v9351_v22 }
 0x25a   : > { %v6405_v1 = vpop.eup %6404  ;;  %v4469_v24 = vmul.f32 0.5, %v3957_v39  ;;  %v3959_v21 = vadd.f32 1.0, %v6403_v30  ;;  %6414 = vtanh.f32 %v2941_v55  ;;  %v2943_v42 = vmul.f32 0.7978846, %v2431_v36 }
 0x25b   : > { %v6407_v40 = vpop.eup %6406  ;;  %v4470_v35 = vmul.f32 0.5, %v3958_v56  ;;  %v3960_v47 = vadd.f32 1.0, %v6405_v1  ;;  %6416 = vtanh.f32 %v2942_v16  ;;  %v2944_v38 = vmul.f32 0.7978846, %v2432_v23 }
 0x25c   : > { %v4981_v9 = vmul.f32 %v4469_v24, %v9263_v37  ;;  %v4471_v53 = vmul.f32 0.5, %v3959_v21  ;;  %v3961_v61 = vadd.f32 1.0, %v6407_v40  ;;  %6418 = vtanh.f32 %v2943_v42 }
 0x25d   : > { %v4982_v46 = vmul.f32 %v4470_v35, %v9268_v19  ;;  %v4472_v62 = vmul.f32 0.5, %v3960_v47  ;;  %v6409_v8 = vpop.eup %6408  ;;  %v2945_v13 = vmul.f32 0.7978846, %v2433_v12  ;;  %6420 = vtanh.f32 %v2944_v38 }
 0x25e   : > { %5493 = vst [vmem:[%s7311_s17 + $0x758] sm:$0xff] %v4981_v9  ;;  %v4983_v37 = vmul.f32 %v4471_v53, %v9271_v25  ;;  %v4473_v63 = vmul.f32 0.5, %v3961_v61  ;;  %v3962_v26 = vadd.f32 1.0, %v6409_v8  ;;  %v899_v28 = vmul.f32 %v9388_v49, %v9388_v49 }
 0x25f   : > { %5494 = vst [vmem:[%s7311_s17 + $0x760] sm:$0xff] %v4982_v46  ;;  %v4984_v19 = vmul.f32 %v4472_v62, %v9275_v29  ;;  %6422 = vtanh.f32 %v2945_v13  ;;  %v1922_v11 = vmul.f32 0.044715, %v1410_v20  ;;  %v900_v54 = vmul.f32 %v9392_v27, %v9392_v27 }
 0x260   : > { %5495 = vst [vmem:[%s7311_s17 + $0x768] sm:$0xff] %v4983_v37  ;;  %v4985_v25 = vmul.f32 %v4473_v63, %v9282_v45  ;;  %v6411_v48 = vpop.eup %6410  ;;  %v4474_v29 = vmul.f32 0.5, %v3962_v26  ;;  %v1411_v4 = vmul.f32 %v899_v28, %v9388_v49  ;;  %v901_v7 = vmul.f32 %v9398_v41, %v9398_v41 }
 0x261   : > { %5496 = vst [vmem:[%s7311_s17 + $0x770] sm:$0xff] %v4984_v19  ;;  %v902_v3 = vmul.f32 %v9401_v6, %v9401_v6  ;;  %v3963_v52 = vadd.f32 1.0, %v6411_v48  ;;  %v2434_v45 = vadd.f32 %v1922_v11, %v9370_v33  ;;  %v1412_v18 = vmul.f32 %v900_v54, %v9392_v27  ;;  %v9451_v54 = vld [vmem:[%s7165_s30 + $0x800] sm:$0xff]  ;;  %v9454_v48 = vld [vmem:[%s7165_s30 + $0x808] sm:$0xff] }
 0x262   : > { %5497 = vst [vmem:[%s7311_s17 + $0x778] sm:$0xff] %v4985_v25  ;;  %v903_v44 = vmul.f32 %v9408_v50, %v9408_v50  ;;  %v4986_v17 = vmul.f32 %v4474_v29, %v9285_v2  ;;  %v1923_v59 = vmul.f32 0.044715, %v1411_v4  ;;  %v1413_v10 = vmul.f32 %v901_v7, %v9398_v41  ;;  %v9437_v2 = vld [vmem:[%s7165_s30 + $0x7f8] sm:$0xff] }
 0x263   : > { %v1414_v14 = vmul.f32 %v902_v3, %v9401_v6  ;;  %v4475_v32 = vmul.f32 0.5, %v3963_v52  ;;  %v2946_v5 = vmul.f32 0.7978846, %v2434_v45  ;;  %v1924_v43 = vmul.f32 0.044715, %v1412_v18  ;;  %v9458_v52 = vld [vmem:[%s7165_s30 + $0x810] sm:$0xff] }
 0x264   : > { %v1415_v39 = vmul.f32 %v903_v44, %v9408_v50  ;;  %5498 = vst [vmem:[%s7311_s17 + $0x780] sm:$0xff] %v4986_v17  ;;  %v2435_v15 = vadd.f32 %v1923_v59, %v9388_v49  ;;  %v1925_v55 = vmul.f32 0.044715, %v1413_v10  ;;  %v904_v56 = vmul.f32 %v9426_v60, %v9426_v60  ;;  %v9464_v17 = vld [vmem:[%s7165_s30 + $0x818] sm:$0xff] }
 0x265   : > { %v1926_v30 = vmul.f32 0.044715, %v1414_v14  ;;  %v4987_v16 = vmul.f32 %v4475_v32, %v9294_v51  ;;  %6424 = vtanh.f32 %v2946_v5  ;;  %v2436_v36 = vadd.f32 %v1924_v43, %v9392_v27 }
 0x266   : > { %v1927_v23 = vmul.f32 0.044715, %v1415_v39  ;;  %v6413_v1 = vpop.eup %6412  ;;  %v2947_v24 = vmul.f32 0.7978846, %v2435_v15  ;;  %v2437_v21 = vadd.f32 %v1925_v55, %v9398_v41  ;;  %v1416_v40 = vmul.f32 %v904_v56, %v9426_v60  ;;  %v9477_v39 = vld [vmem:[%s7165_s30 + $0x820] sm:$0xff]  ;;  %v9486_v56 = vld [vmem:[%s7165_s30 + $0x828] sm:$0xff] }
 0x267   : > { %v2438_v12 = vadd.f32 %v1926_v30, %v9401_v6  ;;  %v6415_v35 = vpop.eup %6414  ;;  %5499 = vst [vmem:[%s7311_s17 + $0x788] sm:$0xff] %v4987_v16  ;;  %v3964_v47 = vadd.f32 1.0, %v6413_v1  ;;  %v2948_v42 = vmul.f32 0.7978846, %v2436_v36  ;;  %v905_v51 = vmul.f32 %v9437_v2, %v9437_v2 }
 0x268   : > { %v2439_v9 = vadd.f32 %v1927_v23, %v9408_v50  ;;  %v6417_v53 = vpop.eup %6416  ;;  %v3965_v61 = vadd.f32 1.0, %v6415_v35  ;;  %6426 = vtanh.f32 %v2947_v24  ;;  %v2949_v46 = vmul.f32 0.7978846, %v2437_v21 }
 0x269   : > { %v2950_v62 = vmul.f32 0.7978846, %v2438_v12  ;;  %v6419_v38 = vpop.eup %6418  ;;  %v4476_v8 = vmul.f32 0.5, %v3964_v47  ;;  %v3966_v37 = vadd.f32 1.0, %v6417_v53  ;;  %6428 = vtanh.f32 %v2948_v42 }
 0x26a   : > { %v2951_v63 = vmul.f32 0.7978846, %v2439_v9  ;;  %v4477_v13 = vmul.f32 0.5, %v3965_v61  ;;  %v3967_v20 = vadd.f32 1.0, %v6419_v38  ;;  %6430 = vtanh.f32 %v2949_v46  ;;  %v6421_v26 = vpop.eup %6420 }
 0x26b   : > { %v1928_v19 = vmul.f32 0.044715, %v1416_v40  ;;  %v4988_v28 = vmul.f32 %v4476_v8, %v9327_v58  ;;  %v4478_v25 = vmul.f32 0.5, %v3966_v37  ;;  %6432 = vtanh.f32 %v2950_v62  ;;  %v9495_v40 = vld [vmem:[%s7165_s30 + $0x830] sm:$0xff] }
 0x26c   : > { %v1417_v11 = vmul.f32 %v905_v51, %v9437_v2  ;;  %v6423_v29 = vpop.eup %6422  ;;  %v4989_v4 = vmul.f32 %v4477_v13, %v9330_v57  ;;  %v4479_v7 = vmul.f32 0.5, %v3967_v20  ;;  %v3968_v3 = vadd.f32 1.0, %v6421_v26 }
 0x26d   : > { %6434 = vtanh.f32 %v2951_v63  ;;  %5500 = vst [vmem:[%s7311_s17 + $0x790] sm:$0xff] %v4988_v28  ;;  %v4990_v58 = vmul.f32 %v4478_v25, %v9334_v34  ;;  %v3969_v45 = vadd.f32 1.0, %v6423_v29  ;;  %v2440_v18 = vadd.f32 %v1928_v19, %v9426_v60 }
 0x26e   : > { %v1929_v44 = vmul.f32 0.044715, %v1417_v11  ;;  %5501 = vst [vmem:[%s7311_s17 + $0x798] sm:$0xff] %v4989_v4  ;;  %v4991_v57 = vmul.f32 %v4479_v7, %v9338_v31  ;;  %v4480_v59 = vmul.f32 0.5, %v3968_v3  ;;  %v906_v10 = vmul.f32 %v9451_v54, %v9451_v54 }
 0x26f   : > { %v907_v14 = vmul.f32 %v9454_v48, %v9454_v48  ;;  %5502 = vst [vmem:[%s7311_s17 + $0x7a0] sm:$0xff] %v4990_v58  ;;  %v4481_v34 = vmul.f32 0.5, %v3969_v45  ;;  %v2952_v32 = vmul.f32 0.7978846, %v2440_v18  ;;  %v908_v43 = vmul.f32 %v9458_v52, %v9458_v52 }
 0x270   : > { %v2441_v5 = vadd.f32 %v1929_v44, %v9437_v2  ;;  %5503 = vst [vmem:[%s7311_s17 + $0x7a8] sm:$0xff] %v4991_v57  ;;  %v4992_v31 = vmul.f32 %v4480_v59, %v9348_v0  ;;  %v1418_v15 = vmul.f32 %v906_v10, %v9451_v54  ;;  %v909_v30 = vmul.f32 %v9464_v17, %v9464_v17 }
 0x271   : > { %v1419_v55 = vmul.f32 %v907_v14, %v9454_v48  ;;  %v4993_v16 = vmul.f32 %v4481_v34, %v9351_v22  ;;  %6436 = vtanh.f32 %v2952_v32  ;;  %v1420_v23 = vmul.f32 %v908_v43, %v9458_v52  ;;  %v9513_v14 = vld [vmem:[%s7165_s30 + $0x838] sm:$0xff]  ;;  %v9516_v34 = vld [vmem:[%s7165_s30 + $0x840] sm:$0xff] }
 0x272   : > { %v2953_v36 = vmul.f32 0.7978846, %v2441_v5  ;;  %v6425_v1 = vpop.eup %6424  ;;  %5504 = vst [vmem:[%s7311_s17 + $0x7b0] sm:$0xff] %v4992_v31  ;;  %v1930_v24 = vmul.f32 0.044715, %v1418_v15  ;;  %v1421_v21 = vmul.f32 %v909_v30, %v9464_v17  ;;  %v910_v12 = vmul.f32 %v9477_v39, %v9477_v39  ;;  %v9520_v31 = vld [vmem:[%s7165_s30 + $0x848] sm:$0xff] }
 0x273   : > { %v1931_v0 = vmul.f32 0.044715, %v1419_v55  ;;  %5505 = vst [vmem:[%s7311_s17 + $0x7b8] sm:$0xff] %v4993_v16  ;;  %v3970_v35 = vadd.f32 1.0, %v6425_v1  ;;  %v1932_v47 = vmul.f32 0.044715, %v1420_v23  ;;  %v911_v22 = vmul.f32 %v9486_v56, %v9486_v56 }
 0x274   : > { %6438 = vtanh.f32 %v2953_v36  ;;  %v2442_v42 = vadd.f32 %v1930_v24, %v9451_v54  ;;  %v1933_v51 = vmul.f32 0.044715, %v1421_v21  ;;  %v1422_v53 = vmul.f32 %v910_v12, %v9477_v39  ;;  %v9526_v16 = vld [vmem:[%s7165_s30 + $0x850] sm:$0xff]  ;;  %v9535_v1 = vld [vmem:[%s7165_s30 + $0x858] sm:$0xff] }
 0x275   : > { %v2443_v9 = vadd.f32 %v1931_v0, %v9454_v48  ;;  %v6427_v61 = vpop.eup %6426  ;;  %v4482_v46 = vmul.f32 0.5, %v3970_v35  ;;  %v2444_v62 = vadd.f32 %v1932_v47, %v9458_v52  ;;  %v1423_v38 = vmul.f32 %v911_v22, %v9486_v56 }
 0x276   : > { %v912_v8 = vmul.f32 %v9495_v40, %v9495_v40  ;;  %v6429_v37 = vpop.eup %6428  ;;  %v3971_v63 = vadd.f32 1.0, %v6427_v61  ;;  %v2954_v13 = vmul.f32 0.7978846, %v2442_v42  ;;  %v2445_v19 = vadd.f32 %v1933_v51, %v9464_v17 }
 0x277   : > { %v2955_v20 = vmul.f32 0.7978846, %v2443_v9  ;;  %v6431_v26 = vpop.eup %6430  ;;  %v4994_v28 = vmul.f32 %v4482_v46, %v9370_v33  ;;  %v3972_v25 = vadd.f32 1.0, %v6429_v37  ;;  %v2956_v11 = vmul.f32 0.7978846, %v2444_v62 }
 0x278   : > { %v1934_v29 = vmul.f32 0.044715, %v1422_v53  ;;  %v6433_v4 = vpop.eup %6432  ;;  %v4483_v7 = vmul.f32 0.5, %v3971_v63  ;;  %v3973_v3 = vadd.f32 1.0, %v6431_v26  ;;  %6440 = vtanh.f32 %v2954_v13  ;;  %v9554_v13 = vld [vmem:[%s7165_s30 + $0x860] sm:$0xff] }
 0x279   : > { %v2957_v58 = vmul.f32 0.7978846, %v2445_v19  ;;  %5506 = vst [vmem:[%s7311_s17 + $0x7c0] sm:$0xff] %v4994_v28  ;;  %v4484_v18 = vmul.f32 0.5, %v3972_v25  ;;  %v3974_v44 = vadd.f32 1.0, %v6433_v4  ;;  %6442 = vtanh.f32 %v2955_v20  ;;  %v9562_v4 = vld [vmem:[%s7165_s30 + $0x868] sm:$0xff] }
 0x27a   : > { %v6435_v45 = vpop.eup %6434  ;;  %v2446_v57 = vadd.f32 %v1934_v29, %v9477_v39  ;;  %v4995_v33 = vmul.f32 %v4483_v7, %v9388_v49  ;;  %v4485_v59 = vmul.f32 0.5, %v3973_v3  ;;  %6444 = vtanh.f32 %v2956_v11 }
 0x27b   : > { %v3975_v10 = vadd.f32 1.0, %v6435_v45  ;;  %v4996_v32 = vmul.f32 %v4484_v18, %v9392_v27  ;;  %v4486_v5 = vmul.f32 0.5, %v3974_v44  ;;  %6446 = vtanh.f32 %v2957_v58 }
 0x27c   : > { %v2958_v43 = vmul.f32 0.7978846, %v2446_v57  ;;  %5507 = vst [vmem:[%s7311_s17 + $0x7c8] sm:$0xff] %v4995_v33  ;;  %v4997_v49 = vmul.f32 %v4485_v59, %v9398_v41  ;;  %v1935_v55 = vmul.f32 0.044715, %v1423_v38  ;;  %v1424_v30 = vmul.f32 %v912_v8, %v9495_v40 }
 0x27d   : > { %v4487_v15 = vmul.f32 0.5, %v3975_v10  ;;  %5508 = vst [vmem:[%s7311_s17 + $0x7d0] sm:$0xff] %v4996_v32  ;;  %v4998_v27 = vmul.f32 %v4486_v5, %v9401_v6  ;;  %v913_v36 = vmul.f32 %v9513_v14, %v9513_v14  ;;  %v914_v23 = vmul.f32 %v9516_v34, %v9516_v34 }
 0x27e   : > { %6448 = vtanh.f32 %v2958_v43  ;;  %v6437_v41 = vpop.eup %6436  ;;  %5509 = vst [vmem:[%s7311_s17 + $0x7d8] sm:$0xff] %v4997_v49  ;;  %v2447_v0 = vadd.f32 %v1935_v55, %v9486_v56  ;;  %v1936_v21 = vmul.f32 0.044715, %v1424_v30  ;;  %v915_v6 = vmul.f32 %v9520_v31, %v9520_v31 }
 0x27f   : > { %v4999_v24 = vmul.f32 %v4487_v15, %v9408_v50  ;;  %5510 = vst [vmem:[%s7311_s17 + $0x7e0] sm:$0xff] %v4998_v27  ;;  %v3976_v12 = vadd.f32 1.0, %v6437_v41  ;;  %v1425_v35 = vmul.f32 %v913_v36, %v9513_v14  ;;  %v1426_v47 = vmul.f32 %v914_v23, %v9516_v34  ;;  %v9575_v23 = vld [vmem:[%s7165_s30 + $0x870] sm:$0xff] }
 0x280   : > { %v916_v22 = vmul.f32 %v9526_v16, %v9526_v16  ;;  %v2959_v9 = vmul.f32 0.7978846, %v2447_v0  ;;  %v2448_v50 = vadd.f32 %v1936_v21, %v9495_v40  ;;  %v1427_v51 = vmul.f32 %v915_v6, %v9520_v31  ;;  %v9579_v6 = vld [vmem:[%s7165_s30 + $0x878] sm:$0xff] }
 0x281   : > { %v6439_v42 = vpop.eup %6438  ;;  %5511 = vst [vmem:[%s7311_s17 + $0x7e8] sm:$0xff] %v4999_v24  ;;  %v917_v53 = vmul.f32 %v9535_v1, %v9535_v1  ;;  %v4488_v61 = vmul.f32 0.5, %v3976_v12  ;;  %v1937_v62 = vmul.f32 0.044715, %v1425_v35  ;;  %v1938_v38 = vmul.f32 0.044715, %v1426_v47 }
 0x282   : > { %v3977_v46 = vadd.f32 1.0, %v6439_v42  ;;  %6450 = vtanh.f32 %v2959_v9  ;;  %v2960_v8 = vmul.f32 0.7978846, %v2448_v50  ;;  %v1939_v37 = vmul.f32 0.044715, %v1427_v51  ;;  %v9583_v42 = vld [vmem:[%s7165_s30 + $0x880] sm:$0xff] }
 0x283   : > { %v1428_v63 = vmul.f32 %v916_v22, %v9526_v16  ;;  %v5000_v20 = vmul.f32 %v4488_v61, %v9426_v60  ;;  %v2449_v26 = vadd.f32 %v1937_v62, %v9513_v14  ;;  %v2450_v28 = vadd.f32 %v1938_v38, %v9516_v34 }
 0x284   : > { %v4489_v19 = vmul.f32 0.5, %v3977_v46  ;;  %6452 = vtanh.f32 %v2960_v8  ;;  %v2451_v25 = vadd.f32 %v1939_v37, %v9520_v31  ;;  %v1429_v29 = vmul.f32 %v917_v53, %v9535_v1  ;;  %v9592_v53 = vld [vmem:[%s7165_s30 + $0x888] sm:$0xff] }
 0x285   : > { %v1940_v11 = vmul.f32 0.044715, %v1428_v63  ;;  %v6441_v7 = vpop.eup %6440  ;;  %5512 = vst [vmem:[%s7311_s17 + $0x7f0] sm:$0xff] %v5000_v20  ;;  %v2961_v58 = vmul.f32 0.7978846, %v2449_v26  ;;  %v918_v45 = vmul.f32 %v9554_v13, %v9554_v13  ;;  %v920_v51 = vmul.f32 %v9575_v23, %v9575_v23 }
 0x286   : > { %v5001_v3 = vmul.f32 %v4489_v19, %v9437_v2  ;;  %v2962_v60 = vmul.f32 0.7978846, %v2450_v28  ;;  %v6443_v18 = vpop.eup %6442  ;;  %v3978_v44 = vadd.f32 1.0, %v6441_v7  ;;  %v2963_v57 = vmul.f32 0.7978846, %v2451_v25 }
 0x287   : > { %v2452_v33 = vadd.f32 %v1940_v11, %v9526_v16  ;;  %v1941_v59 = vmul.f32 0.044715, %v1429_v29  ;;  %v6445_v10 = vpop.eup %6444  ;;  %v3979_v32 = vadd.f32 1.0, %v6443_v18  ;;  %6454 = vtanh.f32 %v2961_v58 }
 0x288   : > { %5513 = vst [vmem:[%s7311_s17 + $0x7f8] sm:$0xff] %v5001_v3  ;;  %v1430_v5 = vmul.f32 %v918_v45, %v9554_v13  ;;  %v919_v2 = vmul.f32 %v9562_v4, %v9562_v4  ;;  %v6447_v43 = vpop.eup %6446  ;;  %v4490_v49 = vmul.f32 0.5, %v3978_v44  ;;  %v3980_v15 = vadd.f32 1.0, %v6445_v10 }
 0x289   : > { %6456 = vtanh.f32 %v2962_v60  ;;  %v2964_v55 = vmul.f32 0.7978846, %v2452_v33  ;;  %v4491_v30 = vmul.f32 0.5, %v3979_v32  ;;  %v3981_v27 = vadd.f32 1.0, %v6447_v43 }
 0x28a   : > { %6458 = vtanh.f32 %v2963_v57  ;;  %v2453_v36 = vadd.f32 %v1941_v59, %v9535_v1  ;;  %v5002_v24 = vmul.f32 %v4490_v49, %v9451_v54  ;;  %v4492_v0 = vmul.f32 0.5, %v3980_v15 }
 0x28b   : > { %v6449_v41 = vpop.eup %6448  ;;  %6460 = vtanh.f32 %v2964_v55  ;;  %v1942_v21 = vmul.f32 0.044715, %v1430_v5  ;;  %v5003_v12 = vmul.f32 %v4491_v30, %v9454_v48  ;;  %v4493_v35 = vmul.f32 0.5, %v3981_v27  ;;  %v9595_v48 = vld [vmem:[%s7165_s30 + $0x890] sm:$0xff] }
 0x28c   : > { %v3982_v47 = vadd.f32 1.0, %v6449_v41  ;;  %v2965_v22 = vmul.f32 0.7978846, %v2453_v36  ;;  %5514 = vst [vmem:[%s7311_s17 + $0x800] sm:$0xff] %v5002_v24  ;;  %v5004_v9 = vmul.f32 %v4492_v0, %v9458_v52  ;;  %v1431_v50 = vmul.f32 %v919_v2, %v9562_v4  ;;  %v9626_v0 = vld [vmem:[%s7165_s30 + $0x898] sm:$0xff] }
 0x28d   : > { %v2454_v54 = vadd.f32 %v1942_v21, %v9554_v13  ;;  %5515 = vst [vmem:[%s7311_s17 + $0x808] sm:$0xff] %v5003_v12  ;;  %v5005_v61 = vmul.f32 %v4493_v35, %v9464_v17  ;;  %v921_v52 = vmul.f32 %v9579_v6, %v9579_v6  ;;  %v1432_v8 = vmul.f32 %v920_v51, %v9575_v23 }
 0x28e   : > { %v4494_v46 = vmul.f32 0.5, %v3982_v47  ;;  %6462 = vtanh.f32 %v2965_v22  ;;  %5516 = vst [vmem:[%s7311_s17 + $0x810] sm:$0xff] %v5004_v9  ;;  %v1943_v38 = vmul.f32 0.044715, %v1431_v50  ;;  %v922_v37 = vmul.f32 %v9583_v42, %v9583_v42  ;;  %v9629_v22 = vld [vmem:[%s7165_s30 + $0x8a0] sm:$0xff] }
 0x28f   : > { %v2966_v62 = vmul.f32 0.7978846, %v2454_v54  ;;  %v6451_v63 = vpop.eup %6450  ;;  %5517 = vst [vmem:[%s7311_s17 + $0x818] sm:$0xff] %v5005_v61  ;;  %v1433_v17 = vmul.f32 %v921_v52, %v9579_v6  ;;  %v923_v19 = vmul.f32 %v9592_v53, %v9592_v53  ;;  %v924_v26 = vmul.f32 %v9595_v48, %v9595_v48  ;;  %v9636_v52 = vld [vmem:[%s7165_s30 + $0x8a8] sm:$0xff] }
 0x290   : > { %v5006_v20 = vmul.f32 %v4494_v46, %v9477_v39  ;;  %v3983_v28 = vadd.f32 1.0, %v6451_v63  ;;  %v2455_v25 = vadd.f32 %v1943_v38, %v9562_v4  ;;  %v1944_v11 = vmul.f32 0.044715, %v1432_v8 }
 0x291   : > { %6464 = vtanh.f32 %v2966_v62  ;;  %v6453_v29 = vpop.eup %6452  ;;  %v1945_v7 = vmul.f32 0.044715, %v1433_v17  ;;  %v1434_v3 = vmul.f32 %v922_v37, %v9583_v42  ;;  %v1435_v39 = vmul.f32 %v923_v19, %v9592_v53  ;;  %v9639_v62 = vld [vmem:[%s7165_s30 + $0x8b0] sm:$0xff] }
 0x292   : > { %5518 = vst [vmem:[%s7311_s17 + $0x820] sm:$0xff] %v5006_v20  ;;  %v1436_v58 = vmul.f32 %v924_v26, %v9595_v48  ;;  %v4495_v60 = vmul.f32 0.5, %v3983_v28  ;;  %v3984_v45 = vadd.f32 1.0, %v6453_v29  ;;  %v2967_v18 = vmul.f32 0.7978846, %v2455_v25  ;;  %v9648_v20 = vld [vmem:[%s7165_s30 + $0x8c0] sm:$0xff] }
 0x293   : > { %v2456_v44 = vadd.f32 %v1944_v11, %v9575_v23  ;;  %v2457_v57 = vadd.f32 %v1945_v7, %v9579_v6  ;;  %v1946_v33 = vmul.f32 0.044715, %v1434_v3  ;;  %v1947_v59 = vmul.f32 0.044715, %v1435_v39 }
 0x294   : > { %v1948_v10 = vmul.f32 0.044715, %v1436_v58  ;;  %v6455_v32 = vpop.eup %6454  ;;  %v5007_v5 = vmul.f32 %v4495_v60, %v9486_v56  ;;  %v4496_v2 = vmul.f32 0.5, %v3984_v45  ;;  %6466 = vtanh.f32 %v2967_v18  ;;  %v9669_v18 = vld [vmem:[%s7165_s30 + $0x8c8] sm:$0xff] }
 0x295   : > { %v2968_v43 = vmul.f32 0.7978846, %v2456_v44  ;;  %v3985_v15 = vadd.f32 1.0, %v6455_v32  ;;  %v2969_v55 = vmul.f32 0.7978846, %v2457_v57  ;;  %v2458_v30 = vadd.f32 %v1946_v33, %v9583_v42 }
 0x296   : > { %v6457_v49 = vpop.eup %6456  ;;  %v2459_v27 = vadd.f32 %v1947_v59, %v9592_v53  ;;  %5519 = vst [vmem:[%s7311_s17 + $0x828] sm:$0xff] %v5007_v5  ;;  %v5008_v41 = vmul.f32 %v4496_v2, %v9495_v40  ;;  %v2460_v56 = vadd.f32 %v1948_v10, %v9595_v48  ;;  %v925_v46 = vmul.f32 %v9626_v0, %v9626_v0 }
 0x297   : > { %v6459_v36 = vpop.eup %6458  ;;  %v3986_v24 = vadd.f32 1.0, %v6457_v49  ;;  %6468 = vtanh.f32 %v2968_v43  ;;  %v4497_v12 = vmul.f32 0.5, %v3985_v15  ;;  %v2970_v47 = vmul.f32 0.7978846, %v2458_v30 }
 0x298   : > { %v6461_v21 = vpop.eup %6460  ;;  %v3987_v35 = vadd.f32 1.0, %v6459_v36  ;;  %6470 = vtanh.f32 %v2969_v55  ;;  %5520 = vst [vmem:[%s7311_s17 + $0x830] sm:$0xff] %v5008_v41  ;;  %v2971_v54 = vmul.f32 0.7978846, %v2459_v27  ;;  %v2972_v50 = vmul.f32 0.7978846, %v2460_v56 }
 0x299   : > { %v4498_v9 = vmul.f32 0.5, %v3986_v24  ;;  %v3988_v40 = vadd.f32 1.0, %v6461_v21  ;;  %v5009_v51 = vmul.f32 %v4497_v12, %v9513_v14  ;;  %6472 = vtanh.f32 %v2970_v47  ;;  %v9645_v14 = vld [vmem:[%s7165_s30 + $0x8b8] sm:$0xff] }
 0x29a   : > { %v4499_v61 = vmul.f32 0.5, %v3987_v35  ;;  %6474 = vtanh.f32 %v2971_v54  ;;  %v926_v63 = vmul.f32 %v9629_v22, %v9629_v22  ;;  %v1437_v26 = vmul.f32 %v925_v46, %v9626_v0 }
 0x29b   : > { %v6463_v38 = vpop.eup %6462  ;;  %v5010_v8 = vmul.f32 %v4498_v9, %v9516_v34  ;;  %v4500_v37 = vmul.f32 0.5, %v3988_v40  ;;  %5521 = vst [vmem:[%s7311_s17 + $0x838] sm:$0xff] %v5009_v51  ;;  %6476 = vtanh.f32 %v2972_v50  ;;  %v927_v25 = vmul.f32 %v9636_v52, %v9636_v52 }
 0x29c   : > { %v5011_v17 = vmul.f32 %v4499_v61, %v9520_v31  ;;  %v3989_v19 = vadd.f32 1.0, %v6463_v38  ;;  %v1438_v28 = vmul.f32 %v926_v63, %v9629_v22  ;;  %v928_v11 = vmul.f32 %v9639_v62, %v9639_v62  ;;  %v9687_v61 = vld [vmem:[%s7165_s30 + $0x8d0] sm:$0xff] }
 0x29d   : > { %5522 = vst [vmem:[%s7311_s17 + $0x840] sm:$0xff] %v5010_v8  ;;  %v5012_v34 = vmul.f32 %v4500_v37, %v9526_v16  ;;  %v1949_v31 = vmul.f32 0.044715, %v1437_v26  ;;  %v929_v3 = vmul.f32 %v9645_v14, %v9645_v14  ;;  %v930_v39 = vmul.f32 %v9648_v20, %v9648_v20 }
 0x29e   : > { %v6465_v29 = vpop.eup %6464  ;;  %5523 = vst [vmem:[%s7311_s17 + $0x848] sm:$0xff] %v5011_v17  ;;  %v4501_v7 = vmul.f32 0.5, %v3989_v19  ;;  %v1950_v58 = vmul.f32 0.044715, %v1438_v28  ;;  %v1439_v60 = vmul.f32 %v927_v25, %v9636_v52  ;;  %v1440_v45 = vmul.f32 %v928_v11, %v9639_v62 }
 0x29f   : > { %5524 = vst [vmem:[%s7311_s17 + $0x850] sm:$0xff] %v5012_v34  ;;  %v3990_v16 = vadd.f32 1.0, %v6465_v29  ;;  %v2461_v57 = vadd.f32 %v1949_v31, %v9626_v0  ;;  %v1441_v33 = vmul.f32 %v929_v3, %v9645_v14  ;;  %v1442_v59 = vmul.f32 %v930_v39, %v9648_v20  ;;  %v9691_v34 = vld [vmem:[%s7165_s30 + $0x8d8] sm:$0xff]  ;;  %v9698_v29 = vld [vmem:[%s7165_s30 + $0x8e0] sm:$0xff] }
 0x2a0   : > { %v5013_v44 = vmul.f32 %v4501_v7, %v9535_v1  ;;  %v2462_v32 = vadd.f32 %v1950_v58, %v9629_v22  ;;  %v1951_v5 = vmul.f32 0.044715, %v1439_v60  ;;  %v1952_v2 = vmul.f32 0.044715, %v1440_v45  ;;  %v9701_v7 = vld [vmem:[%s7165_s30 + $0x8e8] sm:$0xff]  ;;  %v9710_v45 = vld [vmem:[%s7165_s30 + $0x8f0] sm:$0xff] }
 0x2a1   : > { %v4502_v10 = vmul.f32 0.5, %v3990_v16  ;;  %v6467_v43 = vpop.eup %6466  ;;  %v2973_v49 = vmul.f32 0.7978846, %v2461_v57  ;;  %v1953_v15 = vmul.f32 0.044715, %v1441_v33  ;;  %v931_v1 = vmul.f32 %v9669_v18, %v9669_v18 }
 0x2a2   : > { %5525 = vst [vmem:[%s7311_s17 + $0x858] sm:$0xff] %v5013_v44  ;;  %v1954_v55 = vmul.f32 0.044715, %v1442_v59  ;;  %v3991_v27 = vadd.f32 1.0, %v6467_v43  ;;  %v2974_v36 = vmul.f32 0.7978846, %v2462_v32  ;;  %v2463_v41 = vadd.f32 %v1951_v5, %v9636_v52 }
 0x2a3   : > { %v5014_v30 = vmul.f32 %v4502_v10, %v9554_v13  ;;  %6478 = vtanh.f32 %v2973_v49  ;;  %v2464_v56 = vadd.f32 %v1952_v2, %v9639_v62  ;;  %v2465_v21 = vadd.f32 %v1953_v15, %v9645_v14  ;;  %v9719_v59 = vld [vmem:[%s7165_s30 + $0x8f8] sm:$0xff]  ;;  %v9724_v43 = vld [vmem:[%s7165_s30 + $0x900] sm:$0xff] }
 0x2a4   : > { %v6469_v24 = vpop.eup %6468  ;;  %v2466_v12 = vadd.f32 %v1954_v55, %v9648_v20  ;;  %v4503_v47 = vmul.f32 0.5, %v3991_v27  ;;  %6480 = vtanh.f32 %v2974_v36  ;;  %v2975_v40 = vmul.f32 0.7978846, %v2463_v41 }
 0x2a5   : > { %v6471_v35 = vpop.eup %6470  ;;  %5526 = vst [vmem:[%s7311_s17 + $0x860] sm:$0xff] %v5014_v30  ;;  %v3992_v9 = vadd.f32 1.0, %v6469_v24  ;;  %v2976_v54 = vmul.f32 0.7978846, %v2464_v56  ;;  %v2977_v50 = vmul.f32 0.7978846, %v2465_v21  ;;  %v1443_v51 = vmul.f32 %v931_v1, %v9669_v18 }
 0x2a6   : > { %v3993_v13 = vadd.f32 1.0, %v6471_v35  ;;  %v6473_v46 = vpop.eup %6472  ;;  %v5015_v38 = vmul.f32 %v4503_v47, %v9562_v4  ;;  %6482 = vtanh.f32 %v2975_v40  ;;  %v2978_v37 = vmul.f32 0.7978846, %v2466_v12  ;;  %v9733_v1 = vld [vmem:[%s7165_s30 + $0x908] sm:$0xff] }
 0x2a7   : > { %v4504_v8 = vmul.f32 0.5, %v3992_v9  ;;  %v6475_v63 = vpop.eup %6474  ;;  %v3994_v19 = vadd.f32 1.0, %v6473_v46  ;;  %6484 = vtanh.f32 %v2976_v54  ;;  %v1955_v26 = vmul.f32 0.044715, %v1443_v51 }
 0x2a8   : > { %v4505_v17 = vmul.f32 0.5, %v3993_v13  ;;  %v6477_v28 = vpop.eup %6476  ;;  %5527 = vst [vmem:[%s7311_s17 + $0x868] sm:$0xff] %v5015_v38  ;;  %v3995_v4 = vadd.f32 1.0, %v6475_v63  ;;  %6486 = vtanh.f32 %v2977_v50  ;;  %v932_v11 = vmul.f32 %v9687_v61, %v9687_v61 }
 0x2a9   : > { %v5016_v25 = vmul.f32 %v4504_v8, %v9575_v23  ;;  %v4506_v3 = vmul.f32 0.5, %v3994_v19  ;;  %v3996_v39 = vadd.f32 1.0, %v6477_v28  ;;  %6488 = vtanh.f32 %v2978_v37 }
 0x2aa   : > { %v5017_v31 = vmul.f32 %v4505_v17, %v9579_v6  ;;  %v4507_v16 = vmul.f32 0.5, %v3995_v4  ;;  %v2467_v23 = vadd.f32 %v1955_v26, %v9669_v18  ;;  %v1444_v58 = vmul.f32 %v932_v11, %v9687_v61 }
 0x2ab   : > { %5528 = vst [vmem:[%s7311_s17 + $0x870] sm:$0xff] %v5016_v25  ;;  %v933_v60 = vmul.f32 %v9691_v34, %v9691_v34  ;;  %v5018_v6 = vmul.f32 %v4506_v3, %v9583_v42  ;;  %v4508_v44 = vmul.f32 0.5, %v3996_v39  ;;  %v934_v57 = vmul.f32 %v9698_v29, %v9698_v29 }
 0x2ac   : > { %5529 = vst [vmem:[%s7311_s17 + $0x878] sm:$0xff] %v5017_v31  ;;  %v935_v33 = vmul.f32 %v9701_v7, %v9701_v7  ;;  %v5019_v10 = vmul.f32 %v4507_v16, %v9592_v53  ;;  %v2979_v32 = vmul.f32 0.7978846, %v2467_v23  ;;  %v1956_v5 = vmul.f32 0.044715, %v1444_v58 }
 0x2ad   : > { %v1445_v2 = vmul.f32 %v933_v60, %v9691_v34  ;;  %5530 = vst [vmem:[%s7311_s17 + $0x880] sm:$0xff] %v5018_v6  ;;  %v5020_v42 = vmul.f32 %v4508_v44, %v9595_v48  ;;  %v1446_v49 = vmul.f32 %v934_v57, %v9698_v29  ;;  %v936_v55 = vmul.f32 %v9710_v45, %v9710_v45  ;;  %v9754_v6 = vld [vmem:[%s7165_s30 + $0x910] sm:$0xff] }
 0x2ae   : > { %v1447_v15 = vmul.f32 %v935_v33, %v9701_v7  ;;  %5531 = vst [vmem:[%s7311_s17 + $0x888] sm:$0xff] %v5019_v10  ;;  %6490 = vtanh.f32 %v2979_v32  ;;  %v2468_v53 = vadd.f32 %v1956_v5, %v9687_v61  ;;  %v937_v27 = vmul.f32 %v9719_v59, %v9719_v59  ;;  %v9758_v33 = vld [vmem:[%s7165_s30 + $0x918] sm:$0xff] }
 0x2af   : > { %v1957_v30 = vmul.f32 0.044715, %v1445_v2  ;;  %5532 = vst [vmem:[%s7311_s17 + $0x890] sm:$0xff] %v5020_v42  ;;  %v1958_v36 = vmul.f32 0.044715, %v1446_v49  ;;  %v1448_v41 = vmul.f32 %v936_v55, %v9710_v45  ;;  %v938_v24 = vmul.f32 %v9724_v43, %v9724_v43  ;;  %v9765_v2 = vld [vmem:[%s7165_s30 + $0x920] sm:$0xff] }
 0x2b0   : > { %v1959_v48 = vmul.f32 0.044715, %v1447_v15  ;;  %v6479_v56 = vpop.eup %6478  ;;  %v2980_v21 = vmul.f32 0.7978846, %v2468_v53  ;;  %v1449_v35 = vmul.f32 %v937_v27, %v9719_v59  ;;  %v939_v47 = vmul.f32 %v9733_v1, %v9733_v1  ;;  %v9768_v42 = vld [vmem:[%s7165_s30 + $0x928] sm:$0xff] }
 0x2b1   : > { %v2469_v12 = vadd.f32 %v1957_v30, %v9691_v34  ;;  %v6481_v9 = vpop.eup %6480  ;;  %v3997_v40 = vadd.f32 1.0, %v6479_v56  ;;  %v2470_v13 = vadd.f32 %v1958_v36, %v9698_v29  ;;  %v1960_v50 = vmul.f32 0.044715, %v1448_v41  ;;  %v9778_v36 = vld [vmem:[%s7165_s30 + $0x930] sm:$0xff]  ;;  %v9788_v56 = vld [vmem:[%s7165_s30 + $0x938] sm:$0xff] }
 0x2b2   : > { %v2471_v54 = vadd.f32 %v1959_v48, %v9701_v7  ;;  %v3998_v51 = vadd.f32 1.0, %v6481_v9  ;;  %6492 = vtanh.f32 %v2980_v21  ;;  %v1961_v38 = vmul.f32 0.044715, %v1449_v35 }
 0x2b3   : > { %v2981_v46 = vmul.f32 0.7978846, %v2469_v12  ;;  %v6483_v8 = vpop.eup %6482  ;;  %v4509_v37 = vmul.f32 0.5, %v3997_v40  ;;  %v2982_v63 = vmul.f32 0.7978846, %v2470_v13  ;;  %v2472_v19 = vadd.f32 %v1960_v50, %v9710_v45 }
 0x2b4   : > { %v2983_v17 = vmul.f32 0.7978846, %v2471_v54  ;;  %v6485_v26 = vpop.eup %6484  ;;  %v4510_v28 = vmul.f32 0.5, %v3998_v51  ;;  %v3999_v25 = vadd.f32 1.0, %v6483_v8  ;;  %v2473_v4 = vadd.f32 %v1961_v38, %v9719_v59 }
 0x2b5   : > { %6494 = vtanh.f32 %v2981_v46  ;;  %v6487_v11 = vpop.eup %6486  ;;  %v5021_v31 = vmul.f32 %v4509_v37, %v9626_v0  ;;  %v4000_v3 = vadd.f32 1.0, %v6485_v26  ;;  %v2984_v39 = vmul.f32 0.7978846, %v2472_v19 }
 0x2b6   : > { %6496 = vtanh.f32 %v2982_v63  ;;  %v6489_v16 = vpop.eup %6488  ;;  %v5022_v23 = vmul.f32 %v4510_v28, %v9629_v22  ;;  %v4511_v58 = vmul.f32 0.5, %v3999_v25  ;;  %v4001_v60 = vadd.f32 1.0, %v6487_v11 }
 0x2b7   : > { %6498 = vtanh.f32 %v2983_v17  ;;  %5533 = vst [vmem:[%s7311_s17 + $0x898] sm:$0xff] %v5021_v31  ;;  %v4512_v44 = vmul.f32 0.5, %v4000_v3  ;;  %v4002_v57 = vadd.f32 1.0, %v6489_v16  ;;  %v2985_v0 = vmul.f32 0.7978846, %v2473_v4 }
 0x2b8   : > { %6500 = vtanh.f32 %v2984_v39  ;;  %5534 = vst [vmem:[%s7311_s17 + $0x8a0] sm:$0xff] %v5022_v23  ;;  %v5023_v10 = vmul.f32 %v4511_v58, %v9636_v52  ;;  %v4513_v22 = vmul.f32 0.5, %v4001_v60  ;;  %v1450_v32 = vmul.f32 %v938_v24, %v9724_v43 }
 0x2b9   : > { %v1451_v5 = vmul.f32 %v939_v47, %v9733_v1  ;;  %v5024_v49 = vmul.f32 %v4512_v44, %v9639_v62  ;;  %v4514_v15 = vmul.f32 0.5, %v4002_v57  ;;  %6502 = vtanh.f32 %v2985_v0 }
 0x2ba   : > { %v940_v55 = vmul.f32 %v9754_v6, %v9754_v6  ;;  %5535 = vst [vmem:[%s7311_s17 + $0x8a8] sm:$0xff] %v5023_v10  ;;  %v5025_v52 = vmul.f32 %v4513_v22, %v9645_v14  ;;  %v1962_v53 = vmul.f32 0.044715, %v1450_v32  ;;  %v941_v27 = vmul.f32 %v9758_v33, %v9758_v33 }
 0x2bb   : > { %v1963_v30 = vmul.f32 0.044715, %v1451_v5  ;;  %v6491_v48 = vpop.eup %6490  ;;  %5536 = vst [vmem:[%s7311_s17 + $0x8b0] sm:$0xff] %v5024_v49  ;;  %v5026_v62 = vmul.f32 %v4514_v15, %v9648_v20  ;;  %v942_v24 = vmul.f32 %v9765_v2, %v9765_v2  ;;  %v943_v14 = vmul.f32 %v9768_v42, %v9768_v42 }
 0x2bc   : > { %v1452_v41 = vmul.f32 %v940_v55, %v9754_v6  ;;  %5537 = vst [vmem:[%s7311_s17 + $0x8b8] sm:$0xff] %v5025_v52  ;;  %v4003_v21 = vadd.f32 1.0, %v6491_v48  ;;  %v2474_v12 = vadd.f32 %v1962_v53, %v9724_v43  ;;  %v1453_v47 = vmul.f32 %v941_v27, %v9758_v33  ;;  %v9811_v52 = vld [vmem:[%s7165_s30 + $0x940] sm:$0xff]  ;;  %v9817_v48 = vld [vmem:[%s7165_s30 + $0x948] sm:$0xff] }
 0x2bd   : > { %v2475_v35 = vadd.f32 %v1963_v30, %v9733_v1  ;;  %5538 = vst [vmem:[%s7311_s17 + $0x8c0] sm:$0xff] %v5026_v62  ;;  %v1454_v9 = vmul.f32 %v942_v24, %v9765_v2  ;;  %v1455_v40 = vmul.f32 %v943_v14, %v9768_v42  ;;  %v944_v13 = vmul.f32 %v9778_v36, %v9778_v36  ;;  %v9820_v62 = vld [vmem:[%s7165_s30 + $0x950] sm:$0xff] }
 0x2be   : > { %v1964_v20 = vmul.f32 0.044715, %v1452_v41  ;;  %v4515_v54 = vmul.f32 0.5, %v4003_v21  ;;  %v2986_v50 = vmul.f32 0.7978846, %v2474_v12  ;;  %v945_v46 = vmul.f32 %v9788_v56, %v9788_v56  ;;  %v9824_v21 = vld [vmem:[%s7165_s30 + $0x958] sm:$0xff] }
 0x2bf   : > { %v2987_v51 = vmul.f32 0.7978846, %v2475_v35  ;;  %v6493_v38 = vpop.eup %6492  ;;  %v1965_v37 = vmul.f32 0.044715, %v1453_v47  ;;  %v1966_v63 = vmul.f32 0.044715, %v1454_v9  ;;  %v1456_v28 = vmul.f32 %v944_v13, %v9778_v36 }
 0x2c0   : > { %v2476_v8 = vadd.f32 %v1964_v20, %v9754_v6  ;;  %v1967_v17 = vmul.f32 0.044715, %v1455_v40  ;;  %v5027_v19 = vmul.f32 %v4515_v54, %v9669_v18  ;;  %v4004_v26 = vadd.f32 1.0, %v6493_v38  ;;  %v9831_v20 = vld [vmem:[%s7165_s30 + $0x960] sm:$0xff] }
 0x2c1   : > { %6504 = vtanh.f32 %v2986_v50  ;;  %v2477_v11 = vadd.f32 %v1965_v37, %v9758_v33  ;;  %v2478_v31 = vadd.f32 %v1966_v63, %v9765_v2  ;;  %v1968_v58 = vmul.f32 0.044715, %v1456_v28 }
 0x2c2   : > { %v6495_v25 = vpop.eup %6494  ;;  %6506 = vtanh.f32 %v2987_v51  ;;  %v2988_v4 = vmul.f32 0.7978846, %v2476_v8  ;;  %5539 = vst [vmem:[%s7311_s17 + $0x8c8] sm:$0xff] %v5027_v19  ;;  %v4516_v39 = vmul.f32 0.5, %v4004_v26  ;;  %v2479_v23 = vadd.f32 %v1967_v17, %v9768_v42 }
 0x2c3   : > { %v6497_v3 = vpop.eup %6496  ;;  %v4005_v16 = vadd.f32 1.0, %v6495_v25  ;;  %v2989_v44 = vmul.f32 0.7978846, %v2477_v11  ;;  %v2990_v57 = vmul.f32 0.7978846, %v2478_v31  ;;  %v2480_v55 = vadd.f32 %v1968_v58, %v9778_v36 }
 0x2c4   : > { %v6499_v18 = vpop.eup %6498  ;;  %v4006_v60 = vadd.f32 1.0, %v6497_v3  ;;  %6508 = vtanh.f32 %v2988_v4  ;;  %v5028_v10 = vmul.f32 %v4516_v39, %v9687_v61  ;;  %v2991_v5 = vmul.f32 0.7978846, %v2479_v23 }
 0x2c5   : > { %v6501_v0 = vpop.eup %6500  ;;  %v4517_v22 = vmul.f32 0.5, %v4005_v16  ;;  %v4007_v32 = vadd.f32 1.0, %v6499_v18  ;;  %6510 = vtanh.f32 %v2989_v44  ;;  %v1457_v61 = vmul.f32 %v945_v46, %v9788_v56 }
 0x2c6   : > { %v4518_v49 = vmul.f32 0.5, %v4006_v60  ;;  %v4008_v15 = vadd.f32 1.0, %v6501_v0  ;;  %v6503_v53 = vpop.eup %6502  ;;  %5540 = vst [vmem:[%s7311_s17 + $0x8d0] sm:$0xff] %v5028_v10  ;;  %6512 = vtanh.f32 %v2990_v57  ;;  %v2992_v12 = vmul.f32 0.7978846, %v2480_v55 }
 0x2c7   : > { %v5029_v30 = vmul.f32 %v4517_v22, %v9691_v34  ;;  %v4519_v27 = vmul.f32 0.5, %v4007_v32  ;;  %v4009_v14 = vadd.f32 1.0, %v6503_v53  ;;  %6514 = vtanh.f32 %v2991_v5 }
 0x2c8   : > { %v5030_v41 = vmul.f32 %v4518_v49, %v9698_v29  ;;  %v4520_v24 = vmul.f32 0.5, %v4008_v15  ;;  %v1969_v35 = vmul.f32 0.044715, %v1457_v61  ;;  %v946_v47 = vmul.f32 %v9811_v52, %v9811_v52 }
 0x2c9   : > { %5541 = vst [vmem:[%s7311_s17 + $0x8d8] sm:$0xff] %v5029_v30  ;;  %v5031_v34 = vmul.f32 %v4519_v27, %v9701_v7  ;;  %v4521_v9 = vmul.f32 0.5, %v4009_v14  ;;  %v947_v40 = vmul.f32 %v9817_v48, %v9817_v48  ;;  %v948_v13 = vmul.f32 %v9820_v62, %v9820_v62  ;;  %v9840_v7 = vld [vmem:[%s7165_s30 + $0x968] sm:$0xff] }
 0x2ca   : > { %5542 = vst [vmem:[%s7311_s17 + $0x8e0] sm:$0xff] %v5030_v41  ;;  %v5032_v29 = vmul.f32 %v4520_v24, %v9710_v45  ;;  %6516 = vtanh.f32 %v2992_v12  ;;  %v2481_v54 = vadd.f32 %v1969_v35, %v9788_v56  ;;  %v1458_v50 = vmul.f32 %v946_v47, %v9811_v52  ;;  %v9848_v45 = vld [vmem:[%s7165_s30 + $0x970] sm:$0xff] }
 0x2cb   : > { %5543 = vst [vmem:[%s7311_s17 + $0x8e8] sm:$0xff] %v5031_v34  ;;  %v949_v51 = vmul.f32 %v9824_v21, %v9824_v21  ;;  %v5033_v46 = vmul.f32 %v4521_v9, %v9719_v59  ;;  %v1459_v38 = vmul.f32 %v947_v40, %v9817_v48  ;;  %v1460_v8 = vmul.f32 %v948_v13, %v9820_v62  ;;  %v9872_v34 = vld [vmem:[%s7165_s30 + $0x978] sm:$0xff] }
 0x2cc   : > { %5544 = vst [vmem:[%s7311_s17 + $0x8f0] sm:$0xff] %v5032_v29  ;;  %v950_v37 = vmul.f32 %v9831_v20, %v9831_v20  ;;  %v2993_v63 = vmul.f32 0.7978846, %v2481_v54  ;;  %v1970_v17 = vmul.f32 0.044715, %v1458_v50  ;;  %v951_v26 = vmul.f32 %v9840_v7, %v9840_v7  ;;  %v9876_v29 = vld [vmem:[%s7165_s30 + $0x980] sm:$0xff] }
 0x2cd   : > { %v1461_v19 = vmul.f32 %v949_v51, %v9824_v21  ;;  %5545 = vst [vmem:[%s7311_s17 + $0x8f8] sm:$0xff] %v5033_v46  ;;  %v1971_v25 = vmul.f32 0.044715, %v1459_v38  ;;  %v1972_v4 = vmul.f32 0.044715, %v1460_v8  ;;  %v952_v11 = vmul.f32 %v9848_v45, %v9848_v45  ;;  %v9883_v51 = vld [vmem:[%s7165_s30 + $0x988] sm:$0xff] }
 0x2ce   : > { %v6505_v28 = vpop.eup %6504  ;;  %v1462_v59 = vmul.f32 %v950_v37, %v9831_v20  ;;  %6518 = vtanh.f32 %v2993_v63  ;;  %v2482_v39 = vadd.f32 %v1970_v17, %v9811_v52  ;;  %v1463_v22 = vmul.f32 %v951_v26, %v9840_v7  ;;  %v9892_v63 = vld [vmem:[%s7165_s30 + $0x990] sm:$0xff] }
 0x2cf   : > { %v6507_v31 = vpop.eup %6506  ;;  %v4010_v3 = vadd.f32 1.0, %v6505_v28  ;;  %v1973_v16 = vmul.f32 0.044715, %v1461_v19  ;;  %v2483_v58 = vadd.f32 %v1971_v25, %v9817_v48  ;;  %v2484_v18 = vadd.f32 %v1972_v4, %v9820_v62  ;;  %v9896_v25 = vld [vmem:[%s7165_s30 + $0x998] sm:$0xff] }
 0x2d0   : > { %v4011_v23 = vadd.f32 1.0, %v6507_v31  ;;  %v1974_v60 = vmul.f32 0.044715, %v1462_v59  ;;  %v2994_v0 = vmul.f32 0.7978846, %v2482_v39  ;;  %v1464_v50 = vmul.f32 %v952_v11, %v9848_v45 }
 0x2d1   : > { %v6509_v44 = vpop.eup %6508  ;;  %v4522_v57 = vmul.f32 0.5, %v4010_v3  ;;  %v2485_v10 = vadd.f32 %v1973_v16, %v9824_v21  ;;  %v2995_v49 = vmul.f32 0.7978846, %v2483_v58  ;;  %v2996_v15 = vmul.f32 0.7978846, %v2484_v18  ;;  %v9913_v18 = vld [vmem:[%s7165_s30 + $0x9a0] sm:$0xff] }
 0x2d2   : > { %v4523_v32 = vmul.f32 0.5, %v4011_v23  ;;  %v4012_v5 = vadd.f32 1.0, %v6509_v44  ;;  %v6511_v55 = vpop.eup %6510  ;;  %6520 = vtanh.f32 %v2994_v0  ;;  %v2486_v27 = vadd.f32 %v1974_v60, %v9831_v20 }
 0x2d3   : > { %v5034_v53 = vmul.f32 %v4522_v57, %v9724_v43  ;;  %v2997_v30 = vmul.f32 0.7978846, %v2485_v10  ;;  %v6513_v61 = vpop.eup %6512  ;;  %v4013_v14 = vadd.f32 1.0, %v6511_v55  ;;  %6522 = vtanh.f32 %v2995_v49 }
 0x2d4   : > { %v5035_v41 = vmul.f32 %v4523_v32, %v9733_v1  ;;  %v4524_v24 = vmul.f32 0.5, %v4012_v5  ;;  %v6515_v12 = vpop.eup %6514  ;;  %v4014_v35 = vadd.f32 1.0, %v6513_v61  ;;  %6524 = vtanh.f32 %v2996_v15 }
 0x2d5   : > { %5546 = vst [vmem:[%s7311_s17 + $0x900] sm:$0xff] %v5034_v53  ;;  %v2998_v43 = vmul.f32 0.7978846, %v2486_v27  ;;  %v1975_v47 = vmul.f32 0.044715, %v1463_v22  ;;  %v4525_v1 = vmul.f32 0.5, %v4013_v14  ;;  %6526 = vtanh.f32 %v2997_v30 }
 0x2d6   : > { %5547 = vst [vmem:[%s7311_s17 + $0x908] sm:$0xff] %v5035_v41  ;;  %v5036_v9 = vmul.f32 %v4524_v24, %v9754_v6  ;;  %v4015_v40 = vadd.f32 1.0, %v6515_v12  ;;  %v4526_v13 = vmul.f32 0.5, %v4014_v35  ;;  %v953_v6 = vmul.f32 %v9872_v34, %v9872_v34 }
 0x2d7   : > { %6528 = vtanh.f32 %v2998_v43  ;;  %v2487_v54 = vadd.f32 %v1975_v47, %v9840_v7  ;;  %v6517_v46 = vpop.eup %6516  ;;  %v5037_v38 = vmul.f32 %v4525_v1, %v9758_v33  ;;  %v954_v37 = vmul.f32 %v9876_v29, %v9876_v29 }
 0x2d8   : > { %5548 = vst [vmem:[%s7311_s17 + $0x910] sm:$0xff] %v5036_v9  ;;  %v4527_v8 = vmul.f32 0.5, %v4015_v40  ;;  %v5038_v17 = vmul.f32 %v4526_v13, %v9765_v2  ;;  %v4016_v19 = vadd.f32 1.0, %v6517_v46  ;;  %v1976_v28 = vmul.f32 0.044715, %v1464_v50 }
 0x2d9   : > { %v2999_v26 = vmul.f32 0.7978846, %v2487_v54  ;;  %5549 = vst [vmem:[%s7311_s17 + $0x918] sm:$0xff] %v5037_v38  ;;  %v1465_v4 = vmul.f32 %v953_v6, %v9872_v34  ;;  %v1466_v59 = vmul.f32 %v954_v37, %v9876_v29  ;;  %v955_v11 = vmul.f32 %v9883_v51, %v9883_v51  ;;  %v9930_v6 = vld [vmem:[%s7165_s30 + $0x9a8] sm:$0xff]  ;;  %v9933_v37 = vld [vmem:[%s7165_s30 + $0x9b0] sm:$0xff] }
 0x2da   : > { %v5039_v33 = vmul.f32 %v4527_v8, %v9768_v42  ;;  %5550 = vst [vmem:[%s7311_s17 + $0x920] sm:$0xff] %v5038_v17  ;;  %v4528_v31 = vmul.f32 0.5, %v4016_v19  ;;  %v2488_v2 = vadd.f32 %v1976_v28, %v9848_v45  ;;  %v956_v3 = vmul.f32 %v9892_v63, %v9892_v63  ;;  %v9937_v28 = vld [vmem:[%s7165_s30 + $0x9b8] sm:$0xff] }
 0x2db   : > { %6530 = vtanh.f32 %v2999_v26  ;;  %v6519_v39 = vpop.eup %6518  ;;  %v1977_v16 = vmul.f32 0.044715, %v1465_v4  ;;  %v1978_v42 = vmul.f32 0.044715, %v1466_v59  ;;  %v1467_v23 = vmul.f32 %v955_v11, %v9883_v51 }
 0x2dc   : > { %5551 = vst [vmem:[%s7311_s17 + $0x928] sm:$0xff] %v5039_v33  ;;  %v957_v58 = vmul.f32 %v9896_v25, %v9896_v25  ;;  %v5040_v60 = vmul.f32 %v4528_v31, %v9778_v36  ;;  %v4017_v44 = vadd.f32 1.0, %v6519_v39  ;;  %v3000_v57 = vmul.f32 0.7978846, %v2488_v2  ;;  %v9940_v33 = vld [vmem:[%s7165_s30 + $0x9c0] sm:$0xff]  ;;  %v9950_v39 = vld [vmem:[%s7165_s30 + $0x9c8] sm:$0xff] }
 0x2dd   : > { %v1468_v0 = vmul.f32 %v956_v3, %v9892_v63  ;;  %v2489_v10 = vadd.f32 %v1977_v16, %v9872_v34  ;;  %v2490_v22 = vadd.f32 %v1978_v42, %v9876_v29  ;;  %v1979_v32 = vmul.f32 0.044715, %v1467_v23 }
 0x2de   : > { %v1469_v5 = vmul.f32 %v957_v58, %v9896_v25  ;;  %5552 = vst [vmem:[%s7311_s17 + $0x930] sm:$0xff] %v5040_v60  ;;  %v4529_v49 = vmul.f32 0.5, %v4017_v44  ;;  %6532 = vtanh.f32 %v3000_v57  ;;  %v958_v55 = vmul.f32 %v9913_v18, %v9913_v18  ;;  %v9960_v58 = vld [vmem:[%s7165_s30 + $0x9d0] sm:$0xff] }
 0x2df   : > { %v1980_v15 = vmul.f32 0.044715, %v1468_v0  ;;  %v6521_v53 = vpop.eup %6520  ;;  %v3001_v36 = vmul.f32 0.7978846, %v2489_v10  ;;  %v3002_v30 = vmul.f32 0.7978846, %v2490_v22  ;;  %v2491_v27 = vadd.f32 %v1979_v32, %v9883_v51 }
 0x2e0   : > { %v1981_v61 = vmul.f32 0.044715, %v1469_v5  ;;  %v6523_v41 = vpop.eup %6522  ;;  %v5041_v24 = vmul.f32 %v4529_v49, %v9788_v56  ;;  %v4018_v14 = vadd.f32 1.0, %v6521_v53  ;;  %v1470_v35 = vmul.f32 %v958_v55, %v9913_v18 }
 0x2e1   : > { %v2492_v12 = vadd.f32 %v1980_v15, %v9892_v63  ;;  %v6525_v43 = vpop.eup %6524  ;;  %v4019_v47 = vadd.f32 1.0, %v6523_v41  ;;  %6534 = vtanh.f32 %v3001_v36  ;;  %v3003_v9 = vmul.f32 0.7978846, %v2491_v27  ;;  %v9976_v27 = vld [vmem:[%s7165_s30 + $0x9d8] sm:$0xff] }
 0x2e2   : > { %v2493_v1 = vadd.f32 %v1981_v61, %v9896_v25  ;;  %v6527_v40 = vpop.eup %6526  ;;  %5553 = vst [vmem:[%s7311_s17 + $0x938] sm:$0xff] %v5041_v24  ;;  %v4530_v13 = vmul.f32 0.5, %v4018_v14  ;;  %v4020_v54 = vadd.f32 1.0, %v6525_v43  ;;  %6536 = vtanh.f32 %v3002_v30 }
 0x2e3   : > { %v3004_v56 = vmul.f32 0.7978846, %v2492_v12  ;;  %v4531_v46 = vmul.f32 0.5, %v4019_v47  ;;  %v4021_v38 = vadd.f32 1.0, %v6527_v40  ;;  %6538 = vtanh.f32 %v3003_v9 }
 0x2e4   : > { %v6529_v50 = vpop.eup %6528  ;;  %v3005_v8 = vmul.f32 0.7978846, %v2493_v1  ;;  %v5042_v17 = vmul.f32 %v4530_v13, %v9811_v52  ;;  %v4532_v19 = vmul.f32 0.5, %v4020_v54  ;;  %v1982_v11 = vmul.f32 0.044715, %v1470_v35 }
 0x2e5   : > { %v4022_v26 = vadd.f32 1.0, %v6529_v50  ;;  %6540 = vtanh.f32 %v3004_v56  ;;  %v5043_v4 = vmul.f32 %v4531_v46, %v9817_v48  ;;  %v4533_v59 = vmul.f32 0.5, %v4021_v38 }
 0x2e6   : > { %6542 = vtanh.f32 %v3005_v8  ;;  %5554 = vst [vmem:[%s7311_s17 + $0x940] sm:$0xff] %v5042_v17  ;;  %v5044_v31 = vmul.f32 %v4532_v19, %v9820_v62  ;;  %v959_v52 = vmul.f32 %v9930_v6, %v9930_v6  ;;  %v960_v3 = vmul.f32 %v9933_v37, %v9933_v37 }
 0x2e7   : > { %v4534_v2 = vmul.f32 0.5, %v4022_v26  ;;  %5555 = vst [vmem:[%s7311_s17 + $0x948] sm:$0xff] %v5043_v4  ;;  %v5045_v48 = vmul.f32 %v4533_v59, %v9824_v21  ;;  %v2494_v42 = vadd.f32 %v1982_v11, %v9913_v18  ;;  %v961_v62 = vmul.f32 %v9937_v28, %v9937_v28 }
 0x2e8   : > { %v6531_v16 = vpop.eup %6530  ;;  %v962_v23 = vmul.f32 %v9940_v33, %v9940_v33  ;;  %5556 = vst [vmem:[%s7311_s17 + $0x950] sm:$0xff] %v5044_v31  ;;  %v1471_v57 = vmul.f32 %v959_v52, %v9930_v6  ;;  %v1472_v0 = vmul.f32 %v960_v3, %v9933_v37  ;;  %v963_v32 = vmul.f32 %v9950_v39, %v9950_v39 }
 0x2e9   : > { %v5046_v60 = vmul.f32 %v4534_v2, %v9831_v20  ;;  %v4023_v44 = vadd.f32 1.0, %v6531_v16  ;;  %5557 = vst [vmem:[%s7311_s17 + $0x958] sm:$0xff] %v5045_v48  ;;  %v3006_v21 = vmul.f32 0.7978846, %v2494_v42  ;;  %v1473_v10 = vmul.f32 %v961_v62, %v9937_v28 }
 0x2ea   : > { %v1474_v22 = vmul.f32 %v962_v23, %v9940_v33  ;;  %v1983_v49 = vmul.f32 0.044715, %v1471_v57  ;;  %v1984_v15 = vmul.f32 0.044715, %v1472_v0  ;;  %v964_v20 = vmul.f32 %v9960_v58, %v9960_v58  ;;  %v9996_v23 = vld [vmem:[%s7165_s30 + $0x9e8] sm:$0xff] }
 0x2eb   : > { %5558 = vst [vmem:[%s7311_s17 + $0x960] sm:$0xff] %v5046_v60  ;;  %v4535_v5 = vmul.f32 0.5, %v4023_v44  ;;  %v6533_v55 = vpop.eup %6532  ;;  %6544 = vtanh.f32 %v3006_v21  ;;  %v1985_v53 = vmul.f32 0.044715, %v1473_v10  ;;  %v1475_v30 = vmul.f32 %v963_v32, %v9950_v39  ;;  %v9999_v60 = vld [vmem:[%s7165_s30 + $0x9f0] sm:$0xff]  ;;  %v10003_v21 = vld [vmem:[%s7165_s30 + $0x9f8] sm:$0xff] }
 0x2ec   : > { %v1986_v36 = vmul.f32 0.044715, %v1474_v22  ;;  %v4024_v41 = vadd.f32 1.0, %v6533_v55  ;;  %v2495_v24 = vadd.f32 %v1983_v49, %v9930_v6  ;;  %v2496_v14 = vadd.f32 %v1984_v15, %v9933_v37  ;;  %v10014_v49 = vld [vmem:[%s7165_s30 + $0xa08] sm:$0xff] }
 0x2ed   : > { %v5047_v61 = vmul.f32 %v4535_v5, %v9840_v7  ;;  %v2497_v12 = vadd.f32 %v1985_v53, %v9937_v28  ;;  %v1987_v43 = vmul.f32 0.044715, %v1475_v30  ;;  %v1476_v47 = vmul.f32 %v964_v20, %v9960_v58  ;;  %v10011_v5 = vld [vmem:[%s7165_s30 + $0xa00] sm:$0xff] }
 0x2ee   : > { %v2498_v35 = vadd.f32 %v1986_v36, %v9940_v33  ;;  %v6535_v9 = vpop.eup %6534  ;;  %v4536_v1 = vmul.f32 0.5, %v4024_v41  ;;  %v3007_v40 = vmul.f32 0.7978846, %v2495_v24  ;;  %v3008_v13 = vmul.f32 0.7978846, %v2496_v14 }
 0x2ef   : > { %5559 = vst [vmem:[%s7311_s17 + $0x968] sm:$0xff] %v5047_v61  ;;  %v965_v7 = vmul.f32 %v9976_v27, %v9976_v27  ;;  %v6537_v54 = vpop.eup %6536  ;;  %v4025_v56 = vadd.f32 1.0, %v6535_v9  ;;  %v3009_v50 = vmul.f32 0.7978846, %v2497_v12  ;;  %v2499_v38 = vadd.f32 %v1987_v43, %v9950_v39 }
 0x2f0   : > { %v3010_v46 = vmul.f32 0.7978846, %v2498_v35  ;;  %v6539_v8 = vpop.eup %6538  ;;  %v5048_v17 = vmul.f32 %v4536_v1, %v9848_v45  ;;  %v4026_v19 = vadd.f32 1.0, %v6537_v54  ;;  %6546 = vtanh.f32 %v3007_v40  ;;  %v9992_v45 = vld [vmem:[%s7165_s30 + $0x9e0] sm:$0xff] }
 0x2f1   : > { %v1988_v26 = vmul.f32 0.044715, %v1476_v47  ;;  %v4537_v59 = vmul.f32 0.5, %v4025_v56  ;;  %v4027_v11 = vadd.f32 1.0, %v6539_v8  ;;  %6548 = vtanh.f32 %v3008_v13 }
 0x2f2   : > { %v6541_v4 = vpop.eup %6540  ;;  %v3011_v31 = vmul.f32 0.7978846, %v2499_v38  ;;  %5560 = vst [vmem:[%s7311_s17 + $0x970] sm:$0xff] %v5048_v17  ;;  %v4538_v52 = vmul.f32 0.5, %v4026_v19  ;;  %6550 = vtanh.f32 %v3009_v50  ;;  %v1477_v22 = vmul.f32 %v965_v7, %v9976_v27 }
 0x2f3   : > { %v6543_v2 = vpop.eup %6542  ;;  %v4028_v3 = vadd.f32 1.0, %v6541_v4  ;;  %v2500_v16 = vadd.f32 %v1988_v26, %v9960_v58  ;;  %v5049_v48 = vmul.f32 %v4537_v59, %v9872_v34  ;;  %v4539_v42 = vmul.f32 0.5, %v4027_v11 }
 0x2f4   : > { %v4029_v62 = vadd.f32 1.0, %v6543_v2  ;;  %6552 = vtanh.f32 %v3010_v46  ;;  %v5050_v44 = vmul.f32 %v4538_v52, %v9876_v29  ;;  %v966_v32 = vmul.f32 %v9992_v45, %v9992_v45 }
 0x2f5   : > { %v4540_v57 = vmul.f32 0.5, %v4028_v3  ;;  %6554 = vtanh.f32 %v3011_v31  ;;  %v3012_v0 = vmul.f32 0.7978846, %v2500_v16  ;;  %5561 = vst [vmem:[%s7311_s17 + $0x978] sm:$0xff] %v5049_v48  ;;  %v5051_v34 = vmul.f32 %v4539_v42, %v9883_v51 }
 0x2f6   : > { %v4541_v10 = vmul.f32 0.5, %v4029_v62  ;;  %5562 = vst [vmem:[%s7311_s17 + $0x980] sm:$0xff] %v5050_v44  ;;  %v967_v15 = vmul.f32 %v9996_v23, %v9996_v23  ;;  %v968_v51 = vmul.f32 %v9999_v60, %v9999_v60  ;;  %v1989_v55 = vmul.f32 0.044715, %v1477_v22 }
 0x2f7   : > { %v5052_v29 = vmul.f32 %v4540_v57, %v9892_v63  ;;  %6556 = vtanh.f32 %v3012_v0  ;;  %5563 = vst [vmem:[%s7311_s17 + $0x988] sm:$0xff] %v5051_v34  ;;  %v1478_v53 = vmul.f32 %v966_v32, %v9992_v45  ;;  %v969_v36 = vmul.f32 %v10003_v21, %v10003_v21  ;;  %v10048_v57 = vld [vmem:[%s7165_s30 + $0xa10] sm:$0xff] }
 0x2f8   : > { %v5053_v20 = vmul.f32 %v4541_v10, %v9896_v25  ;;  %v6545_v30 = vpop.eup %6544  ;;  %v1479_v63 = vmul.f32 %v967_v15, %v9996_v23  ;;  %v1480_v61 = vmul.f32 %v968_v51, %v9999_v60  ;;  %v970_v41 = vmul.f32 %v10011_v5, %v10011_v5  ;;  %v10052_v51 = vld [vmem:[%s7165_s30 + $0xa18] sm:$0xff] }
 0x2f9   : > { %5564 = vst [vmem:[%s7311_s17 + $0x990] sm:$0xff] %v5052_v29  ;;  %v971_v24 = vmul.f32 %v10014_v49, %v10014_v49  ;;  %v4030_v25 = vadd.f32 1.0, %v6545_v30  ;;  %v2501_v14 = vadd.f32 %v1989_v55, %v9976_v27  ;;  %v1990_v12 = vmul.f32 0.044715, %v1478_v53 }
 0x2fa   : > { %5565 = vst [vmem:[%s7311_s17 + $0x998] sm:$0xff] %v5053_v20  ;;  %v1481_v35 = vmul.f32 %v969_v36, %v10003_v21  ;;  %v1991_v43 = vmul.f32 0.044715, %v1479_v63  ;;  %v1992_v47 = vmul.f32 0.044715, %v1480_v61  ;;  %v1482_v9 = vmul.f32 %v970_v41, %v10011_v5  ;;  %v10055_v20 = vld [vmem:[%s7165_s30 + $0xa20] sm:$0xff] }
 0x2fb   : > { %v1483_v1 = vmul.f32 %v971_v24, %v10014_v49  ;;  %v4542_v40 = vmul.f32 0.5, %v4030_v25  ;;  %v3013_v13 = vmul.f32 0.7978846, %v2501_v14  ;;  %v2502_v7 = vadd.f32 %v1990_v12, %v9992_v45  ;;  %v10064_v63 = vld [vmem:[%s7165_s30 + $0xa30] sm:$0xff]  ;;  %v10069_v25 = vld [vmem:[%s7165_s30 + $0xa38] sm:$0xff] }
 0x2fc   : > { %v1993_v54 = vmul.f32 0.044715, %v1481_v35  ;;  %v2503_v56 = vadd.f32 %v1991_v43, %v9996_v23  ;;  %v2504_v50 = vadd.f32 %v1992_v47, %v9999_v60  ;;  %v1994_v46 = vmul.f32 0.044715, %v1482_v9 }
 0x2fd   : > { %v1995_v38 = vmul.f32 0.044715, %v1483_v1  ;;  %v6547_v8 = vpop.eup %6546  ;;  %v5054_v17 = vmul.f32 %v4542_v40, %v9913_v18  ;;  %6558 = vtanh.f32 %v3013_v13  ;;  %v3014_v19 = vmul.f32 0.7978846, %v2502_v7 }
 0x2fe   : > { %v2505_v26 = vadd.f32 %v1993_v54, %v10003_v21  ;;  %v6549_v4 = vpop.eup %6548  ;;  %v4031_v59 = vadd.f32 1.0, %v6547_v8  ;;  %v3015_v11 = vmul.f32 0.7978846, %v2503_v56  ;;  %v3016_v31 = vmul.f32 0.7978846, %v2504_v50  ;;  %v10093_v54 = vld [vmem:[%s7165_s30 + $0xa48] sm:$0xff] }
 0x2ff   : > { %v2506_v2 = vadd.f32 %v1994_v46, %v10011_v5  ;;  %v6551_v52 = vpop.eup %6550  ;;  %5566 = vst [vmem:[%s7311_s17 + $0x9a0] sm:$0xff] %v5054_v17  ;;  %v4032_v3 = vadd.f32 1.0, %v6549_v4  ;;  %6560 = vtanh.f32 %v3014_v19  ;;  %v2507_v48 = vadd.f32 %v1995_v38, %v10014_v49 }
 0x300   : > { %v3017_v16 = vmul.f32 0.7978846, %v2505_v26  ;;  %v4543_v42 = vmul.f32 0.5, %v4031_v59  ;;  %v4033_v62 = vadd.f32 1.0, %v6551_v52  ;;  %6562 = vtanh.f32 %v3015_v11 }
 0x301   : > { %v6553_v18 = vpop.eup %6552  ;;  %v3018_v44 = vmul.f32 0.7978846, %v2506_v2  ;;  %v4544_v34 = vmul.f32 0.5, %v4032_v3  ;;  %6564 = vtanh.f32 %v3016_v31  ;;  %v3019_v22 = vmul.f32 0.7978846, %v2507_v48 }
 0x302   : > { %v6555_v0 = vpop.eup %6554  ;;  %v4034_v10 = vadd.f32 1.0, %v6553_v18  ;;  %v5055_v32 = vmul.f32 %v4543_v42, %v9930_v6  ;;  %v4545_v29 = vmul.f32 0.5, %v4033_v62  ;;  %6566 = vtanh.f32 %v3017_v16  ;;  %v10061_v6 = vld [vmem:[%s7165_s30 + $0xa28] sm:$0xff] }
 0x303   : > { %v4035_v15 = vadd.f32 1.0, %v6555_v0  ;;  %v5056_v53 = vmul.f32 %v4544_v34, %v9933_v37  ;;  %6568 = vtanh.f32 %v3018_v44  ;;  %v972_v30 = vmul.f32 %v10048_v57, %v10048_v57 }
 0x304   : > { %v6557_v55 = vpop.eup %6556  ;;  %v4546_v36 = vmul.f32 0.5, %v4034_v10  ;;  %5567 = vst [vmem:[%s7311_s17 + $0x9a8] sm:$0xff] %v5055_v32  ;;  %v5057_v61 = vmul.f32 %v4545_v29, %v9937_v28  ;;  %6570 = vtanh.f32 %v3019_v22  ;;  %v973_v12 = vmul.f32 %v10052_v51, %v10052_v51  ;;  %v10079_v28 = vld [vmem:[%s7165_s30 + $0xa40] sm:$0xff] }
 0x305   : > { %v4547_v41 = vmul.f32 0.5, %v4035_v15  ;;  %v4036_v24 = vadd.f32 1.0, %v6557_v55  ;;  %5568 = vst [vmem:[%s7311_s17 + $0x9b0] sm:$0xff] %v5056_v53  ;;  %v1484_v14 = vmul.f32 %v972_v30, %v10048_v57  ;;  %v974_v35 = vmul.f32 %v10055_v20, %v10055_v20 }
 0x306   : > { %v5058_v37 = vmul.f32 %v4546_v36, %v9940_v33  ;;  %5569 = vst [vmem:[%s7311_s17 + $0x9b8] sm:$0xff] %v5057_v61  ;;  %v975_v9 = vmul.f32 %v10061_v6, %v10061_v6  ;;  %v976_v33 = vmul.f32 %v10064_v63, %v10064_v63  ;;  %v1485_v40 = vmul.f32 %v973_v12, %v10052_v51 }
 0x307   : > { %v5059_v43 = vmul.f32 %v4547_v41, %v9950_v39  ;;  %v4548_v47 = vmul.f32 0.5, %v4036_v24  ;;  %v1996_v1 = vmul.f32 0.044715, %v1484_v14  ;;  %v1486_v13 = vmul.f32 %v974_v35, %v10055_v20 }
 0x308   : > { %5570 = vst [vmem:[%s7311_s17 + $0x9c0] sm:$0xff] %v5058_v37  ;;  %v977_v7 = vmul.f32 %v10069_v25, %v10069_v25  ;;  %v1487_v56 = vmul.f32 %v975_v9, %v10061_v6  ;;  %v1488_v50 = vmul.f32 %v976_v33, %v10064_v63  ;;  %v978_v46 = vmul.f32 %v10079_v28, %v10079_v28 }
 0x309   : > { %5571 = vst [vmem:[%s7311_s17 + $0x9c8] sm:$0xff] %v5059_v43  ;;  %v5060_v39 = vmul.f32 %v4548_v47, %v9960_v58  ;;  %v2508_v38 = vadd.f32 %v1996_v1, %v10048_v57  ;;  %v1997_v8 = vmul.f32 0.044715, %v1485_v40  ;;  %v1998_v17 = vmul.f32 0.044715, %v1486_v13  ;;  %v10120_v40 = vld [vmem:[%s7165_s30 + $0xa58] sm:$0xff] }
 0x30a   : > { %v1489_v19 = vmul.f32 %v977_v7, %v10069_v25  ;;  %v6559_v26 = vpop.eup %6558  ;;  %v1999_v4 = vmul.f32 0.044715, %v1487_v56  ;;  %v2000_v59 = vmul.f32 0.044715, %v1488_v50  ;;  %v1490_v11 = vmul.f32 %v978_v46, %v10079_v28  ;;  %v10126_v56 = vld [vmem:[%s7165_s30 + $0xa60] sm:$0xff] }
 0x30b   : > { %5572 = vst [vmem:[%s7311_s17 + $0x9d0] sm:$0xff] %v5060_v39  ;;  %v979_v58 = vmul.f32 %v10093_v54, %v10093_v54  ;;  %v4037_v31 = vadd.f32 1.0, %v6559_v26  ;;  %v3020_v2 = vmul.f32 0.7978846, %v2508_v38  ;;  %v2509_v52 = vadd.f32 %v1997_v8, %v10052_v51  ;;  %v10137_v8 = vld [vmem:[%s7165_s30 + $0xa70] sm:$0xff]  ;;  %v10144_v26 = vld [vmem:[%s7165_s30 + $0xa78] sm:$0xff] }
 0x30c   : > { %v2510_v3 = vadd.f32 %v1998_v17, %v10055_v20  ;;  %v6561_v16 = vpop.eup %6560  ;;  %v2511_v48 = vadd.f32 %v1999_v4, %v10061_v6  ;;  %v2512_v18 = vadd.f32 %v2000_v59, %v10064_v63  ;;  %v2001_v42 = vmul.f32 0.044715, %v1489_v19 }
 0x30d   : > { %v2002_v62 = vmul.f32 0.044715, %v1490_v11  ;;  %v6563_v44 = vpop.eup %6562  ;;  %v4549_v0 = vmul.f32 0.5, %v4037_v31  ;;  %v4038_v34 = vadd.f32 1.0, %v6561_v16  ;;  %6572 = vtanh.f32 %v3020_v2  ;;  %v10152_v31 = vld [vmem:[%s7165_s30 + $0xa80] sm:$0xff] }
 0x30e   : > { %v3021_v10 = vmul.f32 0.7978846, %v2509_v52  ;;  %v6565_v22 = vpop.eup %6564  ;;  %v4039_v32 = vadd.f32 1.0, %v6563_v44  ;;  %v3022_v29 = vmul.f32 0.7978846, %v2510_v3  ;;  %v2513_v55 = vadd.f32 %v2001_v42, %v10069_v25 }
 0x30f   : > { %v3023_v15 = vmul.f32 0.7978846, %v2511_v48  ;;  %v6567_v53 = vpop.eup %6566  ;;  %v5061_v36 = vmul.f32 %v4549_v0, %v9976_v27  ;;  %v4550_v30 = vmul.f32 0.5, %v4038_v34  ;;  %v4040_v61 = vadd.f32 1.0, %v6565_v22  ;;  %v10116_v27 = vld [vmem:[%s7165_s30 + $0xa50] sm:$0xff] }
 0x310   : > { %6574 = vtanh.f32 %v3021_v10  ;;  %v6569_v41 = vpop.eup %6568  ;;  %v4551_v24 = vmul.f32 0.5, %v4039_v32  ;;  %v4041_v37 = vadd.f32 1.0, %v6567_v53  ;;  %v3024_v14 = vmul.f32 0.7978846, %v2512_v18 }
 0x311   : > { %6576 = vtanh.f32 %v3022_v29  ;;  %v6571_v12 = vpop.eup %6570  ;;  %5573 = vst [vmem:[%s7311_s17 + $0x9d8] sm:$0xff] %v5061_v36  ;;  %v5062_v35 = vmul.f32 %v4550_v30, %v9992_v45  ;;  %v4552_v43 = vmul.f32 0.5, %v4040_v61  ;;  %v4042_v47 = vadd.f32 1.0, %v6569_v41 }
 0x312   : > { %6578 = vtanh.f32 %v3023_v15  ;;  %v5063_v9 = vmul.f32 %v4551_v24, %v9996_v23  ;;  %v4553_v33 = vmul.f32 0.5, %v4041_v37  ;;  %v4043_v1 = vadd.f32 1.0, %v6571_v12 }
 0x313   : > { %6580 = vtanh.f32 %v3024_v14  ;;  %5574 = vst [vmem:[%s7311_s17 + $0x9e0] sm:$0xff] %v5062_v35  ;;  %v5064_v13 = vmul.f32 %v4552_v43, %v9999_v60  ;;  %v4554_v45 = vmul.f32 0.5, %v4042_v47  ;;  %v3025_v7 = vmul.f32 0.7978846, %v2513_v55  ;;  %v10134_v60 = vld [vmem:[%s7165_s30 + $0xa68] sm:$0xff] }
 0x314   : > { %v2514_v39 = vadd.f32 %v2002_v62, %v10079_v28  ;;  %5575 = vst [vmem:[%s7311_s17 + $0x9e8] sm:$0xff] %v5063_v9  ;;  %v5065_v23 = vmul.f32 %v4553_v33, %v10003_v21  ;;  %v4555_v50 = vmul.f32 0.5, %v4043_v1  ;;  %v1491_v46 = vmul.f32 %v979_v58, %v10093_v54 }
 0x315   : > { %v980_v38 = vmul.f32 %v10116_v27, %v10116_v27  ;;  %5576 = vst [vmem:[%s7311_s17 + $0x9f0] sm:$0xff] %v5064_v13  ;;  %v5066_v17 = vmul.f32 %v4554_v45, %v10011_v5  ;;  %6582 = vtanh.f32 %v3025_v7  ;;  %v981_v21 = vmul.f32 %v10120_v40, %v10120_v40 }
 0x316   : > { %v3026_v19 = vmul.f32 0.7978846, %v2514_v39  ;;  %5577 = vst [vmem:[%s7311_s17 + $0x9f8] sm:$0xff] %v5065_v23  ;;  %v5067_v4 = vmul.f32 %v4555_v50, %v10014_v49  ;;  %v2003_v59 = vmul.f32 0.044715, %v1491_v46  ;;  %v982_v58 = vmul.f32 %v10126_v56, %v10126_v56 }
 0x317   : > { %v1492_v11 = vmul.f32 %v980_v38, %v10116_v27  ;;  %5578 = vst [vmem:[%s7311_s17 + $0xa00] sm:$0xff] %v5066_v17  ;;  %v1493_v5 = vmul.f32 %v981_v21, %v10120_v40  ;;  %v983_v2 = vmul.f32 %v10134_v60, %v10134_v60  ;;  %v984_v52 = vmul.f32 %v10137_v8, %v10137_v8  ;;  %v10180_v21 = vld [vmem:[%s7165_s30 + $0xa88] sm:$0xff] }
 0x318   : > { %6584 = vtanh.f32 %v3026_v19  ;;  %5579 = vst [vmem:[%s7311_s17 + $0xa08] sm:$0xff] %v5067_v4  ;;  %v2515_v49 = vadd.f32 %v2003_v59, %v10093_v54  ;;  %v1494_v16 = vmul.f32 %v982_v58, %v10126_v56  ;;  %v985_v48 = vmul.f32 %v10144_v26, %v10144_v26 }
 0x319   : > { %v2004_v3 = vmul.f32 0.044715, %v1492_v11  ;;  %v2005_v18 = vmul.f32 0.044715, %v1493_v5  ;;  %v1495_v42 = vmul.f32 %v983_v2, %v10134_v60  ;;  %v1496_v62 = vmul.f32 %v984_v52, %v10137_v8 }
 0x31a   : > { %v986_v44 = vmul.f32 %v10152_v31, %v10152_v31  ;;  %v6573_v0 = vpop.eup %6572  ;;  %v3027_v34 = vmul.f32 0.7978846, %v2515_v49  ;;  %v2006_v22 = vmul.f32 0.044715, %v1494_v16  ;;  %v1497_v32 = vmul.f32 %v985_v48, %v10144_v26  ;;  %v10193_v49 = vld [vmem:[%s7165_s30 + $0xaa0] sm:$0xff] }
 0x31b   : > { %v2516_v10 = vadd.f32 %v2004_v3, %v10116_v27  ;;  %v4044_v29 = vadd.f32 1.0, %v6573_v0  ;;  %v2517_v15 = vadd.f32 %v2005_v18, %v10120_v40  ;;  %v2007_v55 = vmul.f32 0.044715, %v1495_v42  ;;  %v10202_v42 = vld [vmem:[%s7165_s30 + $0xaa8] sm:$0xff] }
 0x31c   : > { %v2008_v53 = vmul.f32 0.044715, %v1496_v62  ;;  %6586 = vtanh.f32 %v3027_v34  ;;  %v2518_v61 = vadd.f32 %v2006_v22, %v10126_v56  ;;  %v2009_v41 = vmul.f32 0.044715, %v1497_v32  ;;  %v10214_v22 = vld [vmem:[%s7165_s30 + $0xab0] sm:$0xff] }
 0x31d   : > { %v6575_v36 = vpop.eup %6574  ;;  %v3028_v30 = vmul.f32 0.7978846, %v2516_v10  ;;  %v4556_v37 = vmul.f32 0.5, %v4044_v29  ;;  %v3029_v12 = vmul.f32 0.7978846, %v2517_v15  ;;  %v2519_v35 = vadd.f32 %v2007_v55, %v10134_v60 }
 0x31e   : > { %v6577_v24 = vpop.eup %6576  ;;  %v4045_v14 = vadd.f32 1.0, %v6575_v36  ;;  %v3030_v9 = vmul.f32 0.7978846, %v2518_v61  ;;  %v2520_v33 = vadd.f32 %v2008_v53, %v10137_v8  ;;  %v2521_v19 = vadd.f32 %v2009_v41, %v10144_v26 }
 0x31f   : > { %v6579_v43 = vpop.eup %6578  ;;  %v4046_v47 = vadd.f32 1.0, %v6577_v24  ;;  %6588 = vtanh.f32 %v3028_v30  ;;  %v5068_v13 = vmul.f32 %v4556_v37, %v10048_v57  ;;  %v3031_v50 = vmul.f32 0.7978846, %v2519_v35  ;;  %v10183_v57 = vld [vmem:[%s7165_s30 + $0xa90] sm:$0xff] }
 0x320   : > { %v6581_v1 = vpop.eup %6580  ;;  %v4557_v45 = vmul.f32 0.5, %v4045_v14  ;;  %v4047_v7 = vadd.f32 1.0, %v6579_v43  ;;  %6590 = vtanh.f32 %v3029_v12  ;;  %v3032_v17 = vmul.f32 0.7978846, %v2520_v33 }
 0x321   : > { %v4558_v39 = vmul.f32 0.5, %v4046_v47  ;;  %v4048_v23 = vadd.f32 1.0, %v6581_v1  ;;  %6592 = vtanh.f32 %v3030_v9  ;;  %5580 = vst [vmem:[%s7311_s17 + $0xa10] sm:$0xff] %v5068_v13  ;;  %v1498_v58 = vmul.f32 %v986_v44, %v10152_v31 }
 0x322   : > { %v5069_v46 = vmul.f32 %v4557_v45, %v10052_v51  ;;  %v4559_v38 = vmul.f32 0.5, %v4047_v7  ;;  %v6583_v4 = vpop.eup %6582  ;;  %6594 = vtanh.f32 %v3031_v50  ;;  %v10188_v51 = vld [vmem:[%s7165_s30 + $0xa98] sm:$0xff]  ;;  %v3033_v52 = vmul.f32 0.7978846, %v2521_v19 }
 0x323   : > { %v5070_v59 = vmul.f32 %v4558_v39, %v10055_v20  ;;  %v4560_v11 = vmul.f32 0.5, %v4048_v23  ;;  %v4049_v2 = vadd.f32 1.0, %v6583_v4  ;;  %6596 = vtanh.f32 %v3032_v17 }
 0x324   : > { %5581 = vst [vmem:[%s7311_s17 + $0xa18] sm:$0xff] %v5069_v46  ;;  %v5071_v5 = vmul.f32 %v4559_v38, %v10061_v6  ;;  %v2010_v16 = vmul.f32 0.044715, %v1498_v58  ;;  %v987_v48 = vmul.f32 %v10180_v21, %v10180_v21  ;;  %v988_v18 = vmul.f32 %v10183_v57, %v10183_v57 }
 0x325   : > { %v6585_v3 = vpop.eup %6584  ;;  %5582 = vst [vmem:[%s7311_s17 + $0xa20] sm:$0xff] %v5070_v59  ;;  %v5072_v20 = vmul.f32 %v4560_v11, %v10064_v63  ;;  %v4561_v6 = vmul.f32 0.5, %v4049_v2  ;;  %6598 = vtanh.f32 %v3033_v52  ;;  %v989_v44 = vmul.f32 %v10188_v51, %v10188_v51 }
 0x326   : > { %5583 = vst [vmem:[%s7311_s17 + $0xa28] sm:$0xff] %v5071_v5  ;;  %v4050_v62 = vadd.f32 1.0, %v6585_v3  ;;  %v2522_v63 = vadd.f32 %v2010_v16, %v10152_v31  ;;  %v1499_v0 = vmul.f32 %v987_v48, %v10180_v21  ;;  %v1500_v34 = vmul.f32 %v988_v18, %v10183_v57  ;;  %v10235_v3 = vld [vmem:[%s7165_s30 + $0xab8] sm:$0xff]  ;;  %v10240_v18 = vld [vmem:[%s7165_s30 + $0xac0] sm:$0xff] }
 0x327   : > { %5584 = vst [vmem:[%s7311_s17 + $0xa30] sm:$0xff] %v5072_v20  ;;  %v990_v10 = vmul.f32 %v10193_v49, %v10193_v49  ;;  %v5073_v32 = vmul.f32 %v4561_v6, %v10069_v25  ;;  %v1501_v15 = vmul.f32 %v989_v44, %v10188_v51  ;;  %v991_v55 = vmul.f32 %v10202_v42, %v10202_v42 }
 0x328   : > { %v4562_v29 = vmul.f32 0.5, %v4050_v62  ;;  %v3034_v53 = vmul.f32 0.7978846, %v2522_v63  ;;  %v2011_v36 = vmul.f32 0.044715, %v1499_v0  ;;  %v992_v25 = vmul.f32 %v10214_v22, %v10214_v22  ;;  %v10244_v63 = vld [vmem:[%s7165_s30 + $0xac8] sm:$0xff] }
 0x329   : > { %v2012_v30 = vmul.f32 0.044715, %v1500_v34  ;;  %v1502_v61 = vmul.f32 %v990_v10, %v10193_v49  ;;  %v6587_v41 = vpop.eup %6586  ;;  %5585 = vst [vmem:[%s7311_s17 + $0xa38] sm:$0xff] %v5073_v32  ;;  %v2013_v37 = vmul.f32 0.044715, %v1501_v15  ;;  %v1503_v14 = vmul.f32 %v991_v55, %v10202_v42  ;;  %v10247_v0 = vld [vmem:[%s7165_s30 + $0xad0] sm:$0xff] }
 0x32a   : > { %v5074_v24 = vmul.f32 %v4562_v29, %v10079_v28  ;;  %v4051_v12 = vadd.f32 1.0, %v6587_v41  ;;  %6600 = vtanh.f32 %v3034_v53  ;;  %v2523_v35 = vadd.f32 %v2011_v36, %v10180_v21  ;;  %v10258_v53 = vld [vmem:[%s7165_s30 + $0xad8] sm:$0xff]  ;;  %v10268_v41 = vld [vmem:[%s7165_s30 + $0xae0] sm:$0xff] }
 0x32b   : > { %v2524_v43 = vadd.f32 %v2012_v30, %v10183_v57  ;;  %v2525_v9 = vadd.f32 %v2013_v37, %v10188_v51  ;;  %v2014_v33 = vmul.f32 0.044715, %v1502_v61  ;;  %v2015_v1 = vmul.f32 0.044715, %v1503_v14 }
 0x32c   : > { %v6589_v47 = vpop.eup %6588  ;;  %5586 = vst [vmem:[%s7311_s17 + $0xa40] sm:$0xff] %v5074_v24  ;;  %v1504_v28 = vmul.f32 %v992_v25, %v10214_v22  ;;  %v4563_v45 = vmul.f32 0.5, %v4051_v12  ;;  %v3035_v39 = vmul.f32 0.7978846, %v2523_v35  ;;  %v993_v32 = vmul.f32 %v10235_v3, %v10235_v3 }
 0x32d   : > { %v6591_v13 = vpop.eup %6590  ;;  %v4052_v7 = vadd.f32 1.0, %v6589_v47  ;;  %v3036_v23 = vmul.f32 0.7978846, %v2524_v43  ;;  %v3037_v38 = vmul.f32 0.7978846, %v2525_v9  ;;  %v2526_v17 = vadd.f32 %v2014_v33, %v10193_v49  ;;  %v10278_v47 = vld [vmem:[%s7165_s30 + $0xae8] sm:$0xff] }
 0x32e   : > { %v6593_v50 = vpop.eup %6592  ;;  %v4053_v46 = vadd.f32 1.0, %v6591_v13  ;;  %v2527_v19 = vadd.f32 %v2015_v1, %v10202_v42  ;;  %v5075_v4 = vmul.f32 %v4563_v45, %v10093_v54  ;;  %6602 = vtanh.f32 %v3035_v39 }
 0x32f   : > { %v4564_v59 = vmul.f32 0.5, %v4052_v7  ;;  %v4054_v11 = vadd.f32 1.0, %v6593_v50  ;;  %v6595_v58 = vpop.eup %6594  ;;  %6604 = vtanh.f32 %v3036_v23  ;;  %v3038_v2 = vmul.f32 0.7978846, %v2526_v17 }
 0x330   : > { %v4565_v5 = vmul.f32 0.5, %v4053_v46  ;;  %v3039_v52 = vmul.f32 0.7978846, %v2527_v19  ;;  %v6597_v20 = vpop.eup %6596  ;;  %5587 = vst [vmem:[%s7311_s17 + $0xa48] sm:$0xff] %v5075_v4  ;;  %v4055_v54 = vadd.f32 1.0, %v6595_v58  ;;  %6606 = vtanh.f32 %v3037_v38 }
 0x331   : > { %v5076_v16 = vmul.f32 %v4564_v59, %v10116_v27  ;;  %v4566_v48 = vmul.f32 0.5, %v4054_v11  ;;  %v4056_v62 = vadd.f32 1.0, %v6597_v20  ;;  %6608 = vtanh.f32 %v3038_v2 }
 0x332   : > { %v5077_v6 = vmul.f32 %v4565_v5, %v10120_v40  ;;  %v2016_v44 = vmul.f32 0.044715, %v1504_v28  ;;  %v6599_v34 = vpop.eup %6598  ;;  %v4567_v10 = vmul.f32 0.5, %v4055_v54  ;;  %6610 = vtanh.f32 %v3039_v52 }
 0x333   : > { %5588 = vst [vmem:[%s7311_s17 + $0xa50] sm:$0xff] %v5076_v16  ;;  %v5078_v27 = vmul.f32 %v4566_v48, %v10126_v56  ;;  %v4568_v40 = vmul.f32 0.5, %v4056_v62  ;;  %v4057_v29 = vadd.f32 1.0, %v6599_v34  ;;  %v994_v55 = vmul.f32 %v10240_v18, %v10240_v18 }
 0x334   : > { %5589 = vst [vmem:[%s7311_s17 + $0xa58] sm:$0xff] %v5077_v6  ;;  %v2528_v15 = vadd.f32 %v2016_v44, %v10214_v22  ;;  %v5079_v56 = vmul.f32 %v4567_v10, %v10134_v60  ;;  %v1505_v36 = vmul.f32 %v993_v32, %v10235_v3  ;;  %v995_v30 = vmul.f32 %v10244_v63, %v10244_v63 }
 0x335   : > { %5590 = vst [vmem:[%s7311_s17 + $0xa60] sm:$0xff] %v5078_v27  ;;  %v996_v61 = vmul.f32 %v10247_v0, %v10247_v0  ;;  %v5080_v24 = vmul.f32 %v4568_v40, %v10137_v8  ;;  %v4569_v37 = vmul.f32 0.5, %v4057_v29  ;;  %v1506_v25 = vmul.f32 %v994_v55, %v10240_v18 }
 0x336   : > { %v3040_v14 = vmul.f32 0.7978846, %v2528_v15  ;;  %5591 = vst [vmem:[%s7311_s17 + $0xa68] sm:$0xff] %v5079_v56  ;;  %v2017_v60 = vmul.f32 0.044715, %v1505_v36  ;;  %v1507_v12 = vmul.f32 %v995_v30, %v10244_v63  ;;  %v997_v43 = vmul.f32 %v10258_v53, %v10258_v53  ;;  %v10299_v15 = vld [vmem:[%s7165_s30 + $0xaf0] sm:$0xff] }
 0x337   : > { %v1508_v35 = vmul.f32 %v996_v61, %v10247_v0  ;;  %v6601_v9 = vpop.eup %6600  ;;  %5592 = vst [vmem:[%s7311_s17 + $0xa70] sm:$0xff] %v5080_v24  ;;  %v5081_v8 = vmul.f32 %v4569_v37, %v10144_v26  ;;  %v2018_v33 = vmul.f32 0.044715, %v1506_v25  ;;  %v998_v1 = vmul.f32 %v10268_v41, %v10268_v41  ;;  %v10303_v61 = vld [vmem:[%s7165_s30 + $0xaf8] sm:$0xff]  ;;  %v10306_v24 = vld [vmem:[%s7165_s30 + $0xb00] sm:$0xff] }
 0x338   : > { %6612 = vtanh.f32 %v3040_v14  ;;  %v4058_v28 = vadd.f32 1.0, %v6601_v9  ;;  %v2529_v13 = vadd.f32 %v2017_v60, %v10235_v3  ;;  %v2019_v45 = vmul.f32 0.044715, %v1507_v12  ;;  %v10310_v60 = vld [vmem:[%s7165_s30 + $0xb08] sm:$0xff]  ;;  %v10313_v12 = vld [vmem:[%s7165_s30 + $0xb10] sm:$0xff] }
 0x339   : > { %v2020_v7 = vmul.f32 0.044715, %v1508_v35  ;;  %5593 = vst [vmem:[%s7311_s17 + $0xa78] sm:$0xff] %v5081_v8  ;;  %v2530_v39 = vadd.f32 %v2018_v33, %v10240_v18  ;;  %v1509_v23 = vmul.f32 %v997_v43, %v10258_v53  ;;  %v1510_v50 = vmul.f32 %v998_v1, %v10268_v41  ;;  %v10327_v1 = vld [vmem:[%s7165_s30 + $0xb18] sm:$0xff] }
 0x33a   : > { %v999_v26 = vmul.f32 %v10278_v47, %v10278_v47  ;;  %v4570_v46 = vmul.f32 0.5, %v4058_v28  ;;  %v3041_v38 = vmul.f32 0.7978846, %v2529_v13  ;;  %v2531_v17 = vadd.f32 %v2019_v45, %v10244_v63 }
 0x33b   : > { %v2532_v19 = vadd.f32 %v2020_v7, %v10247_v0  ;;  %v6603_v4 = vpop.eup %6602  ;;  %v3042_v59 = vmul.f32 0.7978846, %v2530_v39  ;;  %v2021_v11 = vmul.f32 0.044715, %v1509_v23  ;;  %v2022_v58 = vmul.f32 0.044715, %v1510_v50 }
 0x33c   : > { %v1511_v5 = vmul.f32 %v999_v26, %v10278_v47  ;;  %v6605_v2 = vpop.eup %6604  ;;  %v5082_v52 = vmul.f32 %v4570_v46, %v10152_v31  ;;  %v4059_v20 = vadd.f32 1.0, %v6603_v4  ;;  %6614 = vtanh.f32 %v3041_v38 }
 0x33d   : > { %v3043_v16 = vmul.f32 0.7978846, %v2531_v17  ;;  %v6607_v48 = vpop.eup %6606  ;;  %v4060_v54 = vadd.f32 1.0, %v6605_v2  ;;  %6616 = vtanh.f32 %v3042_v59  ;;  %v3044_v6 = vmul.f32 0.7978846, %v2532_v19  ;;  %v10345_v17 = vld [vmem:[%s7165_s30 + $0xb20] sm:$0xff] }
 0x33e   : > { %v2533_v62 = vadd.f32 %v2021_v11, %v10258_v53  ;;  %v6609_v44 = vpop.eup %6608  ;;  %5594 = vst [vmem:[%s7311_s17 + $0xa80] sm:$0xff] %v5082_v52  ;;  %v4571_v34 = vmul.f32 0.5, %v4059_v20  ;;  %v4061_v27 = vadd.f32 1.0, %v6607_v48  ;;  %v2534_v10 = vadd.f32 %v2022_v58, %v10268_v41 }
 0x33f   : > { %6618 = vtanh.f32 %v3043_v16  ;;  %v6611_v31 = vpop.eup %6610  ;;  %v4572_v32 = vmul.f32 0.5, %v4060_v54  ;;  %v4062_v40 = vadd.f32 1.0, %v6609_v44  ;;  %v2023_v25 = vmul.f32 0.044715, %v1511_v5 }
 0x340   : > { %6620 = vtanh.f32 %v3044_v6  ;;  %v3045_v29 = vmul.f32 0.7978846, %v2533_v62  ;;  %v5083_v55 = vmul.f32 %v4571_v34, %v10180_v21  ;;  %v4573_v56 = vmul.f32 0.5, %v4061_v27 }
 0x341   : > { %v4063_v36 = vadd.f32 1.0, %v6611_v31  ;;  %v3046_v30 = vmul.f32 0.7978846, %v2534_v10  ;;  %v5084_v37 = vmul.f32 %v4572_v32, %v10183_v57  ;;  %v4574_v14 = vmul.f32 0.5, %v4062_v40 }
 0x342   : > { %6622 = vtanh.f32 %v3045_v29  ;;  %5595 = vst [vmem:[%s7311_s17 + $0xa88] sm:$0xff] %v5083_v55  ;;  %v5085_v21 = vmul.f32 %v4573_v56, %v10188_v51  ;;  %v1000_v43 = vmul.f32 %v10299_v15, %v10299_v15  ;;  %v2535_v9 = vadd.f32 %v2023_v25, %v10278_v47 }
 0x343   : > { %v4575_v35 = vmul.f32 0.5, %v4063_v36  ;;  %6624 = vtanh.f32 %v3046_v30  ;;  %5596 = vst [vmem:[%s7311_s17 + $0xa90] sm:$0xff] %v5084_v37  ;;  %v5086_v57 = vmul.f32 %v4574_v14, %v10193_v49  ;;  %v1001_v8 = vmul.f32 %v10303_v61, %v10303_v61 }
 0x344   : > { %v1002_v33 = vmul.f32 %v10306_v24, %v10306_v24  ;;  %5597 = vst [vmem:[%s7311_s17 + $0xa98] sm:$0xff] %v5085_v21  ;;  %v1512_v13 = vmul.f32 %v1000_v43, %v10299_v15  ;;  %v1003_v49 = vmul.f32 %v10310_v60, %v10310_v60  ;;  %v1004_v45 = vmul.f32 %v10313_v12, %v10313_v12 }
 0x345   : > { %v6613_v51 = vpop.eup %6612  ;;  %v5087_v28 = vmul.f32 %v4575_v35, %v10202_v42  ;;  %5598 = vst [vmem:[%s7311_s17 + $0xaa0] sm:$0xff] %v5086_v57  ;;  %v3047_v39 = vmul.f32 0.7978846, %v2535_v9  ;;  %v1513_v23 = vmul.f32 %v1001_v8, %v10303_v61  ;;  %v1005_v38 = vmul.f32 %v10327_v1, %v10327_v1  ;;  %v10360_v57 = vld [vmem:[%s7165_s30 + $0xb28] sm:$0xff] }
 0x346   : > { %v4064_v7 = vadd.f32 1.0, %v6613_v51  ;;  %v1514_v50 = vmul.f32 %v1002_v33, %v10306_v24  ;;  %v2024_v26 = vmul.f32 0.044715, %v1512_v13  ;;  %v1515_v46 = vmul.f32 %v1003_v49, %v10310_v60  ;;  %v10367_v13 = vld [vmem:[%s7165_s30 + $0xb38] sm:$0xff] }
 0x347   : > { %5599 = vst [vmem:[%s7311_s17 + $0xaa8] sm:$0xff] %v5087_v28  ;;  %v1516_v42 = vmul.f32 %v1004_v45, %v10313_v12  ;;  %6626 = vtanh.f32 %v3047_v39  ;;  %v2025_v4 = vmul.f32 0.044715, %v1513_v23  ;;  %v1517_v2 = vmul.f32 %v1005_v38, %v10327_v1  ;;  %v10364_v28 = vld [vmem:[%s7165_s30 + $0xb30] sm:$0xff] }
 0x348   : > { %v4576_v19 = vmul.f32 0.5, %v4064_v7  ;;  %v2026_v59 = vmul.f32 0.044715, %v1514_v50  ;;  %v2536_v11 = vadd.f32 %v2024_v26, %v10299_v15  ;;  %v2027_v58 = vmul.f32 0.044715, %v1515_v46  ;;  %v10373_v7 = vld [vmem:[%s7165_s30 + $0xb40] sm:$0xff] }
 0x349   : > { %v2028_v5 = vmul.f32 0.044715, %v1516_v42  ;;  %v6615_v52 = vpop.eup %6614  ;;  %v2537_v16 = vadd.f32 %v2025_v4, %v10303_v61  ;;  %v1006_v54 = vmul.f32 %v10345_v17, %v10345_v17  ;;  %v2029_v43 = vmul.f32 0.044715, %v1517_v2 }
 0x34a   : > { %v5088_v20 = vmul.f32 %v4576_v19, %v10214_v22  ;;  %v2538_v48 = vadd.f32 %v2026_v59, %v10306_v24  ;;  %v6617_v6 = vpop.eup %6616  ;;  %v4065_v62 = vadd.f32 1.0, %v6615_v52  ;;  %v3048_v44 = vmul.f32 0.7978846, %v2536_v11  ;;  %v10391_v59 = vld [vmem:[%s7165_s30 + $0xb48] sm:$0xff]  ;;  %v10394_v11 = vld [vmem:[%s7165_s30 + $0xb50] sm:$0xff] }
 0x34b   : > { %v2539_v34 = vadd.f32 %v2027_v58, %v10310_v60  ;;  %v2540_v27 = vadd.f32 %v2028_v5, %v10313_v12  ;;  %v4066_v31 = vadd.f32 1.0, %v6617_v6  ;;  %v3049_v32 = vmul.f32 0.7978846, %v2537_v16 }
 0x34c   : > { %v6619_v10 = vpop.eup %6618  ;;  %5600 = vst [vmem:[%s7311_s17 + $0xab0] sm:$0xff] %v5088_v20  ;;  %v3050_v40 = vmul.f32 0.7978846, %v2538_v48  ;;  %v1518_v22 = vmul.f32 %v1006_v54, %v10345_v17  ;;  %v4577_v55 = vmul.f32 0.5, %v4065_v62  ;;  %6628 = vtanh.f32 %v3048_v44  ;;  %v10407_v44 = vld [vmem:[%s7165_s30 + $0xb58] sm:$0xff] }
 0x34d   : > { %v6621_v29 = vpop.eup %6620  ;;  %v4067_v56 = vadd.f32 1.0, %v6619_v10  ;;  %v3051_v36 = vmul.f32 0.7978846, %v2539_v34  ;;  %v4578_v30 = vmul.f32 0.5, %v4066_v31  ;;  %6630 = vtanh.f32 %v3049_v32  ;;  %v10411_v31 = vld [vmem:[%s7165_s30 + $0xb60] sm:$0xff] }
 0x34e   : > { %v4068_v37 = vadd.f32 1.0, %v6621_v29  ;;  %v3052_v14 = vmul.f32 0.7978846, %v2540_v27  ;;  %v5089_v21 = vmul.f32 %v4577_v55, %v10235_v3  ;;  %6632 = vtanh.f32 %v3050_v40 }
 0x34f   : > { %v6623_v25 = vpop.eup %6622  ;;  %v4579_v35 = vmul.f32 0.5, %v4067_v56  ;;  %v5090_v8 = vmul.f32 %v4578_v30, %v10240_v18  ;;  %6634 = vtanh.f32 %v3051_v36  ;;  %v2541_v45 = vadd.f32 %v2029_v43, %v10327_v1 }
 0x350   : > { %v6625_v9 = vpop.eup %6624  ;;  %v4580_v33 = vmul.f32 0.5, %v4068_v37  ;;  %v4069_v51 = vadd.f32 1.0, %v6623_v25  ;;  %5601 = vst [vmem:[%s7311_s17 + $0xab8] sm:$0xff] %v5089_v21  ;;  %6636 = vtanh.f32 %v3052_v14  ;;  %v2030_v23 = vmul.f32 0.044715, %v1518_v22 }
 0x351   : > { %v5091_v3 = vmul.f32 %v4579_v35, %v10244_v63  ;;  %v4070_v49 = vadd.f32 1.0, %v6625_v9  ;;  %5602 = vst [vmem:[%s7311_s17 + $0xac0] sm:$0xff] %v5090_v8  ;;  %v1007_v50 = vmul.f32 %v10360_v57, %v10360_v57  ;;  %v3053_v63 = vmul.f32 0.7978846, %v2541_v45 }
 0x352   : > { %v5092_v18 = vmul.f32 %v4580_v33, %v10247_v0  ;;  %v4581_v39 = vmul.f32 0.5, %v4069_v51  ;;  %v1008_v46 = vmul.f32 %v10364_v28, %v10364_v28  ;;  %v1009_v42 = vmul.f32 %v10367_v13, %v10367_v13 }
 0x353   : > { %5603 = vst [vmem:[%s7311_s17 + $0xac8] sm:$0xff] %v5091_v3  ;;  %v4582_v26 = vmul.f32 0.5, %v4070_v49  ;;  %v2542_v0 = vadd.f32 %v2030_v23, %v10345_v17  ;;  %v1519_v19 = vmul.f32 %v1007_v50, %v10360_v57  ;;  %v1010_v4 = vmul.f32 %v10373_v7, %v10373_v7 }
 0x354   : > { %5604 = vst [vmem:[%s7311_s17 + $0xad0] sm:$0xff] %v5092_v18  ;;  %v5093_v38 = vmul.f32 %v4581_v39, %v10258_v53  ;;  %v6627_v58 = vpop.eup %6626  ;;  %6638 = vtanh.f32 %v3053_v63  ;;  %v1520_v2 = vmul.f32 %v1008_v46, %v10364_v28  ;;  %v1521_v53 = vmul.f32 %v1009_v42, %v10367_v13  ;;  %v10427_v42 = vld [vmem:[%s7165_s30 + $0xb68] sm:$0xff] }
 0x355   : > { %v5094_v5 = vmul.f32 %v4582_v26, %v10268_v41  ;;  %v4071_v52 = vadd.f32 1.0, %v6627_v58  ;;  %v3054_v20 = vmul.f32 0.7978846, %v2542_v0  ;;  %v2031_v16 = vmul.f32 0.044715, %v1519_v19 }
 0x356   : > { %5605 = vst [vmem:[%s7311_s17 + $0xad8] sm:$0xff] %v5093_v38  ;;  %v1522_v48 = vmul.f32 %v1010_v4, %v10373_v7  ;;  %v2032_v54 = vmul.f32 0.044715, %v1520_v2  ;;  %v2033_v6 = vmul.f32 0.044715, %v1521_v53  ;;  %v1011_v62 = vmul.f32 %v10391_v59, %v10391_v59  ;;  %v10436_v53 = vld [vmem:[%s7165_s30 + $0xb70] sm:$0xff] }
 0x357   : > { %5606 = vst [vmem:[%s7311_s17 + $0xae0] sm:$0xff] %v5094_v5  ;;  %v1012_v41 = vmul.f32 %v10394_v11, %v10394_v11  ;;  %v4583_v34 = vmul.f32 0.5, %v4071_v52  ;;  %6640 = vtanh.f32 %v3054_v20  ;;  %v2543_v27 = vadd.f32 %v2031_v16, %v10360_v57  ;;  %v10439_v52 = vld [vmem:[%s7165_s30 + $0xb78] sm:$0xff] }
 0x358   : > { %v2034_v10 = vmul.f32 0.044715, %v1522_v48  ;;  %v2544_v32 = vadd.f32 %v2032_v54, %v10364_v28  ;;  %v2545_v40 = vadd.f32 %v2033_v6, %v10367_v13  ;;  %v1523_v22 = vmul.f32 %v1011_v62, %v10391_v59  ;;  %v10446_v48 = vld [vmem:[%s7165_s30 + $0xb80] sm:$0xff] }
 0x359   : > { %v1524_v29 = vmul.f32 %v1012_v41, %v10394_v11  ;;  %v6629_v55 = vpop.eup %6628  ;;  %v5095_v56 = vmul.f32 %v4583_v34, %v10278_v47  ;;  %v3055_v36 = vmul.f32 0.7978846, %v2543_v27  ;;  %v1013_v37 = vmul.f32 %v10407_v44, %v10407_v44 }
 0x35a   : > { %v2546_v30 = vadd.f32 %v2034_v10, %v10373_v7  ;;  %v6631_v14 = vpop.eup %6630  ;;  %v4072_v25 = vadd.f32 1.0, %v6629_v55  ;;  %v3056_v21 = vmul.f32 0.7978846, %v2544_v32  ;;  %v3057_v35 = vmul.f32 0.7978846, %v2545_v40 }
 0x35b   : > { %v1014_v43 = vmul.f32 %v10411_v31, %v10411_v31  ;;  %v6633_v9 = vpop.eup %6632  ;;  %5607 = vst [vmem:[%s7311_s17 + $0xae8] sm:$0xff] %v5095_v56  ;;  %v4073_v8 = vadd.f32 1.0, %v6631_v14  ;;  %6642 = vtanh.f32 %v3055_v36  ;;  %v2035_v47 = vmul.f32 0.044715, %v1523_v22 }
 0x35c   : > { %v3058_v33 = vmul.f32 0.7978846, %v2546_v30  ;;  %v6635_v51 = vpop.eup %6634  ;;  %v4584_v3 = vmul.f32 0.5, %v4072_v25  ;;  %v4074_v49 = vadd.f32 1.0, %v6633_v9  ;;  %6644 = vtanh.f32 %v3056_v21  ;;  %v10464_v30 = vld [vmem:[%s7165_s30 + $0xb88] sm:$0xff] }
 0x35d   : > { %v2036_v45 = vmul.f32 0.044715, %v1524_v29  ;;  %v6637_v18 = vpop.eup %6636  ;;  %v4585_v39 = vmul.f32 0.5, %v4073_v8  ;;  %v4075_v23 = vadd.f32 1.0, %v6635_v51  ;;  %6646 = vtanh.f32 %v3057_v35 }
 0x35e   : > { %v2547_v50 = vadd.f32 %v2035_v47, %v10391_v59  ;;  %v5096_v26 = vmul.f32 %v4584_v3, %v10299_v15  ;;  %v4586_v63 = vmul.f32 0.5, %v4074_v49  ;;  %v4076_v46 = vadd.f32 1.0, %v6637_v18 }
 0x35f   : > { %6648 = vtanh.f32 %v3058_v33  ;;  %v5097_v38 = vmul.f32 %v4585_v39, %v10303_v61  ;;  %v4587_v0 = vmul.f32 0.5, %v4075_v23  ;;  %v2548_v4 = vadd.f32 %v2036_v45, %v10394_v11 }
 0x360   : > { %v3059_v19 = vmul.f32 0.7978846, %v2547_v50  ;;  %5608 = vst [vmem:[%s7311_s17 + $0xaf0] sm:$0xff] %v5096_v26  ;;  %v5098_v58 = vmul.f32 %v4586_v63, %v10306_v24  ;;  %v4588_v5 = vmul.f32 0.5, %v4076_v46  ;;  %v1525_v15 = vmul.f32 %v1013_v37, %v10407_v44  ;;  %v10467_v37 = vld [vmem:[%s7165_s30 + $0xb90] sm:$0xff] }
 0x361   : > { %v1526_v2 = vmul.f32 %v1014_v43, %v10411_v31  ;;  %v6639_v61 = vpop.eup %6638  ;;  %5609 = vst [vmem:[%s7311_s17 + $0xaf8] sm:$0xff] %v5097_v38  ;;  %v5099_v20 = vmul.f32 %v4587_v0, %v10310_v60  ;;  %v3060_v16 = vmul.f32 0.7978846, %v2548_v4  ;;  %v1015_v24 = vmul.f32 %v10427_v42, %v10427_v42 }
 0x362   : > { %6650 = vtanh.f32 %v3059_v19  ;;  %5610 = vst [vmem:[%s7311_s17 + $0xb00] sm:$0xff] %v5098_v58  ;;  %v5100_v54 = vmul.f32 %v4588_v5, %v10313_v12  ;;  %v4077_v6 = vadd.f32 1.0, %v6639_v61  ;;  %v2037_v62 = vmul.f32 0.044715, %v1525_v15 }
 0x363   : > { %v2038_v41 = vmul.f32 0.044715, %v1526_v2  ;;  %5611 = vst [vmem:[%s7311_s17 + $0xb08] sm:$0xff] %v5099_v20  ;;  %6652 = vtanh.f32 %v3060_v16  ;;  %v1527_v60 = vmul.f32 %v1015_v24, %v10427_v42  ;;  %v1016_v34 = vmul.f32 %v10436_v53, %v10436_v53  ;;  %v10485_v24 = vld [vmem:[%s7165_s30 + $0xb98] sm:$0xff] }
 0x364   : > { %v1017_v27 = vmul.f32 %v10439_v52, %v10439_v52  ;;  %v6641_v10 = vpop.eup %6640  ;;  %5612 = vst [vmem:[%s7311_s17 + $0xb10] sm:$0xff] %v5100_v54  ;;  %v4589_v32 = vmul.f32 0.5, %v4077_v6  ;;  %v2549_v12 = vadd.f32 %v2037_v62, %v10407_v44  ;;  %v1018_v22 = vmul.f32 %v10446_v48, %v10446_v48 }
 0x365   : > { %v2550_v40 = vadd.f32 %v2038_v41, %v10411_v31  ;;  %v4078_v29 = vadd.f32 1.0, %v6641_v10  ;;  %v2039_v55 = vmul.f32 0.044715, %v1527_v60  ;;  %v1528_v56 = vmul.f32 %v1016_v34, %v10436_v53  ;;  %v10490_v60 = vld [vmem:[%s7165_s30 + $0xba0] sm:$0xff]  ;;  %v10496_v10 = vld [vmem:[%s7165_s30 + $0xba8] sm:$0xff] }
 0x366   : > { %v1529_v36 = vmul.f32 %v1017_v27, %v10439_v52  ;;  %v5101_v14 = vmul.f32 %v4589_v32, %v10327_v1  ;;  %v3061_v25 = vmul.f32 0.7978846, %v2549_v12  ;;  %v1530_v35 = vmul.f32 %v1018_v22, %v10446_v48  ;;  %v10499_v32 = vld [vmem:[%s7165_s30 + $0xbb0] sm:$0xff] }
 0x367   : > { %v3062_v21 = vmul.f32 0.7978846, %v2550_v40  ;;  %v4590_v43 = vmul.f32 0.5, %v4078_v29  ;;  %v2551_v9 = vadd.f32 %v2039_v55, %v10427_v42  ;;  %v2040_v8 = vmul.f32 0.044715, %v1528_v56 }
 0x368   : > { %v2041_v33 = vmul.f32 0.044715, %v1529_v36  ;;  %v6643_v47 = vpop.eup %6642  ;;  %5613 = vst [vmem:[%s7311_s17 + $0xb18] sm:$0xff] %v5101_v14  ;;  %6654 = vtanh.f32 %v3061_v25  ;;  %v2042_v51 = vmul.f32 0.044715, %v1530_v35  ;;  %v1019_v3 = vmul.f32 %v10464_v30, %v10464_v30  ;;  %v10519_v35 = vld [vmem:[%s7165_s30 + $0xbc0] sm:$0xff] }
 0x369   : > { %v1020_v1 = vmul.f32 %v10467_v37, %v10467_v37  ;;  %v6645_v49 = vpop.eup %6644  ;;  %v5102_v45 = vmul.f32 %v4590_v43, %v10345_v17  ;;  %v4079_v18 = vadd.f32 1.0, %v6643_v47  ;;  %6656 = vtanh.f32 %v3062_v21  ;;  %v10516_v21 = vld [vmem:[%s7165_s30 + $0xbb8] sm:$0xff] }
 0x36a   : > { %v3063_v39 = vmul.f32 0.7978846, %v2551_v9  ;;  %v6647_v23 = vpop.eup %6646  ;;  %v4080_v50 = vadd.f32 1.0, %v6645_v49  ;;  %v2552_v26 = vadd.f32 %v2040_v8, %v10436_v53  ;;  %v2553_v63 = vadd.f32 %v2041_v33, %v10439_v52 }
 0x36b   : > { %v2554_v46 = vadd.f32 %v2042_v51, %v10446_v48  ;;  %5614 = vst [vmem:[%s7311_s17 + $0xb20] sm:$0xff] %v5102_v45  ;;  %v4591_v0 = vmul.f32 0.5, %v4079_v18  ;;  %v4081_v19 = vadd.f32 1.0, %v6647_v23  ;;  %v1531_v17 = vmul.f32 %v1019_v3, %v10464_v30 }
 0x36c   : > { %v6649_v38 = vpop.eup %6648  ;;  %6658 = vtanh.f32 %v3063_v39  ;;  %v4592_v4 = vmul.f32 0.5, %v4080_v50  ;;  %v3064_v5 = vmul.f32 0.7978846, %v2552_v26  ;;  %v3065_v15 = vmul.f32 0.7978846, %v2553_v63 }
 0x36d   : > { %v4082_v58 = vadd.f32 1.0, %v6649_v38  ;;  %v5103_v2 = vmul.f32 %v4591_v0, %v10360_v57  ;;  %v4593_v61 = vmul.f32 0.5, %v4081_v19  ;;  %v3066_v20 = vmul.f32 0.7978846, %v2554_v46 }
 0x36e   : > { %v2043_v16 = vmul.f32 0.044715, %v1531_v17  ;;  %v5104_v6 = vmul.f32 %v4592_v4, %v10364_v28  ;;  %6660 = vtanh.f32 %v3064_v5  ;;  %v1532_v41 = vmul.f32 %v1020_v1, %v10467_v37 }
 0x36f   : > { %v6651_v54 = vpop.eup %6650  ;;  %v4594_v62 = vmul.f32 0.5, %v4082_v58  ;;  %5615 = vst [vmem:[%s7311_s17 + $0xb28] sm:$0xff] %v5103_v2  ;;  %v5105_v57 = vmul.f32 %v4593_v61, %v10367_v13  ;;  %6662 = vtanh.f32 %v3065_v15  ;;  %v1021_v13 = vmul.f32 %v10485_v24, %v10485_v24 }
 0x370   : > { %v4083_v34 = vadd.f32 1.0, %v6651_v54  ;;  %v2555_v27 = vadd.f32 %v2043_v16, %v10464_v30  ;;  %v6653_v28 = vpop.eup %6652  ;;  %5616 = vst [vmem:[%s7311_s17 + $0xb30] sm:$0xff] %v5104_v6  ;;  %6664 = vtanh.f32 %v3066_v20  ;;  %v2044_v40 = vmul.f32 0.044715, %v1532_v41  ;;  %v10540_v6 = vld [vmem:[%s7165_s30 + $0xbc8] sm:$0xff] }
 0x371   : > { %v5106_v12 = vmul.f32 %v4594_v62, %v10373_v7  ;;  %5617 = vst [vmem:[%s7311_s17 + $0xb38] sm:$0xff] %v5105_v57  ;;  %v4084_v29 = vadd.f32 1.0, %v6653_v28  ;;  %v1022_v56 = vmul.f32 %v10490_v60, %v10490_v60  ;;  %v1533_v14 = vmul.f32 %v1021_v13, %v10485_v24  ;;  %v10549_v13 = vld [vmem:[%s7165_s30 + $0xbd8] sm:$0xff] }
 0x372   : > { %v4595_v22 = vmul.f32 0.5, %v4083_v34  ;;  %v3067_v55 = vmul.f32 0.7978846, %v2555_v27  ;;  %v2556_v36 = vadd.f32 %v2044_v40, %v10467_v37  ;;  %v1023_v7 = vmul.f32 %v10496_v10, %v10496_v10  ;;  %v10546_v40 = vld [vmem:[%s7165_s30 + $0xbd0] sm:$0xff] }
 0x373   : > { %5618 = vst [vmem:[%s7311_s17 + $0xb40] sm:$0xff] %v5106_v12  ;;  %v1024_v25 = vmul.f32 %v10499_v32, %v10499_v32  ;;  %v4596_v9 = vmul.f32 0.5, %v4084_v29  ;;  %v1534_v8 = vmul.f32 %v1022_v56, %v10490_v60  ;;  %v2045_v47 = vmul.f32 0.044715, %v1533_v14 }
 0x374   : > { %v5107_v43 = vmul.f32 %v4595_v22, %v10391_v59  ;;  %6666 = vtanh.f32 %v3067_v55  ;;  %v3068_v33 = vmul.f32 0.7978846, %v2556_v36  ;;  %v1535_v51 = vmul.f32 %v1023_v7, %v10496_v10 }
 0x375   : > { %v1536_v3 = vmul.f32 %v1024_v25, %v10499_v32  ;;  %v6655_v1 = vpop.eup %6654  ;;  %v5108_v49 = vmul.f32 %v4596_v9, %v10394_v11  ;;  %v2046_v45 = vmul.f32 0.044715, %v1534_v8  ;;  %v1025_v18 = vmul.f32 %v10516_v21, %v10516_v21  ;;  %v10563_v8 = vld [vmem:[%s7165_s30 + $0xbe0] sm:$0xff] }
 0x376   : > { %5619 = vst [vmem:[%s7311_s17 + $0xb48] sm:$0xff] %v5107_v43  ;;  %v1026_v59 = vmul.f32 %v10519_v35, %v10519_v35  ;;  %v6657_v39 = vpop.eup %6656  ;;  %v4085_v23 = vadd.f32 1.0, %v6655_v1  ;;  %6668 = vtanh.f32 %v3068_v33  ;;  %v2557_v50 = vadd.f32 %v2045_v47, %v10485_v24  ;;  %v10567_v1 = vld [vmem:[%s7165_s30 + $0xbe8] sm:$0xff] }
 0x377   : > { %v2047_v26 = vmul.f32 0.044715, %v1535_v51  ;;  %5620 = vst [vmem:[%s7311_s17 + $0xb50] sm:$0xff] %v5108_v49  ;;  %v4086_v63 = vadd.f32 1.0, %v6657_v39  ;;  %v2558_v46 = vadd.f32 %v2046_v45, %v10490_v60  ;;  %v2048_v38 = vmul.f32 0.044715, %v1536_v3 }
 0x378   : > { %v1537_v11 = vmul.f32 %v1025_v18, %v10516_v21  ;;  %v4597_v19 = vmul.f32 0.5, %v4085_v23  ;;  %v3069_v17 = vmul.f32 0.7978846, %v2557_v50  ;;  %v1538_v58 = vmul.f32 %v1026_v59, %v10519_v35  ;;  %v10572_v39 = vld [vmem:[%s7165_s30 + $0xbf0] sm:$0xff] }
 0x379   : > { %v6659_v0 = vpop.eup %6658  ;;  %v2559_v4 = vadd.f32 %v2047_v26, %v10496_v10  ;;  %v4598_v5 = vmul.f32 0.5, %v4086_v63  ;;  %v3070_v2 = vmul.f32 0.7978846, %v2558_v46  ;;  %v2560_v61 = vadd.f32 %v2048_v38, %v10499_v32 }
 0x37a   : > { %v4087_v15 = vadd.f32 1.0, %v6659_v0  ;;  %v5109_v20 = vmul.f32 %v4597_v19, %v10407_v44  ;;  %6670 = vtanh.f32 %v3069_v17  ;;  %v2049_v54 = vmul.f32 0.044715, %v1537_v11  ;;  %v10588_v17 = vld [vmem:[%s7165_s30 + $0xbf8] sm:$0xff] }
 0x37b   : > { %v3071_v16 = vmul.f32 0.7978846, %v2559_v4  ;;  %v6661_v62 = vpop.eup %6660  ;;  %v5110_v41 = vmul.f32 %v4598_v5, %v10411_v31  ;;  %6672 = vtanh.f32 %v3070_v2  ;;  %v3072_v34 = vmul.f32 0.7978846, %v2560_v61 }
 0x37c   : > { %v4599_v57 = vmul.f32 0.5, %v4087_v15  ;;  %v6663_v27 = vpop.eup %6662  ;;  %5621 = vst [vmem:[%s7311_s17 + $0xb58] sm:$0xff] %v5109_v20  ;;  %v4088_v28 = vadd.f32 1.0, %v6661_v62  ;;  %v2561_v44 = vadd.f32 %v2049_v54, %v10516_v21  ;;  %v2050_v12 = vmul.f32 0.044715, %v1538_v58 }
 0x37d   : > { %6674 = vtanh.f32 %v3071_v16  ;;  %v6665_v22 = vpop.eup %6664  ;;  %5622 = vst [vmem:[%s7311_s17 + $0xb60] sm:$0xff] %v5110_v41  ;;  %v4089_v29 = vadd.f32 1.0, %v6663_v27  ;;  %v1027_v55 = vmul.f32 %v10540_v6, %v10540_v6  ;;  %v1029_v9 = vmul.f32 %v10549_v13, %v10549_v13 }
 0x37e   : > { %v5111_v31 = vmul.f32 %v4599_v57, %v10427_v42  ;;  %6676 = vtanh.f32 %v3072_v34  ;;  %v4600_v56 = vmul.f32 0.5, %v4088_v28  ;;  %v4090_v36 = vadd.f32 1.0, %v6665_v22 }
 0x37f   : > { %v3073_v14 = vmul.f32 0.7978846, %v2561_v44  ;;  %v2562_v7 = vadd.f32 %v2050_v12, %v10519_v35  ;;  %v4601_v25 = vmul.f32 0.5, %v4089_v29  ;;  %v1539_v43 = vmul.f32 %v1027_v55, %v10540_v6 }
 0x380   : > { %5623 = vst [vmem:[%s7311_s17 + $0xb68] sm:$0xff] %v5111_v31  ;;  %v1028_v42 = vmul.f32 %v10546_v40, %v10546_v40  ;;  %v5112_v47 = vmul.f32 %v4600_v56, %v10436_v53  ;;  %v4602_v51 = vmul.f32 0.5, %v4090_v36  ;;  %v1541_v53 = vmul.f32 %v1029_v9, %v10549_v13 }
 0x381   : > { %v6667_v33 = vpop.eup %6666  ;;  %6678 = vtanh.f32 %v3073_v14  ;;  %v3074_v3 = vmul.f32 0.7978846, %v2562_v7  ;;  %v5113_v49 = vmul.f32 %v4601_v25, %v10439_v52  ;;  %v2051_v18 = vmul.f32 0.044715, %v1539_v43 }
 0x382   : > { %v4091_v45 = vadd.f32 1.0, %v6667_v33  ;;  %v1540_v59 = vmul.f32 %v1028_v42, %v10546_v40  ;;  %5624 = vst [vmem:[%s7311_s17 + $0xb70] sm:$0xff] %v5112_v47  ;;  %v5114_v23 = vmul.f32 %v4602_v51, %v10446_v48  ;;  %v1030_v50 = vmul.f32 %v10563_v8, %v10563_v8  ;;  %v10604_v42 = vld [vmem:[%s7165_s30 + $0xc00] sm:$0xff]  ;;  %v10609_v51 = vld [vmem:[%s7165_s30 + $0xc08] sm:$0xff] }
 0x383   : > { %6680 = vtanh.f32 %v3074_v3  ;;  %v6669_v26 = vpop.eup %6668  ;;  %5625 = vst [vmem:[%s7311_s17 + $0xb78] sm:$0xff] %v5113_v49  ;;  %v2563_v63 = vadd.f32 %v2051_v18, %v10540_v6  ;;  %v1031_v38 = vmul.f32 %v10567_v1, %v10567_v1  ;;  %v2053_v0 = vmul.f32 0.044715, %v1541_v53  ;;  %v10612_v3 = vld [vmem:[%s7165_s30 + $0xc10] sm:$0xff] }
 0x384   : > { %v4603_v52 = vmul.f32 0.5, %v4091_v45  ;;  %v2052_v46 = vmul.f32 0.044715, %v1540_v59  ;;  %5626 = vst [vmem:[%s7311_s17 + $0xb80] sm:$0xff] %v5114_v23  ;;  %v4092_v11 = vadd.f32 1.0, %v6669_v26  ;;  %v1542_v48 = vmul.f32 %v1030_v50, %v10563_v8  ;;  %v10620_v26 = vld [vmem:[%s7165_s30 + $0xc18] sm:$0xff] }
 0x385   : > { %v1032_v19 = vmul.f32 %v10572_v39, %v10572_v39  ;;  %v3075_v58 = vmul.f32 0.7978846, %v2563_v63  ;;  %v1543_v15 = vmul.f32 %v1031_v38, %v10567_v1  ;;  %v2565_v61 = vadd.f32 %v2053_v0, %v10549_v13 }
 0x386   : > { %v5115_v4 = vmul.f32 %v4603_v52, %v10464_v30  ;;  %v2564_v5 = vadd.f32 %v2052_v46, %v10546_v40  ;;  %v4604_v2 = vmul.f32 0.5, %v4092_v11  ;;  %v2054_v20 = vmul.f32 0.044715, %v1542_v48  ;;  %v10623_v52 = vld [vmem:[%s7165_s30 + $0xc20] sm:$0xff] }
 0x387   : > { %v1544_v16 = vmul.f32 %v1032_v19, %v10572_v39  ;;  %v6671_v54 = vpop.eup %6670  ;;  %6682 = vtanh.f32 %v3075_v58  ;;  %v2055_v41 = vmul.f32 0.044715, %v1543_v15  ;;  %v1033_v30 = vmul.f32 %v10588_v17, %v10588_v17 }
 0x388   : > { %5627 = vst [vmem:[%s7311_s17 + $0xb88] sm:$0xff] %v5115_v4  ;;  %v3076_v62 = vmul.f32 0.7978846, %v2564_v5  ;;  %v6673_v57 = vpop.eup %6672  ;;  %v5116_v34 = vmul.f32 %v4604_v2, %v10467_v37  ;;  %v4093_v27 = vadd.f32 1.0, %v6671_v54  ;;  %v3077_v28 = vmul.f32 0.7978846, %v2565_v61 }
 0x389   : > { %v2566_v44 = vadd.f32 %v2054_v20, %v10563_v8  ;;  %v4094_v22 = vadd.f32 1.0, %v6673_v57  ;;  %v2567_v31 = vadd.f32 %v2055_v41, %v10567_v1  ;;  %v2056_v29 = vmul.f32 0.044715, %v1544_v16  ;;  %v10642_v5 = vld [vmem:[%s7165_s30 + $0xc28] sm:$0xff] }
 0x38a   : > { %v6675_v12 = vpop.eup %6674  ;;  %6684 = vtanh.f32 %v3076_v62  ;;  %5628 = vst [vmem:[%s7311_s17 + $0xb90] sm:$0xff] %v5116_v34  ;;  %v4605_v56 = vmul.f32 0.5, %v4093_v27  ;;  %v1545_v47 = vmul.f32 %v1033_v30, %v10588_v17  ;;  %v1034_v50 = vmul.f32 %v10604_v42, %v10604_v42  ;;  %v10648_v30 = vld [vmem:[%s7165_s30 + $0xc30] sm:$0xff] }
 0x38b   : > { %v6677_v55 = vpop.eup %6676  ;;  %v4095_v36 = vadd.f32 1.0, %v6675_v12  ;;  %6686 = vtanh.f32 %v3077_v28  ;;  %v3078_v14 = vmul.f32 0.7978846, %v2566_v44  ;;  %v4606_v37 = vmul.f32 0.5, %v4094_v22 }
 0x38c   : > { %v4096_v7 = vadd.f32 1.0, %v6677_v55  ;;  %v3079_v25 = vmul.f32 0.7978846, %v2567_v31  ;;  %v2568_v43 = vadd.f32 %v2056_v29, %v10572_v39  ;;  %v5117_v9 = vmul.f32 %v4605_v56, %v10485_v24 }
 0x38d   : > { %v4607_v33 = vmul.f32 0.5, %v4095_v36  ;;  %6688 = vtanh.f32 %v3078_v14  ;;  %v5118_v45 = vmul.f32 %v4606_v37, %v10490_v60  ;;  %v2057_v53 = vmul.f32 0.044715, %v1545_v47 }
 0x38e   : > { %v6679_v49 = vpop.eup %6678  ;;  %v4608_v18 = vmul.f32 0.5, %v4096_v7  ;;  %6690 = vtanh.f32 %v3079_v25  ;;  %v3080_v59 = vmul.f32 0.7978846, %v2568_v43  ;;  %5629 = vst [vmem:[%s7311_s17 + $0xb98] sm:$0xff] %v5117_v9  ;;  %v1035_v46 = vmul.f32 %v10609_v51, %v10609_v51 }
 0x38f   : > { %v5119_v24 = vmul.f32 %v4607_v33, %v10496_v10  ;;  %v4097_v23 = vadd.f32 1.0, %v6679_v49  ;;  %5630 = vst [vmem:[%s7311_s17 + $0xba0] sm:$0xff] %v5118_v45  ;;  %v1036_v10 = vmul.f32 %v10612_v3, %v10612_v3  ;;  %v2569_v0 = vadd.f32 %v2057_v53, %v10588_v17 }
 0x390   : > { %v6681_v63 = vpop.eup %6680  ;;  %v5120_v60 = vmul.f32 %v4608_v18, %v10499_v32  ;;  %6692 = vtanh.f32 %v3080_v59  ;;  %v1546_v48 = vmul.f32 %v1034_v50, %v10604_v42  ;;  %v1547_v19 = vmul.f32 %v1035_v46, %v10609_v51 }
 0x391   : > { %5631 = vst [vmem:[%s7311_s17 + $0xba8] sm:$0xff] %v5119_v24  ;;  %v4609_v38 = vmul.f32 0.5, %v4097_v23  ;;  %v4098_v11 = vadd.f32 1.0, %v6681_v63  ;;  %v1548_v32 = vmul.f32 %v1036_v10, %v10612_v3  ;;  %v1037_v4 = vmul.f32 %v10620_v26, %v10620_v26  ;;  %v10671_v10 = vld [vmem:[%s7165_s30 + $0xc40] sm:$0xff] }
 0x392   : > { %5632 = vst [vmem:[%s7311_s17 + $0xbb0] sm:$0xff] %v5120_v60  ;;  %v1038_v58 = vmul.f32 %v10623_v52, %v10623_v52  ;;  %v3081_v61 = vmul.f32 0.7978846, %v2569_v0  ;;  %v2058_v20 = vmul.f32 0.044715, %v1546_v48 }
 0x393   : > { %v5121_v15 = vmul.f32 %v4609_v38, %v10516_v21  ;;  %v4610_v2 = vmul.f32 0.5, %v4098_v11  ;;  %v2059_v16 = vmul.f32 0.044715, %v1547_v19  ;;  %v2060_v54 = vmul.f32 0.044715, %v1548_v32 }
 0x394   : > { %v1549_v62 = vmul.f32 %v1037_v4, %v10620_v26  ;;  %v1550_v41 = vmul.f32 %v1038_v58, %v10623_v52  ;;  %v6683_v57 = vpop.eup %6682  ;;  %6694 = vtanh.f32 %v3081_v61  ;;  %v2570_v27 = vadd.f32 %v2058_v20, %v10604_v42  ;;  %v10680_v58 = vld [vmem:[%s7165_s30 + $0xc50] sm:$0xff]  ;;  %v10689_v20 = vld [vmem:[%s7165_s30 + $0xc58] sm:$0xff] }
 0x395   : > { %5633 = vst [vmem:[%s7311_s17 + $0xbb8] sm:$0xff] %v5121_v15  ;;  %v5122_v34 = vmul.f32 %v4610_v2, %v10519_v35  ;;  %v1039_v21 = vmul.f32 %v10642_v5, %v10642_v5  ;;  %v4099_v28 = vadd.f32 1.0, %v6683_v57  ;;  %v2571_v44 = vadd.f32 %v2059_v16, %v10609_v51  ;;  %v10692_v16 = vld [vmem:[%s7165_s30 + $0xc60] sm:$0xff] }
 0x396   : > { %v2572_v12 = vadd.f32 %v2060_v54, %v10612_v3  ;;  %v2061_v22 = vmul.f32 0.044715, %v1549_v62  ;;  %v3082_v29 = vmul.f32 0.7978846, %v2570_v27  ;;  %v2062_v55 = vmul.f32 0.044715, %v1550_v41 }
 0x397   : > { %v6685_v31 = vpop.eup %6684  ;;  %5634 = vst [vmem:[%s7311_s17 + $0xbc0] sm:$0xff] %v5122_v34  ;;  %v1551_v56 = vmul.f32 %v1039_v21, %v10642_v5  ;;  %v1040_v35 = vmul.f32 %v10648_v30, %v10648_v30  ;;  %v4611_v14 = vmul.f32 0.5, %v4099_v28  ;;  %v3083_v7 = vmul.f32 0.7978846, %v2571_v44 }
 0x398   : > { %v6687_v36 = vpop.eup %6686  ;;  %v4100_v37 = vadd.f32 1.0, %v6685_v31  ;;  %v3084_v25 = vmul.f32 0.7978846, %v2572_v12  ;;  %6696 = vtanh.f32 %v3082_v29  ;;  %v2573_v9 = vadd.f32 %v2061_v22, %v10620_v26 }
 0x399   : > { %v4101_v43 = vadd.f32 1.0, %v6687_v36  ;;  %v2574_v33 = vadd.f32 %v2062_v55, %v10623_v52  ;;  %v5123_v49 = vmul.f32 %v4611_v14, %v10540_v6  ;;  %6698 = vtanh.f32 %v3083_v7  ;;  %v10668_v6 = vld [vmem:[%s7165_s30 + $0xc38] sm:$0xff] }
 0x39a   : > { %v6689_v47 = vpop.eup %6688  ;;  %v4612_v45 = vmul.f32 0.5, %v4100_v37  ;;  %v2063_v18 = vmul.f32 0.044715, %v1551_v56  ;;  %6700 = vtanh.f32 %v3084_v25  ;;  %v3085_v53 = vmul.f32 0.7978846, %v2573_v9 }
 0x39b   : > { %v6691_v59 = vpop.eup %6690  ;;  %v4613_v24 = vmul.f32 0.5, %v4101_v43  ;;  %v4102_v23 = vadd.f32 1.0, %v6689_v47  ;;  %5635 = vst [vmem:[%s7311_s17 + $0xbc8] sm:$0xff] %v5123_v49  ;;  %v3086_v60 = vmul.f32 0.7978846, %v2574_v33  ;;  %v1552_v48 = vmul.f32 %v1040_v35, %v10648_v30 }
 0x39c   : > { %v5124_v50 = vmul.f32 %v4612_v45, %v10546_v40  ;;  %v4103_v63 = vadd.f32 1.0, %v6691_v59  ;;  %v2575_v46 = vadd.f32 %v2063_v18, %v10642_v5  ;;  %6702 = vtanh.f32 %v3085_v53  ;;  %v10676_v40 = vld [vmem:[%s7165_s30 + $0xc48] sm:$0xff] }
 0x39d   : > { %v6693_v38 = vpop.eup %6692  ;;  %v5125_v11 = vmul.f32 %v4613_v24, %v10549_v13  ;;  %v4614_v0 = vmul.f32 0.5, %v4102_v23  ;;  %6704 = vtanh.f32 %v3086_v60  ;;  %v2064_v13 = vmul.f32 0.044715, %v1552_v48 }
 0x39e   : > { %5636 = vst [vmem:[%s7311_s17 + $0xbd0] sm:$0xff] %v5124_v50  ;;  %v4615_v19 = vmul.f32 0.5, %v4103_v63  ;;  %v4104_v32 = vadd.f32 1.0, %v6693_v38  ;;  %v3087_v4 = vmul.f32 0.7978846, %v2575_v46  ;;  %v1041_v2 = vmul.f32 %v10668_v6, %v10668_v6 }
 0x39f   : > { %5637 = vst [vmem:[%s7311_s17 + $0xbd8] sm:$0xff] %v5125_v11  ;;  %v5126_v15 = vmul.f32 %v4614_v0, %v10563_v8  ;;  %v1042_v61 = vmul.f32 %v10671_v10, %v10671_v10  ;;  %v1043_v41 = vmul.f32 %v10676_v40, %v10676_v40  ;;  %v2576_v8 = vadd.f32 %v2064_v13, %v10648_v30 }
 0x3a0   : > { %v5127_v54 = vmul.f32 %v4615_v19, %v10567_v1  ;;  %v4616_v62 = vmul.f32 0.5, %v4104_v32  ;;  %6706 = vtanh.f32 %v3087_v4  ;;  %v1553_v57 = vmul.f32 %v1041_v2, %v10668_v6  ;;  %v10723_v32 = vld [vmem:[%s7165_s30 + $0xc68] sm:$0xff] }
 0x3a1   : > { %5638 = vst [vmem:[%s7311_s17 + $0xbe0] sm:$0xff] %v5126_v15  ;;  %v1554_v34 = vmul.f32 %v1042_v61, %v10671_v10  ;;  %v1044_v27 = vmul.f32 %v10680_v58, %v10680_v58  ;;  %v6695_v21 = vpop.eup %6694  ;;  %v1555_v28 = vmul.f32 %v1043_v41, %v10676_v40  ;;  %v1045_v44 = vmul.f32 %v10689_v20, %v10689_v20  ;;  %v10727_v61 = vld [vmem:[%s7165_s30 + $0xc70] sm:$0xff] }
 0x3a2   : > { %5639 = vst [vmem:[%s7311_s17 + $0xbe8] sm:$0xff] %v5127_v54  ;;  %v5128_v1 = vmul.f32 %v4616_v62, %v10572_v39  ;;  %v1046_v12 = vmul.f32 %v10692_v16, %v10692_v16  ;;  %v4105_v22 = vadd.f32 1.0, %v6695_v21  ;;  %v3088_v31 = vmul.f32 0.7978846, %v2576_v8  ;;  %v10731_v8 = vld [vmem:[%s7165_s30 + $0xc78] sm:$0xff] }
 0x3a3   : > { %v2065_v29 = vmul.f32 0.044715, %v1553_v57  ;;  %v1556_v55 = vmul.f32 %v1044_v27, %v10680_v58  ;;  %v2066_v56 = vmul.f32 0.044715, %v1554_v34  ;;  %v2067_v35 = vmul.f32 0.044715, %v1555_v28 }
 0x3a4   : > { %5640 = vst [vmem:[%s7311_s17 + $0xbf0] sm:$0xff] %v5128_v1  ;;  %v1557_v36 = vmul.f32 %v1045_v44, %v10689_v20  ;;  %v1558_v39 = vmul.f32 %v1046_v12, %v10692_v16  ;;  %v4617_v14 = vmul.f32 0.5, %v4105_v22  ;;  %6708 = vtanh.f32 %v3088_v31  ;;  %v10734_v57 = vld [vmem:[%s7165_s30 + $0xc80] sm:$0xff]  ;;  %v10747_v12 = vld [vmem:[%s7165_s30 + $0xc90] sm:$0xff] }
 0x3a5   : > { %v2577_v37 = vadd.f32 %v2065_v29, %v10668_v6  ;;  %v2068_v7 = vmul.f32 0.044715, %v1556_v55  ;;  %v6697_v25 = vpop.eup %6696  ;;  %v2578_v43 = vadd.f32 %v2066_v56, %v10671_v10  ;;  %v2579_v9 = vadd.f32 %v2067_v35, %v10676_v40  ;;  %v10757_v55 = vld [vmem:[%s7165_s30 + $0xc98] sm:$0xff] }
 0x3a6   : > { %v2069_v33 = vmul.f32 0.044715, %v1557_v36  ;;  %v2070_v47 = vmul.f32 0.044715, %v1558_v39  ;;  %v6699_v49 = vpop.eup %6698  ;;  %v5129_v45 = vmul.f32 %v4617_v14, %v10588_v17  ;;  %v4106_v18 = vadd.f32 1.0, %v6697_v25 }
 0x3a7   : > { %v3089_v59 = vmul.f32 0.7978846, %v2577_v37  ;;  %v2580_v24 = vadd.f32 %v2068_v7, %v10680_v58  ;;  %v6701_v23 = vpop.eup %6700  ;;  %v4107_v53 = vadd.f32 1.0, %v6699_v49  ;;  %v3090_v50 = vmul.f32 0.7978846, %v2578_v43 }
 0x3a8   : > { %v3091_v63 = vmul.f32 0.7978846, %v2579_v9  ;;  %v2581_v60 = vadd.f32 %v2069_v33, %v10689_v20  ;;  %5641 = vst [vmem:[%s7311_s17 + $0xbf8] sm:$0xff] %v5129_v45  ;;  %v4618_v46 = vmul.f32 0.5, %v4106_v18  ;;  %v4108_v38 = vadd.f32 1.0, %v6701_v23 }
 0x3a9   : > { %6710 = vtanh.f32 %v3089_v59  ;;  %v3092_v11 = vmul.f32 0.7978846, %v2580_v24  ;;  %v6703_v0 = vpop.eup %6702  ;;  %v4619_v17 = vmul.f32 0.5, %v4107_v53  ;;  %v2582_v19 = vadd.f32 %v2070_v47, %v10692_v16 }
 0x3aa   : > { %6712 = vtanh.f32 %v3090_v50  ;;  %v3093_v48 = vmul.f32 0.7978846, %v2581_v60  ;;  %v6705_v4 = vpop.eup %6704  ;;  %v5130_v15 = vmul.f32 %v4618_v46, %v10604_v42  ;;  %v4620_v13 = vmul.f32 0.5, %v4108_v38 }
 0x3ab   : > { %v4109_v2 = vadd.f32 1.0, %v6703_v0  ;;  %6714 = vtanh.f32 %v3091_v63  ;;  %v5131_v54 = vmul.f32 %v4619_v17, %v10609_v51  ;;  %v4110_v62 = vadd.f32 1.0, %v6705_v4  ;;  %v10741_v51 = vld [vmem:[%s7165_s30 + $0xc88] sm:$0xff] }
 0x3ac   : > { %6716 = vtanh.f32 %v3092_v11  ;;  %v3094_v41 = vmul.f32 0.7978846, %v2582_v19  ;;  %5642 = vst [vmem:[%s7311_s17 + $0xc00] sm:$0xff] %v5130_v15  ;;  %v5132_v42 = vmul.f32 %v4620_v13, %v10612_v3  ;;  %v1047_v21 = vmul.f32 %v10723_v32, %v10723_v32 }
 0x3ad   : > { %v6707_v34 = vpop.eup %6706  ;;  %v4621_v27 = vmul.f32 0.5, %v4109_v2  ;;  %6718 = vtanh.f32 %v3093_v48  ;;  %5643 = vst [vmem:[%s7311_s17 + $0xc08] sm:$0xff] %v5131_v54  ;;  %v4622_v1 = vmul.f32 0.5, %v4110_v62  ;;  %v1048_v44 = vmul.f32 %v10727_v61, %v10727_v61 }
 0x3ae   : > { %v4111_v28 = vadd.f32 1.0, %v6707_v34  ;;  %6720 = vtanh.f32 %v3094_v41  ;;  %5644 = vst [vmem:[%s7311_s17 + $0xc10] sm:$0xff] %v5132_v42  ;;  %v1559_v22 = vmul.f32 %v1047_v21, %v10723_v32  ;;  %v1049_v31 = vmul.f32 %v10731_v8, %v10731_v8 }
 0x3af   : > { %v5133_v3 = vmul.f32 %v4621_v27, %v10620_v26  ;;  %v1050_v29 = vmul.f32 %v10734_v57, %v10734_v57  ;;  %v5134_v56 = vmul.f32 %v4622_v1, %v10623_v52  ;;  %v1560_v36 = vmul.f32 %v1048_v44, %v10727_v61  ;;  %v10786_v44 = vld [vmem:[%s7165_s30 + $0xca0] sm:$0xff] }
 0x3b0   : > { %v4623_v35 = vmul.f32 0.5, %v4111_v28  ;;  %v1051_v39 = vmul.f32 %v10741_v51, %v10741_v51  ;;  %v2071_v26 = vmul.f32 0.044715, %v1559_v22  ;;  %v1561_v14 = vmul.f32 %v1049_v31, %v10731_v8 }
 0x3b1   : > { %5645 = vst [vmem:[%s7311_s17 + $0xc18] sm:$0xff] %v5133_v3  ;;  %v1562_v37 = vmul.f32 %v1050_v29, %v10734_v57  ;;  %v1052_v7 = vmul.f32 %v10747_v12, %v10747_v12  ;;  %v6709_v25 = vpop.eup %6708  ;;  %5646 = vst [vmem:[%s7311_s17 + $0xc20] sm:$0xff] %v5134_v56  ;;  %v2072_v43 = vmul.f32 0.044715, %v1560_v36  ;;  %v1053_v33 = vmul.f32 %v10757_v55, %v10757_v55  ;;  %v10790_v56 = vld [vmem:[%s7165_s30 + $0xca8] sm:$0xff] }
 0x3b2   : > { %v5135_v52 = vmul.f32 %v4623_v35, %v10642_v5  ;;  %v1563_v9 = vmul.f32 %v1051_v39, %v10741_v51  ;;  %v4112_v47 = vadd.f32 1.0, %v6709_v25  ;;  %v2583_v49 = vadd.f32 %v2071_v26, %v10723_v32 }
 0x3b3   : > { %v2073_v45 = vmul.f32 0.044715, %v1561_v14  ;;  %v2074_v18 = vmul.f32 0.044715, %v1562_v37  ;;  %v2584_v59 = vadd.f32 %v2072_v43, %v10727_v61  ;;  %v1564_v23 = vmul.f32 %v1052_v7, %v10747_v12  ;;  %v10794_v14 = vld [vmem:[%s7165_s30 + $0xcb0] sm:$0xff] }
 0x3b4   : > { %5647 = vst [vmem:[%s7311_s17 + $0xc28] sm:$0xff] %v5135_v52  ;;  %v2075_v24 = vmul.f32 0.044715, %v1563_v9  ;;  %v1565_v53 = vmul.f32 %v1053_v33, %v10757_v55  ;;  %v4624_v5 = vmul.f32 0.5, %v4112_v47  ;;  %v3095_v50 = vmul.f32 0.7978846, %v2583_v49 }
 0x3b5   : > { %v2585_v63 = vadd.f32 %v2073_v45, %v10731_v8  ;;  %v2586_v60 = vadd.f32 %v2074_v18, %v10734_v57  ;;  %v3096_v38 = vmul.f32 0.7978846, %v2584_v59  ;;  %v2076_v0 = vmul.f32 0.044715, %v1564_v23  ;;  %v10801_v52 = vld [vmem:[%s7165_s30 + $0xcb8] sm:$0xff]  ;;  %v10811_v33 = vld [vmem:[%s7165_s30 + $0xcc8] sm:$0xff] }
 0x3b6   : > { %v6711_v46 = vpop.eup %6710  ;;  %v2587_v11 = vadd.f32 %v2075_v24, %v10741_v51  ;;  %v2077_v17 = vmul.f32 0.044715, %v1565_v53  ;;  %v5136_v19 = vmul.f32 %v4624_v5, %v10648_v30  ;;  %6722 = vtanh.f32 %v3095_v50  ;;  %v10814_v47 = vld [vmem:[%s7165_s30 + $0xcd0] sm:$0xff]  ;;  %v10822_v18 = vld [vmem:[%s7165_s30 + $0xcd8] sm:$0xff] }
 0x3b7   : > { %v6713_v48 = vpop.eup %6712  ;;  %v4113_v4 = vadd.f32 1.0, %v6711_v46  ;;  %v3097_v15 = vmul.f32 0.7978846, %v2585_v63  ;;  %6724 = vtanh.f32 %v3096_v38  ;;  %v3098_v54 = vmul.f32 0.7978846, %v2586_v60 }
 0x3b8   : > { %v6715_v13 = vpop.eup %6714  ;;  %v4114_v2 = vadd.f32 1.0, %v6713_v48  ;;  %v3099_v62 = vmul.f32 0.7978846, %v2587_v11  ;;  %5648 = vst [vmem:[%s7311_s17 + $0xc30] sm:$0xff] %v5136_v19  ;;  %v2588_v27 = vadd.f32 %v2076_v0, %v10747_v12  ;;  %v2589_v28 = vadd.f32 %v2077_v17, %v10757_v55 }
 0x3b9   : > { %v6717_v41 = vpop.eup %6716  ;;  %v4625_v34 = vmul.f32 0.5, %v4113_v4  ;;  %v4115_v42 = vadd.f32 1.0, %v6715_v13  ;;  %6726 = vtanh.f32 %v3097_v15  ;;  %v1054_v25 = vmul.f32 %v10786_v44, %v10786_v44 }
 0x3ba   : > { %v6719_v21 = vpop.eup %6718  ;;  %v4626_v30 = vmul.f32 0.5, %v4114_v2  ;;  %v4116_v1 = vadd.f32 1.0, %v6717_v41  ;;  %6728 = vtanh.f32 %v3098_v54  ;;  %v3100_v26 = vmul.f32 0.7978846, %v2588_v27 }
 0x3bb   : > { %v6721_v3 = vpop.eup %6720  ;;  %v5137_v22 = vmul.f32 %v4625_v34, %v10668_v6  ;;  %v4627_v31 = vmul.f32 0.5, %v4115_v42  ;;  %v4117_v29 = vadd.f32 1.0, %v6719_v21  ;;  %6730 = vtanh.f32 %v3099_v62 }
 0x3bc   : > { %v5138_v35 = vmul.f32 %v4626_v30, %v10671_v10  ;;  %v4628_v36 = vmul.f32 0.5, %v4116_v1  ;;  %v4118_v39 = vadd.f32 1.0, %v6721_v3  ;;  %v3101_v7 = vmul.f32 0.7978846, %v2589_v28  ;;  %v10804_v10 = vld [vmem:[%s7165_s30 + $0xcc0] sm:$0xff] }
 0x3bd   : > { %5649 = vst [vmem:[%s7311_s17 + $0xc38] sm:$0xff] %v5137_v22  ;;  %v5139_v6 = vmul.f32 %v4627_v31, %v10676_v40  ;;  %v4629_v37 = vmul.f32 0.5, %v4117_v29  ;;  %6732 = vtanh.f32 %v3100_v26  ;;  %v1055_v40 = vmul.f32 %v10790_v56, %v10790_v56 }
 0x3be   : > { %5650 = vst [vmem:[%s7311_s17 + $0xc40] sm:$0xff] %v5138_v35  ;;  %v5140_v43 = vmul.f32 %v4628_v36, %v10680_v58  ;;  %v4630_v9 = vmul.f32 0.5, %v4118_v39  ;;  %6734 = vtanh.f32 %v3101_v7  ;;  %v1566_v45 = vmul.f32 %v1054_v25, %v10786_v44 }
 0x3bf   : > { %5651 = vst [vmem:[%s7311_s17 + $0xc48] sm:$0xff] %v5139_v6  ;;  %v5141_v49 = vmul.f32 %v4629_v37, %v10689_v20  ;;  %v1056_v58 = vmul.f32 %v10794_v14, %v10794_v14  ;;  %v1567_v24 = vmul.f32 %v1055_v40, %v10790_v56  ;;  %v1057_v23 = vmul.f32 %v10801_v52, %v10801_v52 }
 0x3c0   : > { %5652 = vst [vmem:[%s7311_s17 + $0xc50] sm:$0xff] %v5140_v43  ;;  %v5142_v59 = vmul.f32 %v4630_v9, %v10692_v16  ;;  %v1058_v53 = vmul.f32 %v10804_v10, %v10804_v10  ;;  %v2078_v20 = vmul.f32 0.044715, %v1566_v45  ;;  %v1059_v50 = vmul.f32 %v10811_v33, %v10811_v33 }
 0x3c1   : > { %5653 = vst [vmem:[%s7311_s17 + $0xc58] sm:$0xff] %v5141_v49  ;;  %v1568_v5 = vmul.f32 %v1056_v58, %v10794_v14  ;;  %v1060_v63 = vmul.f32 %v10814_v47, %v10814_v47  ;;  %v2079_v16 = vmul.f32 0.044715, %v1567_v24  ;;  %v1569_v60 = vmul.f32 %v1057_v23, %v10801_v52  ;;  %v10859_v24 = vld [vmem:[%s7165_s30 + $0xce8] sm:$0xff] }
 0x3c2   : > { %5654 = vst [vmem:[%s7311_s17 + $0xc60] sm:$0xff] %v5142_v59  ;;  %v1570_v46 = vmul.f32 %v1058_v53, %v10804_v10  ;;  %v1061_v38 = vmul.f32 %v10822_v18, %v10822_v18  ;;  %v2590_v11 = vadd.f32 %v2078_v20, %v10786_v44  ;;  %v1571_v17 = vmul.f32 %v1059_v50, %v10811_v33  ;;  %v10856_v59 = vld [vmem:[%s7165_s30 + $0xce0] sm:$0xff] }
 0x3c3   : > { %v2080_v0 = vmul.f32 0.044715, %v1568_v5  ;;  %v1572_v48 = vmul.f32 %v1060_v63, %v10814_v47  ;;  %v6723_v19 = vpop.eup %6722  ;;  %v2591_v4 = vadd.f32 %v2079_v16, %v10790_v56  ;;  %v2081_v15 = vmul.f32 0.044715, %v1569_v60  ;;  %v10864_v5 = vld [vmem:[%s7165_s30 + $0xcf0] sm:$0xff] }
 0x3c4   : > { %v2082_v13 = vmul.f32 0.044715, %v1570_v46  ;;  %v1573_v2 = vmul.f32 %v1061_v38, %v10822_v18  ;;  %v6725_v54 = vpop.eup %6724  ;;  %v4119_v62 = vadd.f32 1.0, %v6723_v19  ;;  %v3102_v41 = vmul.f32 0.7978846, %v2590_v11  ;;  %v10876_v11 = vld [vmem:[%s7165_s30 + $0xcf8] sm:$0xff] }
 0x3c5   : > { %v2592_v34 = vadd.f32 %v2080_v0, %v10794_v14  ;;  %v2083_v42 = vmul.f32 0.044715, %v1571_v17  ;;  %v4120_v21 = vadd.f32 1.0, %v6725_v54  ;;  %v3103_v30 = vmul.f32 0.7978846, %v2591_v4  ;;  %v10891_v54 = vld [vmem:[%s7165_s30 + $0xd10] sm:$0xff] }
 0x3c6   : > { %v6727_v27 = vpop.eup %6726  ;;  %v2593_v1 = vadd.f32 %v2081_v15, %v10801_v52  ;;  %v2594_v28 = vadd.f32 %v2082_v13, %v10804_v10  ;;  %v4631_v22 = vmul.f32 0.5, %v4119_v62  ;;  %6736 = vtanh.f32 %v3102_v41 }
 0x3c7   : > { %v6729_v3 = vpop.eup %6728  ;;  %v4121_v31 = vadd.f32 1.0, %v6727_v27  ;;  %v3104_v29 = vmul.f32 0.7978846, %v2592_v34  ;;  %v4632_v36 = vmul.f32 0.5, %v4120_v21  ;;  %6738 = vtanh.f32 %v3103_v30 }
 0x3c8   : > { %v6731_v35 = vpop.eup %6730  ;;  %v4122_v39 = vadd.f32 1.0, %v6729_v3  ;;  %v3105_v26 = vmul.f32 0.7978846, %v2593_v1  ;;  %v5143_v6 = vmul.f32 %v4631_v22, %v10723_v32  ;;  %v3106_v9 = vmul.f32 0.7978846, %v2594_v28 }
 0x3c9   : > { %v4633_v37 = vmul.f32 0.5, %v4121_v31  ;;  %v4123_v7 = vadd.f32 1.0, %v6731_v35  ;;  %6740 = vtanh.f32 %v3104_v29  ;;  %v5144_v25 = vmul.f32 %v4632_v36, %v10727_v61 }
 0x3ca   : > { %v4634_v43 = vmul.f32 0.5, %v4122_v39  ;;  %6742 = vtanh.f32 %v3105_v26  ;;  %v6733_v40 = vpop.eup %6732  ;;  %5655 = vst [vmem:[%s7311_s17 + $0xc68] sm:$0xff] %v5143_v6  ;;  %v2595_v58 = vadd.f32 %v2083_v42, %v10811_v33  ;;  %v2084_v32 = vmul.f32 0.044715, %v1572_v48  ;;  %v10882_v48 = vld [vmem:[%s7165_s30 + $0xd00] sm:$0xff]  ;;  %v10898_v42 = vld [vmem:[%s7165_s30 + $0xd18] sm:$0xff] }
 0x3cb   : > { %v5145_v49 = vmul.f32 %v4633_v37, %v10731_v8  ;;  %v4635_v45 = vmul.f32 0.5, %v4123_v7  ;;  %v6735_v23 = vpop.eup %6734  ;;  %5656 = vst [vmem:[%s7311_s17 + $0xc70] sm:$0xff] %v5144_v25  ;;  %v4124_v53 = vadd.f32 1.0, %v6733_v40  ;;  %6744 = vtanh.f32 %v3106_v9 }
 0x3cc   : > { %v5146_v61 = vmul.f32 %v4634_v43, %v10734_v57  ;;  %v2085_v20 = vmul.f32 0.044715, %v1573_v2  ;;  %v4125_v50 = vadd.f32 1.0, %v6735_v23  ;;  %v3107_v63 = vmul.f32 0.7978846, %v2595_v58  ;;  %v10888_v2 = vld [vmem:[%s7165_s30 + $0xd08] sm:$0xff] }
 0x3cd   : > { %5657 = vst [vmem:[%s7311_s17 + $0xc78] sm:$0xff] %v5145_v49  ;;  %v5147_v8 = vmul.f32 %v4635_v45, %v10741_v51  ;;  %v2596_v16 = vadd.f32 %v2084_v32, %v10814_v47  ;;  %v4636_v60 = vmul.f32 0.5, %v4124_v53  ;;  %v1062_v46 = vmul.f32 %v10856_v59, %v10856_v59 }
 0x3ce   : > { %5658 = vst [vmem:[%s7311_s17 + $0xc80] sm:$0xff] %v5146_v61  ;;  %v2597_v57 = vadd.f32 %v2085_v20, %v10822_v18  ;;  %v1063_v38 = vmul.f32 %v10859_v24, %v10859_v24  ;;  %v4637_v51 = vmul.f32 0.5, %v4125_v50  ;;  %6746 = vtanh.f32 %v3107_v63 }
 0x3cf   : > { %5659 = vst [vmem:[%s7311_s17 + $0xc88] sm:$0xff] %v5147_v8  ;;  %v3108_v0 = vmul.f32 0.7978846, %v2596_v16  ;;  %v1064_v17 = vmul.f32 %v10864_v5, %v10864_v5  ;;  %v5148_v19 = vmul.f32 %v4636_v60, %v10747_v12  ;;  %v1574_v15 = vmul.f32 %v1062_v46, %v10856_v59 }
 0x3d0   : > { %v3109_v4 = vmul.f32 0.7978846, %v2597_v57  ;;  %v1575_v13 = vmul.f32 %v1063_v38, %v10859_v24  ;;  %v5149_v62 = vmul.f32 %v4637_v51, %v10757_v55  ;;  %v1065_v34 = vmul.f32 %v10876_v11, %v10876_v11  ;;  %v10921_v38 = vld [vmem:[%s7165_s30 + $0xd20] sm:$0xff] }
 0x3d1   : > { %6748 = vtanh.f32 %v3108_v0  ;;  %v1576_v41 = vmul.f32 %v1064_v17, %v10864_v5  ;;  %5660 = vst [vmem:[%s7311_s17 + $0xc90] sm:$0xff] %v5148_v19  ;;  %v2086_v12 = vmul.f32 0.044715, %v1574_v15  ;;  %v1066_v21 = vmul.f32 %v10882_v48, %v10882_v48  ;;  %v10927_v17 = vld [vmem:[%s7165_s30 + $0xd28] sm:$0xff] }
 0x3d2   : > { %6750 = vtanh.f32 %v3109_v4  ;;  %v2087_v27 = vmul.f32 0.044715, %v1575_v13  ;;  %5661 = vst [vmem:[%s7311_s17 + $0xc98] sm:$0xff] %v5149_v62  ;;  %v1577_v1 = vmul.f32 %v1065_v34, %v10876_v11  ;;  %v1067_v55 = vmul.f32 %v10888_v2, %v10888_v2 }
 0x3d3   : > { %v2088_v30 = vmul.f32 0.044715, %v1576_v41  ;;  %v1068_v28 = vmul.f32 %v10891_v54, %v10891_v54  ;;  %v6737_v3 = vpop.eup %6736  ;;  %v2598_v22 = vadd.f32 %v2086_v12, %v10856_v59  ;;  %v1578_v29 = vmul.f32 %v1066_v21, %v10882_v48 }
 0x3d4   : > { %v2599_v31 = vadd.f32 %v2087_v27, %v10859_v24  ;;  %v1069_v35 = vmul.f32 %v10898_v42, %v10898_v42  ;;  %v6739_v36 = vpop.eup %6738  ;;  %v4126_v39 = vadd.f32 1.0, %v6737_v3  ;;  %v2089_v6 = vmul.f32 0.044715, %v1577_v1 }
 0x3d5   : > { %v2600_v26 = vadd.f32 %v2088_v30, %v10864_v5  ;;  %v1579_v37 = vmul.f32 %v1067_v55, %v10888_v2  ;;  %v4127_v25 = vadd.f32 1.0, %v6739_v36  ;;  %v3110_v43 = vmul.f32 0.7978846, %v2598_v22  ;;  %v10948_v36 = vld [vmem:[%s7165_s30 + $0xd38] sm:$0xff] }
 0x3d6   : > { %v6741_v7 = vpop.eup %6740  ;;  %v3111_v9 = vmul.f32 0.7978846, %v2599_v31  ;;  %v1580_v40 = vmul.f32 %v1068_v28, %v10891_v54  ;;  %v4638_v45 = vmul.f32 0.5, %v4126_v39  ;;  %v2601_v23 = vadd.f32 %v2089_v6, %v10876_v11 }
 0x3d7   : > { %v6743_v49 = vpop.eup %6742  ;;  %v4128_v58 = vadd.f32 1.0, %v6741_v7  ;;  %v3112_v32 = vmul.f32 0.7978846, %v2600_v26  ;;  %v4639_v61 = vmul.f32 0.5, %v4127_v25  ;;  %6752 = vtanh.f32 %v3110_v43 }
 0x3d8   : > { %v4129_v53 = vadd.f32 1.0, %v6743_v49  ;;  %v2090_v20 = vmul.f32 0.044715, %v1578_v29  ;;  %v6745_v8 = vpop.eup %6744  ;;  %v5150_v50 = vmul.f32 %v4638_v45, %v10786_v44  ;;  %6754 = vtanh.f32 %v3111_v9  ;;  %v10956_v9 = vld [vmem:[%s7165_s30 + $0xd48] sm:$0xff] }
 0x3d9   : > { %v4640_v63 = vmul.f32 0.5, %v4128_v58  ;;  %v3113_v16 = vmul.f32 0.7978846, %v2601_v23  ;;  %v5151_v60 = vmul.f32 %v4639_v61, %v10790_v56  ;;  %v4130_v46 = vadd.f32 1.0, %v6745_v8  ;;  %v10965_v58 = vld [vmem:[%s7165_s30 + $0xd50] sm:$0xff] }
 0x3da   : > { %v4641_v57 = vmul.f32 0.5, %v4129_v53  ;;  %6756 = vtanh.f32 %v3112_v32  ;;  %5662 = vst [vmem:[%s7311_s17 + $0xca0] sm:$0xff] %v5150_v50  ;;  %v2602_v0 = vadd.f32 %v2090_v20, %v10882_v48  ;;  %v2091_v44 = vmul.f32 0.044715, %v1579_v37  ;;  %v10953_v37 = vld [vmem:[%s7165_s30 + $0xd40] sm:$0xff] }
 0x3db   : > { %v5152_v51 = vmul.f32 %v4640_v63, %v10794_v14  ;;  %6758 = vtanh.f32 %v3113_v16  ;;  %v6747_v19 = vpop.eup %6746  ;;  %5663 = vst [vmem:[%s7311_s17 + $0xca8] sm:$0xff] %v5151_v60  ;;  %v4642_v4 = vmul.f32 0.5, %v4130_v46  ;;  %v2092_v15 = vmul.f32 0.044715, %v1580_v40 }
 0x3dc   : > { %v5153_v56 = vmul.f32 %v4641_v57, %v10801_v52  ;;  %v1581_v13 = vmul.f32 %v1069_v35, %v10898_v42  ;;  %v4131_v62 = vadd.f32 1.0, %v6747_v19  ;;  %v3114_v41 = vmul.f32 0.7978846, %v2602_v0  ;;  %v10945_v35 = vld [vmem:[%s7165_s30 + $0xd30] sm:$0xff] }
 0x3dd   : > { %5664 = vst [vmem:[%s7311_s17 + $0xcb0] sm:$0xff] %v5152_v51  ;;  %v2603_v14 = vadd.f32 %v2091_v44, %v10888_v2  ;;  %v1070_v34 = vmul.f32 %v10921_v38, %v10921_v38  ;;  %v5154_v27 = vmul.f32 %v4642_v4, %v10804_v10  ;;  %v2604_v52 = vadd.f32 %v2092_v15, %v10891_v54 }
 0x3de   : > { %v6749_v12 = vpop.eup %6748  ;;  %5665 = vst [vmem:[%s7311_s17 + $0xcb8] sm:$0xff] %v5153_v56  ;;  %v2093_v21 = vmul.f32 0.044715, %v1581_v13  ;;  %v1071_v30 = vmul.f32 %v10927_v17, %v10927_v17  ;;  %v4643_v55 = vmul.f32 0.5, %v4131_v62  ;;  %6760 = vtanh.f32 %v3114_v41 }
 0x3df   : > { %v6751_v1 = vpop.eup %6750  ;;  %v4132_v28 = vadd.f32 1.0, %v6749_v12  ;;  %v3115_v3 = vmul.f32 0.7978846, %v2603_v14  ;;  %5666 = vst [vmem:[%s7311_s17 + $0xcc0] sm:$0xff] %v5154_v27  ;;  %v3116_v31 = vmul.f32 0.7978846, %v2604_v52  ;;  %v1582_v10 = vmul.f32 %v1070_v34, %v10921_v38 }
 0x3e0   : > { %v4133_v22 = vadd.f32 1.0, %v6751_v1  ;;  %v2605_v29 = vadd.f32 %v2093_v21, %v10898_v42  ;;  %v5155_v39 = vmul.f32 %v4643_v55, %v10811_v33  ;;  %v1583_v6 = vmul.f32 %v1071_v30, %v10927_v17 }
 0x3e1   : > { %v4644_v26 = vmul.f32 0.5, %v4132_v28  ;;  %6762 = vtanh.f32 %v3115_v3  ;;  %v2094_v43 = vmul.f32 0.044715, %v1582_v10  ;;  %v1072_v33 = vmul.f32 %v10945_v35, %v10945_v35  ;;  %v10987_v28 = vld [vmem:[%s7165_s30 + $0xd58] sm:$0xff]  ;;  %v10994_v10 = vld [vmem:[%s7165_s30 + $0xd60] sm:$0xff] }
 0x3e2   : > { %v4645_v7 = vmul.f32 0.5, %v4133_v22  ;;  %6764 = vtanh.f32 %v3116_v31  ;;  %v3117_v25 = vmul.f32 0.7978846, %v2605_v29  ;;  %5667 = vst [vmem:[%s7311_s17 + $0xcc8] sm:$0xff] %v5155_v39  ;;  %v2095_v49 = vmul.f32 0.044715, %v1583_v6 }
 0x3e3   : > { %v5156_v40 = vmul.f32 %v4644_v26, %v10814_v47  ;;  %v1073_v45 = vmul.f32 %v10948_v36, %v10948_v36  ;;  %v2606_v23 = vadd.f32 %v2094_v43, %v10921_v38  ;;  %v1074_v61 = vmul.f32 %v10953_v37, %v10953_v37 }
 0x3e4   : > { %v5157_v32 = vmul.f32 %v4645_v7, %v10822_v18  ;;  %6766 = vtanh.f32 %v3117_v25  ;;  %v6753_v53 = vpop.eup %6752  ;;  %v2607_v47 = vadd.f32 %v2095_v49, %v10927_v17  ;;  %v1584_v20 = vmul.f32 %v1072_v33, %v10945_v35 }
 0x3e5   : > { %5668 = vst [vmem:[%s7311_s17 + $0xcd0] sm:$0xff] %v5156_v40  ;;  %v1585_v8 = vmul.f32 %v1073_v45, %v10948_v36  ;;  %v1075_v50 = vmul.f32 %v10956_v9, %v10956_v9  ;;  %v6755_v63 = vpop.eup %6754  ;;  %v4134_v18 = vadd.f32 1.0, %v6753_v53  ;;  %v3118_v16 = vmul.f32 0.7978846, %v2606_v23  ;;  %v11011_v53 = vld [vmem:[%s7165_s30 + $0xd70] sm:$0xff] }
 0x3e6   : > { %5669 = vst [vmem:[%s7311_s17 + $0xcd8] sm:$0xff] %v5157_v32  ;;  %v1586_v60 = vmul.f32 %v1074_v61, %v10953_v37  ;;  %v1076_v57 = vmul.f32 %v10965_v58, %v10965_v58  ;;  %v4135_v51 = vadd.f32 1.0, %v6755_v63  ;;  %v3119_v0 = vmul.f32 0.7978846, %v2607_v47  ;;  %v11008_v61 = vld [vmem:[%s7165_s30 + $0xd68] sm:$0xff]  ;;  %v11016_v63 = vld [vmem:[%s7165_s30 + $0xd78] sm:$0xff] }
 0x3e7   : > { %v6757_v46 = vpop.eup %6756  ;;  %v2096_v44 = vmul.f32 0.044715, %v1584_v20  ;;  %v1587_v19 = vmul.f32 %v1075_v50, %v10956_v9  ;;  %v4646_v4 = vmul.f32 0.5, %v4134_v18  ;;  %6768 = vtanh.f32 %v3118_v16 }
 0x3e8   : > { %v6759_v56 = vpop.eup %6758  ;;  %v4136_v15 = vadd.f32 1.0, %v6757_v46  ;;  %v2097_v13 = vmul.f32 0.044715, %v1585_v8  ;;  %v4647_v62 = vmul.f32 0.5, %v4135_v51  ;;  %6770 = vtanh.f32 %v3119_v0 }
 0x3e9   : > { %v4137_v41 = vadd.f32 1.0, %v6759_v56  ;;  %v2608_v14 = vadd.f32 %v2096_v44, %v10945_v35  ;;  %v5158_v34 = vmul.f32 %v4646_v4, %v10856_v59  ;;  %v2098_v52 = vmul.f32 0.044715, %v1586_v60  ;;  %v11025_v44 = vld [vmem:[%s7165_s30 + $0xd80] sm:$0xff] }
 0x3ea   : > { %v4648_v12 = vmul.f32 0.5, %v4136_v15  ;;  %v2609_v27 = vadd.f32 %v2097_v13, %v10948_v36  ;;  %v5159_v21 = vmul.f32 %v4647_v62, %v10859_v24  ;;  %v2099_v55 = vmul.f32 0.044715, %v1587_v19 }
 0x3eb   : > { %v4649_v30 = vmul.f32 0.5, %v4137_v41  ;;  %v3120_v1 = vmul.f32 0.7978846, %v2608_v14  ;;  %v6761_v3 = vpop.eup %6760  ;;  %5670 = vst [vmem:[%s7311_s17 + $0xce0] sm:$0xff] %v5158_v34  ;;  %v2610_v59 = vadd.f32 %v2098_v52, %v10953_v37  ;;  %v1588_v29 = vmul.f32 %v1076_v57, %v10965_v58 }
 0x3ec   : > { %v5160_v22 = vmul.f32 %v4648_v12, %v10864_v5  ;;  %v3121_v31 = vmul.f32 0.7978846, %v2609_v27  ;;  %5671 = vst [vmem:[%s7311_s17 + $0xce8] sm:$0xff] %v5159_v21  ;;  %v4138_v39 = vadd.f32 1.0, %v6761_v3  ;;  %v2611_v26 = vadd.f32 %v2099_v55, %v10956_v9  ;;  %v11041_v55 = vld [vmem:[%s7165_s30 + $0xd88] sm:$0xff] }
 0x3ed   : > { %v5161_v24 = vmul.f32 %v4649_v30, %v10876_v11  ;;  %6772 = vtanh.f32 %v3120_v1  ;;  %v3122_v5 = vmul.f32 0.7978846, %v2610_v59  ;;  %v2100_v7 = vmul.f32 0.044715, %v1588_v29 }
 0x3ee   : > { %v6763_v6 = vpop.eup %6762  ;;  %5672 = vst [vmem:[%s7311_s17 + $0xcf0] sm:$0xff] %v5160_v22  ;;  %6774 = vtanh.f32 %v3121_v31  ;;  %v1077_v25 = vmul.f32 %v10987_v28, %v10987_v28  ;;  %v4650_v40 = vmul.f32 0.5, %v4138_v39  ;;  %v3123_v11 = vmul.f32 0.7978846, %v2611_v26 }
 0x3ef   : > { %v6765_v43 = vpop.eup %6764  ;;  %5673 = vst [vmem:[%s7311_s17 + $0xcf8] sm:$0xff] %v5161_v24  ;;  %v4139_v49 = vadd.f32 1.0, %v6763_v6  ;;  %v1078_v33 = vmul.f32 %v10994_v10, %v10994_v10  ;;  %6776 = vtanh.f32 %v3122_v5  ;;  %v2612_v32 = vadd.f32 %v2100_v7, %v10965_v58  ;;  %v11051_v7 = vld [vmem:[%s7165_s30 + $0xd90] sm:$0xff] }
 0x3f0   : > { %v4140_v45 = vadd.f32 1.0, %v6765_v43  ;;  %v1589_v23 = vmul.f32 %v1077_v25, %v10987_v28  ;;  %v5162_v20 = vmul.f32 %v4650_v40, %v10882_v48  ;;  %6778 = vtanh.f32 %v3123_v11 }
 0x3f1   : > { %v6767_v47 = vpop.eup %6766  ;;  %v4651_v8 = vmul.f32 0.5, %v4139_v49  ;;  %v1590_v50 = vmul.f32 %v1078_v33, %v10994_v10  ;;  %v3124_v60 = vmul.f32 0.7978846, %v2612_v32  ;;  %v1079_v0 = vmul.f32 %v11008_v61, %v11008_v61 }
 0x3f2   : > { %v4652_v18 = vmul.f32 0.5, %v4140_v45  ;;  %v4141_v16 = vadd.f32 1.0, %v6767_v47  ;;  %v2101_v57 = vmul.f32 0.044715, %v1589_v23  ;;  %5674 = vst [vmem:[%s7311_s17 + $0xd00] sm:$0xff] %v5162_v20  ;;  %v1080_v48 = vmul.f32 %v11011_v53, %v11011_v53 }
 0x3f3   : > { %v5163_v46 = vmul.f32 %v4651_v8, %v10888_v2  ;;  %v2102_v51 = vmul.f32 0.044715, %v1590_v50  ;;  %6780 = vtanh.f32 %v3124_v60  ;;  %v1591_v13 = vmul.f32 %v1079_v0, %v11008_v61  ;;  %v11062_v60 = vld [vmem:[%s7165_s30 + $0xd98] sm:$0xff] }
 0x3f4   : > { %v5164_v19 = vmul.f32 %v4652_v18, %v10891_v54  ;;  %v4653_v56 = vmul.f32 0.5, %v4141_v16  ;;  %v2613_v4 = vadd.f32 %v2101_v57, %v10987_v28  ;;  %v6769_v15 = vpop.eup %6768  ;;  %v1592_v62 = vmul.f32 %v1080_v48, %v11011_v53  ;;  %v11065_v57 = vld [vmem:[%s7165_s30 + $0xda0] sm:$0xff]  ;;  %v11069_v48 = vld [vmem:[%s7165_s30 + $0xda8] sm:$0xff] }
 0x3f5   : > { %5675 = vst [vmem:[%s7311_s17 + $0xd08] sm:$0xff] %v5163_v46  ;;  %v2614_v2 = vadd.f32 %v2102_v51, %v10994_v10  ;;  %v1081_v41 = vmul.f32 %v11016_v63, %v11016_v63  ;;  %v6771_v14 = vpop.eup %6770  ;;  %v4142_v34 = vadd.f32 1.0, %v6769_v15  ;;  %v1082_v27 = vmul.f32 %v11025_v44, %v11025_v44 }
 0x3f6   : > { %5676 = vst [vmem:[%s7311_s17 + $0xd10] sm:$0xff] %v5164_v19  ;;  %v5165_v54 = vmul.f32 %v4653_v56, %v10898_v42  ;;  %v3125_v12 = vmul.f32 0.7978846, %v2613_v4  ;;  %v4143_v52 = vadd.f32 1.0, %v6771_v14  ;;  %v2103_v30 = vmul.f32 0.044715, %v1591_v13 }
 0x3f7   : > { %v3126_v21 = vmul.f32 0.7978846, %v2614_v2  ;;  %v1593_v1 = vmul.f32 %v1081_v41, %v11016_v63  ;;  %v4654_v3 = vmul.f32 0.5, %v4142_v34  ;;  %v2104_v22 = vmul.f32 0.044715, %v1592_v62  ;;  %v11080_v41 = vld [vmem:[%s7165_s30 + $0xdb0] sm:$0xff] }
 0x3f8   : > { %5677 = vst [vmem:[%s7311_s17 + $0xd18] sm:$0xff] %v5165_v54  ;;  %6782 = vtanh.f32 %v3125_v12  ;;  %v1594_v31 = vmul.f32 %v1082_v27, %v11025_v44  ;;  %v4655_v42 = vmul.f32 0.5, %v4143_v52  ;;  %v2615_v59 = vadd.f32 %v2103_v30, %v11008_v61  ;;  %v11087_v12 = vld [vmem:[%s7165_s30 + $0xdb8] sm:$0xff] }
 0x3f9   : > { %6784 = vtanh.f32 %v3126_v21  ;;  %v2105_v29 = vmul.f32 0.044715, %v1593_v1  ;;  %v5166_v39 = vmul.f32 %v4654_v3, %v10921_v38  ;;  %v2616_v26 = vadd.f32 %v2104_v22, %v11011_v53 }
 0x3fa   : > { %v6773_v24 = vpop.eup %6772  ;;  %v2106_v6 = vmul.f32 0.044715, %v1594_v31  ;;  %v1083_v5 = vmul.f32 %v11041_v55, %v11041_v55  ;;  %v5167_v43 = vmul.f32 %v4655_v42, %v10927_v17  ;;  %v3127_v49 = vmul.f32 0.7978846, %v2615_v59 }
 0x3fb   : > { %v6775_v25 = vpop.eup %6774  ;;  %v4144_v40 = vadd.f32 1.0, %v6773_v24  ;;  %v2617_v11 = vadd.f32 %v2105_v29, %v11016_v63  ;;  %5678 = vst [vmem:[%s7311_s17 + $0xd20] sm:$0xff] %v5166_v39  ;;  %v3128_v38 = vmul.f32 0.7978846, %v2616_v26  ;;  %v1084_v17 = vmul.f32 %v11051_v7, %v11051_v7 }
 0x3fc   : > { %v4145_v33 = vadd.f32 1.0, %v6775_v25  ;;  %v2618_v45 = vadd.f32 %v2106_v6, %v11025_v44  ;;  %v1595_v32 = vmul.f32 %v1083_v5, %v11041_v55  ;;  %v6777_v23 = vpop.eup %6776  ;;  %5679 = vst [vmem:[%s7311_s17 + $0xd28] sm:$0xff] %v5167_v43  ;;  %6786 = vtanh.f32 %v3127_v49  ;;  %v11102_v5 = vld [vmem:[%s7165_s30 + $0xdc0] sm:$0xff] }
 0x3fd   : > { %v4656_v47 = vmul.f32 0.5, %v4144_v40  ;;  %v3129_v20 = vmul.f32 0.7978846, %v2617_v11  ;;  %v6779_v8 = vpop.eup %6778  ;;  %v4146_v18 = vadd.f32 1.0, %v6777_v23  ;;  %6788 = vtanh.f32 %v3128_v38 }
 0x3fe   : > { %v4657_v50 = vmul.f32 0.5, %v4145_v33  ;;  %v3130_v16 = vmul.f32 0.7978846, %v2618_v45  ;;  %v4147_v51 = vadd.f32 1.0, %v6779_v8  ;;  %v2107_v0 = vmul.f32 0.044715, %v1595_v32 }
 0x3ff   : > { %v5168_v46 = vmul.f32 %v4656_v47, %v10945_v35  ;;  %6790 = vtanh.f32 %v3129_v20  ;;  %v4658_v56 = vmul.f32 0.5, %v4146_v18  ;;  %v1596_v4 = vmul.f32 %v1084_v17, %v11051_v7 }
 0x400   : > { %v5169_v19 = vmul.f32 %v4657_v50, %v10948_v36  ;;  %6792 = vtanh.f32 %v3130_v16  ;;  %v6781_v15 = vpop.eup %6780  ;;  %v4659_v2 = vmul.f32 0.5, %v4147_v51  ;;  %v2619_v13 = vadd.f32 %v2107_v0, %v11041_v55 }
 0x401   : > { %5680 = vst [vmem:[%s7311_s17 + $0xd30] sm:$0xff] %v5168_v46  ;;  %v1085_v35 = vmul.f32 %v11062_v60, %v11062_v60  ;;  %v1086_v62 = vmul.f32 %v11065_v57, %v11065_v57  ;;  %v5170_v36 = vmul.f32 %v4658_v56, %v10953_v37  ;;  %v4148_v14 = vadd.f32 1.0, %v6781_v15 }
 0x402   : > { %5681 = vst [vmem:[%s7311_s17 + $0xd38] sm:$0xff] %v5169_v19  ;;  %v2108_v54 = vmul.f32 0.044715, %v1596_v4  ;;  %v1087_v34 = vmul.f32 %v11069_v48, %v11069_v48  ;;  %v5171_v27 = vmul.f32 %v4659_v2, %v10956_v9  ;;  %v3131_v52 = vmul.f32 0.7978846, %v2619_v13  ;;  %v11119_v4 = vld [vmem:[%s7165_s30 + $0xdc8] sm:$0xff] }
 0x403   : > { %v1597_v21 = vmul.f32 %v1085_v35, %v11062_v60  ;;  %v1598_v30 = vmul.f32 %v1086_v62, %v11065_v57  ;;  %5682 = vst [vmem:[%s7311_s17 + $0xd40] sm:$0xff] %v5170_v36  ;;  %v4660_v1 = vmul.f32 0.5, %v4148_v14  ;;  %v1088_v22 = vmul.f32 %v11080_v41, %v11080_v41  ;;  %v11123_v35 = vld [vmem:[%s7165_s30 + $0xdd0] sm:$0xff] }
 0x404   : > { %v2620_v3 = vadd.f32 %v2108_v54, %v11051_v7  ;;  %v1599_v37 = vmul.f32 %v1087_v34, %v11069_v48  ;;  %5683 = vst [vmem:[%s7311_s17 + $0xd48] sm:$0xff] %v5171_v27  ;;  %6794 = vtanh.f32 %v3131_v52  ;;  %v1089_v59 = vmul.f32 %v11087_v12, %v11087_v12 }
 0x405   : > { %v6783_v31 = vpop.eup %6782  ;;  %v2109_v9 = vmul.f32 0.044715, %v1597_v21  ;;  %v2110_v42 = vmul.f32 0.044715, %v1598_v30  ;;  %v5172_v24 = vmul.f32 %v4660_v1, %v10965_v58  ;;  %v1600_v49 = vmul.f32 %v1088_v22, %v11080_v41  ;;  %v11130_v30 = vld [vmem:[%s7165_s30 + $0xdd8] sm:$0xff]  ;;  %v11133_v1 = vld [vmem:[%s7165_s30 + $0xde0] sm:$0xff] }
 0x406   : > { %v6785_v29 = vpop.eup %6784  ;;  %v4149_v39 = vadd.f32 1.0, %v6783_v31  ;;  %v3132_v26 = vmul.f32 0.7978846, %v2620_v3  ;;  %v2111_v6 = vmul.f32 0.044715, %v1599_v37  ;;  %v1601_v38 = vmul.f32 %v1089_v59, %v11087_v12  ;;  %v11139_v22 = vld [vmem:[%s7165_s30 + $0xde8] sm:$0xff] }
 0x407   : > { %v4150_v25 = vadd.f32 1.0, %v6785_v29  ;;  %v2621_v43 = vadd.f32 %v2109_v9, %v11062_v60  ;;  %v2622_v40 = vadd.f32 %v2110_v42, %v11065_v57  ;;  %5684 = vst [vmem:[%s7311_s17 + $0xd50] sm:$0xff] %v5172_v24  ;;  %v1090_v23 = vmul.f32 %v11102_v5, %v11102_v5  ;;  %v11145_v59 = vld [vmem:[%s7165_s30 + $0xdf0] sm:$0xff] }
 0x408   : > { %v4661_v11 = vmul.f32 0.5, %v4149_v39  ;;  %6796 = vtanh.f32 %v3132_v26  ;;  %v2623_v33 = vadd.f32 %v2111_v6, %v11069_v48  ;;  %v2112_v8 = vmul.f32 0.044715, %v1600_v49 }
 0x409   : > { %v4662_v58 = vmul.f32 0.5, %v4150_v25  ;;  %v3133_v45 = vmul.f32 0.7978846, %v2621_v43  ;;  %v3134_v32 = vmul.f32 0.7978846, %v2622_v40  ;;  %v6787_v47 = vpop.eup %6786  ;;  %v1602_v51 = vmul.f32 %v1090_v23, %v11102_v5 }
 0x40a   : > { %v5173_v20 = vmul.f32 %v4661_v11, %v10987_v28  ;;  %v3135_v17 = vmul.f32 0.7978846, %v2623_v33  ;;  %v2113_v50 = vmul.f32 0.044715, %v1601_v38  ;;  %v6789_v18 = vpop.eup %6788  ;;  %v4151_v46 = vadd.f32 1.0, %v6787_v47 }
 0x40b   : > { %v5174_v16 = vmul.f32 %v4662_v58, %v10994_v10  ;;  %6798 = vtanh.f32 %v3133_v45  ;;  %v4152_v19 = vadd.f32 1.0, %v6789_v18  ;;  %v2624_v56 = vadd.f32 %v2112_v8, %v11080_v41 }
 0x40c   : > { %v6791_v0 = vpop.eup %6790  ;;  %5685 = vst [vmem:[%s7311_s17 + $0xd58] sm:$0xff] %v5173_v20  ;;  %6800 = vtanh.f32 %v3134_v32  ;;  %v2625_v28 = vadd.f32 %v2113_v50, %v11087_v12  ;;  %v4663_v10 = vmul.f32 0.5, %v4151_v46  ;;  %v2114_v13 = vmul.f32 0.044715, %v1602_v51 }
 0x40d   : > { %v6793_v15 = vpop.eup %6792  ;;  %5686 = vst [vmem:[%s7311_s17 + $0xd60] sm:$0xff] %v5174_v16  ;;  %v4153_v2 = vadd.f32 1.0, %v6791_v0  ;;  %6802 = vtanh.f32 %v3135_v17  ;;  %v4664_v62 = vmul.f32 0.5, %v4152_v19  ;;  %v3136_v14 = vmul.f32 0.7978846, %v2624_v56 }
 0x40e   : > { %v4154_v36 = vadd.f32 1.0, %v6793_v15  ;;  %v3137_v54 = vmul.f32 0.7978846, %v2625_v28  ;;  %v5175_v34 = vmul.f32 %v4663_v10, %v11008_v61  ;;  %v2626_v52 = vadd.f32 %v2114_v13, %v11102_v5 }
 0x40f   : > { %v4665_v27 = vmul.f32 0.5, %v4153_v2  ;;  %v1091_v21 = vmul.f32 %v11119_v4, %v11119_v4  ;;  %v5176_v3 = vmul.f32 %v4664_v62, %v11011_v53  ;;  %6804 = vtanh.f32 %v3136_v14  ;;  %v11178_v14 = vld [vmem:[%s7165_s30 + $0xe00] sm:$0xff] }
 0x410   : > { %v4666_v37 = vmul.f32 0.5, %v4154_v36  ;;  %v1092_v61 = vmul.f32 %v11123_v35, %v11123_v35  ;;  %5687 = vst [vmem:[%s7311_s17 + $0xd68] sm:$0xff] %v5175_v34  ;;  %6806 = vtanh.f32 %v3137_v54  ;;  %v3138_v9 = vmul.f32 0.7978846, %v2626_v52 }
 0x411   : > { %v5177_v31 = vmul.f32 %v4665_v27, %v11016_v63  ;;  %v1603_v42 = vmul.f32 %v1091_v21, %v11119_v4  ;;  %v6795_v53 = vpop.eup %6794  ;;  %5688 = vst [vmem:[%s7311_s17 + $0xd70] sm:$0xff] %v5176_v3  ;;  %v1093_v39 = vmul.f32 %v11130_v30, %v11130_v30  ;;  %v1094_v26 = vmul.f32 %v11133_v1, %v11133_v1  ;;  %v11155_v63 = vld [vmem:[%s7165_s30 + $0xdf8] sm:$0xff] }
 0x412   : > { %v5178_v29 = vmul.f32 %v4666_v37, %v11025_v44  ;;  %v1604_v24 = vmul.f32 %v1092_v61, %v11123_v35  ;;  %v4155_v6 = vadd.f32 1.0, %v6795_v53  ;;  %6808 = vtanh.f32 %v3138_v9  ;;  %v11190_v53 = vld [vmem:[%s7165_s30 + $0xe10] sm:$0xff] }
 0x413   : > { %5689 = vst [vmem:[%s7311_s17 + $0xd78] sm:$0xff] %v5177_v31  ;;  %v2115_v25 = vmul.f32 0.044715, %v1603_v42  ;;  %v1095_v43 = vmul.f32 %v11139_v22, %v11139_v22  ;;  %v1605_v44 = vmul.f32 %v1093_v39, %v11130_v30  ;;  %v1606_v49 = vmul.f32 %v1094_v26, %v11133_v1  ;;  %v11187_v42 = vld [vmem:[%s7165_s30 + $0xe08] sm:$0xff] }
 0x414   : > { %5690 = vst [vmem:[%s7311_s17 + $0xd80] sm:$0xff] %v5178_v29  ;;  %v2116_v40 = vmul.f32 0.044715, %v1604_v24  ;;  %v1096_v11 = vmul.f32 %v11145_v59, %v11145_v59  ;;  %v4667_v38 = vmul.f32 0.5, %v4155_v6  ;;  %v1097_v32 = vmul.f32 %v11155_v63, %v11155_v63 }
 0x415   : > { %v6797_v33 = vpop.eup %6796  ;;  %v2627_v58 = vadd.f32 %v2115_v25, %v11119_v4  ;;  %v1607_v45 = vmul.f32 %v1095_v43, %v11139_v22  ;;  %v2117_v20 = vmul.f32 0.044715, %v1605_v44  ;;  %v2118_v17 = vmul.f32 0.044715, %v1606_v49 }
 0x416   : > { %v4156_v23 = vadd.f32 1.0, %v6797_v33  ;;  %v2628_v47 = vadd.f32 %v2116_v40, %v11123_v35  ;;  %v5179_v8 = vmul.f32 %v4667_v38, %v11041_v55  ;;  %v1608_v16 = vmul.f32 %v1096_v11, %v11145_v59  ;;  %v11197_v40 = vld [vmem:[%s7165_s30 + $0xe18] sm:$0xff] }
 0x417   : > { %v3139_v50 = vmul.f32 0.7978846, %v2627_v58  ;;  %v2119_v18 = vmul.f32 0.044715, %v1607_v45  ;;  %v2629_v19 = vadd.f32 %v2117_v20, %v11130_v30  ;;  %v2630_v56 = vadd.f32 %v2118_v17, %v11133_v1  ;;  %v11207_v45 = vld [vmem:[%s7165_s30 + $0xe20] sm:$0xff]  ;;  %v11215_v17 = vld [vmem:[%s7165_s30 + $0xe28] sm:$0xff] }
 0x418   : > { %v6799_v46 = vpop.eup %6798  ;;  %v4668_v51 = vmul.f32 0.5, %v4156_v23  ;;  %v3140_v0 = vmul.f32 0.7978846, %v2628_v47  ;;  %5691 = vst [vmem:[%s7311_s17 + $0xd88] sm:$0xff] %v5179_v8  ;;  %v2120_v55 = vmul.f32 0.044715, %v1608_v16  ;;  %v1609_v37 = vmul.f32 %v1097_v32, %v11155_v63 }
 0x419   : > { %v6801_v28 = vpop.eup %6800  ;;  %v4157_v15 = vadd.f32 1.0, %v6799_v46  ;;  %6810 = vtanh.f32 %v3139_v50  ;;  %v2631_v10 = vadd.f32 %v2119_v18, %v11139_v22  ;;  %v3141_v36 = vmul.f32 0.7978846, %v2629_v19  ;;  %v11224_v19 = vld [vmem:[%s7165_s30 + $0xe30] sm:$0xff] }
 0x41a   : > { %v6803_v2 = vpop.eup %6802  ;;  %v5180_v13 = vmul.f32 %v4668_v51, %v11051_v7  ;;  %v4158_v62 = vadd.f32 1.0, %v6801_v28  ;;  %6812 = vtanh.f32 %v3140_v0  ;;  %v3142_v27 = vmul.f32 0.7978846, %v2630_v56 }
 0x41b   : > { %v4669_v54 = vmul.f32 0.5, %v4157_v15  ;;  %v4159_v34 = vadd.f32 1.0, %v6803_v2  ;;  %v3143_v52 = vmul.f32 0.7978846, %v2631_v10  ;;  %6814 = vtanh.f32 %v3141_v36 }
 0x41c   : > { %5692 = vst [vmem:[%s7311_s17 + $0xd90] sm:$0xff] %v5180_v13  ;;  %v4670_v21 = vmul.f32 0.5, %v4158_v62  ;;  %v2632_v3 = vadd.f32 %v2120_v55, %v11145_v59  ;;  %v6805_v7 = vpop.eup %6804  ;;  %6816 = vtanh.f32 %v3142_v27  ;;  %v1098_v9 = vmul.f32 %v11178_v14, %v11178_v14 }
 0x41d   : > { %v5181_v61 = vmul.f32 %v4669_v54, %v11062_v60  ;;  %v4671_v31 = vmul.f32 0.5, %v4159_v34  ;;  %v6807_v29 = vpop.eup %6806  ;;  %v4160_v39 = vadd.f32 1.0, %v6805_v7  ;;  %6818 = vtanh.f32 %v3143_v52 }
 0x41e   : > { %v5182_v24 = vmul.f32 %v4670_v21, %v11065_v57  ;;  %v3144_v26 = vmul.f32 0.7978846, %v2632_v3  ;;  %v4161_v6 = vadd.f32 1.0, %v6807_v29  ;;  %v2121_v25 = vmul.f32 0.044715, %v1609_v37 }
 0x41f   : > { %5693 = vst [vmem:[%s7311_s17 + $0xd98] sm:$0xff] %v5181_v61  ;;  %v5183_v60 = vmul.f32 %v4671_v31, %v11069_v48  ;;  %v1610_v43 = vmul.f32 %v1098_v9, %v11178_v14  ;;  %v6809_v44 = vpop.eup %6808  ;;  %v4672_v49 = vmul.f32 0.5, %v4160_v39  ;;  %v1099_v57 = vmul.f32 %v11187_v42, %v11187_v42 }
 0x420   : > { %5694 = vst [vmem:[%s7311_s17 + $0xda0] sm:$0xff] %v5182_v24  ;;  %6820 = vtanh.f32 %v3144_v26  ;;  %v1100_v11 = vmul.f32 %v11190_v53, %v11190_v53  ;;  %v4673_v48 = vmul.f32 0.5, %v4161_v6  ;;  %v4162_v33 = vadd.f32 1.0, %v6809_v44 }
 0x421   : > { %5695 = vst [vmem:[%s7311_s17 + $0xda8] sm:$0xff] %v5183_v60  ;;  %v2633_v38 = vadd.f32 %v2121_v25, %v11155_v63  ;;  %v2122_v58 = vmul.f32 0.044715, %v1610_v43  ;;  %v5184_v32 = vmul.f32 %v4672_v49, %v11080_v41  ;;  %v1611_v23 = vmul.f32 %v1099_v57, %v11187_v42  ;;  %v11242_v43 = vld [vmem:[%s7165_s30 + $0xe38] sm:$0xff] }
 0x422   : > { %v1612_v47 = vmul.f32 %v1100_v11, %v11190_v53  ;;  %v1101_v20 = vmul.f32 %v11197_v40, %v11197_v40  ;;  %v5185_v8 = vmul.f32 %v4673_v48, %v11087_v12  ;;  %v4674_v50 = vmul.f32 0.5, %v4162_v33 }
 0x423   : > { %v3145_v18 = vmul.f32 0.7978846, %v2633_v38  ;;  %v2634_v16 = vadd.f32 %v2122_v58, %v11178_v14  ;;  %5696 = vst [vmem:[%s7311_s17 + $0xdb0] sm:$0xff] %v5184_v32  ;;  %v2123_v46 = vmul.f32 0.044715, %v1611_v23  ;;  %v1102_v0 = vmul.f32 %v11207_v45, %v11207_v45  ;;  %v11248_v58 = vld [vmem:[%s7165_s30 + $0xe40] sm:$0xff] }
 0x424   : > { %v2124_v51 = vmul.f32 0.044715, %v1612_v47  ;;  %v1613_v41 = vmul.f32 %v1101_v20, %v11197_v40  ;;  %5697 = vst [vmem:[%s7311_s17 + $0xdb8] sm:$0xff] %v5185_v8  ;;  %v5186_v56 = vmul.f32 %v4674_v50, %v11102_v5  ;;  %v1103_v28 = vmul.f32 %v11215_v17, %v11215_v17  ;;  %v11255_v20 = vld [vmem:[%s7165_s30 + $0xe48] sm:$0xff]  ;;  %v11258_v8 = vld [vmem:[%s7165_s30 + $0xe50] sm:$0xff] }
 0x425   : > { %6822 = vtanh.f32 %v3145_v18  ;;  %v3146_v12 = vmul.f32 0.7978846, %v2634_v16  ;;  %v2635_v10 = vadd.f32 %v2123_v46, %v11187_v42  ;;  %v1614_v13 = vmul.f32 %v1102_v0, %v11207_v45  ;;  %v11263_v46 = vld [vmem:[%s7165_s30 + $0xe58] sm:$0xff] }
 0x426   : > { %v6811_v15 = vpop.eup %6810  ;;  %v2636_v55 = vadd.f32 %v2124_v51, %v11190_v53  ;;  %v2125_v2 = vmul.f32 0.044715, %v1613_v41  ;;  %5698 = vst [vmem:[%s7311_s17 + $0xdc0] sm:$0xff] %v5186_v56  ;;  %v1615_v54 = vmul.f32 %v1103_v28, %v11215_v17  ;;  %v1104_v5 = vmul.f32 %v11224_v19, %v11224_v19  ;;  %v11276_v28 = vld [vmem:[%s7165_s30 + $0xe60] sm:$0xff] }
 0x427   : > { %v6813_v62 = vpop.eup %6812  ;;  %v4163_v36 = vadd.f32 1.0, %v6811_v15  ;;  %6824 = vtanh.f32 %v3146_v12  ;;  %v3147_v27 = vmul.f32 0.7978846, %v2635_v10  ;;  %v2126_v7 = vmul.f32 0.044715, %v1614_v13 }
 0x428   : > { %v4164_v34 = vadd.f32 1.0, %v6813_v62  ;;  %v3148_v52 = vmul.f32 0.7978846, %v2636_v55  ;;  %v2637_v21 = vadd.f32 %v2125_v2, %v11197_v40  ;;  %v6815_v3 = vpop.eup %6814  ;;  %v2127_v61 = vmul.f32 0.044715, %v1615_v54 }
 0x429   : > { %v4675_v37 = vmul.f32 0.5, %v4163_v36  ;;  %v1616_v31 = vmul.f32 %v1104_v5, %v11224_v19  ;;  %v6817_v9 = vpop.eup %6816  ;;  %v4165_v24 = vadd.f32 1.0, %v6815_v3  ;;  %6826 = vtanh.f32 %v3147_v27 }
 0x42a   : > { %v4676_v29 = vmul.f32 0.5, %v4164_v34  ;;  %v3149_v39 = vmul.f32 0.7978846, %v2637_v21  ;;  %v6819_v26 = vpop.eup %6818  ;;  %v4166_v6 = vadd.f32 1.0, %v6817_v9  ;;  %6828 = vtanh.f32 %v3148_v52 }
 0x42b   : > { %v5187_v60 = vmul.f32 %v4675_v37, %v11119_v4  ;;  %v2638_v25 = vadd.f32 %v2126_v7, %v11207_v45  ;;  %v4677_v49 = vmul.f32 0.5, %v4165_v24  ;;  %v4167_v57 = vadd.f32 1.0, %v6819_v26 }
 0x42c   : > { %v5188_v44 = vmul.f32 %v4676_v29, %v11123_v35  ;;  %6830 = vtanh.f32 %v3149_v39  ;;  %v4678_v48 = vmul.f32 0.5, %v4166_v6  ;;  %v2639_v4 = vadd.f32 %v2127_v61, %v11215_v17 }
 0x42d   : > { %v6821_v11 = vpop.eup %6820  ;;  %5699 = vst [vmem:[%s7311_s17 + $0xdc8] sm:$0xff] %v5187_v60  ;;  %v3150_v33 = vmul.f32 0.7978846, %v2638_v25  ;;  %v2128_v38 = vmul.f32 0.044715, %v1616_v31  ;;  %v5189_v32 = vmul.f32 %v4677_v49, %v11130_v30  ;;  %v4679_v35 = vmul.f32 0.5, %v4167_v57 }
 0x42e   : > { %5700 = vst [vmem:[%s7311_s17 + $0xdd0] sm:$0xff] %v5188_v44  ;;  %v4168_v23 = vadd.f32 1.0, %v6821_v11  ;;  %v1105_v47 = vmul.f32 %v11242_v43, %v11242_v43  ;;  %v5190_v50 = vmul.f32 %v4678_v48, %v11133_v1  ;;  %v3151_v18 = vmul.f32 0.7978846, %v2639_v4  ;;  %v11297_v57 = vld [vmem:[%s7165_s30 + $0xe68] sm:$0xff] }
 0x42f   : > { %6832 = vtanh.f32 %v3150_v33  ;;  %v2640_v16 = vadd.f32 %v2128_v38, %v11224_v19  ;;  %5701 = vst [vmem:[%s7311_s17 + $0xdd8] sm:$0xff] %v5189_v32  ;;  %v5191_v30 = vmul.f32 %v4679_v35, %v11139_v22  ;;  %v1106_v0 = vmul.f32 %v11248_v58, %v11248_v58  ;;  %v11302_v38 = vld [vmem:[%s7165_s30 + $0xe70] sm:$0xff] }
 0x430   : > { %v4680_v51 = vmul.f32 0.5, %v4168_v23  ;;  %v1617_v41 = vmul.f32 %v1105_v47, %v11242_v43  ;;  %5702 = vst [vmem:[%s7311_s17 + $0xde0] sm:$0xff] %v5190_v50  ;;  %6834 = vtanh.f32 %v3151_v18  ;;  %v1107_v56 = vmul.f32 %v11255_v20, %v11255_v20 }
 0x431   : > { %v3152_v1 = vmul.f32 0.7978846, %v2640_v16  ;;  %v1108_v12 = vmul.f32 %v11258_v8, %v11258_v8  ;;  %5703 = vst [vmem:[%s7311_s17 + $0xde8] sm:$0xff] %v5191_v30  ;;  %v1618_v55 = vmul.f32 %v1106_v0, %v11248_v58  ;;  %v1109_v2 = vmul.f32 %v11263_v46, %v11263_v46  ;;  %v11314_v0 = vld [vmem:[%s7165_s30 + $0xe80] sm:$0xff] }
 0x432   : > { %v6823_v15 = vpop.eup %6822  ;;  %v5192_v22 = vmul.f32 %v4680_v51, %v11145_v59  ;;  %v2129_v10 = vmul.f32 0.044715, %v1617_v41  ;;  %v1619_v62 = vmul.f32 %v1107_v56, %v11255_v20  ;;  %v1110_v59 = vmul.f32 %v11276_v28, %v11276_v28 }
 0x433   : > { %v4169_v13 = vadd.f32 1.0, %v6823_v15  ;;  %6836 = vtanh.f32 %v3152_v1  ;;  %v1620_v36 = vmul.f32 %v1108_v12, %v11258_v8  ;;  %v2130_v34 = vmul.f32 0.044715, %v1618_v55  ;;  %v11319_v15 = vld [vmem:[%s7165_s30 + $0xe88] sm:$0xff] }
 0x434   : > { %v6825_v54 = vpop.eup %6824  ;;  %5704 = vst [vmem:[%s7311_s17 + $0xdf0] sm:$0xff] %v5192_v22  ;;  %v2641_v5 = vadd.f32 %v2129_v10, %v11242_v43  ;;  %v1621_v27 = vmul.f32 %v1109_v2, %v11263_v46  ;;  %v2131_v3 = vmul.f32 0.044715, %v1619_v62  ;;  %v1622_v9 = vmul.f32 %v1110_v59, %v11276_v28  ;;  %v11335_v59 = vld [vmem:[%s7165_s30 + $0xe90] sm:$0xff] }
 0x435   : > { %v4681_v52 = vmul.f32 0.5, %v4169_v13  ;;  %v4170_v21 = vadd.f32 1.0, %v6825_v54  ;;  %v2132_v37 = vmul.f32 0.044715, %v1620_v36  ;;  %v2642_v61 = vadd.f32 %v2130_v34, %v11248_v58 }
 0x436   : > { %v3153_v7 = vmul.f32 0.7978846, %v2641_v5  ;;  %v2133_v31 = vmul.f32 0.044715, %v1621_v27  ;;  %v6827_v29 = vpop.eup %6826  ;;  %v2643_v26 = vadd.f32 %v2131_v3, %v11255_v20  ;;  %v2134_v50 = vmul.f32 0.044715, %v1622_v9 }
 0x437   : > { %v5193_v24 = vmul.f32 %v4681_v52, %v11155_v63  ;;  %v4682_v39 = vmul.f32 0.5, %v4170_v21  ;;  %v2644_v60 = vadd.f32 %v2132_v37, %v11258_v8  ;;  %v6829_v6 = vpop.eup %6828  ;;  %v4171_v25 = vadd.f32 1.0, %v6827_v29  ;;  %v11342_v9 = vld [vmem:[%s7165_s30 + $0xe98] sm:$0xff] }
 0x438   : > { %6838 = vtanh.f32 %v3153_v7  ;;  %v3154_v44 = vmul.f32 0.7978846, %v2642_v61  ;;  %v2645_v49 = vadd.f32 %v2133_v31, %v11263_v46  ;;  %v4172_v48 = vadd.f32 1.0, %v6829_v6 }
 0x439   : > { %v6831_v11 = vpop.eup %6830  ;;  %5705 = vst [vmem:[%s7311_s17 + $0xdf8] sm:$0xff] %v5193_v24  ;;  %v5194_v63 = vmul.f32 %v4682_v39, %v11178_v14  ;;  %v3155_v33 = vmul.f32 0.7978846, %v2643_v26  ;;  %v3156_v4 = vmul.f32 0.7978846, %v2644_v60  ;;  %v4683_v32 = vmul.f32 0.5, %v4171_v25 }
 0x43a   : > { %v4173_v35 = vadd.f32 1.0, %v6831_v11  ;;  %6840 = vtanh.f32 %v3154_v44  ;;  %v3157_v23 = vmul.f32 0.7978846, %v2645_v49  ;;  %v4684_v47 = vmul.f32 0.5, %v4172_v48  ;;  %v11308_v14 = vld [vmem:[%s7165_s30 + $0xe78] sm:$0xff] }
 0x43b   : > { %5706 = vst [vmem:[%s7311_s17 + $0xe00] sm:$0xff] %v5194_v63  ;;  %6842 = vtanh.f32 %v3155_v33  ;;  %v1111_v18 = vmul.f32 %v11297_v57, %v11297_v57  ;;  %v5195_v30 = vmul.f32 %v4683_v32, %v11187_v42  ;;  %v1112_v41 = vmul.f32 %v11302_v38, %v11302_v38 }
 0x43c   : > { %v6833_v16 = vpop.eup %6832  ;;  %v4685_v51 = vmul.f32 0.5, %v4173_v35  ;;  %6844 = vtanh.f32 %v3156_v4  ;;  %v5196_v1 = vmul.f32 %v4684_v47, %v11190_v53  ;;  %v2646_v12 = vadd.f32 %v2134_v50, %v11276_v28 }
 0x43d   : > { %v4174_v56 = vadd.f32 1.0, %v6833_v16  ;;  %6846 = vtanh.f32 %v3157_v23  ;;  %v6835_v22 = vpop.eup %6834  ;;  %5707 = vst [vmem:[%s7311_s17 + $0xe08] sm:$0xff] %v5195_v30  ;;  %v1623_v10 = vmul.f32 %v1111_v18, %v11297_v57  ;;  %v1624_v55 = vmul.f32 %v1112_v41, %v11302_v38 }
 0x43e   : > { %v5197_v42 = vmul.f32 %v4685_v51, %v11197_v40  ;;  %v1113_v2 = vmul.f32 %v11308_v14, %v11308_v14  ;;  %5708 = vst [vmem:[%s7311_s17 + $0xe10] sm:$0xff] %v5196_v1  ;;  %v4175_v13 = vadd.f32 1.0, %v6835_v22  ;;  %v3158_v62 = vmul.f32 0.7978846, %v2646_v12  ;;  %v11361_v12 = vld [vmem:[%s7165_s30 + $0xea0] sm:$0xff] }
 0x43f   : > { %v4686_v53 = vmul.f32 0.5, %v4174_v56  ;;  %v1114_v36 = vmul.f32 %v11314_v0, %v11314_v0  ;;  %v2135_v5 = vmul.f32 0.044715, %v1623_v10  ;;  %v2136_v40 = vmul.f32 0.044715, %v1624_v55 }
 0x440   : > { %v6837_v54 = vpop.eup %6836  ;;  %5709 = vst [vmem:[%s7311_s17 + $0xe18] sm:$0xff] %v5197_v42  ;;  %v1625_v34 = vmul.f32 %v1113_v2, %v11308_v14  ;;  %v1115_v27 = vmul.f32 %v11319_v15, %v11319_v15  ;;  %v4687_v21 = vmul.f32 0.5, %v4175_v13  ;;  %6848 = vtanh.f32 %v3158_v62  ;;  %v11365_v2 = vld [vmem:[%s7165_s30 + $0xea8] sm:$0xff] }
 0x441   : > { %v5198_v52 = vmul.f32 %v4686_v53, %v11207_v45  ;;  %v4176_v3 = vadd.f32 1.0, %v6837_v54  ;;  %v2647_v37 = vadd.f32 %v2135_v5, %v11297_v57  ;;  %v2648_v7 = vadd.f32 %v2136_v40, %v11302_v38 }
 0x442   : > { %v2137_v61 = vmul.f32 0.044715, %v1625_v34  ;;  %v1626_v31 = vmul.f32 %v1114_v36, %v11314_v0  ;;  %v5199_v29 = vmul.f32 %v4687_v21, %v11215_v17  ;;  %v1627_v39 = vmul.f32 %v1115_v27, %v11319_v15  ;;  %v11368_v36 = vld [vmem:[%s7165_s30 + $0xeb0] sm:$0xff]  ;;  %v11376_v34 = vld [vmem:[%s7165_s30 + $0xeb8] sm:$0xff] }
 0x443   : > { %5710 = vst [vmem:[%s7311_s17 + $0xe20] sm:$0xff] %v5198_v52  ;;  %v4688_v24 = vmul.f32 0.5, %v4176_v3  ;;  %v1116_v45 = vmul.f32 %v11335_v59, %v11335_v59  ;;  %v3159_v26 = vmul.f32 0.7978846, %v2647_v37  ;;  %v3160_v60 = vmul.f32 0.7978846, %v2648_v7 }
 0x444   : > { %v2649_v6 = vadd.f32 %v2137_v61, %v11308_v14  ;;  %v2138_v25 = vmul.f32 0.044715, %v1626_v31  ;;  %5711 = vst [vmem:[%s7311_s17 + $0xe28] sm:$0xff] %v5199_v29  ;;  %v2139_v11 = vmul.f32 0.044715, %v1627_v39  ;;  %v1117_v17 = vmul.f32 %v11342_v9, %v11342_v9  ;;  %v11390_v31 = vld [vmem:[%s7165_s30 + $0xec8] sm:$0xff] }
 0x445   : > { %v6839_v44 = vpop.eup %6838  ;;  %v5200_v49 = vmul.f32 %v4688_v24, %v11224_v19  ;;  %v1628_v63 = vmul.f32 %v1116_v45, %v11335_v59  ;;  %6850 = vtanh.f32 %v3159_v26  ;;  %v1118_v40 = vmul.f32 %v11361_v12, %v11361_v12  ;;  %v11398_v26 = vld [vmem:[%s7165_s30 + $0xed0] sm:$0xff] }
 0x446   : > { %v4177_v48 = vadd.f32 1.0, %v6839_v44  ;;  %v3161_v33 = vmul.f32 0.7978846, %v2649_v6  ;;  %v2650_v4 = vadd.f32 %v2138_v25, %v11314_v0  ;;  %6852 = vtanh.f32 %v3160_v60 }
 0x447   : > { %v6841_v32 = vpop.eup %6840  ;;  %5712 = vst [vmem:[%s7311_s17 + $0xe30] sm:$0xff] %v5200_v49  ;;  %v2651_v35 = vadd.f32 %v2139_v11, %v11319_v15  ;;  %v2140_v23 = vmul.f32 0.044715, %v1628_v63  ;;  %v1629_v19 = vmul.f32 %v1117_v17, %v11342_v9  ;;  %v1119_v21 = vmul.f32 %v11365_v2, %v11365_v2 }
 0x448   : > { %v6843_v47 = vpop.eup %6842  ;;  %v4689_v50 = vmul.f32 0.5, %v4177_v48  ;;  %v4178_v18 = vadd.f32 1.0, %v6841_v32  ;;  %6854 = vtanh.f32 %v3161_v33  ;;  %v3162_v16 = vmul.f32 0.7978846, %v2650_v4 }
 0x449   : > { %v6845_v30 = vpop.eup %6844  ;;  %v4179_v51 = vadd.f32 1.0, %v6843_v47  ;;  %v3163_v41 = vmul.f32 0.7978846, %v2651_v35  ;;  %v2652_v1 = vadd.f32 %v2140_v23, %v11335_v59  ;;  %v2141_v56 = vmul.f32 0.044715, %v1629_v19 }
 0x44a   : > { %v6847_v22 = vpop.eup %6846  ;;  %v5201_v42 = vmul.f32 %v4689_v50, %v11242_v43  ;;  %v4690_v10 = vmul.f32 0.5, %v4178_v18  ;;  %v4180_v55 = vadd.f32 1.0, %v6845_v30  ;;  %6856 = vtanh.f32 %v3162_v16 }
 0x44b   : > { %v4691_v53 = vmul.f32 0.5, %v4179_v51  ;;  %v4181_v13 = vadd.f32 1.0, %v6847_v22  ;;  %6858 = vtanh.f32 %v3163_v41  ;;  %v3164_v62 = vmul.f32 0.7978846, %v2652_v1 }
 0x44c   : > { %5713 = vst [vmem:[%s7311_s17 + $0xe38] sm:$0xff] %v5201_v42  ;;  %v5202_v54 = vmul.f32 %v4690_v10, %v11248_v58  ;;  %v4692_v5 = vmul.f32 0.5, %v4180_v55  ;;  %v2653_v43 = vadd.f32 %v2141_v56, %v11342_v9  ;;  %v11382_v58 = vld [vmem:[%s7165_s30 + $0xec0] sm:$0xff]  ;;  %v1630_v61 = vmul.f32 %v1118_v40, %v11361_v12  ;;  %v11421_v40 = vld [vmem:[%s7165_s30 + $0xed8] sm:$0xff] }
 0x44d   : > { %v5203_v27 = vmul.f32 %v4691_v53, %v11255_v20  ;;  %v4693_v52 = vmul.f32 0.5, %v4181_v13  ;;  %6860 = vtanh.f32 %v3164_v62  ;;  %v6849_v3 = vpop.eup %6848  ;;  %v1120_v20 = vmul.f32 %v11368_v36, %v11368_v36 }
 0x44e   : > { %5714 = vst [vmem:[%s7311_s17 + $0xe40] sm:$0xff] %v5202_v54  ;;  %v5204_v37 = vmul.f32 %v4692_v5, %v11258_v8  ;;  %v3165_v7 = vmul.f32 0.7978846, %v2653_v43  ;;  %v4182_v24 = vadd.f32 1.0, %v6849_v3  ;;  %v1631_v39 = vmul.f32 %v1119_v21, %v11365_v2  ;;  %v11425_v3 = vld [vmem:[%s7165_s30 + $0xee0] sm:$0xff] }
 0x44f   : > { %5715 = vst [vmem:[%s7311_s17 + $0xe48] sm:$0xff] %v5203_v27  ;;  %v5205_v29 = vmul.f32 %v4693_v52, %v11263_v46  ;;  %v1121_v45 = vmul.f32 %v11376_v34, %v11376_v34  ;;  %v2142_v8 = vmul.f32 0.044715, %v1630_v61  ;;  %v1632_v60 = vmul.f32 %v1120_v20, %v11368_v36 }
 0x450   : > { %5716 = vst [vmem:[%s7311_s17 + $0xe50] sm:$0xff] %v5204_v37  ;;  %6862 = vtanh.f32 %v3165_v7  ;;  %v1122_v6 = vmul.f32 %v11382_v58, %v11382_v58  ;;  %v4694_v25 = vmul.f32 0.5, %v4182_v24  ;;  %v2143_v44 = vmul.f32 0.044715, %v1631_v39 }
 0x451   : > { %5717 = vst [vmem:[%s7311_s17 + $0xe58] sm:$0xff] %v5205_v29  ;;  %v1633_v46 = vmul.f32 %v1121_v45, %v11376_v34  ;;  %v1123_v49 = vmul.f32 %v11390_v31, %v11390_v31  ;;  %v2654_v11 = vadd.f32 %v2142_v8, %v11361_v12  ;;  %v2144_v63 = vmul.f32 0.044715, %v1632_v60  ;;  %v11432_v29 = vld [vmem:[%s7165_s30 + $0xee8] sm:$0xff] }
 0x452   : > { %v1634_v17 = vmul.f32 %v1122_v6, %v11382_v58  ;;  %v1124_v48 = vmul.f32 %v11398_v26, %v11398_v26  ;;  %v6851_v33 = vpop.eup %6850  ;;  %v5206_v4 = vmul.f32 %v4694_v25, %v11276_v28  ;;  %v2655_v32 = vadd.f32 %v2143_v44, %v11365_v2  ;;  %v11442_v6 = vld [vmem:[%s7165_s30 + $0xef0] sm:$0xff] }
 0x453   : > { %v2145_v35 = vmul.f32 0.044715, %v1633_v46  ;;  %v1635_v23 = vmul.f32 %v1123_v49, %v11390_v31  ;;  %v6853_v19 = vpop.eup %6852  ;;  %v4183_v47 = vadd.f32 1.0, %v6851_v33  ;;  %v3166_v50 = vmul.f32 0.7978846, %v2654_v11  ;;  %v11455_v33 = vld [vmem:[%s7165_s30 + $0xf00] sm:$0xff] }
 0x454   : > { %v2656_v18 = vadd.f32 %v2144_v63, %v11368_v36  ;;  %v2146_v16 = vmul.f32 0.044715, %v1634_v17  ;;  %5718 = vst [vmem:[%s7311_s17 + $0xe60] sm:$0xff] %v5206_v4  ;;  %v4184_v51 = vadd.f32 1.0, %v6853_v19  ;;  %v3167_v41 = vmul.f32 0.7978846, %v2655_v32 }
 0x455   : > { %v6855_v30 = vpop.eup %6854  ;;  %v2657_v1 = vadd.f32 %v2145_v35, %v11376_v34  ;;  %v2147_v56 = vmul.f32 0.044715, %v1635_v23  ;;  %v4695_v28 = vmul.f32 0.5, %v4183_v47  ;;  %6864 = vtanh.f32 %v3166_v50  ;;  %v11449_v63 = vld [vmem:[%s7165_s30 + $0xef8] sm:$0xff] }
 0x456   : > { %v4185_v22 = vadd.f32 1.0, %v6855_v30  ;;  %v3168_v42 = vmul.f32 0.7978846, %v2656_v18  ;;  %v4696_v55 = vmul.f32 0.5, %v4184_v51  ;;  %6866 = vtanh.f32 %v3167_v41  ;;  %v11470_v51 = vld [vmem:[%s7165_s30 + $0xf08] sm:$0xff] }
 0x457   : > { %v6857_v10 = vpop.eup %6856  ;;  %v3169_v53 = vmul.f32 0.7978846, %v2657_v1  ;;  %v2658_v13 = vadd.f32 %v2146_v16, %v11382_v58  ;;  %v5207_v54 = vmul.f32 %v4695_v28, %v11297_v57  ;;  %v2659_v61 = vadd.f32 %v2147_v56, %v11390_v31 }
 0x458   : > { %v6859_v62 = vpop.eup %6858  ;;  %v4697_v5 = vmul.f32 0.5, %v4185_v22  ;;  %v4186_v43 = vadd.f32 1.0, %v6857_v10  ;;  %6868 = vtanh.f32 %v3168_v42  ;;  %v5208_v27 = vmul.f32 %v4696_v55, %v11302_v38 }
 0x459   : > { %v4187_v52 = vadd.f32 1.0, %v6859_v62  ;;  %6870 = vtanh.f32 %v3169_v53  ;;  %v3170_v21 = vmul.f32 0.7978846, %v2658_v13  ;;  %5719 = vst [vmem:[%s7311_s17 + $0xe68] sm:$0xff] %v5207_v54  ;;  %v1636_v20 = vmul.f32 %v1124_v48, %v11398_v26 }
 0x45a   : > { %v6861_v37 = vpop.eup %6860  ;;  %v5209_v57 = vmul.f32 %v4697_v5, %v11308_v14  ;;  %v4698_v7 = vmul.f32 0.5, %v4186_v43  ;;  %5720 = vst [vmem:[%s7311_s17 + $0xe70] sm:$0xff] %v5208_v27  ;;  %v1125_v39 = vmul.f32 %v11421_v40, %v11421_v40  ;;  %v3171_v14 = vmul.f32 0.7978846, %v2659_v61 }
 0x45b   : > { %v4699_v38 = vmul.f32 0.5, %v4187_v52  ;;  %v4188_v24 = vadd.f32 1.0, %v6861_v37  ;;  %6872 = vtanh.f32 %v3170_v21  ;;  %v2148_v8 = vmul.f32 0.044715, %v1636_v20 }
 0x45c   : > { %5721 = vst [vmem:[%s7311_s17 + $0xe78] sm:$0xff] %v5209_v57  ;;  %v5210_v45 = vmul.f32 %v4698_v7, %v11314_v0  ;;  %v1126_v60 = vmul.f32 %v11425_v3, %v11425_v3  ;;  %v1637_v49 = vmul.f32 %v1125_v39, %v11421_v40  ;;  %v1127_v11 = vmul.f32 %v11432_v29, %v11432_v29 }
 0x45d   : > { %v6863_v25 = vpop.eup %6862  ;;  %v5211_v44 = vmul.f32 %v4699_v38, %v11319_v15  ;;  %v4700_v46 = vmul.f32 0.5, %v4188_v24  ;;  %6874 = vtanh.f32 %v3171_v14  ;;  %v2660_v17 = vadd.f32 %v2148_v8, %v11398_v26  ;;  %v11483_v24 = vld [vmem:[%s7165_s30 + $0xf10] sm:$0xff] }
 0x45e   : > { %5722 = vst [vmem:[%s7311_s17 + $0xe80] sm:$0xff] %v5210_v45  ;;  %v4189_v0 = vadd.f32 1.0, %v6863_v25  ;;  %v1638_v48 = vmul.f32 %v1126_v60, %v11425_v3  ;;  %v2149_v4 = vmul.f32 0.044715, %v1637_v49  ;;  %v1639_v32 = vmul.f32 %v1127_v11, %v11432_v29  ;;  %v11487_v25 = vld [vmem:[%s7165_s30 + $0xf18] sm:$0xff]  ;;  %v11491_v11 = vld [vmem:[%s7165_s30 + $0xf20] sm:$0xff] }
 0x45f   : > { %5723 = vst [vmem:[%s7311_s17 + $0xe88] sm:$0xff] %v5211_v44  ;;  %v5212_v15 = vmul.f32 %v4700_v46, %v11335_v59  ;;  %v1128_v35 = vmul.f32 %v11442_v6, %v11442_v6  ;;  %v3172_v19 = vmul.f32 0.7978846, %v2660_v17  ;;  %v1129_v50 = vmul.f32 %v11449_v63, %v11449_v63 }
 0x460   : > { %v4701_v23 = vmul.f32 0.5, %v4189_v0  ;;  %v2150_v47 = vmul.f32 0.044715, %v1638_v48  ;;  %v2661_v18 = vadd.f32 %v2149_v4, %v11421_v40  ;;  %v2151_v16 = vmul.f32 0.044715, %v1639_v32  ;;  %v11498_v48 = vld [vmem:[%s7165_s30 + $0xf28] sm:$0xff] }
 0x461   : > { %5724 = vst [vmem:[%s7311_s17 + $0xe90] sm:$0xff] %v5212_v15  ;;  %v1640_v30 = vmul.f32 %v1128_v35, %v11442_v6  ;;  %v1130_v59 = vmul.f32 %v11455_v33, %v11455_v33  ;;  %6876 = vtanh.f32 %v3172_v19  ;;  %v1641_v56 = vmul.f32 %v1129_v50, %v11449_v63  ;;  %v11510_v50 = vld [vmem:[%s7165_s30 + $0xf30] sm:$0xff] }
 0x462   : > { %v5213_v41 = vmul.f32 %v4701_v23, %v11342_v9  ;;  %v2662_v1 = vadd.f32 %v2150_v47, %v11425_v3  ;;  %v6865_v28 = vpop.eup %6864  ;;  %v3173_v22 = vmul.f32 0.7978846, %v2661_v18  ;;  %v2663_v42 = vadd.f32 %v2151_v16, %v11432_v29 }
 0x463   : > { %v2152_v10 = vmul.f32 0.044715, %v1640_v30  ;;  %v1642_v55 = vmul.f32 %v1130_v59, %v11455_v33  ;;  %v6867_v53 = vpop.eup %6866  ;;  %v4190_v13 = vadd.f32 1.0, %v6865_v28  ;;  %v2153_v54 = vmul.f32 0.044715, %v1641_v56 }
 0x464   : > { %5725 = vst [vmem:[%s7311_s17 + $0xe98] sm:$0xff] %v5213_v41  ;;  %v3174_v62 = vmul.f32 0.7978846, %v2662_v1  ;;  %v1131_v9 = vmul.f32 %v11470_v51, %v11470_v51  ;;  %v4191_v43 = vadd.f32 1.0, %v6867_v53  ;;  %6878 = vtanh.f32 %v3173_v22 }
 0x465   : > { %v6869_v5 = vpop.eup %6868  ;;  %v3175_v27 = vmul.f32 0.7978846, %v2663_v42  ;;  %v2664_v52 = vadd.f32 %v2152_v10, %v11442_v6  ;;  %v4702_v37 = vmul.f32 0.5, %v4190_v13  ;;  %v2665_v7 = vadd.f32 %v2153_v54, %v11449_v63  ;;  %v11525_v10 = vld [vmem:[%s7165_s30 + $0xf38] sm:$0xff] }
 0x466   : > { %v6871_v21 = vpop.eup %6870  ;;  %v4192_v57 = vadd.f32 1.0, %v6869_v5  ;;  %6880 = vtanh.f32 %v3174_v62  ;;  %v4703_v61 = vmul.f32 0.5, %v4191_v43  ;;  %v2154_v60 = vmul.f32 0.044715, %v1642_v55 }
 0x467   : > { %v4193_v20 = vadd.f32 1.0, %v6871_v21  ;;  %6882 = vtanh.f32 %v3175_v27  ;;  %v3176_v38 = vmul.f32 0.7978846, %v2664_v52  ;;  %v5214_v45 = vmul.f32 %v4702_v37, %v11361_v12 }
 0x468   : > { %v6873_v39 = vpop.eup %6872  ;;  %v4704_v14 = vmul.f32 0.5, %v4192_v57  ;;  %v3177_v8 = vmul.f32 0.7978846, %v2665_v7  ;;  %v5215_v44 = vmul.f32 %v4703_v61, %v11365_v2  ;;  %v2666_v12 = vadd.f32 %v2154_v60, %v11455_v33 }
 0x469   : > { %v4705_v46 = vmul.f32 0.5, %v4193_v20  ;;  %v4194_v49 = vadd.f32 1.0, %v6873_v39  ;;  %6884 = vtanh.f32 %v3176_v38  ;;  %5726 = vst [vmem:[%s7311_s17 + $0xea0] sm:$0xff] %v5214_v45  ;;  %v1643_v17 = vmul.f32 %v1131_v9, %v11470_v51 }
 0x46a   : > { %v5216_v0 = vmul.f32 %v4704_v14, %v11368_v36  ;;  %6886 = vtanh.f32 %v3177_v8  ;;  %v6875_v15 = vpop.eup %6874  ;;  %5727 = vst [vmem:[%s7311_s17 + $0xea8] sm:$0xff] %v5215_v44  ;;  %v1132_v32 = vmul.f32 %v11483_v24, %v11483_v24  ;;  %v1133_v36 = vmul.f32 %v11487_v25, %v11487_v25 }
 0x46b   : > { %v5217_v2 = vmul.f32 %v4705_v46, %v11376_v34  ;;  %v4706_v4 = vmul.f32 0.5, %v4194_v49  ;;  %v4195_v35 = vadd.f32 1.0, %v6875_v15  ;;  %v3178_v23 = vmul.f32 0.7978846, %v2666_v12 }
 0x46c   : > { %5728 = vst [vmem:[%s7311_s17 + $0xeb0] sm:$0xff] %v5216_v0  ;;  %v2155_v19 = vmul.f32 0.044715, %v1643_v17  ;;  %v1134_v47 = vmul.f32 %v11491_v11, %v11491_v11  ;;  %v1644_v18 = vmul.f32 %v1132_v32, %v11483_v24  ;;  %v1645_v16 = vmul.f32 %v1133_v36, %v11487_v25  ;;  %v11545_v36 = vld [vmem:[%s7165_s30 + $0xf48] sm:$0xff] }
 0x46d   : > { %5729 = vst [vmem:[%s7311_s17 + $0xeb8] sm:$0xff] %v5217_v2  ;;  %v5218_v34 = vmul.f32 %v4706_v4, %v11382_v58  ;;  %v1135_v30 = vmul.f32 %v11498_v48, %v11498_v48  ;;  %v4707_v59 = vmul.f32 0.5, %v4195_v35  ;;  %6888 = vtanh.f32 %v3178_v23  ;;  %v11548_v35 = vld [vmem:[%s7165_s30 + $0xf50] sm:$0xff] }
 0x46e   : > { %v2667_v41 = vadd.f32 %v2155_v19, %v11470_v51  ;;  %v1646_v1 = vmul.f32 %v1134_v47, %v11491_v11  ;;  %v6877_v56 = vpop.eup %6876  ;;  %v2156_v28 = vmul.f32 0.044715, %v1644_v18  ;;  %v2157_v22 = vmul.f32 0.044715, %v1645_v16 }
 0x46f   : > { %5730 = vst [vmem:[%s7311_s17 + $0xec0] sm:$0xff] %v5218_v34  ;;  %v1647_v58 = vmul.f32 %v1135_v30, %v11498_v48  ;;  %v1136_v42 = vmul.f32 %v11510_v50, %v11510_v50  ;;  %v5219_v55 = vmul.f32 %v4707_v59, %v11390_v31  ;;  %v4196_v53 = vadd.f32 1.0, %v6877_v56  ;;  %v11552_v34 = vld [vmem:[%s7165_s30 + $0xf58] sm:$0xff] }
 0x470   : > { %v3179_v13 = vmul.f32 0.7978846, %v2667_v41  ;;  %v2158_v62 = vmul.f32 0.044715, %v1646_v1  ;;  %v2668_v54 = vadd.f32 %v2156_v28, %v11483_v24  ;;  %v2669_v9 = vadd.f32 %v2157_v22, %v11487_v25  ;;  %v11564_v1 = vld [vmem:[%s7165_s30 + $0xf60] sm:$0xff] }
 0x471   : > { %v2159_v5 = vmul.f32 0.044715, %v1647_v58  ;;  %v1648_v43 = vmul.f32 %v1136_v42, %v11510_v50  ;;  %v6879_v27 = vpop.eup %6878  ;;  %5731 = vst [vmem:[%s7311_s17 + $0xec8] sm:$0xff] %v5219_v55  ;;  %v4708_v52 = vmul.f32 0.5, %v4196_v53  ;;  %v1137_v37 = vmul.f32 %v11525_v10, %v11525_v10  ;;  %v11573_v42 = vld [vmem:[%s7165_s30 + $0xf68] sm:$0xff] }
 0x472   : > { %6890 = vtanh.f32 %v3179_v13  ;;  %v2670_v21 = vadd.f32 %v2158_v62, %v11491_v11  ;;  %v4197_v57 = vadd.f32 1.0, %v6879_v27  ;;  %v3180_v7 = vmul.f32 0.7978846, %v2668_v54 }
 0x473   : > { %v6881_v31 = vpop.eup %6880  ;;  %v3181_v61 = vmul.f32 0.7978846, %v2669_v9  ;;  %v2671_v20 = vadd.f32 %v2159_v5, %v11498_v48  ;;  %v5220_v39 = vmul.f32 %v4708_v52, %v11398_v26  ;;  %v2160_v8 = vmul.f32 0.044715, %v1648_v43  ;;  %v11541_v26 = vld [vmem:[%s7165_s30 + $0xf40] sm:$0xff] }
 0x474   : > { %v6883_v38 = vpop.eup %6882  ;;  %v4198_v45 = vadd.f32 1.0, %v6881_v31  ;;  %v3182_v14 = vmul.f32 0.7978846, %v2670_v21  ;;  %v4709_v60 = vmul.f32 0.5, %v4197_v57  ;;  %6892 = vtanh.f32 %v3180_v7  ;;  %v11588_v7 = vld [vmem:[%s7165_s30 + $0xf70] sm:$0xff] }
 0x475   : > { %v4199_v44 = vadd.f32 1.0, %v6883_v38  ;;  %v3183_v46 = vmul.f32 0.7978846, %v2671_v20  ;;  %5732 = vst [vmem:[%s7311_s17 + $0xed0] sm:$0xff] %v5220_v39  ;;  %6894 = vtanh.f32 %v3181_v61  ;;  %v2672_v12 = vadd.f32 %v2160_v8, %v11510_v50 }
 0x476   : > { %v6885_v49 = vpop.eup %6884  ;;  %v4710_v0 = vmul.f32 0.5, %v4198_v45  ;;  %v1649_v17 = vmul.f32 %v1137_v37, %v11525_v10  ;;  %v5221_v2 = vmul.f32 %v4709_v60, %v11421_v40  ;;  %6896 = vtanh.f32 %v3182_v14 }
 0x477   : > { %v6887_v15 = vpop.eup %6886  ;;  %v4711_v4 = vmul.f32 0.5, %v4199_v44  ;;  %v4200_v32 = vadd.f32 1.0, %v6885_v49  ;;  %6898 = vtanh.f32 %v3183_v46  ;;  %v3184_v47 = vmul.f32 0.7978846, %v2672_v12 }
 0x478   : > { %v5222_v23 = vmul.f32 %v4710_v0, %v11425_v3  ;;  %v4201_v19 = vadd.f32 1.0, %v6887_v15  ;;  %5733 = vst [vmem:[%s7311_s17 + $0xed8] sm:$0xff] %v5221_v2  ;;  %v2161_v16 = vmul.f32 0.044715, %v1649_v17  ;;  %v1138_v30 = vmul.f32 %v11541_v26, %v11541_v26 }
 0x479   : > { %v5223_v40 = vmul.f32 %v4711_v4, %v11432_v29  ;;  %v4712_v18 = vmul.f32 0.5, %v4200_v32  ;;  %6900 = vtanh.f32 %v3184_v47  ;;  %v1139_v3 = vmul.f32 %v11545_v36, %v11545_v36 }
 0x47a   : > { %5734 = vst [vmem:[%s7311_s17 + $0xee0] sm:$0xff] %v5222_v23  ;;  %v4713_v59 = vmul.f32 0.5, %v4201_v19  ;;  %v1140_v41 = vmul.f32 %v11548_v35, %v11548_v35  ;;  %v6889_v56 = vpop.eup %6888  ;;  %v2673_v28 = vadd.f32 %v2161_v16, %v11525_v10  ;;  %v1650_v22 = vmul.f32 %v1138_v30, %v11541_v26 }
 0x47b   : > { %5735 = vst [vmem:[%s7311_s17 + $0xee8] sm:$0xff] %v5223_v40  ;;  %v5224_v29 = vmul.f32 %v4712_v18, %v11442_v6  ;;  %v1141_v58 = vmul.f32 %v11552_v34, %v11552_v34  ;;  %v4202_v53 = vadd.f32 1.0, %v6889_v56  ;;  %v1651_v13 = vmul.f32 %v1139_v3, %v11545_v36 }
 0x47c   : > { %v5225_v55 = vmul.f32 %v4713_v59, %v11449_v63  ;;  %v1652_v62 = vmul.f32 %v1140_v41, %v11548_v35  ;;  %v3185_v54 = vmul.f32 0.7978846, %v2673_v28  ;;  %v2162_v6 = vmul.f32 0.044715, %v1650_v22  ;;  %v11603_v41 = vld [vmem:[%s7165_s30 + $0xf78] sm:$0xff] }
 0x47d   : > { %5736 = vst [vmem:[%s7311_s17 + $0xef0] sm:$0xff] %v5224_v29  ;;  %v1653_v9 = vmul.f32 %v1141_v58, %v11552_v34  ;;  %v1142_v5 = vmul.f32 %v11564_v1, %v11564_v1  ;;  %v4714_v43 = vmul.f32 0.5, %v4202_v53  ;;  %v2163_v27 = vmul.f32 0.044715, %v1651_v13  ;;  %v11611_v58 = vld [vmem:[%s7165_s30 + $0xf88] sm:$0xff] }
 0x47e   : > { %5737 = vst [vmem:[%s7311_s17 + $0xef8] sm:$0xff] %v5225_v55  ;;  %v2164_v52 = vmul.f32 0.044715, %v1652_v62  ;;  %v1143_v63 = vmul.f32 %v11573_v42, %v11573_v42  ;;  %6902 = vtanh.f32 %v3185_v54  ;;  %v2674_v37 = vadd.f32 %v2162_v6, %v11541_v26  ;;  %v11615_v54 = vld [vmem:[%s7165_s30 + $0xf90] sm:$0xff] }
 0x47f   : > { %v6891_v21 = vpop.eup %6890  ;;  %v2165_v31 = vmul.f32 0.044715, %v1653_v9  ;;  %v1654_v57 = vmul.f32 %v1142_v5, %v11564_v1  ;;  %v5226_v61 = vmul.f32 %v4714_v43, %v11455_v33  ;;  %v2675_v38 = vadd.f32 %v2163_v27, %v11545_v36  ;;  %v11624_v43 = vld [vmem:[%s7165_s30 + $0xf98] sm:$0xff] }
 0x480   : > { %v4203_v20 = vadd.f32 1.0, %v6891_v21  ;;  %v2676_v39 = vadd.f32 %v2164_v52, %v11548_v35  ;;  %v3186_v45 = vmul.f32 0.7978846, %v2674_v37  ;;  %v1655_v60 = vmul.f32 %v1143_v63, %v11573_v42 }
 0x481   : > { %v2677_v14 = vadd.f32 %v2165_v31, %v11552_v34  ;;  %v2166_v8 = vmul.f32 0.044715, %v1654_v57  ;;  %v6893_v44 = vpop.eup %6892  ;;  %5738 = vst [vmem:[%s7311_s17 + $0xf00] sm:$0xff] %v5226_v61  ;;  %v3187_v49 = vmul.f32 0.7978846, %v2675_v38  ;;  %v1144_v12 = vmul.f32 %v11588_v7, %v11588_v7 }
 0x482   : > { %v4715_v46 = vmul.f32 0.5, %v4203_v20  ;;  %v3188_v0 = vmul.f32 0.7978846, %v2676_v39  ;;  %v6895_v33 = vpop.eup %6894  ;;  %v4204_v17 = vadd.f32 1.0, %v6893_v44  ;;  %6904 = vtanh.f32 %v3186_v45 }
 0x483   : > { %v3189_v15 = vmul.f32 0.7978846, %v2677_v14  ;;  %v2678_v2 = vadd.f32 %v2166_v8, %v11564_v1  ;;  %v6897_v4 = vpop.eup %6896  ;;  %v4205_v23 = vadd.f32 1.0, %v6895_v33  ;;  %6906 = vtanh.f32 %v3187_v49 }
 0x484   : > { %v5227_v32 = vmul.f32 %v4715_v46, %v11470_v51  ;;  %v2167_v19 = vmul.f32 0.044715, %v1655_v60  ;;  %v6899_v47 = vpop.eup %6898  ;;  %v4716_v40 = vmul.f32 0.5, %v4204_v17  ;;  %v4206_v18 = vadd.f32 1.0, %v6897_v4  ;;  %v11606_v51 = vld [vmem:[%s7165_s30 + $0xf80] sm:$0xff] }
 0x485   : > { %6908 = vtanh.f32 %v3188_v0  ;;  %v3190_v16 = vmul.f32 0.7978846, %v2678_v2  ;;  %v4717_v30 = vmul.f32 0.5, %v4205_v23  ;;  %v4207_v59 = vadd.f32 1.0, %v6899_v47 }
 0x486   : > { %5739 = vst [vmem:[%s7311_s17 + $0xf08] sm:$0xff] %v5227_v32  ;;  %6910 = vtanh.f32 %v3189_v15  ;;  %v2679_v3 = vadd.f32 %v2167_v19, %v11573_v42  ;;  %v6901_v56 = vpop.eup %6900  ;;  %v5228_v29 = vmul.f32 %v4716_v40, %v11483_v24  ;;  %v4718_v28 = vmul.f32 0.5, %v4206_v18 }
 0x487   : > { %6912 = vtanh.f32 %v3190_v16  ;;  %v1656_v22 = vmul.f32 %v1144_v12, %v11588_v7  ;;  %v5229_v55 = vmul.f32 %v4717_v30, %v11487_v25  ;;  %v4719_v53 = vmul.f32 0.5, %v4207_v59  ;;  %v11627_v25 = vld [vmem:[%s7165_s30 + $0xfa0] sm:$0xff] }
 0x488   : > { %v4208_v13 = vadd.f32 1.0, %v6901_v56  ;;  %v3191_v62 = vmul.f32 0.7978846, %v2679_v3  ;;  %5740 = vst [vmem:[%s7311_s17 + $0xf10] sm:$0xff] %v5228_v29  ;;  %v5230_v6 = vmul.f32 %v4718_v28, %v11491_v11  ;;  %v1145_v9 = vmul.f32 %v11603_v41, %v11603_v41 }
 0x489   : > { %v2168_v24 = vmul.f32 0.044715, %v1656_v22  ;;  %v1146_v5 = vmul.f32 %v11606_v51, %v11606_v51  ;;  %5741 = vst [vmem:[%s7311_s17 + $0xf18] sm:$0xff] %v5229_v55  ;;  %v5231_v27 = vmul.f32 %v4719_v53, %v11498_v48  ;;  %v1147_v11 = vmul.f32 %v11611_v58, %v11611_v58 }
 0x48a   : > { %v4720_v52 = vmul.f32 0.5, %v4208_v13  ;;  %6914 = vtanh.f32 %v3191_v62  ;;  %5742 = vst [vmem:[%s7311_s17 + $0xf20] sm:$0xff] %v5230_v6  ;;  %v1657_v21 = vmul.f32 %v1145_v9, %v11603_v41  ;;  %v1148_v31 = vmul.f32 %v11615_v54, %v11615_v54  ;;  %v11658_v62 = vld [vmem:[%s7165_s30 + $0xfa8] sm:$0xff] }
 0x48b   : > { %v2680_v63 = vadd.f32 %v2168_v24, %v11588_v7  ;;  %v1658_v37 = vmul.f32 %v1146_v5, %v11606_v51  ;;  %v6903_v57 = vpop.eup %6902  ;;  %5743 = vst [vmem:[%s7311_s17 + $0xf28] sm:$0xff] %v5231_v27  ;;  %v1659_v61 = vmul.f32 %v1147_v11, %v11611_v58  ;;  %v1149_v20 = vmul.f32 %v11624_v43, %v11624_v43  ;;  %v11662_v5 = vld [vmem:[%s7165_s30 + $0xfb0] sm:$0xff] }
 0x48c   : > { %v5232_v48 = vmul.f32 %v4720_v52, %v11510_v50  ;;  %v1150_v38 = vmul.f32 %v11627_v25, %v11627_v25  ;;  %v4209_v39 = vadd.f32 1.0, %v6903_v57  ;;  %v2169_v14 = vmul.f32 0.044715, %v1657_v21  ;;  %v11670_v21 = vld [vmem:[%s7165_s30 + $0xfc0] sm:$0xff]  ;;  %v11677_v57 = vld [vmem:[%s7165_s30 + $0xfc8] sm:$0xff] }
 0x48d   : > { %v3192_v45 = vmul.f32 0.7978846, %v2680_v63  ;;  %v1660_v8 = vmul.f32 %v1148_v31, %v11615_v54  ;;  %v2170_v60 = vmul.f32 0.044715, %v1658_v37  ;;  %v2171_v44 = vmul.f32 0.044715, %v1659_v61 }
 0x48e   : > { %5744 = vst [vmem:[%s7311_s17 + $0xf30] sm:$0xff] %v5232_v48  ;;  %v1661_v46 = vmul.f32 %v1149_v20, %v11624_v43  ;;  %v1662_v50 = vmul.f32 %v1150_v38, %v11627_v25  ;;  %v4721_v49 = vmul.f32 0.5, %v4209_v39  ;;  %v2681_v0 = vadd.f32 %v2169_v14, %v11603_v41  ;;  %v11667_v63 = vld [vmem:[%s7165_s30 + $0xfb8] sm:$0xff]  ;;  %v11684_v39 = vld [vmem:[%s7165_s30 + $0xfd0] sm:$0xff] }
 0x48f   : > { %6916 = vtanh.f32 %v3192_v45  ;;  %v2172_v12 = vmul.f32 0.044715, %v1660_v8  ;;  %v6905_v33 = vpop.eup %6904  ;;  %v2682_v17 = vadd.f32 %v2170_v60, %v11606_v51  ;;  %v2683_v15 = vadd.f32 %v2171_v44, %v11611_v58 }
 0x490   : > { %v2173_v2 = vmul.f32 0.044715, %v1661_v46  ;;  %v2174_v4 = vmul.f32 0.044715, %v1662_v50  ;;  %v6907_v32 = vpop.eup %6906  ;;  %v5233_v23 = vmul.f32 %v4721_v49, %v11525_v10  ;;  %v4210_v19 = vadd.f32 1.0, %v6905_v33 }
 0x491   : > { %v3193_v47 = vmul.f32 0.7978846, %v2681_v0  ;;  %v2684_v40 = vadd.f32 %v2172_v12, %v11615_v54  ;;  %v4211_v16 = vadd.f32 1.0, %v6907_v32  ;;  %v3194_v30 = vmul.f32 0.7978846, %v2682_v17 }
 0x492   : > { %v6909_v18 = vpop.eup %6908  ;;  %v3195_v59 = vmul.f32 0.7978846, %v2683_v15  ;;  %v2685_v3 = vadd.f32 %v2173_v2, %v11624_v43  ;;  %5745 = vst [vmem:[%s7311_s17 + $0xf38] sm:$0xff] %v5233_v23  ;;  %v4722_v29 = vmul.f32 0.5, %v4210_v19  ;;  %v2686_v11 = vadd.f32 %v2174_v4, %v11627_v25 }
 0x493   : > { %v6911_v56 = vpop.eup %6910  ;;  %v4212_v28 = vadd.f32 1.0, %v6909_v18  ;;  %6918 = vtanh.f32 %v3193_v47  ;;  %v3196_v22 = vmul.f32 0.7978846, %v2684_v40  ;;  %v4723_v55 = vmul.f32 0.5, %v4211_v16 }
 0x494   : > { %v6913_v10 = vpop.eup %6912  ;;  %v4213_v53 = vadd.f32 1.0, %v6911_v56  ;;  %6920 = vtanh.f32 %v3194_v30  ;;  %v3197_v13 = vmul.f32 0.7978846, %v2685_v3  ;;  %v5234_v6 = vmul.f32 %v4722_v29, %v11541_v26 }
 0x495   : > { %v4724_v24 = vmul.f32 0.5, %v4212_v28  ;;  %v4214_v9 = vadd.f32 1.0, %v6913_v10  ;;  %6922 = vtanh.f32 %v3195_v59  ;;  %v5235_v27 = vmul.f32 %v4723_v55, %v11545_v36 }
 0x496   : > { %v4725_v52 = vmul.f32 0.5, %v4213_v53  ;;  %6924 = vtanh.f32 %v3196_v22  ;;  %5746 = vst [vmem:[%s7311_s17 + $0xf40] sm:$0xff] %v5234_v6  ;;  %v1151_v36 = vmul.f32 %v11658_v62, %v11658_v62  ;;  %v3198_v20 = vmul.f32 0.7978846, %v2686_v11 }
 0x497   : > { %v6915_v26 = vpop.eup %6914  ;;  %v5236_v37 = vmul.f32 %v4724_v24, %v11548_v35  ;;  %v4726_v31 = vmul.f32 0.5, %v4214_v9  ;;  %6926 = vtanh.f32 %v3197_v13  ;;  %5747 = vst [vmem:[%s7311_s17 + $0xf48] sm:$0xff] %v5235_v27  ;;  %v1152_v38 = vmul.f32 %v11662_v5, %v11662_v5 }
 0x498   : > { %v5237_v48 = vmul.f32 %v4725_v52, %v11552_v34  ;;  %v4215_v61 = vadd.f32 1.0, %v6915_v26  ;;  %v1663_v45 = vmul.f32 %v1151_v36, %v11658_v62  ;;  %v1153_v14 = vmul.f32 %v11667_v63, %v11667_v63  ;;  %v11694_v34 = vld [vmem:[%s7165_s30 + $0xfd8] sm:$0xff] }
 0x499   : > { %5748 = vst [vmem:[%s7311_s17 + $0xf50] sm:$0xff] %v5236_v37  ;;  %v5238_v35 = vmul.f32 %v4726_v31, %v11564_v1  ;;  %v1154_v8 = vmul.f32 %v11670_v21, %v11670_v21  ;;  %6928 = vtanh.f32 %v3198_v20  ;;  %v1664_v44 = vmul.f32 %v1152_v38, %v11662_v5  ;;  %v11722_v20 = vld [vmem:[%s7165_s30 + $0xfe0] sm:$0xff]  ;;  %v11725_v38 = vld [vmem:[%s7165_s30 + $0xfe8] sm:$0xff] }
 0x49a   : > { %5749 = vst [vmem:[%s7311_s17 + $0xf58] sm:$0xff] %v5237_v48  ;;  %v4727_v60 = vmul.f32 0.5, %v4215_v61  ;;  %v1155_v46 = vmul.f32 %v11677_v57, %v11677_v57  ;;  %v2175_v1 = vmul.f32 0.044715, %v1663_v45  ;;  %v1665_v50 = vmul.f32 %v1153_v14, %v11667_v63 }
 0x49b   : > { %5750 = vst [vmem:[%s7311_s17 + $0xf60] sm:$0xff] %v5238_v35  ;;  %v1666_v49 = vmul.f32 %v1154_v8, %v11670_v21  ;;  %v1156_v0 = vmul.f32 %v11684_v39, %v11684_v39  ;;  %v2176_v17 = vmul.f32 0.044715, %v1664_v44  ;;  %v1157_v2 = vmul.f32 %v11694_v34, %v11694_v34  ;;  %v11729_v8 = vld [vmem:[%s7165_s30 + $0xff0] sm:$0xff] }
 0x49c   : > { %v6917_v12 = vpop.eup %6916  ;;  %v5239_v33 = vmul.f32 %v4727_v60, %v11573_v42  ;;  %v1667_v15 = vmul.f32 %v1155_v46, %v11677_v57  ;;  %v2687_v32 = vadd.f32 %v2175_v1, %v11658_v62  ;;  %v2177_v23 = vmul.f32 0.044715, %v1665_v50 }
 0x49d   : > { %v4216_v4 = vadd.f32 1.0, %v6917_v12  ;;  %v2178_v19 = vmul.f32 0.044715, %v1666_v49  ;;  %v2688_v47 = vadd.f32 %v2176_v17, %v11662_v5  ;;  %v1668_v18 = vmul.f32 %v1156_v0, %v11684_v39 }
 0x49e   : > { %5751 = vst [vmem:[%s7311_s17 + $0xf68] sm:$0xff] %v5239_v33  ;;  %v2179_v40 = vmul.f32 0.044715, %v1667_v15  ;;  %v1669_v16 = vmul.f32 %v1157_v2, %v11694_v34  ;;  %v3199_v30 = vmul.f32 0.7978846, %v2687_v32  ;;  %v2689_v59 = vadd.f32 %v2177_v23, %v11667_v63  ;;  %v11739_v33 = vld [vmem:[%s7165_s30 + $0xff8] sm:$0xff] }
 0x49f   : > { %v4728_v42 = vmul.f32 0.5, %v4216_v4  ;;  %v2690_v3 = vadd.f32 %v2178_v19, %v11670_v21  ;;  %v3200_v29 = vmul.f32 0.7978846, %v2688_v47  ;;  %v2180_v22 = vmul.f32 0.044715, %v1668_v18 }
 0x4a0   : > { %v6919_v56 = vpop.eup %6918  ;;  %v2691_v28 = vadd.f32 %v2179_v40, %v11677_v57  ;;  %v2181_v10 = vmul.f32 0.044715, %v1669_v16  ;;  %6930 = vtanh.f32 %v3199_v30  ;;  %v3201_v6 = vmul.f32 0.7978846, %v2689_v59 }
 0x4a1   : > { %v6921_v55 = vpop.eup %6920  ;;  %v5240_v53 = vmul.f32 %v4728_v42, %v11588_v7  ;;  %v4217_v13 = vadd.f32 1.0, %v6919_v56  ;;  %6932 = vtanh.f32 %v3200_v29  ;;  %v3202_v27 = vmul.f32 0.7978846, %v2690_v3 }
 0x4a2   : > { %v6923_v24 = vpop.eup %6922  ;;  %v4218_v9 = vadd.f32 1.0, %v6921_v55  ;;  %v3203_v52 = vmul.f32 0.7978846, %v2691_v28  ;;  %6934 = vtanh.f32 %v3201_v6  ;;  %v2692_v31 = vadd.f32 %v2180_v22, %v11684_v39 }
 0x4a3   : > { %v6925_v11 = vpop.eup %6924  ;;  %5752 = vst [vmem:[%s7311_s17 + $0xf70] sm:$0xff] %v5240_v53  ;;  %v4729_v26 = vmul.f32 0.5, %v4217_v13  ;;  %v4219_v37 = vadd.f32 1.0, %v6923_v24  ;;  %6936 = vtanh.f32 %v3202_v27  ;;  %v2693_v61 = vadd.f32 %v2181_v10, %v11694_v34 }
 0x4a4   : > { %v6927_v36 = vpop.eup %6926  ;;  %v4730_v7 = vmul.f32 0.5, %v4218_v9  ;;  %v4220_v48 = vadd.f32 1.0, %v6925_v11  ;;  %6938 = vtanh.f32 %v3203_v52  ;;  %v3204_v46 = vmul.f32 0.7978846, %v2692_v31 }
 0x4a5   : > { %v5241_v35 = vmul.f32 %v4729_v26, %v11603_v41  ;;  %v4731_v45 = vmul.f32 0.5, %v4219_v37  ;;  %v4221_v14 = vadd.f32 1.0, %v6927_v36  ;;  %v3205_v1 = vmul.f32 0.7978846, %v2693_v61 }
 0x4a6   : > { %v5242_v60 = vmul.f32 %v4730_v7, %v11606_v51  ;;  %v4732_v44 = vmul.f32 0.5, %v4220_v48  ;;  %v6929_v50 = vpop.eup %6928  ;;  %v1158_v41 = vmul.f32 %v11722_v20, %v11722_v20  ;;  %v1159_v12 = vmul.f32 %v11725_v38, %v11725_v38 }
 0x4a7   : > { %5753 = vst [vmem:[%s7311_s17 + $0xf78] sm:$0xff] %v5241_v35  ;;  %v5243_v49 = vmul.f32 %v4731_v45, %v11611_v58  ;;  %v4733_v0 = vmul.f32 0.5, %v4221_v14  ;;  %v4222_v17 = vadd.f32 1.0, %v6929_v50  ;;  %6940 = vtanh.f32 %v3204_v46 }
 0x4a8   : > { %5754 = vst [vmem:[%s7311_s17 + $0xf80] sm:$0xff] %v5242_v60  ;;  %v5244_v51 = vmul.f32 %v4732_v44, %v11615_v54  ;;  %v1160_v15 = vmul.f32 %v11729_v8, %v11729_v8  ;;  %6942 = vtanh.f32 %v3205_v1  ;;  %v1670_v2 = vmul.f32 %v1158_v41, %v11722_v20 }
 0x4a9   : > { %5755 = vst [vmem:[%s7311_s17 + $0xf88] sm:$0xff] %v5243_v49  ;;  %v5245_v58 = vmul.f32 %v4733_v0, %v11624_v43  ;;  %v1671_v4 = vmul.f32 %v1159_v12, %v11725_v38  ;;  %v4734_v32 = vmul.f32 0.5, %v4222_v17  ;;  %v1161_v54 = vmul.f32 %v11739_v33, %v11739_v33 }
 0x4aa   : > { %5756 = vst [vmem:[%s7311_s17 + $0xf90] sm:$0xff] %v5244_v51  ;;  %v1672_v23 = vmul.f32 %v1160_v15, %v11729_v8  ;;  %v2182_v19 = vmul.f32 0.044715, %v1670_v2 }
 0x4ab   : > { %5757 = vst [vmem:[%s7311_s17 + $0xf98] sm:$0xff] %v5245_v58  ;;  %v2183_v47 = vmul.f32 0.044715, %v1671_v4  ;;  %v5246_v40 = vmul.f32 %v4734_v32, %v11627_v25  ;;  %v1673_v43 = vmul.f32 %v1161_v54, %v11739_v33 }
 0x4ac   : > { %v2184_v18 = vmul.f32 0.044715, %v1672_v23  ;;  %v2694_v16 = vadd.f32 %v2182_v19, %v11722_v20 }
 0x4ad   : > { %v2695_v42 = vadd.f32 %v2183_v47, %v11725_v38  ;;  %v6931_v30 = vpop.eup %6930  ;;  %5758 = vst [vmem:[%s7311_s17 + $0xfa0] sm:$0xff] %v5246_v40  ;;  %v2185_v3 = vmul.f32 0.044715, %v1673_v43 }
 0x4ae   : > { %v2696_v59 = vadd.f32 %v2184_v18, %v11729_v8  ;;  %v6933_v56 = vpop.eup %6932  ;;  %v4223_v29 = vadd.f32 1.0, %v6931_v30  ;;  %v3206_v28 = vmul.f32 0.7978846, %v2694_v16 }
 0x4af   : > { %v3207_v22 = vmul.f32 0.7978846, %v2695_v42  ;;  %v6935_v10 = vpop.eup %6934  ;;  %v4224_v55 = vadd.f32 1.0, %v6933_v56  ;;  %v2697_v25 = vadd.f32 %v2185_v3, %v11739_v33 }
 0x4b0   : > { %v3208_v53 = vmul.f32 0.7978846, %v2696_v59  ;;  %v6937_v13 = vpop.eup %6936  ;;  %v4735_v6 = vmul.f32 0.5, %v4223_v29  ;;  %v4225_v24 = vadd.f32 1.0, %v6935_v10  ;;  %6944 = vtanh.f32 %v3206_v28 }
 0x4b1   : > { %v6939_v9 = vpop.eup %6938  ;;  %v4736_v27 = vmul.f32 0.5, %v4224_v55  ;;  %v4226_v52 = vadd.f32 1.0, %v6937_v13  ;;  %6946 = vtanh.f32 %v3207_v22  ;;  %v3209_v11 = vmul.f32 0.7978846, %v2697_v25 }
 0x4b2   : > { %v5247_v26 = vmul.f32 %v4735_v6, %v11658_v62  ;;  %v4737_v37 = vmul.f32 0.5, %v4225_v24  ;;  %v4227_v31 = vadd.f32 1.0, %v6939_v9  ;;  %6948 = vtanh.f32 %v3208_v53 }
 0x4b3   : > { %v5248_v36 = vmul.f32 %v4736_v27, %v11662_v5  ;;  %v4738_v7 = vmul.f32 0.5, %v4226_v52  ;;  %6950 = vtanh.f32 %v3209_v11 }
 0x4b4   : > { %v6941_v48 = vpop.eup %6940  ;;  %5759 = vst [vmem:[%s7311_s17 + $0xfa8] sm:$0xff] %v5247_v26  ;;  %v5249_v61 = vmul.f32 %v4737_v37, %v11667_v63  ;;  %v4739_v35 = vmul.f32 0.5, %v4227_v31 }
 0x4b5   : > { %v6943_v45 = vpop.eup %6942  ;;  %5760 = vst [vmem:[%s7311_s17 + $0xfb0] sm:$0xff] %v5248_v36  ;;  %v5250_v62 = vmul.f32 %v4738_v7, %v11670_v21  ;;  %v4228_v14 = vadd.f32 1.0, %v6941_v48 }
 0x4b6   : > { %5761 = vst [vmem:[%s7311_s17 + $0xfb8] sm:$0xff] %v5249_v61  ;;  %v5251_v60 = vmul.f32 %v4739_v35, %v11677_v57  ;;  %v4229_v44 = vadd.f32 1.0, %v6943_v45 }
 0x4b7   : > { %5762 = vst [vmem:[%s7311_s17 + $0xfc0] sm:$0xff] %v5250_v62  ;;  %v4740_v5 = vmul.f32 0.5, %v4228_v14 }
 0x4b8   : > { %5763 = vst [vmem:[%s7311_s17 + $0xfc8] sm:$0xff] %v5251_v60  ;;  %v4741_v46 = vmul.f32 0.5, %v4229_v44 }
 0x4b9   : > { %v5252_v1 = vmul.f32 %v4740_v5, %v11684_v39 }
 0x4ba   : > { %v5253_v63 = vmul.f32 %v4741_v46, %v11694_v34 }
 0x4bb   : > { %5764 = vst [vmem:[%s7311_s17 + $0xfd0] sm:$0xff] %v5252_v1 }
 0x4bc   : > { %5765 = vst [vmem:[%s7311_s17 + $0xfd8] sm:$0xff] %v5253_v63 }
 0x4bd   : > { %v6945_v50 = vpop.eup %6944 }
 0x4be   : > { %v6947_v21 = vpop.eup %6946  ;;  %v4230_v49 = vadd.f32 1.0, %v6945_v50 }
 0x4bf   : > { %v6949_v0 = vpop.eup %6948  ;;  %v4231_v41 = vadd.f32 1.0, %v6947_v21 }
 0x4c0   : > { %v6951_v57 = vpop.eup %6950  ;;  %v4742_v12 = vmul.f32 0.5, %v4230_v49  ;;  %v4232_v51 = vadd.f32 1.0, %v6949_v0 }
 0x4c1   : > { %v4743_v17 = vmul.f32 0.5, %v4231_v41  ;;  %v4233_v15 = vadd.f32 1.0, %v6951_v57 }
 0x4c2   : > { %v5254_v39 = vmul.f32 %v4742_v12, %v11722_v20  ;;  %v4744_v34 = vmul.f32 0.5, %v4232_v51 }
 0x4c3   : > { %v5255_v58 = vmul.f32 %v4743_v17, %v11725_v38  ;;  %v4745_v2 = vmul.f32 0.5, %v4233_v15 }
 0x4c4   : > { %5766 = vst [vmem:[%s7311_s17 + $0xfe0] sm:$0xff] %v5254_v39  ;;  %v5256_v4 = vmul.f32 %v4744_v34, %v11729_v8 }
 0x4c5   : > { %5767 = vst [vmem:[%s7311_s17 + $0xfe8] sm:$0xff] %v5255_v58  ;;  %v5257_v20 = vmul.f32 %v4745_v2, %v11739_v33 }
 0x4c6   : > { %5768 = vst [vmem:[%s7311_s17 + $0xff0] sm:$0xff] %v5256_v4 }
 0x4c7   : > { %5769 = vst [vmem:[%s7311_s17 + $0xff8] sm:$0xff] %v5257_v20 }
 0x4c8   : > { %6993 = shalt.err (!%p6990_p10)
}
 0x4c9   : > { %s6994_s13 = scalar_lea.hbm %s11784_s2, 65536  ;;  %s6998_s20 = scalar_lea.hbm %s11834_s1, 131072 }
 0x4ca   : > { %p6995_p0 = scmp.ne.s32.totalorder %s11784_s2, %s6994_s13  ;;  %p6999_p1 = scmp.lt.s32.totalorder %s11784_s2, %s11834_s1 }
 0x4cb   : > { %p7000_p3 = scmp.lt.s32.totalorder %s6998_s20, %s6994_s13 }
 0x4cc   : > { %p6996_p2 = pnand %p6995_p0, %p11843_p12 }
 0x4cd   : > { %p7001_p6 = por %p7000_p3, %p6999_p1 }
 0x4ce   : > { %p6997_p9 = pneg %p6996_p2 }
 0x4d0   : > { %p7002_p11 = pnand %p7001_p6, %p6997_p9 }
 0x4d2   : > { %7005 = shalt.err (!%p7002_p11)
}
 0x4d3   : > { %s7050_s24 = smov 4096   ;;  %s7051_s26 = smov 256  }
 0x4d4   : > { %5880 = dma.vmem_to_hbm [thread:$0]  (%p11843_p12), %s11786_s27, 65536, %s11784_s2, %s5771_s10, %s7050_s24, %s7050_s24, %s7051_s26  }
 0x4d5 PF: > { %s5800_s30 = sand.u32 1, %s7032_s6   ;;  %p11844_p13 = scmp.ne.s32.totalorder %s11840_s19, 0 }
 0x4d6   : > { %p11845_p4 = scmp.ge.s32.totalorder %s7044_s9, 2  ;;  %s5801_s17 = scalar_lea.sflag [#allocation4], %s5800_s30 }
 0x4d8   : > { %p5887_p5 = pnand %p11845_p4, %p11844_p13 }
 0x4da   : > { %p5888_p7 = pneg %p5887_p5 }
 0x4dc   : > { %7027 = dma.done.wait (%p5888_p7), %s5801_s17, 65536  }
 0x4dd   : > { %7029 = vsyncadd (%p5888_p7), %s5801_s17, 4294901760  ;;  %p14_p8 = scmp.ge.s32.totalorder %s7087_s12, 4   ;;  %s11846_s6 = smov %s7036_s7 }
 0x4de   : > { %s11847_s7 = smov %s7040_s8  ;;  %s11848_s8 = smov %s7099_s15 }
 0x4df   : > { %s11849_s9 = smov %s7087_s12  ;;  %16 = sbr.rel (!%p14_p8) target bundleno = 5 (0x5), region = 69 }
 0x4e4   :  { %5806 = vsyncpa [#allocation3], 1 }
 0x4e5   :  { %5808 = vsyncpa [#allocation3 + $0x1], 1 }
 0x4e6   :  { %5809 = vsyncpa [#allocation4], 1 }
 0x4e7   :  { %5811 = vsyncpa [#allocation4 + $0x1], 1 }

</bundles_post_ra>
